<compile_context>
chip_gen: v6e
topology: v6e:2x2x1
jax: 0.10.0
libtpu: 0.0.40
codegen_flags: <defaults>
</compile_context>

<pallas_src>
import functools
import math

import jax
import jax.numpy as jnp
from jax import lax
from jax.experimental import pallas as pl
from jax.experimental.pallas import tpu as pltpu

F32 = jnp.float32
BF16 = jnp.bfloat16
DESC_DIM = 256
NEG = -1.0e30                 # "-inf" that stays NaN-free under +/- arithmetic
ATT_ROW_BATCH = 8             # rows of P0 per MXU matmul in the attention kernel


def _detect_vmem_limit():
    """Generation-aware VMEM budget (~85% of physical), safe fallback."""
    try:
        cap = int(pltpu.get_tpu_info().vmem_capacity_bytes)
        if cap > 0:
            return int(cap * 0.85)
    except Exception:
        pass
    return 64 * 1024 * 1024


VMEM_LIMIT = _detect_vmem_limit()
_BIG_VMEM = VMEM_LIMIT >= 96 * 1024 * 1024      # v5e/v6e (128 MiB) vs v7x (64 MiB)
_ROW_CAP = 512 if _BIG_VMEM else 256
_COL_CAP = 1024 if _BIG_VMEM else 512


# --------------------------------------------------------------------------
# padding helpers (coupling matrix is (nA+1, nB+1); keep it (8,128)-aligned)
# --------------------------------------------------------------------------
def _roundup(x, m):
    return ((x + m - 1) // m) * m


def _row_pad(n):
    """Padded row count (incl. dustbin row) and row tile size."""
    m = _roundup(n + 1, 8)
    if m <= _ROW_CAP:
        return m, m
    return _roundup(m, _ROW_CAP), _ROW_CAP


def _col_pad(n):
    """Padded col count (incl. dustbin col) and col tile size."""
    c = _roundup(n + 1, 128)
    if c <= _COL_CAP:
        return c, c
    return _roundup(c, _COL_CAP), _COL_CAP


def _vmem_call(kernel, out_shape, args, vmem_limit=None):
    """Single-invocation pallas_call with every operand resident in VMEM."""
    multi = isinstance(out_shape, (tuple, list))
    n_out = len(out_shape) if multi else 1
    out_specs = tuple(pl.BlockSpec(memory_space=pltpu.MemorySpace.VMEM)
                      for _ in range(n_out))
    if not multi:
        out_specs = out_specs[0]
    compiler_params = None
    if vmem_limit is not None:
        compiler_params = pltpu.CompilerParams(vmem_limit_bytes=vmem_limit)
    return pl.pallas_call(
        kernel,
        out_shape=out_shape,
        in_specs=[pl.BlockSpec(memory_space=pltpu.MemorySpace.VMEM)] * len(args),
        out_specs=out_specs,
        compiler_params=compiler_params,
    )(*args)


# --------------------------------------------------------------------------
# Kernel 0: final_proj (1x1 conv == matmul) fused with attention layer-1 half
# --------------------------------------------------------------------------
def _proj_prep_kernel(d_ref, pw_ref, pb_ref, w1h_ref, b1h_ref, m_ref, p_ref):
    # d: (rows, 256), pw: (256,256) in->out, pb: (1,256)
    m = jnp.dot(d_ref[...], pw_ref[...], preferred_element_type=F32) + pb_ref[...]
    m_ref[...] = m
    # partial product for the attention first Linear (its half of W1)
    p_ref[...] = jnp.dot(m, w1h_ref[...], preferred_element_type=F32) + b1h_ref[...]


# --------------------------------------------------------------------------
# Kernel 1: attention MLP over (i, j) pair tiles, no pair matrix materialized
#   att[i, j] = w3 . relu(W2 . relu(P0[i] + P1[j]) + b2) + b3
# Rows of P0 are processed ATT_ROW_BATCH at a time: one big 2-D MXU matmul and
# one unmasked multi-sublane store per step (review item #1).
# --------------------------------------------------------------------------
def _attention_kernel(p0_ref, p1_ref, w2_ref, b2_ref, w3_ref, b3_ref, att_ref):
    p1 = p1_ref[...]                      # (tj, 256) f32   (already contains b1)
    w2 = w2_ref[...]                      # (256, 64) f32
    b2 = b2_ref[...]                      # (1, 64)   f32
    w3 = w3_ref[...]                      # (1, 64)   f32
    b3 = b3_ref[...]                      # (1, 1)    f32
    ti, tj = att_ref.shape
    g_batch = ATT_ROW_BATCH               # ti is always a multiple of 8

    @pl.loop(0, ti // g_batch)
    def _(g):
        base = pl.multiple_of(g * g_batch, g_batch)
        p0_blk = p0_ref[pl.ds(base, g_batch), :]                       # (G, 256)
        h1 = jnp.maximum(p0_blk[:, None, :] + p1[None, :, :], 0.0)     # (G, tj, 256)
        h1 = h1.reshape(g_batch * tj, DESC_DIM)                        # leading-dim merge
        h2 = jnp.dot(h1, w2, preferred_element_type=F32) + b2          # (G*tj, 64)
        h2 = jnp.maximum(h2, 0.0).reshape(g_batch, tj, 64)
        a = jnp.sum(h2 * w3, axis=-1) + b3                             # (G, tj)
        att_ref[pl.ds(base, g_batch), :] = a.astype(att_ref.dtype)


def _attention_call(p0, p1, pp, m_p, n_p, ti, tj):
    grid = (m_p // ti, n_p // tj)
    return pl.pallas_call(
        _attention_kernel,
        out_shape=jax.ShapeDtypeStruct((m_p, n_p), BF16),      # att stored in bf16
        grid_spec=pltpu.PrefetchScalarGridSpec(
            num_scalar_prefetch=0,
            grid=grid,
            in_specs=[
                pl.BlockSpec((ti, DESC_DIM), lambda i, j: (i, 0)),
                pl.BlockSpec((tj, DESC_DIM), lambda i, j: (j, 0)),
                pl.BlockSpec((DESC_DIM, 64), lambda i, j: (0, 0)),
                pl.BlockSpec((1, 64), lambda i, j: (0, 0)),
                pl.BlockSpec((1, 64), lambda i, j: (0, 0)),
                pl.BlockSpec((1, 1), lambda i, j: (0, 0)),
            ],
            out_specs=pl.BlockSpec((ti, tj), lambda i, j: (i, j)),
        ),
        compiler_params=pltpu.CompilerParams(
            dimension_semantics=("parallel", "parallel"),
            vmem_limit_bytes=VMEM_LIMIT),
    )(p0, p1, pp["att_w2_t"], pp["att_b2"], pp["att_w3_row"], pp["att_b3"])


# --------------------------------------------------------------------------
# Kernel 2a: zA  (row blocks: softmax over j, weighted sum of mdesc1, z-MLP)
# TODO(synk): optionally fuse this into the attention kernel as an online
# (flash-style) softmax over the j grid axis to save one N^2 HBM read of att.
# --------------------------------------------------------------------------
def _zvec_a_kernel(att_ref, m0_ref, m1_ref, w1s_ref, w1d_ref, b1_ref,
                   w2_ref, b2_ref, w3_ref, b3_ref, za_ref, *, n_b):
    att = att_ref[...].astype(F32)                                      # (ti, Np)
    col = lax.broadcasted_iota(jnp.int32, (1, att.shape[1]), 1)
    logits = jnp.where(col < n_b, att, NEG)
    mx = jnp.max(logits, axis=1, keepdims=True)
    e = jnp.exp(logits - mx)
    prob = e * (1.0 / jnp.sum(e, axis=1, keepdims=True))                # (ti, Np)
    zsum = jnp.dot(prob, m1_ref[...], preferred_element_type=F32)       # (ti, 256)
    h = jnp.dot(zsum, w1s_ref[...], preferred_element_type=F32)
    h = h + jnp.dot(m0_ref[...], w1d_ref[...], preferred_element_type=F32)
    h = jnp.maximum(h + b1_ref[...], 0.0)                               # (ti, 256)
    h2 = jnp.maximum(jnp.dot(h, w2_ref[...], preferred_element_type=F32)
                     + b2_ref[...], 0.0)                                # (ti, 64)
    za_ref[...] = jnp.sum(h2 * w3_ref[...], axis=1, keepdims=True) + b3_ref[...]


def _zvec_a_call(att, m0, m1, pp, n_b, m_p, n_p, ti):
    kern = functools.partial(_zvec_a_kernel, n_b=n_b)
    return pl.pallas_call(
        kern,
        out_shape=jax.ShapeDtypeStruct((m_p, 1), F32),
        grid_spec=pltpu.PrefetchScalarGridSpec(
            num_scalar_prefetch=0,
            grid=(m_p // ti,),
            in_specs=[
                pl.BlockSpec((ti, n_p), lambda i: (i, 0)),
                pl.BlockSpec((ti, DESC_DIM), lambda i: (i, 0)),
                pl.BlockSpec((n_p, DESC_DIM), lambda i: (0, 0)),
                pl.BlockSpec((DESC_DIM, DESC_DIM), lambda i: (0, 0)),
                pl.BlockSpec((DESC_DIM, DESC_DIM), lambda i: (0, 0)),
                pl.BlockSpec((1, DESC_DIM), lambda i: (0, 0)),
                pl.BlockSpec((DESC_DIM, 64), lambda i: (0, 0)),
                pl.BlockSpec((1, 64), lambda i: (0, 0)),
                pl.BlockSpec((1, 64), lambda i: (0, 0)),
                pl.BlockSpec((1, 1), lambda i: (0, 0)),
            ],
            out_specs=pl.BlockSpec((ti, 1), lambda i: (i, 0)),
        ),
        compiler_params=pltpu.CompilerParams(
            dimension_semantics=("parallel",),
            vmem_limit_bytes=VMEM_LIMIT),
    )(att, m0, m1, pp["z_w1_sum_t"], pp["z_w1_self_t"], pp["z_b1_row"],
      pp["z_w2_t"], pp["z_b2_row"], pp["z_w3_row"], pp["z_b3"])


# --------------------------------------------------------------------------
# Kernel 2b: zB  (column blocks, column-major math -> no big per-step
#                 transposes; output is directly the (1, Np) dustbin row)
# --------------------------------------------------------------------------
def _zvec_b_kernel(att_ref, m0t_ref, m1_ref, w1s_ref, w1d_ref, b1_ref,
                   w2_ref, b2_ref, w3_ref, b3_ref, zb_ref, *, n_a):
    att = att_ref[...].astype(F32)                                      # (Mp, tj)
    row = lax.broadcasted_iota(jnp.int32, (att.shape[0], 1), 0)
    logits = jnp.where(row < n_a, att, NEG)
    mx = jnp.max(logits, axis=0, keepdims=True)                         # (1, tj)
    e = jnp.exp(logits - mx)
    inv_s = 1.0 / jnp.sum(e, axis=0, keepdims=True)                     # (1, tj)
    zsum = jnp.dot(m0t_ref[...], e, preferred_element_type=F32) * inv_s  # (256, tj)
    h = jnp.dot(w1s_ref[...], zsum, preferred_element_type=F32)
    # "self" branch: z_w1[:, 256:] @ m1_j  as an A @ B^T contraction (no m1.T needed)
    h = h + lax.dot_general(w1d_ref[...], m1_ref[...],
                            (((1,), (1,)), ((), ())),
                            preferred_element_type=F32)                  # (256, tj)
    h = jnp.maximum(h + b1_ref[...], 0.0)
    h2 = jnp.maximum(jnp.dot(w2_ref[...], h, preferred_element_type=F32)
                     + b2_ref[...], 0.0)                                 # (64, tj)
    zb_ref[...] = jnp.sum(h2 * w3_ref[...], axis=0, keepdims=True) + b3_ref[...]


def _zvec_b_call(att, m0t, m1, pp, n_a, m_p, n_p, tj):
    kern = functools.partial(_zvec_b_kernel, n_a=n_a)
    return pl.pallas_call(
        kern,
        out_shape=jax.ShapeDtypeStruct((1, n_p), F32),
        grid_spec=pltpu.PrefetchScalarGridSpec(
            num_scalar_prefetch=0,
            grid=(n_p // tj,),
            in_specs=[
                pl.BlockSpec((m_p, tj), lambda j: (0, j)),
                pl.BlockSpec((DESC_DIM, m_p), lambda j: (0, 0)),
                pl.BlockSpec((tj, DESC_DIM), lambda j: (j, 0)),
                pl.BlockSpec((DESC_DIM, DESC_DIM), lambda j: (0, 0)),
                pl.BlockSpec((DESC_DIM, DESC_DIM), lambda j: (0, 0)),
                pl.BlockSpec((DESC_DIM, 1), lambda j: (0, 0)),
                pl.BlockSpec((64, DESC_DIM), lambda j: (0, 0)),
                pl.BlockSpec((64, 1), lambda j: (0, 0)),
                pl.BlockSpec((64, 1), lambda j: (0, 0)),
                pl.BlockSpec((1, 1), lambda j: (0, 0)),
            ],
            out_specs=pl.BlockSpec((1, tj), lambda j: (0, j)),
        ),
        compiler_params=pltpu.CompilerParams(
            dimension_semantics=("parallel",),
            vmem_limit_bytes=VMEM_LIMIT),
    )(att, m0t, m1, pp["z_w1_sum_l"], pp["z_w1_self_l"], pp["z_b1_col"],
      pp["z_w2_l"], pp["z_b2_col"], pp["z_w3_col"], pp["z_b3"])


# --------------------------------------------------------------------------
# Kernel 3: scores matmul + padded coupling build + log-Sinkhorn + row softmax
# --------------------------------------------------------------------------
def _lse(x, axis):
    m = jnp.max(x, axis=axis, keepdims=True)
    return m + jnp.log(jnp.sum(jnp.exp(x - m), axis=axis, keepdims=True))


def _sinkhorn_kernel(m0_ref, m1_ref, za_ref, zb_ref, out_ref, *, n_a, n_b, iters):
    m_p, n_p = out_ref.shape
    inv = 1.0 / math.sqrt(float(DESC_DIM))

    # scores = m0 @ m1^T / sqrt(d)   (rhs-transposed contraction, no host m1.T)
    scores = lax.dot_general(m0_ref[...], m1_ref[...],
                             (((1,), (1,)), ((), ())),
                             preferred_element_type=F32) * inv           # (Mp, Np)

    row = lax.broadcasted_iota(jnp.int32, (m_p, 1), 0)
    col = lax.broadcasted_iota(jnp.int32, (1, n_p), 1)
    r_real, r_bin = row < n_a, row == n_a
    c_real, c_bin = col < n_b, col == n_b

    # padded, aligned coupling matrix [[scores, zA], [zB, 1]] built in place:
    # one masked select (padding -> NEG), then three small slice patches.
    out_ref[...] = jnp.where(r_real & c_real, scores, NEG)
    out_ref[0:n_a, n_b:n_b + 1] = za_ref[0:n_a, :]
    out_ref[n_a:n_a + 1, 0:n_b] = zb_ref[:, 0:n_b]
    out_ref[n_a:n_a + 1, n_b:n_b + 1] = jnp.ones((1, 1), F32)
    z = out_ref[...]

    norm = -math.log(float(n_a + n_b))
    log_mu = jnp.where(r_real, norm,
                       jnp.where(r_bin, math.log(float(n_b)) + norm, NEG)).astype(F32)
    log_nu = jnp.where(c_real, norm,
                       jnp.where(c_bin, math.log(float(n_a)) + norm, NEG)).astype(F32)

    def body(_, carry):
        u, v = carry
        u = log_mu - _lse(z + v, axis=1)
        v = log_nu - _lse(z + u, axis=0)
        return (u, v)

    u, v = lax.fori_loop(0, iters, body,
                         (jnp.zeros((m_p, 1), F32), jnp.zeros((1, n_p), F32)))

    zf = z + u + v - norm                     # log-OT result (padding stays ~NEG)
    zf = zf - jnp.max(zf, axis=1, keepdims=True)
    e = jnp.exp(zf)
    out_ref[...] = e * (1.0 / jnp.sum(e, axis=1, keepdims=True))  # softmax(dim=2)


# TODO(synk): for very large N on v7x (64 MiB VMEM) the Sinkhorn loop should be
# blocked over row/column passes with Z streamed from HBM; here the padded
# coupling matrix is kept VMEM-resident (fine for the v5e/v6e budget).


# --------------------------------------------------------------------------
# parameters
# --------------------------------------------------------------------------
def init_params(key):
    keys = jax.random.split(key, 14)

    def w(k, shape, scale=0.06):
        return (scale * jax.random.normal(k, shape)).astype(F32)

    return {
        # Conv1d(256, 256, k=1) weight (out, in) and bias
        "proj_w": w(keys[0], (256, 256)), "proj_b": w(keys[1], (256,)),
        # attention: Linear(512,256) -> ReLU -> Linear(256,64) -> ReLU -> Linear(64,1)
        "att_w1": w(keys[2], (256, 512)), "att_b1": w(keys[3], (256,)),
        "att_w2": w(keys[4], (64, 256)),  "att_b2": w(keys[5], (64,)),
        "att_w3": w(keys[6], (1, 64)),    "att_b3": w(keys[7], (1,)),
        # z: Linear(512,256) -> ReLU -> Linear(256,64) -> ReLU -> Linear(64,1)
        "z_w1": w(keys[8], (256, 512)),  "z_b1": w(keys[9], (256,)),
        "z_w2": w(keys[10], (64, 256)),  "z_b2": w(keys[11], (64,)),
        "z_w3": w(keys[12], (1, 64)),    "z_b3": w(keys[13], (1,)),
    }


def prepare_params(params):
    """One-time weight transposes / splits, hoisted out of the per-pair path."""
    w1t = params["att_w1"].T       # (512, 256): rows [0:256] pair with mdesc0
    zw1t = params["z_w1"].T        # (512, 256): rows [0:256] pair with the prob-weighted sum
    return {
        "proj_w_t": params["proj_w"].T.astype(F32),
        "proj_b": params["proj_b"][None, :].astype(F32),
        # attention layer-1 halves (pair matrix eliminated)
        "att_w1_top": w1t[:DESC_DIM].astype(F32),
        "att_w1_bot": w1t[DESC_DIM:].astype(F32),
        "att_b1": params["att_b1"][None, :].astype(F32),
        "att_b1_zero": jnp.zeros((1, DESC_DIM), F32),
        "att_w2_t": params["att_w2"].T.astype(F32),
        "att_b2": params["att_b2"][None, :].astype(F32),
        "att_w3_row": params["att_w3"].astype(F32),              # (1, 64)
        "att_b3": params["att_b3"].reshape(1, 1).astype(F32),
        # z-MLP, row-major form (zA kernel)
        "z_w1_sum_t": zw1t[:DESC_DIM].astype(F32),
        "z_w1_self_t": zw1t[DESC_DIM:].astype(F32),
        "z_b1_row": params["z_b1"][None, :].astype(F32),
        "z_w2_t": params["z_w2"].T.astype(F32),
        "z_b2_row": params["z_b2"][None, :].astype(F32),
        "z_w3_row": params["z_w3"].astype(F32),                  # (1, 64)
        "z_b3": params["z_b3"].reshape(1, 1).astype(F32),
        # z-MLP, column-major form (zB kernel)
        "z_w1_sum_l": params["z_w1"][:, :DESC_DIM].astype(F32),
        "z_w1_self_l": params["z_w1"][:, DESC_DIM:].astype(F32),
        "z_b1_col": params["z_b1"][:, None].astype(F32),
        "z_w2_l": params["z_w2"].astype(F32),
        "z_b2_col": params["z_b2"][:, None].astype(F32),
        "z_w3_col": params["z_w3"].T.astype(F32),                # (64, 1)
    }


# --------------------------------------------------------------------------
# forward
# --------------------------------------------------------------------------
@functools.partial(jax.jit, static_argnums=(3,))
def forward_pair(desc0, desc1, pp, sinkhorn_iterations, match_threshold):
    # desc*: torch-layout (C, n) without batch dim
    if desc0.shape[0] == 128:
        desc0 = jnp.concatenate([desc0, desc0], axis=0)
        desc1 = jnp.concatenate([desc1, desc1], axis=0)
    assert desc0.shape[0] == DESC_DIM and desc1.shape[0] == DESC_DIM

    d0 = desc0.T.astype(F32)        # (nA, 256)
    d1 = desc1.T.astype(F32)        # (nB, 256)
    n_a, n_b = d0.shape[0], d1.shape[0]
    m_p, ti = _row_pad(n_a)         # padded rows of the coupling matrix + row tile
    n_p, tj = _col_pad(n_b)         # padded cols of the coupling matrix + col tile

    d0p = jnp.zeros((m_p, DESC_DIM), F32).at[:n_a, :].set(d0)
    d1p = jnp.zeros((n_p, DESC_DIM), F32).at[:n_b, :].set(d1)

    # fused final_proj (1x1 conv) + attention layer-1 partial products
    m0, p0 = _vmem_call(
        _proj_prep_kernel,
        (jax.ShapeDtypeStruct((m_p, DESC_DIM), F32),
         jax.ShapeDtypeStruct((m_p, DESC_DIM), F32)),
        (d0p, pp["proj_w_t"], pp["proj_b"], pp["att_w1_top"], pp["att_b1_zero"]),
        vmem_limit=VMEM_LIMIT)
    m1, p1 = _vmem_call(
        _proj_prep_kernel,
        (jax.ShapeDtypeStruct((n_p, DESC_DIM), F32),
         jax.ShapeDtypeStruct((n_p, DESC_DIM), F32)),
        (d1p, pp["proj_w_t"], pp["proj_b"], pp["att_w1_bot"], pp["att_b1"]),
        vmem_limit=VMEM_LIMIT)

    # attention logits, tiled and lane-dense (no nA*nB x 512 pair matrix), bf16
    att = _attention_call(p0, p1, pp, m_p, n_p, ti, tj)       # (Mp, Np) bf16

    # one small O(Mp*256) transpose for the column-major zB contraction
    m0t = m0.T                                                 # (256, Mp)

    z_a = _zvec_a_call(att, m0, m1, pp, n_b, m_p, n_p, ti)     # (Mp, 1)
    z_b = _zvec_b_call(att, m0t, m1, pp, n_a, m_p, n_p, tj)    # (1, Np)

    kern = functools.partial(_sinkhorn_kernel, n_a=n_a, n_b=n_b,
                             iters=sinkhorn_iterations)
    z_soft_p = _vmem_call(kern, jax.ShapeDtypeStruct((m_p, n_p), F32),
                          (m0, m1, z_a, z_b), vmem_limit=VMEM_LIMIT)

    scores_pair = z_soft_p[:n_a + 1, :n_b + 1]                 # drop padding

    # ---- mutual-match post-processing (tiny data-dependent gathers, JAX glue) ----
    s = scores_pair[:-1, :-1]
    max0 = jnp.max(s, axis=1)
    idx0 = jnp.argmax(s, axis=1)
    idx1 = jnp.argmax(s, axis=0)
    mutual0 = jnp.arange(n_a) == jnp.take(idx1, idx0)
    mutual1 = jnp.arange(n_b) == jnp.take(idx0, idx1)
    zero = jnp.float32(0.0)
    # NOTE: faithful to the reference, which exp()s already-softmaxed scores.
    mscores0 = jnp.where(mutual0, jnp.exp(max0), zero)
    mscores1 = jnp.where(mutual1, jnp.take(mscores0, idx1), zero)
    valid0 = mutual0 & (mscores0 > match_threshold)
    valid1 = mutual1 & jnp.take(valid0, idx1)
    matches0 = jnp.where(valid0, idx0, -1)
    matches1 = jnp.where(valid1, idx1, -1)

    # TODO(synk): the reference's `self.bin_score = zA.mean()` side effect is not
    # reproduced (it does not feed any forward() output).
    return {
        "matches0": matches0[None],
        "matches1": matches1[None],
        "matches_scores0": mscores0[None],
        "matches_scores1": mscores1[None],
        "scores": scores_pair,
    }


def sinkhorn_wzatt_forward(data, params, config):
    pp = prepare_params(params)
    output = {"matches0": [], "matches1": [], "matches_scores0": [],
              "matches_scores1": [], "scores": []}
    batch = data["descriptors0"].shape[0]
    for b in range(batch):
        out_b = forward_pair(data["descriptors0"][b], data["descriptors1"][b], pp,
                             config["sinkhorn_iterations"], config["match_threshold"])
        for k in output:
            output[k].append(out_b[k])
    return output


if __name__ == "__main__":
    key = jax.random.PRNGKey(0)
    pkey, d0key, d1key = jax.random.split(key, 3)
    params = init_params(pkey)
    config = {"sinkhorn_iterations": 10, "match_threshold": 0.2}

    B, n_a, n_b = 2, 8, 16
    data = {
        "descriptors0": jax.random.normal(d0key, (B, DESC_DIM, n_a), F32),
        "descriptors1": jax.random.normal(d1key, (B, DESC_DIM, n_b), F32),
    }

    output = sinkhorn_wzatt_forward(data, params, config)
    jax.block_until_ready(output["scores"][-1])
    jax.block_until_ready(output["matches0"][-1])
    print("KERNEL_OK")
</pallas_src>

<mosaic_0001>
module attributes {stable_mosaic.version = 11 : i64} {
  func.func @_proj_prep_kernel(%arg0: memref<128x256xf32, #tpu.memory_space<vmem>>, %arg1: memref<256x256xf32, #tpu.memory_space<vmem>>, %arg2: memref<1x256xf32, #tpu.memory_space<vmem>>, %arg3: memref<256x256xf32, #tpu.memory_space<vmem>>, %arg4: memref<1x256xf32, #tpu.memory_space<vmem>>, %arg5: memref<128x256xf32, #tpu.memory_space<vmem>>, %arg6: memref<128x256xf32, #tpu.memory_space<vmem>>) attributes {dimension_semantics = [], scalar_prefetch = 0 : i64, scratch_operands = 0 : i64, tpu.core_type = #tpu.core_type<tc>} {
    %c0 = arith.constant 0 : index
    %c0_0 = arith.constant 0 : index
    %0 = vector.load %arg0[%c0, %c0_0] : memref<128x256xf32, #tpu.memory_space<vmem>>, vector<128x256xf32>
    %c0_1 = arith.constant 0 : index
    %c0_2 = arith.constant 0 : index
    %1 = vector.load %arg1[%c0_1, %c0_2] : memref<256x256xf32, #tpu.memory_space<vmem>>, vector<256x256xf32>
    %cst = arith.constant dense<0.000000e+00> : vector<128x256xf32>
    %2 = tpu.matmul %0, %1, %cst {dimension_numbers = #tpu.dot_dimension_numbers<[1], [0], [0], [1], [0, 0, 1, 1], [], []>} : vector<128x256xf32>, vector<256x256xf32>, vector<128x256xf32> -> vector<128x256xf32>
    %c0_3 = arith.constant 0 : index
    %c0_4 = arith.constant 0 : index
    %3 = vector.load %arg2[%c0_3, %c0_4] : memref<1x256xf32, #tpu.memory_space<vmem>>, vector<1x256xf32>
    %4 = vector.broadcast %3 : vector<1x256xf32> to vector<128x256xf32>
    %5 = arith.addf %2, %4 : vector<128x256xf32>
    %c0_5 = arith.constant 0 : index
    %c0_6 = arith.constant 0 : index
    %6 = vector.load %arg5[%c0_5, %c0_6] : memref<128x256xf32, #tpu.memory_space<vmem>>, vector<128x256xf32>
    tpu.vector_store %arg5[%c0_5, %c0_6], %5 {strides = array<i32>} : memref<128x256xf32, #tpu.memory_space<vmem>>, vector<128x256xf32>,
    %c0_7 = arith.constant 0 : index
    %c0_8 = arith.constant 0 : index
    %7 = vector.load %arg3[%c0_7, %c0_8] : memref<256x256xf32, #tpu.memory_space<vmem>>, vector<256x256xf32>
    %cst_9 = arith.constant dense<0.000000e+00> : vector<128x256xf32>
    %8 = tpu.matmul %5, %7, %cst_9 {dimension_numbers = #tpu.dot_dimension_numbers<[1], [0], [0], [1], [0, 0, 1, 1], [], []>} : vector<128x256xf32>, vector<256x256xf32>, vector<128x256xf32> -> vector<128x256xf32>
    %c0_10 = arith.constant 0 : index
    %c0_11 = arith.constant 0 : index
    %9 = vector.load %arg4[%c0_10, %c0_11] : memref<1x256xf32, #tpu.memory_space<vmem>>, vector<1x256xf32>
    %10 = vector.broadcast %9 : vector<1x256xf32> to vector<128x256xf32>
    %11 = arith.addf %8, %10 : vector<128x256xf32>
    %c0_12 = arith.constant 0 : index
    %c0_13 = arith.constant 0 : index
    %12 = vector.load %arg6[%c0_12, %c0_13] : memref<128x256xf32, #tpu.memory_space<vmem>>, vector<128x256xf32>
    tpu.vector_store %arg6[%c0_12, %c0_13], %11 {strides = array<i32>} : memref<128x256xf32, #tpu.memory_space<vmem>>, vector<128x256xf32>,
    return
  }
}

module attributes {stable_mosaic.version = 11 : i64} {
  func.func @_proj_prep_kernel(%arg0: memref<16x256xf32, #tpu.memory_space<vmem>>, %arg1: memref<256x256xf32, #tpu.memory_space<vmem>>, %arg2: memref<1x256xf32, #tpu.memory_space<vmem>>, %arg3: memref<256x256xf32, #tpu.memory_space<vmem>>, %arg4: memref<1x256xf32, #tpu.memory_space<vmem>>, %arg5: memref<16x256xf32, #tpu.memory_space<vmem>>, %arg6: memref<16x256xf32, #tpu.memory_space<vmem>>) attributes {dimension_semantics = [], scalar_prefetch = 0 : i64, scratch_operands = 0 : i64, tpu.core_type = #tpu.core_type<tc>} {
    %c0 = arith.constant 0 : index
    %c0_0 = arith.constant 0 : index
    %0 = vector.load %arg0[%c0, %c0_0] : memref<16x256xf32, #tpu.memory_space<vmem>>, vector<16x256xf32>
    %c0_1 = arith.constant 0 : index
    %c0_2 = arith.constant 0 : index
    %1 = vector.load %arg1[%c0_1, %c0_2] : memref<256x256xf32, #tpu.memory_space<vmem>>, vector<256x256xf32>
    %cst = arith.constant dense<0.000000e+00> : vector<16x256xf32>
    %2 = tpu.matmul %0, %1, %cst {dimension_numbers = #tpu.dot_dimension_numbers<[1], [0], [0], [1], [0, 0, 1, 1], [], []>} : vector<16x256xf32>, vector<256x256xf32>, vector<16x256xf32> -> vector<16x256xf32>
    %c0_3 = arith.constant 0 : index
    %c0_4 = arith.constant 0 : index
    %3 = vector.load %arg2[%c0_3, %c0_4] : memref<1x256xf32, #tpu.memory_space<vmem>>, vector<1x256xf32>
    %4 = vector.broadcast %3 : vector<1x256xf32> to vector<16x256xf32>
    %5 = arith.addf %2, %4 : vector<16x256xf32>
    %c0_5 = arith.constant 0 : index
    %c0_6 = arith.constant 0 : index
    %6 = vector.load %arg5[%c0_5, %c0_6] : memref<16x256xf32, #tpu.memory_space<vmem>>, vector<16x256xf32>
    tpu.vector_store %arg5[%c0_5, %c0_6], %5 {strides = array<i32>} : memref<16x256xf32, #tpu.memory_space<vmem>>, vector<16x256xf32>,
    %c0_7 = arith.constant 0 : index
    %c0_8 = arith.constant 0 : index
    %7 = vector.load %arg3[%c0_7, %c0_8] : memref<256x256xf32, #tpu.memory_space<vmem>>, vector<256x256xf32>
    %cst_9 = arith.constant dense<0.000000e+00> : vector<16x256xf32>
    %8 = tpu.matmul %5, %7, %cst_9 {dimension_numbers = #tpu.dot_dimension_numbers<[1], [0], [0], [1], [0, 0, 1, 1], [], []>} : vector<16x256xf32>, vector<256x256xf32>, vector<16x256xf32> -> vector<16x256xf32>
    %c0_10 = arith.constant 0 : index
    %c0_11 = arith.constant 0 : index
    %9 = vector.load %arg4[%c0_10, %c0_11] : memref<1x256xf32, #tpu.memory_space<vmem>>, vector<1x256xf32>
    %10 = vector.broadcast %9 : vector<1x256xf32> to vector<16x256xf32>
    %11 = arith.addf %8, %10 : vector<16x256xf32>
    %c0_12 = arith.constant 0 : index
    %c0_13 = arith.constant 0 : index
    %12 = vector.load %arg6[%c0_12, %c0_13] : memref<16x256xf32, #tpu.memory_space<vmem>>, vector<16x256xf32>
    tpu.vector_store %arg6[%c0_12, %c0_13], %11 {strides = array<i32>} : memref<16x256xf32, #tpu.memory_space<vmem>>, vector<16x256xf32>,
    return
  }
}

module attributes {stable_mosaic.version = 11 : i64} {
  func.func @_attention_kernel(%arg0: i32, %arg1: i32, %arg2: memref<16x256xf32, #tpu.memory_space<vmem>>, %arg3: memref<128x256xf32, #tpu.memory_space<vmem>>, %arg4: memref<256x64xf32, #tpu.memory_space<vmem>>, %arg5: memref<1x64xf32, #tpu.memory_space<vmem>>, %arg6: memref<1x64xf32, #tpu.memory_space<vmem>>, %arg7: memref<1x1xf32, #tpu.memory_space<vmem>>, %arg8: memref<16x128xbf16, #tpu.memory_space<vmem>>) attributes {dimension_semantics = [#tpu.dimension_semantics<parallel>, #tpu.dimension_semantics<parallel>], iteration_bounds = array<i64: 1, 1>, scalar_prefetch = 0 : i64, scratch_operands = 0 : i64, tpu.core_type = #tpu.core_type<tc>, window_params = [{transform_indices = @transform_0, window_bounds = array<i64: 16, 256>}, {transform_indices = @transform_1, window_bounds = array<i64: 128, 256>}, {pipeline_mode = #tpu.pipeline_mode<synchronous>, transform_indices = @transform_2, window_bounds = array<i64: 256, 64>}, {pipeline_mode = #tpu.pipeline_mode<synchronous>, transform_indices = @transform_3, window_bounds = array<i64: 1, 64>}, {pipeline_mode = #tpu.pipeline_mode<synchronous>, transform_indices = @transform_4, window_bounds = array<i64: 1, 64>}, {pipeline_mode = #tpu.pipeline_mode<synchronous>, transform_indices = @transform_5, window_bounds = array<i64: 1, 1>}, {transform_indices = @transform_6, window_bounds = array<i64: 16, 128>}]} {
    %c0 = arith.constant 0 : index
    %c0_0 = arith.constant 0 : index
    %0 = vector.load %arg3[%c0, %c0_0] : memref<128x256xf32, #tpu.memory_space<vmem>>, vector<128x256xf32>
    %c0_1 = arith.constant 0 : index
    %c0_2 = arith.constant 0 : index
    %1 = vector.load %arg4[%c0_1, %c0_2] : memref<256x64xf32, #tpu.memory_space<vmem>>, vector<256x64xf32>
    %c0_3 = arith.constant 0 : index
    %c0_4 = arith.constant 0 : index
    %2 = vector.load %arg5[%c0_3, %c0_4] : memref<1x64xf32, #tpu.memory_space<vmem>>, vector<1x64xf32>
    %c0_5 = arith.constant 0 : index
    %c0_6 = arith.constant 0 : index
    %3 = vector.load %arg6[%c0_5, %c0_6] : memref<1x64xf32, #tpu.memory_space<vmem>>, vector<1x64xf32>
    %c0_7 = arith.constant 0 : index
    %c0_8 = arith.constant 0 : index
    %4 = vector.load %arg7[%c0_7, %c0_8] : memref<1x1xf32, #tpu.memory_space<vmem>>, vector<1x1xf32>
    %c0_i32 = arith.constant 0 : i32
    %c2_i32 = arith.constant 2 : i32
    %5 = arith.addi %c0_i32, %c2_i32 : i32
    %c1_i32 = arith.constant 1 : i32
    scf.for %arg9 = %c0_i32 to %5 step %c1_i32  : i32 {
      %c1_i32_10 = arith.constant 1 : i32
      %6 = arith.muli %arg9, %c1_i32_10 : i32
      %c0_i32_11 = arith.constant 0 : i32
      %7 = arith.addi %c0_i32_11, %6 : i32
      %c8_i32 = arith.constant 8 : i32
      %8 = arith.muli %7, %c8_i32 : i32
      %9 = tpu.assume_multiple %8, 8 : i32
      %10 = arith.index_cast %9 : i32 to index
      %c0_12 = arith.constant 0 : index
      %11 = vector.load %arg2[%10, %c0_12] : memref<16x256xf32, #tpu.memory_space<vmem>>, vector<8x256xf32>
      %12 = vector.shape_cast %11 : vector<8x256xf32> to vector<8x1x256xf32>
      %13 = vector.shape_cast %0 : vector<128x256xf32> to vector<1x128x256xf32>
      %14 = vector.broadcast %12 : vector<8x1x256xf32> to vector<8x128x256xf32>
      %15 = vector.broadcast %13 : vector<1x128x256xf32> to vector<8x128x256xf32>
      %16 = arith.addf %14, %15 : vector<8x128x256xf32>
      %cst = arith.constant 0.000000e+00 : f32
      %17 = vector.broadcast %cst : f32 to vector<8x128x256xf32>
      %18 = arith.maximumf %16, %17 : vector<8x128x256xf32>
      %19 = vector.shape_cast %18 : vector<8x128x256xf32> to vector<1024x256xf32>
      %cst_13 = arith.constant dense<0.000000e+00> : vector<1024x64xf32>
      %20 = tpu.matmul %19, %1, %cst_13 {dimension_numbers = #tpu.dot_dimension_numbers<[1], [0], [0], [1], [0, 0, 1, 1], [], []>} : vector<1024x256xf32>, vector<256x64xf32>, vector<1024x64xf32> -> vector<1024x64xf32>
      %21 = vector.broadcast %2 : vector<1x64xf32> to vector<1024x64xf32>
      %22 = arith.addf %20, %21 : vector<1024x64xf32>
      %cst_14 = arith.constant 0.000000e+00 : f32
      %23 = vector.broadcast %cst_14 : f32 to vector<1024x64xf32>
      %24 = arith.maximumf %22, %23 : vector<1024x64xf32>
      %25 = vector.shape_cast %24 : vector<1024x64xf32> to vector<8x128x64xf32>
      %26 = vector.shape_cast %3 : vector<1x64xf32> to vector<1x1x64xf32>
      %27 = vector.broadcast %26 : vector<1x1x64xf32> to vector<8x128x64xf32>
      %28 = arith.mulf %25, %27 : vector<8x128x64xf32>
      %cst_15 = arith.constant dense<0.000000e+00> : vector<8x128xf32>
      %29 = vector.multi_reduction <add>, %28, %cst_15 [2] : vector<8x128x64xf32> to vector<8x128xf32>
      %30 = vector.broadcast %4 : vector<1x1xf32> to vector<8x128xf32>
      %31 = arith.addf %29, %30 : vector<8x128xf32>
      %32 = arith.truncf %31 : vector<8x128xf32> to vector<8x128xbf16>
      %33 = arith.index_cast %9 : i32 to index
      %c0_16 = arith.constant 0 : index
      %34 = vector.load %arg8[%33, %c0_16] : memref<16x128xbf16, #tpu.memory_space<vmem>>, vector<8x128xbf16>
      tpu.vector_store %arg8[%33, %c0_16], %32 {strides = array<i32>} : memref<16x128xbf16, #tpu.memory_space<vmem>>, vector<8x128xbf16>,
    }
    %c2_i32_9 = arith.constant 2 : i32
    return
  }
  func.func @transform_0(%arg0: i32, %arg1: i32) -> (i32, i32) {
    %c0_i32 = arith.constant 0 : i32
    %c0_i32_0 = arith.constant 0 : i32
    return %arg0, %c0_i32 : i32, i32
  }
  func.func @transform_1(%arg0: i32, %arg1: i32) -> (i32, i32) {
    %c0_i32 = arith.constant 0 : i32
    %c0_i32_0 = arith.constant 0 : i32
    return %arg1, %c0_i32 : i32, i32
  }
  func.func @transform_2(%arg0: i32, %arg1: i32) -> (i32, i32) {
    %c0_i32 = arith.constant 0 : i32
    %c0_i32_0 = arith.constant 0 : i32
    %c0_i32_1 = arith.constant 0 : i32
    return %c0_i32, %c0_i32_0 : i32, i32
  }
  func.func @transform_3(%arg0: i32, %arg1: i32) -> (i32, i32) {
    %c0_i32 = arith.constant 0 : i32
    %c0_i32_0 = arith.constant 0 : i32
    %c0_i32_1 = arith.constant 0 : i32
    return %c0_i32, %c0_i32_0 : i32, i32
  }
  func.func @transform_4(%arg0: i32, %arg1: i32) -> (i32, i32) {
    %c0_i32 = arith.constant 0 : i32
    %c0_i32_0 = arith.constant 0 : i32
    %c0_i32_1 = arith.constant 0 : i32
    return %c0_i32, %c0_i32_0 : i32, i32
  }
  func.func @transform_5(%arg0: i32, %arg1: i32) -> (i32, i32) {
    %c0_i32 = arith.constant 0 : i32
    %c0_i32_0 = arith.constant 0 : i32
    %c0_i32_1 = arith.constant 0 : i32
    return %c0_i32, %c0_i32_0 : i32, i32
  }
  func.func @transform_6(%arg0: i32, %arg1: i32) -> (i32, i32) {
    %c0_i32 = arith.constant 0 : i32
    return %arg0, %arg1 : i32, i32
  }
}

module attributes {stable_mosaic.version = 11 : i64} {
  func.func @_zvec_b_kernel(%arg0: i32, %arg1: memref<16x128xbf16, #tpu.memory_space<vmem>>, %arg2: memref<256x16xf32, #tpu.memory_space<vmem>>, %arg3: memref<128x256xf32, #tpu.memory_space<vmem>>, %arg4: memref<256x256xf32, #tpu.memory_space<vmem>>, %arg5: memref<256x256xf32, #tpu.memory_space<vmem>>, %arg6: memref<256x1xf32, #tpu.memory_space<vmem>>, %arg7: memref<64x256xf32, #tpu.memory_space<vmem>>, %arg8: memref<64x1xf32, #tpu.memory_space<vmem>>, %arg9: memref<64x1xf32, #tpu.memory_space<vmem>>, %arg10: memref<1x1xf32, #tpu.memory_space<vmem>>, %arg11: memref<1x128xf32, #tpu.memory_space<vmem>>) attributes {dimension_semantics = [#tpu.dimension_semantics<parallel>], iteration_bounds = array<i64: 1>, scalar_prefetch = 0 : i64, scratch_operands = 0 : i64, tpu.core_type = #tpu.core_type<tc>, window_params = [{transform_indices = @transform_0, window_bounds = array<i64: 16, 128>}, {pipeline_mode = #tpu.pipeline_mode<synchronous>, transform_indices = @transform_1, window_bounds = array<i64: 256, 16>}, {transform_indices = @transform_2, window_bounds = array<i64: 128, 256>}, {pipeline_mode = #tpu.pipeline_mode<synchronous>, transform_indices = @transform_3, window_bounds = array<i64: 256, 256>}, {pipeline_mode = #tpu.pipeline_mode<synchronous>, transform_indices = @transform_4, window_bounds = array<i64: 256, 256>}, {pipeline_mode = #tpu.pipeline_mode<synchronous>, transform_indices = @transform_5, window_bounds = array<i64: 256, 1>}, {pipeline_mode = #tpu.pipeline_mode<synchronous>, transform_indices = @transform_6, window_bounds = array<i64: 64, 256>}, {pipeline_mode = #tpu.pipeline_mode<synchronous>, transform_indices = @transform_7, window_bounds = array<i64: 64, 1>}, {pipeline_mode = #tpu.pipeline_mode<synchronous>, transform_indices = @transform_8, window_bounds = array<i64: 64, 1>}, {pipeline_mode = #tpu.pipeline_mode<synchronous>, transform_indices = @transform_9, window_bounds = array<i64: 1, 1>}, {transform_indices = @transform_10, window_bounds = array<i64: 1, 128>}]} {
    %c0 = arith.constant 0 : index
    %c0_0 = arith.constant 0 : index
    %0 = vector.load %arg1[%c0, %c0_0] : memref<16x128xbf16, #tpu.memory_space<vmem>>, vector<16x128xbf16>
    %1 = arith.extf %0 : vector<16x128xbf16> to vector<16x128xf32>
    %2 = tpu.iota {dimensions = array<i32: 0>} : vector<16x1xi32>
    %c8_i32 = arith.constant 8 : i32
    %3 = vector.broadcast %c8_i32 : i32 to vector<16x1xi32>
    %4 = arith.cmpi slt, %2, %3 : vector<16x1xi32>
    %cst = arith.constant -1.000000e+30 : f32
    %5 = vector.shape_cast %4 : vector<16x1xi1> to vector<16x1xi1>
    %6 = vector.broadcast %5 : vector<16x1xi1> to vector<16x128xi1>
    %7 = vector.broadcast %cst : f32 to vector<16x128xf32>
    %8 = arith.select %6, %1, %7 : vector<16x128xi1>, vector<16x128xf32>
    %cst_1 = arith.constant dense<0xFF800000> : vector<128xf32>
    %9 = vector.multi_reduction <maximumf>, %8, %cst_1 [0] : vector<16x128xf32> to vector<128xf32>
    %10 = vector.shape_cast %9 : vector<128xf32> to vector<1x128xf32>
    %11 = vector.broadcast %10 : vector<1x128xf32> to vector<16x128xf32>
    %12 = arith.subf %8, %11 : vector<16x128xf32>
    %13 = math.exp %12 : vector<16x128xf32>
    %cst_2 = arith.constant dense<0.000000e+00> : vector<128xf32>
    %14 = vector.multi_reduction <add>, %13, %cst_2 [0] : vector<16x128xf32> to vector<128xf32>
    %15 = vector.shape_cast %14 : vector<128xf32> to vector<1x128xf32>
    %cst_3 = arith.constant 1.000000e+00 : f32
    %16 = vector.broadcast %cst_3 : f32 to vector<1x128xf32>
    %17 = arith.divf %16, %15 : vector<1x128xf32>
    %c0_4 = arith.constant 0 : index
    %c0_5 = arith.constant 0 : index
    %18 = vector.load %arg2[%c0_4, %c0_5] : memref<256x16xf32, #tpu.memory_space<vmem>>, vector<256x16xf32>
    %cst_6 = arith.constant dense<0.000000e+00> : vector<256x128xf32>
    %19 = tpu.matmul %18, %13, %cst_6 {dimension_numbers = #tpu.dot_dimension_numbers<[1], [0], [0], [1], [0, 0, 1, 1], [], []>} : vector<256x16xf32>, vector<16x128xf32>, vector<256x128xf32> -> vector<256x128xf32>
    %20 = vector.broadcast %17 : vector<1x128xf32> to vector<256x128xf32>
    %21 = arith.mulf %19, %20 : vector<256x128xf32>
    %c0_7 = arith.constant 0 : index
    %c0_8 = arith.constant 0 : index
    %22 = vector.load %arg4[%c0_7, %c0_8] : memref<256x256xf32, #tpu.memory_space<vmem>>, vector<256x256xf32>
    %cst_9 = arith.constant dense<0.000000e+00> : vector<256x128xf32>
    %23 = tpu.matmul %22, %21, %cst_9 {dimension_numbers = #tpu.dot_dimension_numbers<[1], [0], [0], [1], [0, 0, 1, 1], [], []>} : vector<256x256xf32>, vector<256x128xf32>, vector<256x128xf32> -> vector<256x128xf32>
    %c0_10 = arith.constant 0 : index
    %c0_11 = arith.constant 0 : index
    %24 = vector.load %arg5[%c0_10, %c0_11] : memref<256x256xf32, #tpu.memory_space<vmem>>, vector<256x256xf32>
    %c0_12 = arith.constant 0 : index
    %c0_13 = arith.constant 0 : index
    %25 = vector.load %arg3[%c0_12, %c0_13] : memref<128x256xf32, #tpu.memory_space<vmem>>, vector<128x256xf32>
    %cst_14 = arith.constant dense<0.000000e+00> : vector<256x128xf32>
    %26 = tpu.matmul %24, %25, %cst_14 {dimension_numbers = #tpu.dot_dimension_numbers<[1], [1], [0], [0], [0, 0, 1, 0], [], []>} : vector<256x256xf32>, vector<128x256xf32>, vector<256x128xf32> -> vector<256x128xf32>
    %27 = arith.addf %23, %26 : vector<256x128xf32>
    %c0_15 = arith.constant 0 : index
    %c0_16 = arith.constant 0 : index
    %28 = vector.load %arg6[%c0_15, %c0_16] : memref<256x1xf32, #tpu.memory_space<vmem>>, vector<256x1xf32>
    %29 = vector.broadcast %28 : vector<256x1xf32> to vector<256x128xf32>
    %30 = arith.addf %27, %29 : vector<256x128xf32>
    %cst_17 = arith.constant 0.000000e+00 : f32
    %31 = vector.broadcast %cst_17 : f32 to vector<256x128xf32>
    %32 = arith.maximumf %30, %31 : vector<256x128xf32>
    %c0_18 = arith.constant 0 : index
    %c0_19 = arith.constant 0 : index
    %33 = vector.load %arg7[%c0_18, %c0_19] : memref<64x256xf32, #tpu.memory_space<vmem>>, vector<64x256xf32>
    %cst_20 = arith.constant dense<0.000000e+00> : vector<64x128xf32>
    %34 = tpu.matmul %33, %32, %cst_20 {dimension_numbers = #tpu.dot_dimension_numbers<[1], [0], [0], [1], [0, 0, 1, 1], [], []>} : vector<64x256xf32>, vector<256x128xf32>, vector<64x128xf32> -> vector<64x128xf32>
    %c0_21 = arith.constant 0 : index
    %c0_22 = arith.constant 0 : index
    %35 = vector.load %arg8[%c0_21, %c0_22] : memref<64x1xf32, #tpu.memory_space<vmem>>, vector<64x1xf32>
    %36 = vector.broadcast %35 : vector<64x1xf32> to vector<64x128xf32>
    %37 = arith.addf %34, %36 : vector<64x128xf32>
    %cst_23 = arith.constant 0.000000e+00 : f32
    %38 = vector.broadcast %cst_23 : f32 to vector<64x128xf32>
    %39 = arith.maximumf %37, %38 : vector<64x128xf32>
    %c0_24 = arith.constant 0 : index
    %c0_25 = arith.constant 0 : index
    %40 = vector.load %arg9[%c0_24, %c0_25] : memref<64x1xf32, #tpu.memory_space<vmem>>, vector<64x1xf32>
    %41 = vector.broadcast %40 : vector<64x1xf32> to vector<64x128xf32>
    %42 = arith.mulf %39, %41 : vector<64x128xf32>
    %cst_26 = arith.constant dense<0.000000e+00> : vector<128xf32>
    %43 = vector.multi_reduction <add>, %42, %cst_26 [0] : vector<64x128xf32> to vector<128xf32>
    %44 = vector.shape_cast %43 : vector<128xf32> to vector<1x128xf32>
    %c0_27 = arith.constant 0 : index
    %c0_28 = arith.constant 0 : index
    %45 = vector.load %arg10[%c0_27, %c0_28] : memref<1x1xf32, #tpu.memory_space<vmem>>, vector<1x1xf32>
    %46 = vector.broadcast %45 : vector<1x1xf32> to vector<1x128xf32>
    %47 = arith.addf %44, %46 : vector<1x128xf32>
    %c0_29 = arith.constant 0 : index
    %c0_30 = arith.constant 0 : index
    %48 = vector.load %arg11[%c0_29, %c0_30] : memref<1x128xf32, #tpu.memory_space<vmem>>, vector<1x128xf32>
    tpu.vector_store %arg11[%c0_29, %c0_30], %47 {strides = array<i32>} : memref<1x128xf32, #tpu.memory_space<vmem>>, vector<1x128xf32>,
    return
  }
  func.func @transform_0(%arg0: i32) -> (i32, i32) {
    %c0_i32 = arith.constant 0 : i32
    %c0_i32_0 = arith.constant 0 : i32
    return %c0_i32, %arg0 : i32, i32
  }
  func.func @transform_1(%arg0: i32) -> (i32, i32) {
    %c0_i32 = arith.constant 0 : i32
    %c0_i32_0 = arith.constant 0 : i32
    %c0_i32_1 = arith.constant 0 : i32
    return %c0_i32, %c0_i32_0 : i32, i32
  }
  func.func @transform_2(%arg0: i32) -> (i32, i32) {
    %c0_i32 = arith.constant 0 : i32
    %c0_i32_0 = arith.constant 0 : i32
    return %arg0, %c0_i32 : i32, i32
  }
  func.func @transform_3(%arg0: i32) -> (i32, i32) {
    %c0_i32 = arith.constant 0 : i32
    %c0_i32_0 = arith.constant 0 : i32
    %c0_i32_1 = arith.constant 0 : i32
    return %c0_i32, %c0_i32_0 : i32, i32
  }
  func.func @transform_4(%arg0: i32) -> (i32, i32) {
    %c0_i32 = arith.constant 0 : i32
    %c0_i32_0 = arith.constant 0 : i32
    %c0_i32_1 = arith.constant 0 : i32
    return %c0_i32, %c0_i32_0 : i32, i32
  }
  func.func @transform_5(%arg0: i32) -> (i32, i32) {
    %c0_i32 = arith.constant 0 : i32
    %c0_i32_0 = arith.constant 0 : i32
    %c0_i32_1 = arith.constant 0 : i32
    return %c0_i32, %c0_i32_0 : i32, i32
  }
  func.func @transform_6(%arg0: i32) -> (i32, i32) {
    %c0_i32 = arith.constant 0 : i32
    %c0_i32_0 = arith.constant 0 : i32
    %c0_i32_1 = arith.constant 0 : i32
    return %c0_i32, %c0_i32_0 : i32, i32
  }
  func.func @transform_7(%arg0: i32) -> (i32, i32) {
    %c0_i32 = arith.constant 0 : i32
    %c0_i32_0 = arith.constant 0 : i32
    %c0_i32_1 = arith.constant 0 : i32
    return %c0_i32, %c0_i32_0 : i32, i32
  }
  func.func @transform_8(%arg0: i32) -> (i32, i32) {
    %c0_i32 = arith.constant 0 : i32
    %c0_i32_0 = arith.constant 0 : i32
    %c0_i32_1 = arith.constant 0 : i32
    return %c0_i32, %c0_i32_0 : i32, i32
  }
  func.func @transform_9(%arg0: i32) -> (i32, i32) {
    %c0_i32 = arith.constant 0 : i32
    %c0_i32_0 = arith.constant 0 : i32
    %c0_i32_1 = arith.constant 0 : i32
    return %c0_i32, %c0_i32_0 : i32, i32
  }
  func.func @transform_10(%arg0: i32) -> (i32, i32) {
    %c0_i32 = arith.constant 0 : i32
    %c0_i32_0 = arith.constant 0 : i32
    return %c0_i32, %arg0 : i32, i32
  }
}

module attributes {stable_mosaic.version = 11 : i64} {
  func.func @_sinkhorn_kernel(%arg0: memref<16x256xf32, #tpu.memory_space<vmem>>, %arg1: memref<128x256xf32, #tpu.memory_space<vmem>>, %arg2: memref<16x1xf32, #tpu.memory_space<vmem>>, %arg3: memref<1x128xf32, #tpu.memory_space<vmem>>, %arg4: memref<16x128xf32, #tpu.memory_space<vmem>>) attributes {dimension_semantics = [], scalar_prefetch = 0 : i64, scratch_operands = 0 : i64, tpu.core_type = #tpu.core_type<tc>} {
    %c0 = arith.constant 0 : index
    %c0_0 = arith.constant 0 : index
    %0 = vector.load %arg0[%c0, %c0_0] : memref<16x256xf32, #tpu.memory_space<vmem>>, vector<16x256xf32>
    %c0_1 = arith.constant 0 : index
    %c0_2 = arith.constant 0 : index
    %1 = vector.load %arg1[%c0_1, %c0_2] : memref<128x256xf32, #tpu.memory_space<vmem>>, vector<128x256xf32>
    %cst = arith.constant dense<0.000000e+00> : vector<16x128xf32>
    %2 = tpu.matmul %0, %1, %cst {dimension_numbers = #tpu.dot_dimension_numbers<[1], [1], [0], [0], [0, 0, 1, 0], [], []>} : vector<16x256xf32>, vector<128x256xf32>, vector<16x128xf32> -> vector<16x128xf32>
    %cst_3 = arith.constant 6.250000e-02 : f32
    %3 = vector.broadcast %cst_3 : f32 to vector<16x128xf32>
    %4 = arith.mulf %2, %3 : vector<16x128xf32>
    %5 = tpu.iota {dimensions = array<i32: 0>} : vector<16x1xi32>
    %6 = tpu.iota {dimensions = array<i32: 1>} : vector<1x128xi32>
    %c8_i32 = arith.constant 8 : i32
    %7 = vector.broadcast %c8_i32 : i32 to vector<16x1xi32>
    %8 = arith.cmpi slt, %5, %7 : vector<16x1xi32>
    %c8_i32_4 = arith.constant 8 : i32
    %9 = vector.broadcast %c8_i32_4 : i32 to vector<16x1xi32>
    %10 = arith.cmpi eq, %5, %9 : vector<16x1xi32>
    %c16_i32 = arith.constant 16 : i32
    %11 = vector.broadcast %c16_i32 : i32 to vector<1x128xi32>
    %12 = arith.cmpi slt, %6, %11 : vector<1x128xi32>
    %c16_i32_5 = arith.constant 16 : i32
    %13 = vector.broadcast %c16_i32_5 : i32 to vector<1x128xi32>
    %14 = arith.cmpi eq, %6, %13 : vector<1x128xi32>
    %15 = vector.broadcast %8 : vector<16x1xi1> to vector<16x128xi1>
    %16 = vector.broadcast %12 : vector<1x128xi1> to vector<16x128xi1>
    %17 = arith.andi %15, %16 : vector<16x128xi1>
    %cst_6 = arith.constant -1.000000e+30 : f32
    %18 = vector.broadcast %cst_6 : f32 to vector<16x128xf32>
    %19 = arith.select %17, %4, %18 : vector<16x128xi1>, vector<16x128xf32>
    %c0_7 = arith.constant 0 : index
    %c0_8 = arith.constant 0 : index
    %20 = vector.load %arg4[%c0_7, %c0_8] : memref<16x128xf32, #tpu.memory_space<vmem>>, vector<16x128xf32>
    tpu.vector_store %arg4[%c0_7, %c0_8], %19 {strides = array<i32>} : memref<16x128xf32, #tpu.memory_space<vmem>>, vector<16x128xf32>,
    %c0_9 = arith.constant 0 : index
    %c0_10 = arith.constant 0 : index
    %21 = vector.load %arg2[%c0_9, %c0_10] : memref<16x1xf32, #tpu.memory_space<vmem>>, vector<8x1xf32>
    %c0_11 = arith.constant 0 : index
    %c16 = arith.constant 16 : index
    %22 = vector.load %arg4[%c0_11, %c16] : memref<16x128xf32, #tpu.memory_space<vmem>>, vector<8x1xf32>
    tpu.vector_store %arg4[%c0_11, %c16], %21 {strides = array<i32>} : memref<16x128xf32, #tpu.memory_space<vmem>>, vector<8x1xf32>,
    %c0_12 = arith.constant 0 : index
    %c0_13 = arith.constant 0 : index
    %23 = vector.load %arg3[%c0_12, %c0_13] : memref<1x128xf32, #tpu.memory_space<vmem>>, vector<1x16xf32>
    %c8 = arith.constant 8 : index
    %c0_14 = arith.constant 0 : index
    %24 = vector.load %arg4[%c8, %c0_14] : memref<16x128xf32, #tpu.memory_space<vmem>>, vector<1x16xf32>
    tpu.vector_store %arg4[%c8, %c0_14], %23 {strides = array<i32>} : memref<16x128xf32, #tpu.memory_space<vmem>>, vector<1x16xf32>,
    %cst_15 = arith.constant 1.000000e+00 : f32
    %25 = vector.broadcast %cst_15 : f32 to vector<1x1xf32>
    %c8_16 = arith.constant 8 : index
    %c16_17 = arith.constant 16 : index
    %26 = vector.load %arg4[%c8_16, %c16_17] : memref<16x128xf32, #tpu.memory_space<vmem>>, vector<1x1xf32>
    tpu.vector_store %arg4[%c8_16, %c16_17], %25 {strides = array<i32>} : memref<16x128xf32, #tpu.memory_space<vmem>>, vector<1x1xf32>,
    %c0_18 = arith.constant 0 : index
    %c0_19 = arith.constant 0 : index
    %27 = vector.load %arg4[%c0_18, %c0_19] : memref<16x128xf32, #tpu.memory_space<vmem>>, vector<16x128xf32>
    %cst_20 = arith.constant -0.405465096 : f32
    %cst_21 = arith.constant -1.000000e+30 : f32
    %28 = vector.broadcast %cst_20 : f32 to vector<16x1xf32>
    %29 = vector.broadcast %cst_21 : f32 to vector<16x1xf32>
    %30 = arith.select %10, %28, %29 : vector<16x1xi1>, vector<16x1xf32>
    %cst_22 = arith.constant -3.17805386 : f32
    %31 = vector.broadcast %cst_22 : f32 to vector<16x1xf32>
    %32 = arith.select %8, %31, %30 : vector<16x1xi1>, vector<16x1xf32>
    %cst_23 = arith.constant -1.09861231 : f32
    %cst_24 = arith.constant -1.000000e+30 : f32
    %33 = vector.broadcast %cst_23 : f32 to vector<1x128xf32>
    %34 = vector.broadcast %cst_24 : f32 to vector<1x128xf32>
    %35 = arith.select %14, %33, %34 : vector<1x128xi1>, vector<1x128xf32>
    %cst_25 = arith.constant -3.17805386 : f32
    %36 = vector.broadcast %cst_25 : f32 to vector<1x128xf32>
    %37 = arith.select %12, %36, %35 : vector<1x128xi1>, vector<1x128xf32>
    %cst_26 = arith.constant 0.000000e+00 : f32
    %38 = vector.broadcast %cst_26 : f32 to vector<16x1xf32>
    %cst_27 = arith.constant 0.000000e+00 : f32
    %39 = vector.broadcast %cst_27 : f32 to vector<1x128xf32>
    %c0_i32 = arith.constant 0 : i32
    %c10_i32 = arith.constant 10 : i32
    %40 = arith.addi %c0_i32, %c10_i32 : i32
    %c1_i32 = arith.constant 1 : i32
    %41:2 = scf.for %arg5 = %c0_i32 to %40 step %c1_i32 iter_args(%arg6 = %38, %arg7 = %39) -> (vector<16x1xf32>, vector<1x128xf32>)  : i32 {
      %60 = vector.broadcast %arg7 : vector<1x128xf32> to vector<16x128xf32>
      %61 = arith.addf %27, %60 : vector<16x128xf32>
      %cst_34 = arith.constant dense<0xFF800000> : vector<16xf32>
      %62 = vector.multi_reduction <maximumf>, %61, %cst_34 [1] : vector<16x128xf32> to vector<16xf32>
      %63 = vector.shape_cast %62 : vector<16xf32> to vector<16x1xf32>
      %64 = vector.broadcast %63 : vector<16x1xf32> to vector<16x128xf32>
      %65 = arith.subf %61, %64 : vector<16x128xf32>
      %66 = math.exp %65 : vector<16x128xf32>
      %cst_35 = arith.constant dense<0.000000e+00> : vector<16xf32>
      %67 = vector.multi_reduction <add>, %66, %cst_35 [1] : vector<16x128xf32> to vector<16xf32>
      %68 = vector.shape_cast %67 : vector<16xf32> to vector<16x1xf32>
      %69 = math.log %68 : vector<16x1xf32>
      %70 = arith.addf %63, %69 : vector<16x1xf32>
      %71 = arith.subf %32, %70 : vector<16x1xf32>
      %72 = vector.broadcast %71 : vector<16x1xf32> to vector<16x128xf32>
      %73 = arith.addf %27, %72 : vector<16x128xf32>
      %cst_36 = arith.constant dense<0xFF800000> : vector<128xf32>
      %74 = vector.multi_reduction <maximumf>, %73, %cst_36 [0] : vector<16x128xf32> to vector<128xf32>
      %75 = vector.shape_cast %74 : vector<128xf32> to vector<1x128xf32>
      %76 = vector.broadcast %75 : vector<1x128xf32> to vector<16x128xf32>
      %77 = arith.subf %73, %76 : vector<16x128xf32>
      %78 = math.exp %77 : vector<16x128xf32>
      %cst_37 = arith.constant dense<0.000000e+00> : vector<128xf32>
      %79 = vector.multi_reduction <add>, %78, %cst_37 [0] : vector<16x128xf32> to vector<128xf32>
      %80 = vector.shape_cast %79 : vector<128xf32> to vector<1x128xf32>
      %81 = math.log %80 : vector<1x128xf32>
      %82 = arith.addf %75, %81 : vector<1x128xf32>
      %83 = arith.subf %37, %82 : vector<1x128xf32>
      scf.yield %71, %83 : vector<16x1xf32>, vector<1x128xf32>
    }
    %42 = vector.broadcast %41#0 : vector<16x1xf32> to vector<16x128xf32>
    %43 = arith.addf %27, %42 : vector<16x128xf32>
    %44 = vector.broadcast %41#1 : vector<1x128xf32> to vector<16x128xf32>
    %45 = arith.addf %43, %44 : vector<16x128xf32>
    %cst_28 = arith.constant -3.17805386 : f32
    %46 = vector.broadcast %cst_28 : f32 to vector<16x128xf32>
    %47 = arith.subf %45, %46 : vector<16x128xf32>
    %cst_29 = arith.constant dense<0xFF800000> : vector<16xf32>
    %48 = vector.multi_reduction <maximumf>, %47, %cst_29 [1] : vector<16x128xf32> to vector<16xf32>
    %49 = vector.shape_cast %48 : vector<16xf32> to vector<16x1xf32>
    %50 = vector.broadcast %49 : vector<16x1xf32> to vector<16x128xf32>
    %51 = arith.subf %47, %50 : vector<16x128xf32>
    %52 = math.exp %51 : vector<16x128xf32>
    %cst_30 = arith.constant dense<0.000000e+00> : vector<16xf32>
    %53 = vector.multi_reduction <add>, %52, %cst_30 [1] : vector<16x128xf32> to vector<16xf32>
    %54 = vector.shape_cast %53 : vector<16xf32> to vector<16x1xf32>
    %cst_31 = arith.constant 1.000000e+00 : f32
    %55 = vector.broadcast %cst_31 : f32 to vector<16x1xf32>
    %56 = arith.divf %55, %54 : vector<16x1xf32>
    %57 = vector.broadcast %56 : vector<16x1xf32> to vector<16x128xf32>
    %58 = arith.mulf %52, %57 : vector<16x128xf32>
    %c0_32 = arith.constant 0 : index
    %c0_33 = arith.constant 0 : index
    %59 = vector.load %arg4[%c0_32, %c0_33] : memref<16x128xf32, #tpu.memory_space<vmem>>, vector<16x128xf32>
    tpu.vector_store %arg4[%c0_32, %c0_33], %58 {strides = array<i32>} : memref<16x128xf32, #tpu.memory_space<vmem>>, vector<16x128xf32>,
    return
  }
}

module attributes {stable_mosaic.version = 11 : i64} {
  func.func @_zvec_a_kernel(%arg0: i32, %arg1: memref<16x128xbf16, #tpu.memory_space<vmem>>, %arg2: memref<16x256xf32, #tpu.memory_space<vmem>>, %arg3: memref<128x256xf32, #tpu.memory_space<vmem>>, %arg4: memref<256x256xf32, #tpu.memory_space<vmem>>, %arg5: memref<256x256xf32, #tpu.memory_space<vmem>>, %arg6: memref<1x256xf32, #tpu.memory_space<vmem>>, %arg7: memref<256x64xf32, #tpu.memory_space<vmem>>, %arg8: memref<1x64xf32, #tpu.memory_space<vmem>>, %arg9: memref<1x64xf32, #tpu.memory_space<vmem>>, %arg10: memref<1x1xf32, #tpu.memory_space<vmem>>, %arg11: memref<16x1xf32, #tpu.memory_space<vmem>>) attributes {dimension_semantics = [#tpu.dimension_semantics<parallel>], iteration_bounds = array<i64: 1>, scalar_prefetch = 0 : i64, scratch_operands = 0 : i64, tpu.core_type = #tpu.core_type<tc>, window_params = [{transform_indices = @transform_0, window_bounds = array<i64: 16, 128>}, {transform_indices = @transform_1, window_bounds = array<i64: 16, 256>}, {pipeline_mode = #tpu.pipeline_mode<synchronous>, transform_indices = @transform_2, window_bounds = array<i64: 128, 256>}, {pipeline_mode = #tpu.pipeline_mode<synchronous>, transform_indices = @transform_3, window_bounds = array<i64: 256, 256>}, {pipeline_mode = #tpu.pipeline_mode<synchronous>, transform_indices = @transform_4, window_bounds = array<i64: 256, 256>}, {pipeline_mode = #tpu.pipeline_mode<synchronous>, transform_indices = @transform_5, window_bounds = array<i64: 1, 256>}, {pipeline_mode = #tpu.pipeline_mode<synchronous>, transform_indices = @transform_6, window_bounds = array<i64: 256, 64>}, {pipeline_mode = #tpu.pipeline_mode<synchronous>, transform_indices = @transform_7, window_bounds = array<i64: 1, 64>}, {pipeline_mode = #tpu.pipeline_mode<synchronous>, transform_indices = @transform_8, window_bounds = array<i64: 1, 64>}, {pipeline_mode = #tpu.pipeline_mode<synchronous>, transform_indices = @transform_9, window_bounds = array<i64: 1, 1>}, {transform_indices = @transform_10, window_bounds = array<i64: 16, 1>}]} {
    %c0 = arith.constant 0 : index
    %c0_0 = arith.constant 0 : index
    %0 = vector.load %arg1[%c0, %c0_0] : memref<16x128xbf16, #tpu.memory_space<vmem>>, vector<16x128xbf16>
    %1 = arith.extf %0 : vector<16x128xbf16> to vector<16x128xf32>
    %2 = tpu.iota {dimensions = array<i32: 1>} : vector<1x128xi32>
    %c16_i32 = arith.constant 16 : i32
    %3 = vector.broadcast %c16_i32 : i32 to vector<1x128xi32>
    %4 = arith.cmpi slt, %2, %3 : vector<1x128xi32>
    %cst = arith.constant -1.000000e+30 : f32
    %5 = vector.shape_cast %4 : vector<1x128xi1> to vector<1x128xi1>
    %6 = vector.broadcast %5 : vector<1x128xi1> to vector<16x128xi1>
    %7 = vector.broadcast %cst : f32 to vector<16x128xf32>
    %8 = arith.select %6, %1, %7 : vector<16x128xi1>, vector<16x128xf32>
    %cst_1 = arith.constant dense<0xFF800000> : vector<16xf32>
    %9 = vector.multi_reduction <maximumf>, %8, %cst_1 [1] : vector<16x128xf32> to vector<16xf32>
    %10 = vector.shape_cast %9 : vector<16xf32> to vector<16x1xf32>
    %11 = vector.broadcast %10 : vector<16x1xf32> to vector<16x128xf32>
    %12 = arith.subf %8, %11 : vector<16x128xf32>
    %13 = math.exp %12 : vector<16x128xf32>
    %cst_2 = arith.constant dense<0.000000e+00> : vector<16xf32>
    %14 = vector.multi_reduction <add>, %13, %cst_2 [1] : vector<16x128xf32> to vector<16xf32>
    %15 = vector.shape_cast %14 : vector<16xf32> to vector<16x1xf32>
    %cst_3 = arith.constant 1.000000e+00 : f32
    %16 = vector.broadcast %cst_3 : f32 to vector<16x1xf32>
    %17 = arith.divf %16, %15 : vector<16x1xf32>
    %18 = vector.broadcast %17 : vector<16x1xf32> to vector<16x128xf32>
    %19 = arith.mulf %13, %18 : vector<16x128xf32>
    %c0_4 = arith.constant 0 : index
    %c0_5 = arith.constant 0 : index
    %20 = vector.load %arg3[%c0_4, %c0_5] : memref<128x256xf32, #tpu.memory_space<vmem>>, vector<128x256xf32>
    %cst_6 = arith.constant dense<0.000000e+00> : vector<16x256xf32>
    %21 = tpu.matmul %19, %20, %cst_6 {dimension_numbers = #tpu.dot_dimension_numbers<[1], [0], [0], [1], [0, 0, 1, 1], [], []>} : vector<16x128xf32>, vector<128x256xf32>, vector<16x256xf32> -> vector<16x256xf32>
    %c0_7 = arith.constant 0 : index
    %c0_8 = arith.constant 0 : index
    %22 = vector.load %arg4[%c0_7, %c0_8] : memref<256x256xf32, #tpu.memory_space<vmem>>, vector<256x256xf32>
    %cst_9 = arith.constant dense<0.000000e+00> : vector<16x256xf32>
    %23 = tpu.matmul %21, %22, %cst_9 {dimension_numbers = #tpu.dot_dimension_numbers<[1], [0], [0], [1], [0, 0, 1, 1], [], []>} : vector<16x256xf32>, vector<256x256xf32>, vector<16x256xf32> -> vector<16x256xf32>
    %c0_10 = arith.constant 0 : index
    %c0_11 = arith.constant 0 : index
    %24 = vector.load %arg2[%c0_10, %c0_11] : memref<16x256xf32, #tpu.memory_space<vmem>>, vector<16x256xf32>
    %c0_12 = arith.constant 0 : index
    %c0_13 = arith.constant 0 : index
    %25 = vector.load %arg5[%c0_12, %c0_13] : memref<256x256xf32, #tpu.memory_space<vmem>>, vector<256x256xf32>
    %cst_14 = arith.constant dense<0.000000e+00> : vector<16x256xf32>
    %26 = tpu.matmul %24, %25, %cst_14 {dimension_numbers = #tpu.dot_dimension_numbers<[1], [0], [0], [1], [0, 0, 1, 1], [], []>} : vector<16x256xf32>, vector<256x256xf32>, vector<16x256xf32> -> vector<16x256xf32>
    %27 = arith.addf %23, %26 : vector<16x256xf32>
    %c0_15 = arith.constant 0 : index
    %c0_16 = arith.constant 0 : index
    %28 = vector.load %arg6[%c0_15, %c0_16] : memref<1x256xf32, #tpu.memory_space<vmem>>, vector<1x256xf32>
    %29 = vector.broadcast %28 : vector<1x256xf32> to vector<16x256xf32>
    %30 = arith.addf %27, %29 : vector<16x256xf32>
    %cst_17 = arith.constant 0.000000e+00 : f32
    %31 = vector.broadcast %cst_17 : f32 to vector<16x256xf32>
    %32 = arith.maximumf %30, %31 : vector<16x256xf32>
    %c0_18 = arith.constant 0 : index
    %c0_19 = arith.constant 0 : index
    %33 = vector.load %arg7[%c0_18, %c0_19] : memref<256x64xf32, #tpu.memory_space<vmem>>, vector<256x64xf32>
    %cst_20 = arith.constant dense<0.000000e+00> : vector<16x64xf32>
    %34 = tpu.matmul %32, %33, %cst_20 {dimension_numbers = #tpu.dot_dimension_numbers<[1], [0], [0], [1], [0, 0, 1, 1], [], []>} : vector<16x256xf32>, vector<256x64xf32>, vector<16x64xf32> -> vector<16x64xf32>
    %c0_21 = arith.constant 0 : index
    %c0_22 = arith.constant 0 : index
    %35 = vector.load %arg8[%c0_21, %c0_22] : memref<1x64xf32, #tpu.memory_space<vmem>>, vector<1x64xf32>
    %36 = vector.broadcast %35 : vector<1x64xf32> to vector<16x64xf32>
    %37 = arith.addf %34, %36 : vector<16x64xf32>
    %cst_23 = arith.constant 0.000000e+00 : f32
    %38 = vector.broadcast %cst_23 : f32 to vector<16x64xf32>
    %39 = arith.maximumf %37, %38 : vector<16x64xf32>
    %c0_24 = arith.constant 0 : index
    %c0_25 = arith.constant 0 : index
    %40 = vector.load %arg9[%c0_24, %c0_25] : memref<1x64xf32, #tpu.memory_space<vmem>>, vector<1x64xf32>
    %41 = vector.broadcast %40 : vector<1x64xf32> to vector<16x64xf32>
    %42 = arith.mulf %39, %41 : vector<16x64xf32>
    %cst_26 = arith.constant dense<0.000000e+00> : vector<16xf32>
    %43 = vector.multi_reduction <add>, %42, %cst_26 [1] : vector<16x64xf32> to vector<16xf32>
    %44 = vector.shape_cast %43 : vector<16xf32> to vector<16x1xf32>
    %c0_27 = arith.constant 0 : index
    %c0_28 = arith.constant 0 : index
    %45 = vector.load %arg10[%c0_27, %c0_28] : memref<1x1xf32, #tpu.memory_space<vmem>>, vector<1x1xf32>
    %46 = vector.broadcast %45 : vector<1x1xf32> to vector<16x1xf32>
    %47 = arith.addf %44, %46 : vector<16x1xf32>
    %c0_29 = arith.constant 0 : index
    %c0_30 = arith.constant 0 : index
    %48 = vector.load %arg11[%c0_29, %c0_30] : memref<16x1xf32, #tpu.memory_space<vmem>>, vector<16x1xf32>
    tpu.vector_store %arg11[%c0_29, %c0_30], %47 {strides = array<i32>} : memref<16x1xf32, #tpu.memory_space<vmem>>, vector<16x1xf32>,
    return
  }
  func.func @transform_0(%arg0: i32) -> (i32, i32) {
    %c0_i32 = arith.constant 0 : i32
    %c0_i32_0 = arith.constant 0 : i32
    return %arg0, %c0_i32 : i32, i32
  }
  func.func @transform_1(%arg0: i32) -> (i32, i32) {
    %c0_i32 = arith.constant 0 : i32
    %c0_i32_0 = arith.constant 0 : i32
    return %arg0, %c0_i32 : i32, i32
  }
  func.func @transform_2(%arg0: i32) -> (i32, i32) {
    %c0_i32 = arith.constant 0 : i32
    %c0_i32_0 = arith.constant 0 : i32
    %c0_i32_1 = arith.constant 0 : i32
    return %c0_i32, %c0_i32_0 : i32, i32
  }
  func.func @transform_3(%arg0: i32) -> (i32, i32) {
    %c0_i32 = arith.constant 0 : i32
    %c0_i32_0 = arith.constant 0 : i32
    %c0_i32_1 = arith.constant 0 : i32
    return %c0_i32, %c0_i32_0 : i32, i32
  }
  func.func @transform_4(%arg0: i32) -> (i32, i32) {
    %c0_i32 = arith.constant 0 : i32
    %c0_i32_0 = arith.constant 0 : i32
    %c0_i32_1 = arith.constant 0 : i32
    return %c0_i32, %c0_i32_0 : i32, i32
  }
  func.func @transform_5(%arg0: i32) -> (i32, i32) {
    %c0_i32 = arith.constant 0 : i32
    %c0_i32_0 = arith.constant 0 : i32
    %c0_i32_1 = arith.constant 0 : i32
    return %c0_i32, %c0_i32_0 : i32, i32
  }
  func.func @transform_6(%arg0: i32) -> (i32, i32) {
    %c0_i32 = arith.constant 0 : i32
    %c0_i32_0 = arith.constant 0 : i32
    %c0_i32_1 = arith.constant 0 : i32
    return %c0_i32, %c0_i32_0 : i32, i32
  }
  func.func @transform_7(%arg0: i32) -> (i32, i32) {
    %c0_i32 = arith.constant 0 : i32
    %c0_i32_0 = arith.constant 0 : i32
    %c0_i32_1 = arith.constant 0 : i32
    return %c0_i32, %c0_i32_0 : i32, i32
  }
  func.func @transform_8(%arg0: i32) -> (i32, i32) {
    %c0_i32 = arith.constant 0 : i32
    %c0_i32_0 = arith.constant 0 : i32
    %c0_i32_1 = arith.constant 0 : i32
    return %c0_i32, %c0_i32_0 : i32, i32
  }
  func.func @transform_9(%arg0: i32) -> (i32, i32) {
    %c0_i32 = arith.constant 0 : i32
    %c0_i32_0 = arith.constant 0 : i32
    %c0_i32_1 = arith.constant 0 : i32
    return %c0_i32, %c0_i32_0 : i32, i32
  }
  func.func @transform_10(%arg0: i32) -> (i32, i32) {
    %c0_i32 = arith.constant 0 : i32
    %c0_i32_0 = arith.constant 0 : i32
    return %arg0, %c0_i32 : i32, i32
  }
}

</mosaic_0001>

<bundles_post_ra>
// kernel: forward_pair.6
= control target key start
LH: loop header
LB: loop body
LE: loop exit
PB: predicated region body
PF: predicated region fallthrough
CT: control target
= control target key end

     0   :  { %s809_s1 = inlined_call_operand.vmem [shape: f32[256,256], index: 1, kind: input, shape index: {}]   ;;  %s810_s0 = inlined_call_operand.vmem [shape: f32[16,256], index: 0, kind: input, shape index: {}]   ;;  %s811_s3 = inlined_call_operand.vmem [shape: f32[256,256], index: 3, kind: input, shape index: {}]   ;;  %s812_s2 = inlined_call_operand.vmem [shape: f32[1,256], index: 2, kind: input, shape index: {}]   ;;  %s813_s5 = inlined_call_operand.vmem [shape: f32[16,256], index: 5, kind: output, shape index: {0}]   ;;  %s814_s4 = inlined_call_operand.vmem [shape: f32[1,256], index: 4, kind: input, shape index: {}]   ;;  %s815_s6 = inlined_call_operand.vmem [shape: f32[16,256], index: 6, kind: output, shape index: {1}]  }
   0x1   :  { %v57_v0 = vld [vmem:[%s809_s1 + $0xf8] sm:$0xff]  ;;  %v56_v1 = vld [vmem:[%s809_s1 + $0xf0] sm:$0xff]  ;;  %v55_v2 = vld [vmem:[%s809_s1 + $0xe8] sm:$0xff] }
   0x2   :  { %102 = vmatprep.subr.mxu0 %v57_v0  ;;  %v54_v3 = vld [vmem:[%s809_s1 + $0xe0] sm:$0xff]  ;;  %v53_v4 = vld [vmem:[%s809_s1 + $0xd8] sm:$0xff]  ;;  %v52_v5 = vld [vmem:[%s809_s1 + $0xd0] sm:$0xff] }
   0x3   :  { %103 = vmatpush1.msra.mxu0 %v56_v1  ;;  %v51_v6 = vld [vmem:[%s809_s1 + $0xc8] sm:$0xff]  ;;  %v50_v7 = vld [vmem:[%s809_s1 + $0xc0] sm:$0xff]  ;;  %v49_v8 = vld [vmem:[%s809_s1 + $0xb8] sm:$0xff] }
   0x4   :  { %104 = vmatprep.subr.mxu0 %v55_v2  ;;  %v48_v9 = vld [vmem:[%s809_s1 + $0xb0] sm:$0xff]  ;;  %v47_v10 = vld [vmem:[%s809_s1 + $0xa8] sm:$0xff]  ;;  %v46_v11 = vld [vmem:[%s809_s1 + $0xa0] sm:$0xff] }
   0x5   :  { %105 = vmatpush1.msra.mxu0 %v54_v3  ;;  %v45_v12 = vld [vmem:[%s809_s1 + $0x98] sm:$0xff]  ;;  %v44_v13 = vld [vmem:[%s809_s1 + $0x90] sm:$0xff]  ;;  %v43_v14 = vld [vmem:[%s809_s1 + $0x88] sm:$0xff] }
   0x6   :  { %106 = vmatprep.subr.mxu0 %v53_v4  ;;  %v42_v15 = vld [vmem:[%s809_s1 + $0x80] sm:$0xff]  ;;  %v41_v16 = vld [vmem:[%s809_s1 + $0x78] sm:$0xff]  ;;  %v40_v17 = vld [vmem:[%s809_s1 + $0x70] sm:$0xff] }
   0x7   :  { %107 = vmatpush1.msra.mxu0 %v52_v5  ;;  %v39_v18 = vld [vmem:[%s809_s1 + $0x68] sm:$0xff]  ;;  %v38_v19 = vld [vmem:[%s809_s1 + $0x60] sm:$0xff]  ;;  %v37_v20 = vld [vmem:[%s809_s1 + $0x58] sm:$0xff] }
   0x8   :  { %108 = vmatprep.subr.mxu0 %v51_v6  ;;  %v36_v21 = vld [vmem:[%s809_s1 + $0x50] sm:$0xff]  ;;  %v35_v22 = vld [vmem:[%s809_s1 + $0x48] sm:$0xff]  ;;  %v34_v23 = vld [vmem:[%s809_s1 + $0x40] sm:$0xff] }
   0x9   :  { %109 = vmatpush1.msra.mxu0 %v50_v7  ;;  %v23_v24 = vld [vmem:[%s810_s0 + $0x8] sm:$0xff]  ;;  %v33_v25 = vld [vmem:[%s809_s1 + $0x38] sm:$0xff]  ;;  %v32_v26 = vld [vmem:[%s809_s1 + $0x30] sm:$0xff] }
   0xa   :  { %110 = vmatprep.subr.mxu0 %v49_v8  ;;  %166 = vmatprep.mubr.f32.mxu0 %v23_v24  ;;  %v214_v27 = vld [vmem:[%s811_s3 + $0xf8] sm:$0xff]  ;;  %v213_v28 = vld [vmem:[%s811_s3 + $0xf0] sm:$0xff]  ;;  %v212_v29 = vld [vmem:[%s811_s3 + $0xe8] sm:$0xff] }
   0xb   :  { %111 = vmatpush1.msra.mxu0 %v48_v9  ;;  %259 = vmatprep.subr.mxu1 %v214_v27  ;;  %v211_v30 = vld [vmem:[%s811_s3 + $0xe0] sm:$0xff]  ;;  %v31_v31 = vld [vmem:[%s809_s1 + $0x28] sm:$0xff]  ;;  %v210_v32 = vld [vmem:[%s811_s3 + $0xd8] sm:$0xff] }
   0xc   :  { %112 = vmatprep.subr.mxu0 %v47_v10  ;;  %260 = vmatpush1.msra.mxu1 %v213_v28  ;;  %v30_v33 = vld [vmem:[%s809_s1 + $0x20] sm:$0xff]  ;;  %v209_v34 = vld [vmem:[%s811_s3 + $0xd0] sm:$0xff]  ;;  %v29_v35 = vld [vmem:[%s809_s1 + $0x18] sm:$0xff] }
   0xd   :  { %113 = vmatpush1.msra.mxu0 %v46_v11  ;;  %261 = vmatprep.subr.mxu1 %v212_v29  ;;  %v208_v36 = vld [vmem:[%s811_s3 + $0xc8] sm:$0xff]  ;;  %v28_v37 = vld [vmem:[%s809_s1 + $0x10] sm:$0xff]  ;;  %v207_v38 = vld [vmem:[%s811_s3 + $0xc0] sm:$0xff] }
   0xe   :  { %114 = vmatprep.subr.mxu0 %v45_v12  ;;  %262 = vmatpush1.msra.mxu1 %v211_v30  ;;  %v27_v39 = vld [vmem:[%s809_s1 + $0x8] sm:$0xff]  ;;  %v206_v40 = vld [vmem:[%s811_s3 + $0xb8] sm:$0xff]  ;;  %v26_v41 = vld [vmem:[%s809_s1] sm:$0xff] }
   0xf   :  { %115 = vmatpush1.msra.mxu0 %v44_v13  ;;  %263 = vmatprep.subr.mxu1 %v210_v32  ;;  %v205_v42 = vld [vmem:[%s811_s3 + $0xb0] sm:$0xff]  ;;  %v89_v43 = vld [vmem:[%s809_s1 + $0x1f8] sm:$0xff]  ;;  %v204_v44 = vld [vmem:[%s811_s3 + $0xa8] sm:$0xff] }
  0x10   :  { %116 = vmatprep.subr.mxu0 %v43_v14  ;;  %264 = vmatpush1.msra.mxu1 %v209_v34  ;;  %v88_v45 = vld [vmem:[%s809_s1 + $0x1f0] sm:$0xff]  ;;  %v203_v46 = vld [vmem:[%s811_s3 + $0xa0] sm:$0xff]  ;;  %v87_v47 = vld [vmem:[%s809_s1 + $0x1e8] sm:$0xff] }
  0x11   :  { %117 = vmatpush1.msra.mxu0 %v42_v15  ;;  %265 = vmatprep.subr.mxu1 %v208_v36  ;;  %v202_v48 = vld [vmem:[%s811_s3 + $0x98] sm:$0xff]  ;;  %v86_v49 = vld [vmem:[%s809_s1 + $0x1e0] sm:$0xff]  ;;  %v201_v50 = vld [vmem:[%s811_s3 + $0x90] sm:$0xff] }
  0x12   :  { %118 = vmatprep.subr.mxu0 %v41_v16  ;;  %266 = vmatpush1.msra.mxu1 %v207_v38  ;;  %v85_v51 = vld [vmem:[%s809_s1 + $0x1d8] sm:$0xff]  ;;  %v200_v52 = vld [vmem:[%s811_s3 + $0x88] sm:$0xff]  ;;  %v84_v53 = vld [vmem:[%s809_s1 + $0x1d0] sm:$0xff] }
  0x13   :  { %119 = vmatpush1.msra.mxu0 %v40_v17  ;;  %267 = vmatprep.subr.mxu1 %v206_v40  ;;  %v199_v54 = vld [vmem:[%s811_s3 + $0x80] sm:$0xff]  ;;  %v83_v55 = vld [vmem:[%s809_s1 + $0x1c8] sm:$0xff]  ;;  %v198_v56 = vld [vmem:[%s811_s3 + $0x78] sm:$0xff] }
  0x14   :  { %120 = vmatprep.subr.mxu0 %v39_v18  ;;  %268 = vmatpush1.msra.mxu1 %v205_v42  ;;  %v82_v57 = vld [vmem:[%s809_s1 + $0x1c0] sm:$0xff]  ;;  %v197_v58 = vld [vmem:[%s811_s3 + $0x70] sm:$0xff]  ;;  %v81_v59 = vld [vmem:[%s809_s1 + $0x1b8] sm:$0xff] }
  0x15   :  { %121 = vmatpush1.msra.mxu0 %v38_v19  ;;  %269 = vmatprep.subr.mxu1 %v204_v44  ;;  %v196_v60 = vld [vmem:[%s811_s3 + $0x68] sm:$0xff]  ;;  %v80_v61 = vld [vmem:[%s809_s1 + $0x1b0] sm:$0xff]  ;;  %v195_v62 = vld [vmem:[%s811_s3 + $0x60] sm:$0xff] }
  0x16   :  { %122 = vmatprep.subr.mxu0 %v37_v20  ;;  %270 = vmatpush1.msra.mxu1 %v203_v46  ;;  %v79_v63 = vld [vmem:[%s809_s1 + $0x1a8] sm:$0xff]  ;;  %v194_v0 = vld [vmem:[%s811_s3 + $0x58] sm:$0xff]  ;;  %v78_v1 = vld [vmem:[%s809_s1 + $0x1a0] sm:$0xff] }
  0x17   :  { %123 = vmatpush1.msra.mxu0 %v36_v21  ;;  %271 = vmatprep.subr.mxu1 %v202_v48  ;;  %v193_v2 = vld [vmem:[%s811_s3 + $0x50] sm:$0xff]  ;;  %v77_v3 = vld [vmem:[%s809_s1 + $0x198] sm:$0xff]  ;;  %v192_v4 = vld [vmem:[%s811_s3 + $0x48] sm:$0xff] }
  0x18   :  { %124 = vmatprep.subr.mxu0 %v35_v22  ;;  %272 = vmatpush1.msra.mxu1 %v201_v50  ;;  %v76_v5 = vld [vmem:[%s809_s1 + $0x190] sm:$0xff]  ;;  %v191_v6 = vld [vmem:[%s811_s3 + $0x40] sm:$0xff]  ;;  %v75_v7 = vld [vmem:[%s809_s1 + $0x188] sm:$0xff] }
  0x19   :  { %125 = vmatpush1.msra.mxu0 %v34_v23  ;;  %273 = vmatprep.subr.mxu1 %v200_v52  ;;  %v190_v8 = vld [vmem:[%s811_s3 + $0x38] sm:$0xff]  ;;  %v74_v9 = vld [vmem:[%s809_s1 + $0x180] sm:$0xff]  ;;  %v189_v10 = vld [vmem:[%s811_s3 + $0x30] sm:$0xff] }
  0x1a   :  { %126 = vmatprep.subr.mxu0 %v33_v25  ;;  %274 = vmatpush1.msra.mxu1 %v199_v54  ;;  %v73_v11 = vld [vmem:[%s809_s1 + $0x178] sm:$0xff]  ;;  %v188_v12 = vld [vmem:[%s811_s3 + $0x28] sm:$0xff]  ;;  %v72_v13 = vld [vmem:[%s809_s1 + $0x170] sm:$0xff] }
  0x1b   :  { %127 = vmatpush1.msra.mxu0 %v32_v26  ;;  %275 = vmatprep.subr.mxu1 %v198_v56  ;;  %v187_v14 = vld [vmem:[%s811_s3 + $0x20] sm:$0xff]  ;;  %v71_v15 = vld [vmem:[%s809_s1 + $0x168] sm:$0xff]  ;;  %v186_v16 = vld [vmem:[%s811_s3 + $0x18] sm:$0xff] }
  0x1c   :  { %128 = vmatprep.subr.mxu0 %v31_v31  ;;  %276 = vmatpush1.msra.mxu1 %v197_v58  ;;  %v70_v17 = vld [vmem:[%s809_s1 + $0x160] sm:$0xff]  ;;  %v185_v18 = vld [vmem:[%s811_s3 + $0x10] sm:$0xff]  ;;  %v69_v19 = vld [vmem:[%s809_s1 + $0x158] sm:$0xff] }
  0x1d   :  { %129 = vmatpush1.msra.mxu0 %v30_v33  ;;  %277 = vmatprep.subr.mxu1 %v196_v60  ;;  %v184_v20 = vld [vmem:[%s811_s3 + $0x8] sm:$0xff]  ;;  %v68_v21 = vld [vmem:[%s809_s1 + $0x150] sm:$0xff]  ;;  %v183_v22 = vld [vmem:[%s811_s3] sm:$0xff] }
  0x1e   :  { %130 = vmatprep.subr.mxu0 %v29_v35  ;;  %278 = vmatpush1.msra.mxu1 %v195_v62  ;;  %v67_v23 = vld [vmem:[%s809_s1 + $0x148] sm:$0xff]  ;;  %v246_v24 = vld [vmem:[%s811_s3 + $0x1f8] sm:$0xff]  ;;  %v66_v25 = vld [vmem:[%s809_s1 + $0x140] sm:$0xff] }
  0x1f   :  { %131 = vmatpush1.msra.mxu0 %v28_v37  ;;  %279 = vmatprep.subr.mxu1 %v194_v0  ;;  %v245_v26 = vld [vmem:[%s811_s3 + $0x1f0] sm:$0xff]  ;;  %v65_v27 = vld [vmem:[%s809_s1 + $0x138] sm:$0xff]  ;;  %v244_v28 = vld [vmem:[%s811_s3 + $0x1e8] sm:$0xff] }
  0x20   :  { %132 = vmatprep.subr.mxu0 %v27_v39  ;;  %280 = vmatpush1.msra.mxu1 %v193_v2  ;;  %v64_v29 = vld [vmem:[%s809_s1 + $0x130] sm:$0xff]  ;;  %v243_v30 = vld [vmem:[%s811_s3 + $0x1e0] sm:$0xff]  ;;  %v63_v31 = vld [vmem:[%s809_s1 + $0x128] sm:$0xff] }
  0x21   :  { %133 = vmatpush1.msra.mxu0 %v26_v41  ;;  %281 = vmatprep.subr.mxu1 %v192_v4  ;;  %v242_v32 = vld [vmem:[%s811_s3 + $0x1d8] sm:$0xff]  ;;  %v62_v33 = vld [vmem:[%s809_s1 + $0x120] sm:$0xff]  ;;  %v241_v34 = vld [vmem:[%s811_s3 + $0x1d0] sm:$0xff]  ;;  %v92_v4 = vlaneseq }
  0x22   :  { %134 = vmatprep.subr.mxu0 %v89_v43  ;;  %282 = vmatpush1.msra.mxu1 %v191_v6  ;;  %v61_v35 = vld [vmem:[%s809_s1 + $0x118] sm:$0xff]  ;;  %v240_v36 = vld [vmem:[%s811_s3 + $0x1c8] sm:$0xff]  ;;  %v60_v37 = vld [vmem:[%s809_s1 + $0x110] sm:$0xff] }
  0x23   :  { %135 = vmatpush2.msra.mxu0 %v88_v45  ;;  %283 = vmatprep.subr.mxu1 %v190_v8  ;;  %v239_v38 = vld [vmem:[%s811_s3 + $0x1c0] sm:$0xff]  ;;  %v59_v39 = vld [vmem:[%s809_s1 + $0x108] sm:$0xff]  ;;  %v238_v40 = vld [vmem:[%s811_s3 + $0x1b8] sm:$0xff] }
  0x24   :  { %136 = vmatprep.subr.mxu0 %v87_v47  ;;  %284 = vmatpush1.msra.mxu1 %v189_v10  ;;  %v58_v41 = vld [vmem:[%s809_s1 + $0x100] sm:$0xff]  ;;  %v237_v42 = vld [vmem:[%s811_s3 + $0x1b0] sm:$0xff]  ;;  %v236_v44 = vld [vmem:[%s811_s3 + $0x1a8] sm:$0xff] }
  0x25   :  { %137 = vmatpush2.msra.mxu0 %v86_v49  ;;  %285 = vmatprep.subr.mxu1 %v188_v12  ;;  %v22_v43 = vld [vmem:[%s810_s0] sm:$0xff]  ;;  %v25_v45 = vld [vmem:[%s810_s0 + $0x18] sm:$0xff]  ;;  %v233_v48 = vld [vmem:[%s811_s3 + $0x190] sm:$0xff] }
  0x26   :  { %138 = vmatprep.subr.mxu0 %v85_v51  ;;  %286 = vmatpush1.msra.mxu1 %v187_v14  ;;  %v235_v46 = vld [vmem:[%s811_s3 + $0x1a0] sm:$0xff]  ;;  %v234_v47 = vld [vmem:[%s811_s3 + $0x198] sm:$0xff]  ;;  %v24_v49 = vld [vmem:[%s810_s0 + $0x10] sm:$0xff] }
  0x27   :  { %139 = vmatpush2.msra.mxu0 %v84_v53  ;;  %287 = vmatprep.subr.mxu1 %v186_v16  ;;  %v232_v50 = vld [vmem:[%s811_s3 + $0x188] sm:$0xff]  ;;  %v231_v51 = vld [vmem:[%s811_s3 + $0x180] sm:$0xff]  ;;  %v230_v52 = vld [vmem:[%s811_s3 + $0x178] sm:$0xff] }
  0x28   :  { %140 = vmatprep.subr.mxu0 %v83_v55  ;;  %288 = vmatpush1.msra.mxu1 %v185_v18  ;;  %v229_v53 = vld [vmem:[%s811_s3 + $0x170] sm:$0xff]  ;;  %v228_v54 = vld [vmem:[%s811_s3 + $0x168] sm:$0xff]  ;;  %v227_v55 = vld [vmem:[%s811_s3 + $0x160] sm:$0xff] }
  0x29   :  { %141 = vmatpush2.msra.mxu0 %v82_v57  ;;  %289 = vmatprep.subr.mxu1 %v184_v20  ;;  %v226_v56 = vld [vmem:[%s811_s3 + $0x158] sm:$0xff]  ;;  %v225_v57 = vld [vmem:[%s811_s3 + $0x150] sm:$0xff]  ;;  %v224_v58 = vld [vmem:[%s811_s3 + $0x148] sm:$0xff] }
  0x2a   :  { %142 = vmatprep.subr.mxu0 %v81_v59  ;;  %290 = vmatpush1.msra.mxu1 %v183_v22  ;;  %v223_v59 = vld [vmem:[%s811_s3 + $0x140] sm:$0xff]  ;;  %v222_v60 = vld [vmem:[%s811_s3 + $0x138] sm:$0xff]  ;;  %v220_v62 = vld [vmem:[%s811_s3 + $0x128] sm:$0xff] }
  0x2b   :  { %143 = vmatpush2.msra.mxu0 %v80_v61  ;;  %291 = vmatprep.subr.mxu1 %v246_v24  ;;  %v221_v61 = vld [vmem:[%s811_s3 + $0x130] sm:$0xff]  ;;  %v218_v0 = vld [vmem:[%s811_s3 + $0x118] sm:$0xff]  ;;  %v216_v2 = vld [vmem:[%s811_s3 + $0x108] sm:$0xff] }
  0x2c   :  { %144 = vmatprep.subr.mxu0 %v79_v63  ;;  %292 = vmatpush2.msra.mxu1 %v245_v26  ;;  %v219_v63 = vld [vmem:[%s811_s3 + $0x120] sm:$0xff] }
  0x2d   :  { %145 = vmatpush2.msra.mxu0 %v78_v1  ;;  %293 = vmatprep.subr.mxu1 %v244_v28  ;;  %v217_v1 = vld [vmem:[%s811_s3 + $0x110] sm:$0xff] }
  0x2e   :  { %146 = vmatprep.subr.mxu0 %v77_v3  ;;  %294 = vmatpush2.msra.mxu1 %v243_v30  ;;  %v215_v3 = vld [vmem:[%s811_s3 + $0x100] sm:$0xff] }
  0x2f   :  { %147 = vmatpush2.msra.mxu0 %v76_v5  ;;  %295 = vmatprep.subr.mxu1 %v242_v32  ;;  %v93_v5 = vshrl.u32 %v92_v4, 7 }
  0x30   :  { %148 = vmatprep.subr.mxu0 %v75_v7  ;;  %296 = vmatpush2.msra.mxu1 %v241_v34  ;;  %v90_v7 = vld [vmem:[%s812_s2] sm:$0x3] }
  0x31   :  { %149 = vmatpush2.msra.mxu0 %v74_v9  ;;  %297 = vmatprep.subr.mxu1 %v240_v36  ;;  %v94_v6 = vsub.s32 0, %v93_v5  ;;  %v98_v8 = vsub.s32 1, %v93_v5 }
  0x32   :  { %150 = vmatprep.subr.mxu0 %v73_v11  ;;  %298 = vmatpush2.msra.mxu1 %v239_v38 }
  0x33   :  { %151 = vmatpush2.msra.mxu0 %v72_v13  ;;  %299 = vmatprep.subr.mxu1 %v238_v40  ;;  %v95_v9 = vrot.slane %v90_v7, %v94_v6  ;;  %v99_v10 = vrot.slane %v90_v7, %v98_v8 }
  0x34   :  { %152 = vmatprep.subr.mxu0 %v71_v15  ;;  %300 = vmatpush2.msra.mxu1 %v237_v42 }
  0x35   :  { %153 = vmatpush2.msra.mxu0 %v70_v17  ;;  %301 = vmatprep.subr.mxu1 %v236_v44 }
  0x36   :  { %154 = vmatprep.subr.mxu0 %v69_v19  ;;  %302 = vmatpush2.msra.mxu1 %v235_v46  ;;  %v247_v19 = vld [vmem:[%s814_s4] sm:$0x3] }
  0x37   :  { %155 = vmatpush2.msra.mxu0 %v68_v21  ;;  %303 = vmatprep.subr.mxu1 %v234_v47  ;;  %v252_v20 = vrot.slane %v247_v19, %v94_v6  ;;  %v256_v21 = vrot.slane %v247_v19, %v98_v8 }
  0x38   :  { %156 = vmatprep.subr.mxu0 %v67_v23  ;;  %304 = vmatpush2.msra.mxu1 %v233_v48 }
  0x39   :  { %157 = vmatpush2.msra.mxu0 %v66_v25  ;;  %305 = vmatprep.subr.mxu1 %v232_v50 }
  0x3a   :  { %158 = vmatprep.subr.mxu0 %v65_v27  ;;  %306 = vmatpush2.msra.mxu1 %v231_v51 }
  0x3b   :  { %159 = vmatpush2.msra.mxu0 %v64_v29  ;;  %307 = vmatprep.subr.mxu1 %v230_v52 }
  0x3c   :  { %160 = vmatprep.subr.mxu0 %v63_v31  ;;  %308 = vmatpush2.msra.mxu1 %v229_v53 }
  0x3d   :  { %161 = vmatpush2.msra.mxu0 %v62_v33  ;;  %309 = vmatprep.subr.mxu1 %v228_v54 }
  0x3e   :  { %162 = vmatprep.subr.mxu0 %v61_v35  ;;  %310 = vmatpush2.msra.mxu1 %v227_v55 }
  0x3f   :  { %163 = vmatpush2.msra.mxu0 %v60_v37  ;;  %311 = vmatprep.subr.mxu1 %v226_v56 }
  0x40   :  { %164 = vmatprep.subr.mxu0 %v59_v39  ;;  %312 = vmatpush2.msra.mxu1 %v225_v57 }
  0x41   :  { %165 = vmatpush2.msra.mxu0 %v58_v41  ;;  %313 = vmatprep.subr.mxu1 %v224_v58 }
  0x42   :  { %167 = vmatmul.mubr.f32.vlgmr.msra.gmra.mxu0 %v22_v43  ;;  %314 = vmatpush2.msra.mxu1 %v223_v59 }
  0x43   :  { %172 = vmatprep.mubr.f32.mxu0 %v25_v45  ;;  %315 = vmatprep.subr.mxu1 %v222_v60 }
  0x44   :  { %316 = vmatpush2.msra.mxu1 %v221_v61 }
  0x45   :  { %317 = vmatprep.subr.mxu1 %v220_v62 }
  0x46   :  { %173 = vmatmul.mubr.f32.gmra.mxu0 %v24_v49  ;;  %318 = vmatpush2.msra.mxu1 %v219_v63 }
  0x47   :  { %319 = vmatprep.subr.mxu1 %v218_v0 }
  0x48   :  { %320 = vmatpush2.msra.mxu1 %v217_v1 }
  0x49   :  { %321 = vmatprep.subr.mxu1 %v216_v2 }
  0x4a   :  { %322 = vmatpush2.msra.mxu1 %v215_v3 }
 0x102   :  { %v168_v11 = vpop.f32.mrf.mxu0 }
 0x103   :  { %v169_v12 = vadd.f32 %v168_v11, %v95_v9 }
 0x104   :  { %v170_v13 = vpop.f32.mrf.mxu0 }
 0x105   :  { %179 = vst [vmem:[%s813_s5] sm:$0xff] %v169_v12  ;;  %v171_v14 = vadd.f32 %v170_v13, %v99_v10 }
 0x106   :  { %v174_v15 = vpop.f32.mrf.mxu0 }
 0x107   :  { %180 = vst [vmem:[%s813_s5 + $0x8] sm:$0xff] %v171_v14  ;;  %v175_v16 = vadd.f32 %v174_v15, %v95_v9  ;;  %323 = vmatprep.mubr.f32.mxu1 %v171_v14 }
 0x108   :  { %v176_v17 = vpop.f32.mrf.mxu0  ;;  %324 = vmatmul.mubr.f32.vlgmr.msra.gmra.mxu1 %v169_v12 }
 0x109   :  { %181 = vst [vmem:[%s813_s5 + $0x10] sm:$0xff] %v175_v16  ;;  %v177_v18 = vadd.f32 %v176_v17, %v99_v10 }
 0x10b   :  { %182 = vst [vmem:[%s813_s5 + $0x18] sm:$0xff] %v177_v18  ;;  %329 = vmatprep.mubr.f32.mxu1 %v177_v18 }
 0x10c   :  { %330 = vmatmul.mubr.f32.gmra.mxu1 %v175_v16 }
 0x1c8   :  { %v325_v22 = vpop.f32.mrf.mxu1 }
 0x1c9   :  { %v326_v23 = vadd.f32 %v325_v22, %v252_v20 }
 0x1ca   :  { %v327_v24 = vpop.f32.mrf.mxu1 }
 0x1cb   :  { %336 = vst [vmem:[%s815_s6] sm:$0xff] %v326_v23  ;;  %v328_v25 = vadd.f32 %v327_v24, %v256_v21 }
 0x1cc   :  { %v331_v26 = vpop.f32.mrf.mxu1 }
 0x1cd   :  { %337 = vst [vmem:[%s815_s6 + $0x8] sm:$0xff] %v328_v25  ;;  %v332_v27 = vadd.f32 %v331_v26, %v252_v20 }
 0x1ce   :  { %v333_v28 = vpop.f32.mrf.mxu1 }
 0x1cf   :  { %338 = vst [vmem:[%s815_s6 + $0x10] sm:$0xff] %v332_v27  ;;  %v334_v29 = vadd.f32 %v333_v28, %v256_v21 }
 0x1d1   :  { %339 = vst [vmem:[%s815_s6 + $0x18] sm:$0xff] %v334_v29 }

// kernel: forward_pair.7
= control target key start
LH: loop header
LB: loop body
LE: loop exit
PB: predicated region body
PF: predicated region fallthrough
CT: control target
= control target key end

     0   :  { %12 = vsyncpa [#allocation3], 0  ;;  %s1101_s0 = inlined_call_operand.vmem [shape: f32[128,256], index: 0, kind: input, shape index: {}]   ;;  %s1102_s1 = inlined_call_operand.hbm [shape: f32[256,256], index: 1, kind: input, shape index: {}]   ;;  %s1103_s2 = inlined_call_operand.vmem [shape: f32[1,256], index: 2, kind: input, shape index: {}]   ;;  %s1104_s3 = inlined_call_operand.hbm [shape: f32[256,256], index: 3, kind: input, shape index: {}]   ;;  %s1105_s4 = inlined_call_operand.vmem [shape: f32[1,256], index: 4, kind: input, shape index: {}]   ;;  %s1106_s5 = inlined_call_operand.vmem [shape: f32[128,256], index: 5, kind: output, shape index: {0}]   ;;  %s1107_s6 = inlined_call_operand.vmem [shape: f32[128,256], index: 6, kind: output, shape index: {1}]  }
   0x1   :  { %13 = vsyncpa [#allocation5], 0  ;;  %s678_s21 = smov [#allocation2]  }
   0x2   :  { %s21_s22 = sshll.u32 %s678_s21, 4  ;;  %s22_s22 = int_to_ptr.vmem [resolvable:$true] %s21_s22 }
   0x3   :  { %s642_s23 = scalar_lea.vmem %s22_s22, 8192  ;;  %p647_p1 = scmp.lt.s32.totalorder %s22_s22, %s22_s22 }
   0x4   :  { %p643_p0 = scmp.ne.s32.totalorder %s22_s22, %s642_s23  ;;  %p648_p2 = scmp.lt.s32.totalorder %s642_s23, %s642_s23 }
   0x6   :  { %p649_p3 = por %p648_p2, %p647_p1 }
   0x8   :  { %p650_p4 = pnand %p649_p3, %p643_p0 }
   0xa   :  { %653 = shalt.err (!%p650_p4)
}
   0xb   :  { %s679_s24 = smov 256   ;;  %s680_s25 = smov 16  }
   0xc   :  { %27 = dma.hbm_to_vmem [thread:$0]  %s1102_s1, 8192, %s22_s22, [#allocation3], %s679_s24, %s679_s24, %s680_s25  }
   0xd   :  { %s681_s28 = smov [#allocation4]  }
   0xe   :  { %s35_s29 = sshll.u32 %s681_s28, 4  ;;  %s36_s29 = int_to_ptr.vmem [resolvable:$true] %s35_s29 }
   0xf   :  { %s662_s30 = scalar_lea.vmem %s36_s29, 8192  ;;  %p667_p6 = scmp.lt.s32.totalorder %s36_s29, %s36_s29 }
  0x10   :  { %p663_p5 = scmp.ne.s32.totalorder %s36_s29, %s662_s30  ;;  %p668_p7 = scmp.lt.s32.totalorder %s662_s30, %s662_s30 }
  0x12   :  { %p669_p8 = por %p668_p7, %p667_p6 }
  0x14   :  { %p670_p9 = pnand %p669_p8, %p663_p5 }
  0x16   :  { %673 = shalt.err (!%p670_p9)
}
  0x17   :  { %41 = dma.hbm_to_vmem [thread:$0]  %s1104_s3, 8192, %s36_s29, [#allocation5], %s679_s24, %s679_s24, %s680_s25  }
  0x18   :  { %674 = dma.done.wait [#allocation3], 8192  }
  0x19   :  { %675 = vsyncadd [#allocation3], 4294959104 }
  0x1a   :  { %676 = dma.done.wait [#allocation5], 8192  }
  0x1b   :  { %677 = vsyncadd [#allocation5], 4294959104  ;;  %v113_v0 = vld [vmem:[#allocation2 + $0xf8] sm:$0xff]  ;;  %v112_v1 = vld [vmem:[#allocation2 + $0xf0] sm:$0xff] }
  0x1c   :  { %v111_v2 = vld [vmem:[#allocation2 + $0xe8] sm:$0xff]  ;;  %158 = vmatprep.subr.mxu0 %v113_v0  ;;  %v110_v3 = vld [vmem:[#allocation2 + $0xe0] sm:$0xff]  ;;  %v109_v4 = vld [vmem:[#allocation2 + $0xd8] sm:$0xff] }
  0x1d   :  { %159 = vmatpush1.msra.mxu0 %v112_v1  ;;  %v108_v5 = vld [vmem:[#allocation2 + $0xd0] sm:$0xff]  ;;  %v107_v6 = vld [vmem:[#allocation2 + $0xc8] sm:$0xff]  ;;  %v106_v7 = vld [vmem:[#allocation2 + $0xc0] sm:$0xff] }
  0x1e   :  { %160 = vmatprep.subr.mxu0 %v111_v2  ;;  %v105_v8 = vld [vmem:[#allocation2 + $0xb8] sm:$0xff]  ;;  %v104_v9 = vld [vmem:[#allocation2 + $0xb0] sm:$0xff]  ;;  %v103_v10 = vld [vmem:[#allocation2 + $0xa8] sm:$0xff] }
  0x1f   :  { %161 = vmatpush1.msra.mxu0 %v110_v3  ;;  %v102_v11 = vld [vmem:[#allocation2 + $0xa0] sm:$0xff]  ;;  %v101_v12 = vld [vmem:[#allocation2 + $0x98] sm:$0xff]  ;;  %v100_v13 = vld [vmem:[#allocation2 + $0x90] sm:$0xff] }
  0x20   :  { %162 = vmatprep.subr.mxu0 %v109_v4  ;;  %v99_v14 = vld [vmem:[#allocation2 + $0x88] sm:$0xff]  ;;  %v98_v15 = vld [vmem:[#allocation2 + $0x80] sm:$0xff]  ;;  %v97_v16 = vld [vmem:[#allocation2 + $0x78] sm:$0xff] }
  0x21   :  { %163 = vmatpush1.msra.mxu0 %v108_v5  ;;  %v96_v17 = vld [vmem:[#allocation2 + $0x70] sm:$0xff]  ;;  %v95_v18 = vld [vmem:[#allocation2 + $0x68] sm:$0xff]  ;;  %v94_v19 = vld [vmem:[#allocation2 + $0x60] sm:$0xff] }
  0x22   :  { %164 = vmatprep.subr.mxu0 %v107_v6  ;;  %v93_v20 = vld [vmem:[#allocation2 + $0x58] sm:$0xff]  ;;  %v92_v21 = vld [vmem:[#allocation2 + $0x50] sm:$0xff]  ;;  %v91_v22 = vld [vmem:[#allocation2 + $0x48] sm:$0xff] }
  0x23   :  { %165 = vmatpush1.msra.mxu0 %v106_v7  ;;  %v90_v23 = vld [vmem:[#allocation2 + $0x40] sm:$0xff]  ;;  %v51_v24 = vld [vmem:[%s1101_s0 + $0x8] sm:$0xff]  ;;  %v89_v25 = vld [vmem:[#allocation2 + $0x38] sm:$0xff] }
  0x24   :  { %166 = vmatprep.subr.mxu0 %v105_v8  ;;  %222 = vmatprep.mubr.f32.mxu0 %v51_v24  ;;  %v88_v26 = vld [vmem:[#allocation2 + $0x30] sm:$0xff]  ;;  %v87_v27 = vld [vmem:[#allocation2 + $0x28] sm:$0xff]  ;;  %v86_v28 = vld [vmem:[#allocation2 + $0x20] sm:$0xff] }
  0x25   :  { %167 = vmatpush1.msra.mxu0 %v104_v9  ;;  %v85_v29 = vld [vmem:[#allocation2 + $0x18] sm:$0xff]  ;;  %v84_v30 = vld [vmem:[#allocation2 + $0x10] sm:$0xff]  ;;  %v83_v31 = vld [vmem:[#allocation2 + $0x8] sm:$0xff] }
  0x26   :  { %168 = vmatprep.subr.mxu0 %v103_v10  ;;  %v82_v32 = vld [vmem:[#allocation2] sm:$0xff]  ;;  %v145_v33 = vld [vmem:[#allocation2 + $0x1f8] sm:$0xff]  ;;  %v144_v34 = vld [vmem:[#allocation2 + $0x1f0] sm:$0xff] }
  0x27   :  { %169 = vmatpush1.msra.mxu0 %v102_v11  ;;  %v143_v35 = vld [vmem:[#allocation2 + $0x1e8] sm:$0xff]  ;;  %v382_v36 = vld [vmem:[#allocation4 + $0xf8] sm:$0xff]  ;;  %v381_v37 = vld [vmem:[#allocation4 + $0xf0] sm:$0xff] }
  0x28   :  { %170 = vmatprep.subr.mxu0 %v101_v12  ;;  %v380_v38 = vld [vmem:[#allocation4 + $0xe8] sm:$0xff]  ;;  %v142_v39 = vld [vmem:[#allocation2 + $0x1e0] sm:$0xff]  ;;  %427 = vmatprep.subr.mxu1 %v382_v36  ;;  %v141_v41 = vld [vmem:[#allocation2 + $0x1d8] sm:$0xff] }
  0x29   :  { %171 = vmatpush1.msra.mxu0 %v100_v13  ;;  %v379_v40 = vld [vmem:[#allocation4 + $0xe0] sm:$0xff]  ;;  %428 = vmatpush1.msra.mxu1 %v381_v37  ;;  %v378_v42 = vld [vmem:[#allocation4 + $0xd8] sm:$0xff]  ;;  %v140_v43 = vld [vmem:[#allocation2 + $0x1d0] sm:$0xff] }
  0x2a   :  { %172 = vmatprep.subr.mxu0 %v99_v14  ;;  %429 = vmatprep.subr.mxu1 %v380_v38  ;;  %v377_v44 = vld [vmem:[#allocation4 + $0xd0] sm:$0xff]  ;;  %v139_v45 = vld [vmem:[#allocation2 + $0x1c8] sm:$0xff]  ;;  %v138_v47 = vld [vmem:[#allocation2 + $0x1c0] sm:$0xff] }
  0x2b   :  { %173 = vmatpush1.msra.mxu0 %v98_v15  ;;  %430 = vmatpush1.msra.mxu1 %v379_v40  ;;  %v376_v46 = vld [vmem:[#allocation4 + $0xc8] sm:$0xff]  ;;  %v375_v48 = vld [vmem:[#allocation4 + $0xc0] sm:$0xff]  ;;  %v137_v49 = vld [vmem:[#allocation2 + $0x1b8] sm:$0xff] }
  0x2c   :  { %174 = vmatprep.subr.mxu0 %v97_v16  ;;  %431 = vmatprep.subr.mxu1 %v378_v42  ;;  %v374_v50 = vld [vmem:[#allocation4 + $0xb8] sm:$0xff]  ;;  %v136_v51 = vld [vmem:[#allocation2 + $0x1b0] sm:$0xff]  ;;  %v135_v53 = vld [vmem:[#allocation2 + $0x1a8] sm:$0xff] }
  0x2d   :  { %175 = vmatpush1.msra.mxu0 %v96_v17  ;;  %432 = vmatpush1.msra.mxu1 %v377_v44  ;;  %v373_v52 = vld [vmem:[#allocation4 + $0xb0] sm:$0xff]  ;;  %v372_v54 = vld [vmem:[#allocation4 + $0xa8] sm:$0xff]  ;;  %v134_v55 = vld [vmem:[#allocation2 + $0x1a0] sm:$0xff] }
  0x2e   :  { %176 = vmatprep.subr.mxu0 %v95_v18  ;;  %433 = vmatprep.subr.mxu1 %v376_v46  ;;  %v371_v56 = vld [vmem:[#allocation4 + $0xa0] sm:$0xff]  ;;  %v133_v57 = vld [vmem:[#allocation2 + $0x198] sm:$0xff]  ;;  %v132_v59 = vld [vmem:[#allocation2 + $0x190] sm:$0xff] }
  0x2f   :  { %177 = vmatpush1.msra.mxu0 %v94_v19  ;;  %434 = vmatpush1.msra.mxu1 %v375_v48  ;;  %v370_v58 = vld [vmem:[#allocation4 + $0x98] sm:$0xff]  ;;  %v369_v60 = vld [vmem:[#allocation4 + $0x90] sm:$0xff]  ;;  %v131_v61 = vld [vmem:[#allocation2 + $0x188] sm:$0xff] }
  0x30   :  { %178 = vmatprep.subr.mxu0 %v93_v20  ;;  %435 = vmatprep.subr.mxu1 %v374_v50  ;;  %v368_v62 = vld [vmem:[#allocation4 + $0x88] sm:$0xff]  ;;  %v130_v63 = vld [vmem:[#allocation2 + $0x180] sm:$0xff]  ;;  %v129_v1 = vld [vmem:[#allocation2 + $0x178] sm:$0xff] }
  0x31   :  { %179 = vmatpush1.msra.mxu0 %v92_v21  ;;  %436 = vmatpush1.msra.mxu1 %v373_v52  ;;  %v367_v0 = vld [vmem:[#allocation4 + $0x80] sm:$0xff]  ;;  %v366_v2 = vld [vmem:[#allocation4 + $0x78] sm:$0xff]  ;;  %v128_v3 = vld [vmem:[#allocation2 + $0x170] sm:$0xff] }
  0x32   :  { %180 = vmatprep.subr.mxu0 %v91_v22  ;;  %437 = vmatprep.subr.mxu1 %v372_v54  ;;  %v365_v4 = vld [vmem:[#allocation4 + $0x70] sm:$0xff]  ;;  %v127_v5 = vld [vmem:[#allocation2 + $0x168] sm:$0xff]  ;;  %v126_v7 = vld [vmem:[#allocation2 + $0x160] sm:$0xff] }
  0x33   :  { %181 = vmatpush1.msra.mxu0 %v90_v23  ;;  %438 = vmatpush1.msra.mxu1 %v371_v56  ;;  %v364_v6 = vld [vmem:[#allocation4 + $0x68] sm:$0xff]  ;;  %v363_v8 = vld [vmem:[#allocation4 + $0x60] sm:$0xff]  ;;  %v125_v9 = vld [vmem:[#allocation2 + $0x158] sm:$0xff] }
  0x34   :  { %182 = vmatprep.subr.mxu0 %v89_v25  ;;  %439 = vmatprep.subr.mxu1 %v370_v58  ;;  %v362_v10 = vld [vmem:[#allocation4 + $0x58] sm:$0xff]  ;;  %v124_v11 = vld [vmem:[#allocation2 + $0x150] sm:$0xff]  ;;  %v123_v13 = vld [vmem:[#allocation2 + $0x148] sm:$0xff] }
  0x35   :  { %183 = vmatpush1.msra.mxu0 %v88_v26  ;;  %440 = vmatpush1.msra.mxu1 %v369_v60  ;;  %v361_v12 = vld [vmem:[#allocation4 + $0x50] sm:$0xff]  ;;  %v360_v14 = vld [vmem:[#allocation4 + $0x48] sm:$0xff]  ;;  %v122_v15 = vld [vmem:[#allocation2 + $0x140] sm:$0xff] }
  0x36   :  { %184 = vmatprep.subr.mxu0 %v87_v27  ;;  %441 = vmatprep.subr.mxu1 %v368_v62  ;;  %v359_v16 = vld [vmem:[#allocation4 + $0x40] sm:$0xff]  ;;  %v121_v17 = vld [vmem:[#allocation2 + $0x138] sm:$0xff]  ;;  %v120_v19 = vld [vmem:[#allocation2 + $0x130] sm:$0xff] }
  0x37   :  { %185 = vmatpush1.msra.mxu0 %v86_v28  ;;  %442 = vmatpush1.msra.mxu1 %v367_v0  ;;  %v358_v18 = vld [vmem:[#allocation4 + $0x38] sm:$0xff]  ;;  %v357_v20 = vld [vmem:[#allocation4 + $0x30] sm:$0xff]  ;;  %v119_v21 = vld [vmem:[#allocation2 + $0x128] sm:$0xff] }
  0x38   :  { %186 = vmatprep.subr.mxu0 %v85_v29  ;;  %443 = vmatprep.subr.mxu1 %v366_v2  ;;  %v356_v22 = vld [vmem:[#allocation4 + $0x28] sm:$0xff]  ;;  %v118_v23 = vld [vmem:[#allocation2 + $0x120] sm:$0xff]  ;;  %v117_v25 = vld [vmem:[#allocation2 + $0x118] sm:$0xff] }
  0x39   :  { %187 = vmatpush1.msra.mxu0 %v84_v30  ;;  %444 = vmatpush1.msra.mxu1 %v365_v4  ;;  %v355_v24 = vld [vmem:[#allocation4 + $0x20] sm:$0xff]  ;;  %v354_v26 = vld [vmem:[#allocation4 + $0x18] sm:$0xff]  ;;  %v116_v27 = vld [vmem:[#allocation2 + $0x110] sm:$0xff] }
  0x3a   :  { %188 = vmatprep.subr.mxu0 %v83_v31  ;;  %445 = vmatprep.subr.mxu1 %v364_v6  ;;  %v353_v28 = vld [vmem:[#allocation4 + $0x10] sm:$0xff]  ;;  %v115_v29 = vld [vmem:[#allocation2 + $0x108] sm:$0xff]  ;;  %v114_v31 = vld [vmem:[#allocation2 + $0x100] sm:$0xff] }
  0x3b   :  { %189 = vmatpush1.msra.mxu0 %v82_v32  ;;  %446 = vmatpush1.msra.mxu1 %v363_v8  ;;  %v352_v30 = vld [vmem:[#allocation4 + $0x8] sm:$0xff]  ;;  %v351_v32 = vld [vmem:[#allocation4] sm:$0xff]  ;;  %v413_v36 = vld [vmem:[#allocation4 + $0x1f0] sm:$0xff] }
  0x3c   :  { %190 = vmatprep.subr.mxu0 %v145_v33  ;;  %447 = vmatprep.subr.mxu1 %v362_v10  ;;  %v50_v33 = vld [vmem:[%s1101_s0] sm:$0xff]  ;;  %v412_v37 = vld [vmem:[#allocation4 + $0x1e8] sm:$0xff]  ;;  %v410_v40 = vld [vmem:[#allocation4 + $0x1d8] sm:$0xff] }
  0x3d   :  { %191 = vmatpush2.msra.mxu0 %v144_v34  ;;  %448 = vmatpush1.msra.mxu1 %v361_v12  ;;  %v414_v34 = vld [vmem:[#allocation4 + $0x1f8] sm:$0xff]  ;;  %v411_v38 = vld [vmem:[#allocation4 + $0x1e0] sm:$0xff]  ;;  %v409_v42 = vld [vmem:[#allocation4 + $0x1d0] sm:$0xff] }
  0x3e   :  { %192 = vmatprep.subr.mxu0 %v143_v35  ;;  %449 = vmatprep.subr.mxu1 %v360_v14  ;;  %v53_v35 = vld [vmem:[%s1101_s0 + $0x18] sm:$0xff]  ;;  %v407_v44 = vld [vmem:[#allocation4 + $0x1c0] sm:$0xff]  ;;  %v405_v48 = vld [vmem:[#allocation4 + $0x1b0] sm:$0xff] }
  0x3f   :  { %193 = vmatpush2.msra.mxu0 %v142_v39  ;;  %450 = vmatpush1.msra.mxu1 %v359_v16  ;;  %v52_v39 = vld [vmem:[%s1101_s0 + $0x10] sm:$0xff]  ;;  %v406_v46 = vld [vmem:[#allocation4 + $0x1b8] sm:$0xff]  ;;  %v403_v50 = vld [vmem:[#allocation4 + $0x1a0] sm:$0xff] }
  0x40   :  { %194 = vmatprep.subr.mxu0 %v141_v41  ;;  %451 = vmatprep.subr.mxu1 %v358_v18  ;;  %v55_v41 = vld [vmem:[%s1101_s0 + $0x28] sm:$0xff]  ;;  %v402_v52 = vld [vmem:[#allocation4 + $0x198] sm:$0xff]  ;;  %v401_v54 = vld [vmem:[#allocation4 + $0x190] sm:$0xff] }
  0x41   :  { %195 = vmatpush2.msra.mxu0 %v140_v43  ;;  %452 = vmatpush1.msra.mxu1 %v357_v20  ;;  %v408_v43 = vld [vmem:[#allocation4 + $0x1c8] sm:$0xff]  ;;  %v399_v56 = vld [vmem:[#allocation4 + $0x180] sm:$0xff]  ;;  %v398_v58 = vld [vmem:[#allocation4 + $0x178] sm:$0xff] }
  0x42   :  { %196 = vmatprep.subr.mxu0 %v139_v45  ;;  %453 = vmatprep.subr.mxu1 %v356_v22  ;;  %v54_v45 = vld [vmem:[%s1101_s0 + $0x20] sm:$0xff]  ;;  %v397_v60 = vld [vmem:[#allocation4 + $0x170] sm:$0xff]  ;;  %v394_v0 = vld [vmem:[#allocation4 + $0x158] sm:$0xff] }
  0x43   :  { %197 = vmatpush2.msra.mxu0 %v138_v47  ;;  %454 = vmatpush1.msra.mxu1 %v355_v24  ;;  %v57_v47 = vld [vmem:[%s1101_s0 + $0x38] sm:$0xff]  ;;  %v395_v62 = vld [vmem:[#allocation4 + $0x160] sm:$0xff]  ;;  %v393_v2 = vld [vmem:[#allocation4 + $0x150] sm:$0xff] }
  0x44   :  { %198 = vmatprep.subr.mxu0 %v137_v49  ;;  %455 = vmatprep.subr.mxu1 %v354_v26  ;;  %v404_v49 = vld [vmem:[#allocation4 + $0x1a8] sm:$0xff]  ;;  %v391_v4 = vld [vmem:[#allocation4 + $0x140] sm:$0xff]  ;;  %v390_v6 = vld [vmem:[#allocation4 + $0x138] sm:$0xff] }
  0x45   :  { %199 = vmatpush2.msra.mxu0 %v136_v51  ;;  %456 = vmatpush1.msra.mxu1 %v353_v28  ;;  %v56_v51 = vld [vmem:[%s1101_s0 + $0x30] sm:$0xff]  ;;  %v67_v10 = vld [vmem:[%s1101_s0 + $0x88] sm:$0xff]  ;;  %v69_v12 = vld [vmem:[%s1101_s0 + $0x98] sm:$0xff] }
  0x46   :  { %200 = vmatprep.subr.mxu0 %v135_v53  ;;  %457 = vmatprep.subr.mxu1 %v352_v30  ;;  %v59_v53 = vld [vmem:[%s1101_s0 + $0x48] sm:$0xff]  ;;  %v389_v8 = vld [vmem:[#allocation4 + $0x130] sm:$0xff]  ;;  %v73_v16 = vld [vmem:[%s1101_s0 + $0xb8] sm:$0xff] }
  0x47   :  { %201 = vmatpush2.msra.mxu0 %v134_v55  ;;  %458 = vmatpush1.msra.mxu1 %v351_v32  ;;  %v400_v55 = vld [vmem:[#allocation4 + $0x188] sm:$0xff]  ;;  %v77_v20 = vld [vmem:[%s1101_s0 + $0xd8] sm:$0xff]  ;;  %v148_v32 = vlaneseq }
  0x48   :  { %202 = vmatprep.subr.mxu0 %v133_v57  ;;  %459 = vmatprep.subr.mxu1 %v414_v34  ;;  %v58_v57 = vld [vmem:[%s1101_s0 + $0x40] sm:$0xff]  ;;  %v71_v14 = vld [vmem:[%s1101_s0 + $0xa8] sm:$0xff]  ;;  %v81_v24 = vld [vmem:[%s1101_s0 + $0xf8] sm:$0xff] }
  0x49   :  { %203 = vmatpush2.msra.mxu0 %v132_v59  ;;  %460 = vmatpush2.msra.mxu1 %v413_v36  ;;  %v61_v59 = vld [vmem:[%s1101_s0 + $0x58] sm:$0xff]  ;;  %v75_v18 = vld [vmem:[%s1101_s0 + $0xc8] sm:$0xff] }
  0x4a   :  { %204 = vmatprep.subr.mxu0 %v131_v61  ;;  %461 = vmatprep.subr.mxu1 %v412_v37  ;;  %v396_v61 = vld [vmem:[#allocation4 + $0x168] sm:$0xff]  ;;  %v386_v28 = vld [vmem:[#allocation4 + $0x118] sm:$0xff] }
  0x4b   :  { %205 = vmatpush2.msra.mxu0 %v130_v63  ;;  %462 = vmatpush2.msra.mxu1 %v411_v38  ;;  %v60_v63 = vld [vmem:[%s1101_s0 + $0x50] sm:$0xff]  ;;  %v79_v22 = vld [vmem:[%s1101_s0 + $0xe8] sm:$0xff] }
  0x4c   :  { %206 = vmatprep.subr.mxu0 %v129_v1  ;;  %463 = vmatprep.subr.mxu1 %v410_v40  ;;  %v63_v1 = vld [vmem:[%s1101_s0 + $0x68] sm:$0xff] }
  0x4d   :  { %207 = vmatpush2.msra.mxu0 %v128_v3  ;;  %464 = vmatpush2.msra.mxu1 %v409_v42  ;;  %v392_v3 = vld [vmem:[#allocation4 + $0x148] sm:$0xff] }
  0x4e   :  { %208 = vmatprep.subr.mxu0 %v127_v5  ;;  %465 = vmatprep.subr.mxu1 %v408_v43  ;;  %v62_v5 = vld [vmem:[%s1101_s0 + $0x60] sm:$0xff]  ;;  %v388_v26 = vld [vmem:[#allocation4 + $0x128] sm:$0xff] }
  0x4f   :  { %209 = vmatpush2.msra.mxu0 %v126_v7  ;;  %466 = vmatpush2.msra.mxu1 %v407_v44  ;;  %v65_v7 = vld [vmem:[%s1101_s0 + $0x78] sm:$0xff]  ;;  %v384_v30 = vld [vmem:[#allocation4 + $0x108] sm:$0xff] }
  0x50   :  { %210 = vmatprep.subr.mxu0 %v125_v9  ;;  %467 = vmatprep.subr.mxu1 %v406_v46  ;;  %v64_v9 = vld [vmem:[%s1101_s0 + $0x70] sm:$0xff] }
  0x51   :  { %211 = vmatpush2.msra.mxu0 %v124_v11  ;;  %468 = vmatpush2.msra.mxu1 %v405_v48  ;;  %v66_v11 = vld [vmem:[%s1101_s0 + $0x80] sm:$0xff] }
  0x52   :  { %212 = vmatprep.subr.mxu0 %v123_v13  ;;  %469 = vmatprep.subr.mxu1 %v404_v49  ;;  %v68_v13 = vld [vmem:[%s1101_s0 + $0x90] sm:$0xff] }
  0x53   :  { %213 = vmatpush2.msra.mxu0 %v122_v15  ;;  %470 = vmatpush2.msra.mxu1 %v403_v50  ;;  %v70_v15 = vld [vmem:[%s1101_s0 + $0xa0] sm:$0xff] }
  0x54   :  { %214 = vmatprep.subr.mxu0 %v121_v17  ;;  %471 = vmatprep.subr.mxu1 %v402_v52  ;;  %v72_v17 = vld [vmem:[%s1101_s0 + $0xb0] sm:$0xff] }
  0x55   :  { %215 = vmatpush2.msra.mxu0 %v120_v19  ;;  %472 = vmatpush2.msra.mxu1 %v401_v54  ;;  %v74_v19 = vld [vmem:[%s1101_s0 + $0xc0] sm:$0xff] }
  0x56   :  { %216 = vmatprep.subr.mxu0 %v119_v21  ;;  %473 = vmatprep.subr.mxu1 %v400_v55  ;;  %v76_v21 = vld [vmem:[%s1101_s0 + $0xd0] sm:$0xff] }
  0x57   :  { %217 = vmatpush2.msra.mxu0 %v118_v23  ;;  %474 = vmatpush2.msra.mxu1 %v399_v56  ;;  %v78_v23 = vld [vmem:[%s1101_s0 + $0xe0] sm:$0xff] }
  0x58   :  { %218 = vmatprep.subr.mxu0 %v117_v25  ;;  %475 = vmatprep.subr.mxu1 %v398_v58  ;;  %v80_v25 = vld [vmem:[%s1101_s0 + $0xf0] sm:$0xff] }
  0x59   :  { %219 = vmatpush2.msra.mxu0 %v116_v27  ;;  %476 = vmatpush2.msra.mxu1 %v397_v60  ;;  %v387_v27 = vld [vmem:[#allocation4 + $0x120] sm:$0xff] }
  0x5a   :  { %220 = vmatprep.subr.mxu0 %v115_v29  ;;  %477 = vmatprep.subr.mxu1 %v396_v61  ;;  %v385_v29 = vld [vmem:[#allocation4 + $0x110] sm:$0xff] }
  0x5b   :  { %221 = vmatpush2.msra.mxu0 %v114_v31  ;;  %478 = vmatpush2.msra.mxu1 %v395_v62  ;;  %v383_v31 = vld [vmem:[#allocation4 + $0x100] sm:$0xff] }
  0x5c   :  { %223 = vmatmul.mubr.f32.vlgmr.msra.gmra.mxu0 %v50_v33  ;;  %479 = vmatprep.subr.mxu1 %v394_v0  ;;  %v819_v33 = vshrl.u32 %v148_v32, 7 }
  0x5d   :  { %228 = vmatprep.mubr.f32.mxu0 %v53_v35  ;;  %480 = vmatpush2.msra.mxu1 %v393_v2  ;;  %v146_v35 = vld [vmem:[%s1103_s2] sm:$0x3] }
  0x5e   :  { %481 = vmatprep.subr.mxu1 %v392_v3  ;;  %v150_v34 = vsub.s32 0, %v819_v33  ;;  %v154_v36 = vsub.s32 1, %v819_v33 }
  0x5f   :  { %482 = vmatpush2.msra.mxu1 %v391_v4 }
  0x60   :  { %229 = vmatmul.mubr.f32.gmra.mxu0 %v52_v39  ;;  %483 = vmatprep.subr.mxu1 %v390_v6  ;;  %v828_v37 = vrot.slane %v146_v35, %v150_v34  ;;  %v832_v38 = vrot.slane %v146_v35, %v154_v36 }
  0x61   :  { %234 = vmatprep.mubr.f32.mxu0 %v55_v41  ;;  %484 = vmatpush2.msra.mxu1 %v389_v8 }
  0x62   :  { %485 = vmatprep.subr.mxu1 %v388_v26 }
  0x63   :  { %486 = vmatpush2.msra.mxu1 %v387_v27 }
  0x64   :  { %235 = vmatmul.mubr.f32.gmra.mxu0 %v54_v45  ;;  %487 = vmatprep.subr.mxu1 %v386_v28 }
  0x65   :  { %240 = vmatprep.mubr.f32.mxu0 %v57_v47  ;;  %488 = vmatpush2.msra.mxu1 %v385_v29 }
  0x66   :  { %489 = vmatprep.subr.mxu1 %v384_v30 }
  0x67   :  { %490 = vmatpush2.msra.mxu1 %v383_v31 }
  0x68   :  { %241 = vmatmul.mubr.f32.gmra.mxu0 %v56_v51 }
  0x69   :  { %246 = vmatprep.mubr.f32.mxu0 %v59_v53 }
  0x6c   :  { %247 = vmatmul.mubr.f32.gmra.mxu0 %v58_v57 }
  0x6d   :  { %252 = vmatprep.mubr.f32.mxu0 %v61_v59 }
  0x70   :  { %253 = vmatmul.mubr.f32.gmra.mxu0 %v60_v63 }
  0x71   :  { %258 = vmatprep.mubr.f32.mxu0 %v63_v1 }
  0x74   :  { %259 = vmatmul.mubr.f32.gmra.mxu0 %v62_v5 }
  0x75   :  { %264 = vmatprep.mubr.f32.mxu0 %v65_v7 }
  0x78   :  { %265 = vmatmul.mubr.f32.gmra.mxu0 %v64_v9 }
  0x79   :  { %270 = vmatprep.mubr.f32.mxu0 %v67_v10 }
  0x7c   :  { %271 = vmatmul.mubr.f32.gmra.mxu0 %v66_v11 }
  0x7d   :  { %276 = vmatprep.mubr.f32.mxu0 %v69_v12 }
  0x80   :  { %277 = vmatmul.mubr.f32.gmra.mxu0 %v68_v13 }
  0x81   :  { %282 = vmatprep.mubr.f32.mxu0 %v71_v14 }
  0x84   :  { %283 = vmatmul.mubr.f32.gmra.mxu0 %v70_v15 }
  0x85   :  { %288 = vmatprep.mubr.f32.mxu0 %v73_v16 }
  0x88   :  { %289 = vmatmul.mubr.f32.gmra.mxu0 %v72_v17 }
  0x89   :  { %294 = vmatprep.mubr.f32.mxu0 %v75_v18 }
  0x8c   :  { %295 = vmatmul.mubr.f32.gmra.mxu0 %v74_v19 }
  0x8d   :  { %300 = vmatprep.mubr.f32.mxu0 %v77_v20 }
  0x90   :  { %301 = vmatmul.mubr.f32.gmra.mxu0 %v76_v21 }
  0x91   :  { %306 = vmatprep.mubr.f32.mxu0 %v79_v22 }
  0x94   :  { %307 = vmatmul.mubr.f32.gmra.mxu0 %v78_v23 }
  0x95   :  { %312 = vmatprep.mubr.f32.mxu0 %v81_v24 }
  0x98   :  { %313 = vmatmul.mubr.f32.gmra.mxu0 %v80_v25 }
 0x11c   :  { %v224_v39 = vpop.f32.mrf.mxu0 }
 0x11d   :  { %v225_v40 = vadd.f32 %v224_v39, %v828_v37 }
 0x11e   :  { %v226_v41 = vpop.f32.mrf.mxu0 }
 0x11f   :  { %319 = vst [vmem:[%s1106_s5] sm:$0xff] %v225_v40  ;;  %v227_v42 = vadd.f32 %v226_v41, %v832_v38 }
 0x120   :  { %v230_v43 = vpop.f32.mrf.mxu0 }
 0x121   :  { %320 = vst [vmem:[%s1106_s5 + $0x8] sm:$0xff] %v227_v42  ;;  %v231_v44 = vadd.f32 %v230_v43, %v828_v37  ;;  %491 = vmatprep.mubr.f32.mxu1 %v227_v42 }
 0x122   :  { %v232_v45 = vpop.f32.mrf.mxu0  ;;  %492 = vmatmul.mubr.f32.vlgmr.msra.gmra.mxu1 %v225_v40 }
 0x123   :  { %321 = vst [vmem:[%s1106_s5 + $0x10] sm:$0xff] %v231_v44  ;;  %v233_v46 = vadd.f32 %v232_v45, %v832_v38 }
 0x124   :  { %v236_v47 = vpop.f32.mrf.mxu0 }
 0x125   :  { %322 = vst [vmem:[%s1106_s5 + $0x18] sm:$0xff] %v233_v46  ;;  %v237_v48 = vadd.f32 %v236_v47, %v828_v37  ;;  %497 = vmatprep.mubr.f32.mxu1 %v233_v46 }
 0x126   :  { %v238_v49 = vpop.f32.mrf.mxu0  ;;  %498 = vmatmul.mubr.f32.gmra.mxu1 %v231_v44  ;;  %v415_v44 = vld [vmem:[%s1105_s4] sm:$0x3] }
 0x127   :  { %323 = vst [vmem:[%s1106_s5 + $0x20] sm:$0xff] %v237_v48  ;;  %v239_v50 = vadd.f32 %v238_v49, %v832_v38  ;;  %v971_v45 = vrot.slane %v415_v44, %v154_v36 }
 0x128   :  { %v242_v51 = vpop.f32.mrf.mxu0 }
 0x129   :  { %324 = vst [vmem:[%s1106_s5 + $0x28] sm:$0xff] %v239_v50  ;;  %v243_v52 = vadd.f32 %v242_v51, %v828_v37  ;;  %503 = vmatprep.mubr.f32.mxu1 %v239_v50 }
 0x12a   :  { %v244_v53 = vpop.f32.mrf.mxu0  ;;  %504 = vmatmul.mubr.f32.gmra.mxu1 %v237_v48 }
 0x12b   :  { %325 = vst [vmem:[%s1106_s5 + $0x30] sm:$0xff] %v243_v52  ;;  %v245_v54 = vadd.f32 %v244_v53, %v832_v38 }
 0x12c   :  { %v248_v55 = vpop.f32.mrf.mxu0 }
 0x12d   :  { %326 = vst [vmem:[%s1106_s5 + $0x38] sm:$0xff] %v245_v54  ;;  %v249_v56 = vadd.f32 %v248_v55, %v828_v37  ;;  %509 = vmatprep.mubr.f32.mxu1 %v245_v54 }
 0x12e   :  { %v250_v57 = vpop.f32.mrf.mxu0  ;;  %510 = vmatmul.mubr.f32.gmra.mxu1 %v243_v52 }
 0x12f   :  { %327 = vst [vmem:[%s1106_s5 + $0x40] sm:$0xff] %v249_v56  ;;  %v251_v58 = vadd.f32 %v250_v57, %v832_v38 }
 0x130   :  { %v254_v59 = vpop.f32.mrf.mxu0 }
 0x131   :  { %328 = vst [vmem:[%s1106_s5 + $0x48] sm:$0xff] %v251_v58  ;;  %v255_v60 = vadd.f32 %v254_v59, %v828_v37  ;;  %515 = vmatprep.mubr.f32.mxu1 %v251_v58 }
 0x132   :  { %v256_v61 = vpop.f32.mrf.mxu0  ;;  %516 = vmatmul.mubr.f32.gmra.mxu1 %v249_v56 }
 0x133   :  { %329 = vst [vmem:[%s1106_s5 + $0x50] sm:$0xff] %v255_v60  ;;  %v257_v62 = vadd.f32 %v256_v61, %v832_v38 }
 0x134   :  { %v260_v63 = vpop.f32.mrf.mxu0 }
 0x135   :  { %330 = vst [vmem:[%s1106_s5 + $0x58] sm:$0xff] %v257_v62  ;;  %v261_v0 = vadd.f32 %v260_v63, %v828_v37  ;;  %521 = vmatprep.mubr.f32.mxu1 %v257_v62 }
 0x136   :  { %v262_v1 = vpop.f32.mrf.mxu0  ;;  %522 = vmatmul.mubr.f32.gmra.mxu1 %v255_v60 }
 0x137   :  { %331 = vst [vmem:[%s1106_s5 + $0x60] sm:$0xff] %v261_v0  ;;  %v263_v2 = vadd.f32 %v262_v1, %v832_v38 }
 0x138   :  { %v266_v3 = vpop.f32.mrf.mxu0 }
 0x139   :  { %332 = vst [vmem:[%s1106_s5 + $0x68] sm:$0xff] %v263_v2  ;;  %v267_v4 = vadd.f32 %v266_v3, %v828_v37  ;;  %527 = vmatprep.mubr.f32.mxu1 %v263_v2 }
 0x13a   :  { %v268_v5 = vpop.f32.mrf.mxu0  ;;  %528 = vmatmul.mubr.f32.gmra.mxu1 %v261_v0 }
 0x13b   :  { %333 = vst [vmem:[%s1106_s5 + $0x70] sm:$0xff] %v267_v4  ;;  %v269_v6 = vadd.f32 %v268_v5, %v832_v38 }
 0x13c   :  { %v272_v7 = vpop.f32.mrf.mxu0 }
 0x13d   :  { %334 = vst [vmem:[%s1106_s5 + $0x78] sm:$0xff] %v269_v6  ;;  %v273_v8 = vadd.f32 %v272_v7, %v828_v37  ;;  %533 = vmatprep.mubr.f32.mxu1 %v269_v6 }
 0x13e   :  { %v274_v9 = vpop.f32.mrf.mxu0  ;;  %534 = vmatmul.mubr.f32.gmra.mxu1 %v267_v4 }
 0x13f   :  { %335 = vst [vmem:[%s1106_s5 + $0x80] sm:$0xff] %v273_v8  ;;  %v275_v10 = vadd.f32 %v274_v9, %v832_v38 }
 0x140   :  { %v278_v11 = vpop.f32.mrf.mxu0 }
 0x141   :  { %336 = vst [vmem:[%s1106_s5 + $0x88] sm:$0xff] %v275_v10  ;;  %v279_v12 = vadd.f32 %v278_v11, %v828_v37  ;;  %539 = vmatprep.mubr.f32.mxu1 %v275_v10 }
 0x142   :  { %v280_v13 = vpop.f32.mrf.mxu0  ;;  %540 = vmatmul.mubr.f32.gmra.mxu1 %v273_v8 }
 0x143   :  { %337 = vst [vmem:[%s1106_s5 + $0x90] sm:$0xff] %v279_v12  ;;  %v281_v14 = vadd.f32 %v280_v13, %v832_v38 }
 0x144   :  { %v284_v15 = vpop.f32.mrf.mxu0 }
 0x145   :  { %338 = vst [vmem:[%s1106_s5 + $0x98] sm:$0xff] %v281_v14  ;;  %v285_v16 = vadd.f32 %v284_v15, %v828_v37  ;;  %545 = vmatprep.mubr.f32.mxu1 %v281_v14 }
 0x146   :  { %v286_v17 = vpop.f32.mrf.mxu0  ;;  %546 = vmatmul.mubr.f32.gmra.mxu1 %v279_v12 }
 0x147   :  { %339 = vst [vmem:[%s1106_s5 + $0xa0] sm:$0xff] %v285_v16  ;;  %v287_v18 = vadd.f32 %v286_v17, %v832_v38 }
 0x148   :  { %v290_v19 = vpop.f32.mrf.mxu0 }
 0x149   :  { %340 = vst [vmem:[%s1106_s5 + $0xa8] sm:$0xff] %v287_v18  ;;  %v291_v20 = vadd.f32 %v290_v19, %v828_v37  ;;  %551 = vmatprep.mubr.f32.mxu1 %v287_v18 }
 0x14a   :  { %v292_v21 = vpop.f32.mrf.mxu0  ;;  %552 = vmatmul.mubr.f32.gmra.mxu1 %v285_v16 }
 0x14b   :  { %341 = vst [vmem:[%s1106_s5 + $0xb0] sm:$0xff] %v291_v20  ;;  %v293_v22 = vadd.f32 %v292_v21, %v832_v38 }
 0x14c   :  { %v296_v23 = vpop.f32.mrf.mxu0 }
 0x14d   :  { %342 = vst [vmem:[%s1106_s5 + $0xb8] sm:$0xff] %v293_v22  ;;  %v297_v24 = vadd.f32 %v296_v23, %v828_v37  ;;  %557 = vmatprep.mubr.f32.mxu1 %v293_v22 }
 0x14e   :  { %v298_v25 = vpop.f32.mrf.mxu0  ;;  %558 = vmatmul.mubr.f32.gmra.mxu1 %v291_v20 }
 0x14f   :  { %343 = vst [vmem:[%s1106_s5 + $0xc0] sm:$0xff] %v297_v24  ;;  %v299_v26 = vadd.f32 %v298_v25, %v832_v38 }
 0x150   :  { %v302_v27 = vpop.f32.mrf.mxu0 }
 0x151   :  { %344 = vst [vmem:[%s1106_s5 + $0xc8] sm:$0xff] %v299_v26  ;;  %v303_v28 = vadd.f32 %v302_v27, %v828_v37  ;;  %563 = vmatprep.mubr.f32.mxu1 %v299_v26 }
 0x152   :  { %v304_v29 = vpop.f32.mrf.mxu0  ;;  %564 = vmatmul.mubr.f32.gmra.mxu1 %v297_v24 }
 0x153   :  { %345 = vst [vmem:[%s1106_s5 + $0xd0] sm:$0xff] %v303_v28  ;;  %v305_v30 = vadd.f32 %v304_v29, %v832_v38 }
 0x154   :  { %v308_v31 = vpop.f32.mrf.mxu0 }
 0x155   :  { %346 = vst [vmem:[%s1106_s5 + $0xd8] sm:$0xff] %v305_v30  ;;  %v309_v32 = vadd.f32 %v308_v31, %v828_v37  ;;  %569 = vmatprep.mubr.f32.mxu1 %v305_v30 }
 0x156   :  { %v310_v35 = vpop.f32.mrf.mxu0  ;;  %570 = vmatmul.mubr.f32.gmra.mxu1 %v303_v28 }
 0x157   :  { %347 = vst [vmem:[%s1106_s5 + $0xe0] sm:$0xff] %v309_v32  ;;  %v311_v39 = vadd.f32 %v310_v35, %v832_v38 }
 0x158   :  { %v314_v40 = vpop.f32.mrf.mxu0 }
 0x159   :  { %348 = vst [vmem:[%s1106_s5 + $0xe8] sm:$0xff] %v311_v39  ;;  %v315_v41 = vadd.f32 %v314_v40, %v828_v37  ;;  %575 = vmatprep.mubr.f32.mxu1 %v311_v39  ;;  %v967_v37 = vrot.slane %v415_v44, %v150_v34 }
 0x15a   :  { %v316_v42 = vpop.f32.mrf.mxu0  ;;  %576 = vmatmul.mubr.f32.gmra.mxu1 %v309_v32 }
 0x15b   :  { %349 = vst [vmem:[%s1106_s5 + $0xf0] sm:$0xff] %v315_v41  ;;  %v317_v43 = vadd.f32 %v316_v42, %v832_v38 }
 0x15d   :  { %350 = vst [vmem:[%s1106_s5 + $0xf8] sm:$0xff] %v317_v43  ;;  %581 = vmatprep.mubr.f32.mxu1 %v317_v43 }
 0x15e   :  { %582 = vmatmul.mubr.f32.gmra.mxu1 %v315_v41 }
 0x1e2   :  { %v493_v46 = vpop.f32.mrf.mxu1 }
 0x1e3   :  { %v494_v38 = vadd.f32 %v493_v46, %v967_v37 }
 0x1e4   :  { %v495_v47 = vpop.f32.mrf.mxu1 }
 0x1e5   :  { %588 = vst [vmem:[%s1107_s6] sm:$0xff] %v494_v38  ;;  %v496_v48 = vadd.f32 %v495_v47, %v971_v45 }
 0x1e6   :  { %v499_v49 = vpop.f32.mrf.mxu1 }
 0x1e7   :  { %589 = vst [vmem:[%s1107_s6 + $0x8] sm:$0xff] %v496_v48  ;;  %v500_v34 = vadd.f32 %v499_v49, %v967_v37 }
 0x1e8   :  { %v501_v33 = vpop.f32.mrf.mxu1 }
 0x1e9   :  { %590 = vst [vmem:[%s1107_s6 + $0x10] sm:$0xff] %v500_v34  ;;  %v502_v36 = vadd.f32 %v501_v33, %v971_v45 }
 0x1ea   :  { %v505_v50 = vpop.f32.mrf.mxu1 }
 0x1eb   :  { %591 = vst [vmem:[%s1107_s6 + $0x18] sm:$0xff] %v502_v36  ;;  %v506_v51 = vadd.f32 %v505_v50, %v967_v37 }
 0x1ec   :  { %v507_v52 = vpop.f32.mrf.mxu1 }
 0x1ed   :  { %592 = vst [vmem:[%s1107_s6 + $0x20] sm:$0xff] %v506_v51  ;;  %v508_v53 = vadd.f32 %v507_v52, %v971_v45 }
 0x1ee   :  { %v511_v54 = vpop.f32.mrf.mxu1 }
 0x1ef   :  { %593 = vst [vmem:[%s1107_s6 + $0x28] sm:$0xff] %v508_v53  ;;  %v512_v55 = vadd.f32 %v511_v54, %v967_v37 }
 0x1f0   :  { %v513_v56 = vpop.f32.mrf.mxu1 }
 0x1f1   :  { %594 = vst [vmem:[%s1107_s6 + $0x30] sm:$0xff] %v512_v55  ;;  %v514_v57 = vadd.f32 %v513_v56, %v971_v45 }
 0x1f2   :  { %v517_v58 = vpop.f32.mrf.mxu1 }
 0x1f3   :  { %595 = vst [vmem:[%s1107_s6 + $0x38] sm:$0xff] %v514_v57  ;;  %v518_v59 = vadd.f32 %v517_v58, %v967_v37 }
 0x1f4   :  { %v519_v60 = vpop.f32.mrf.mxu1 }
 0x1f5   :  { %596 = vst [vmem:[%s1107_s6 + $0x40] sm:$0xff] %v518_v59  ;;  %v520_v61 = vadd.f32 %v519_v60, %v971_v45 }
 0x1f6   :  { %v523_v62 = vpop.f32.mrf.mxu1 }
 0x1f7   :  { %597 = vst [vmem:[%s1107_s6 + $0x48] sm:$0xff] %v520_v61  ;;  %v524_v63 = vadd.f32 %v523_v62, %v967_v37 }
 0x1f8   :  { %v525_v0 = vpop.f32.mrf.mxu1 }
 0x1f9   :  { %598 = vst [vmem:[%s1107_s6 + $0x50] sm:$0xff] %v524_v63  ;;  %v526_v1 = vadd.f32 %v525_v0, %v971_v45 }
 0x1fa   :  { %v529_v2 = vpop.f32.mrf.mxu1 }
 0x1fb   :  { %599 = vst [vmem:[%s1107_s6 + $0x58] sm:$0xff] %v526_v1  ;;  %v530_v3 = vadd.f32 %v529_v2, %v967_v37 }
 0x1fc   :  { %v531_v4 = vpop.f32.mrf.mxu1 }
 0x1fd   :  { %600 = vst [vmem:[%s1107_s6 + $0x60] sm:$0xff] %v530_v3  ;;  %v532_v5 = vadd.f32 %v531_v4, %v971_v45 }
 0x1fe   :  { %v535_v6 = vpop.f32.mrf.mxu1 }
 0x1ff   :  { %601 = vst [vmem:[%s1107_s6 + $0x68] sm:$0xff] %v532_v5  ;;  %v536_v7 = vadd.f32 %v535_v6, %v967_v37 }
 0x200   :  { %v537_v8 = vpop.f32.mrf.mxu1 }
 0x201   :  { %602 = vst [vmem:[%s1107_s6 + $0x70] sm:$0xff] %v536_v7  ;;  %v538_v9 = vadd.f32 %v537_v8, %v971_v45 }
 0x202   :  { %v541_v10 = vpop.f32.mrf.mxu1 }
 0x203   :  { %603 = vst [vmem:[%s1107_s6 + $0x78] sm:$0xff] %v538_v9  ;;  %v542_v11 = vadd.f32 %v541_v10, %v967_v37 }
 0x204   :  { %v543_v12 = vpop.f32.mrf.mxu1 }
 0x205   :  { %604 = vst [vmem:[%s1107_s6 + $0x80] sm:$0xff] %v542_v11  ;;  %v544_v13 = vadd.f32 %v543_v12, %v971_v45 }
 0x206   :  { %v547_v14 = vpop.f32.mrf.mxu1 }
 0x207   :  { %605 = vst [vmem:[%s1107_s6 + $0x88] sm:$0xff] %v544_v13  ;;  %v548_v15 = vadd.f32 %v547_v14, %v967_v37 }
 0x208   :  { %v549_v16 = vpop.f32.mrf.mxu1 }
 0x209   :  { %606 = vst [vmem:[%s1107_s6 + $0x90] sm:$0xff] %v548_v15  ;;  %v550_v17 = vadd.f32 %v549_v16, %v971_v45 }
 0x20a   :  { %v553_v18 = vpop.f32.mrf.mxu1 }
 0x20b   :  { %607 = vst [vmem:[%s1107_s6 + $0x98] sm:$0xff] %v550_v17  ;;  %v554_v19 = vadd.f32 %v553_v18, %v967_v37 }
 0x20c   :  { %v555_v20 = vpop.f32.mrf.mxu1 }
 0x20d   :  { %608 = vst [vmem:[%s1107_s6 + $0xa0] sm:$0xff] %v554_v19  ;;  %v556_v21 = vadd.f32 %v555_v20, %v971_v45 }
 0x20e   :  { %v559_v22 = vpop.f32.mrf.mxu1 }
 0x20f   :  { %609 = vst [vmem:[%s1107_s6 + $0xa8] sm:$0xff] %v556_v21  ;;  %v560_v23 = vadd.f32 %v559_v22, %v967_v37 }
 0x210   :  { %v561_v24 = vpop.f32.mrf.mxu1 }
 0x211   :  { %610 = vst [vmem:[%s1107_s6 + $0xb0] sm:$0xff] %v560_v23  ;;  %v562_v25 = vadd.f32 %v561_v24, %v971_v45 }
 0x212   :  { %v565_v26 = vpop.f32.mrf.mxu1 }
 0x213   :  { %611 = vst [vmem:[%s1107_s6 + $0xb8] sm:$0xff] %v562_v25  ;;  %v566_v27 = vadd.f32 %v565_v26, %v967_v37 }
 0x214   :  { %v567_v28 = vpop.f32.mrf.mxu1 }
 0x215   :  { %612 = vst [vmem:[%s1107_s6 + $0xc0] sm:$0xff] %v566_v27  ;;  %v568_v29 = vadd.f32 %v567_v28, %v971_v45 }
 0x216   :  { %v571_v30 = vpop.f32.mrf.mxu1 }
 0x217   :  { %613 = vst [vmem:[%s1107_s6 + $0xc8] sm:$0xff] %v568_v29  ;;  %v572_v31 = vadd.f32 %v571_v30, %v967_v37 }
 0x218   :  { %v573_v32 = vpop.f32.mrf.mxu1 }
 0x219   :  { %614 = vst [vmem:[%s1107_s6 + $0xd0] sm:$0xff] %v572_v31  ;;  %v574_v35 = vadd.f32 %v573_v32, %v971_v45 }
 0x21a   :  { %v577_v39 = vpop.f32.mrf.mxu1 }
 0x21b   :  { %615 = vst [vmem:[%s1107_s6 + $0xd8] sm:$0xff] %v574_v35  ;;  %v578_v40 = vadd.f32 %v577_v39, %v967_v37 }
 0x21c   :  { %v579_v41 = vpop.f32.mrf.mxu1 }
 0x21d   :  { %616 = vst [vmem:[%s1107_s6 + $0xe0] sm:$0xff] %v578_v40  ;;  %v580_v42 = vadd.f32 %v579_v41, %v971_v45 }
 0x21e   :  { %v583_v43 = vpop.f32.mrf.mxu1 }
 0x21f   :  { %617 = vst [vmem:[%s1107_s6 + $0xe8] sm:$0xff] %v580_v42  ;;  %v584_v44 = vadd.f32 %v583_v43, %v967_v37 }
 0x220   :  { %v585_v46 = vpop.f32.mrf.mxu1 }
 0x221   :  { %618 = vst [vmem:[%s1107_s6 + $0xf0] sm:$0xff] %v584_v44  ;;  %v586_v38 = vadd.f32 %v585_v46, %v971_v45 }
 0x223   :  { %619 = vst [vmem:[%s1107_s6 + $0xf8] sm:$0xff] %v586_v38 }
 0x224   :  { %628 = vsyncpa [#allocation3], 1 }
 0x225   :  { %629 = vsyncpa [#allocation5], 1 }

// kernel: forward_pair.10
= control target key start
LH: loop header
LB: loop body
LE: loop exit
PB: predicated region body
PF: predicated region fallthrough
CT: control target
= control target key end

     0   :  { %vm106_vm0 = vcmask 130048   ;;  %v1804_v50 = vmov 0.0   ;;  %s3022_s0 = inlined_call_operand.vmem [shape: bf16[16,128], index: 0, kind: input, shape index: {}]   ;;  %s3023_s1 = inlined_call_operand.vmem [shape: f32[256,16], index: 1, kind: input, shape index: {}]   ;;  %s3024_s2 = inlined_call_operand.vmem [shape: f32[128,256], index: 2, kind: input, shape index: {}]   ;;  %s3025_s4 = inlined_call_operand.vmem [shape: f32[256,256], index: 4, kind: input, shape index: {}]   ;;  %s3026_s3 = inlined_call_operand.vmem [shape: f32[256,256], index: 3, kind: input, shape index: {}]   ;;  %s3027_s5 = inlined_call_operand.vmem [shape: f32[256,1], index: 5, kind: input, shape index: {}]   ;;  %s3028_s9 = inlined_call_operand.<no memory space> [shape: f32[1,1], index: 9, kind: input, shape index: {}]   ;;  %s3029_s7 = inlined_call_operand.vmem [shape: f32[64,1], index: 7, kind: input, shape index: {}]   ;;  %s3030_s8 = inlined_call_operand.vmem [shape: f32[64,1], index: 8, kind: input, shape index: {}]   ;;  %s3031_s6 = inlined_call_operand.vmem [shape: f32[64,256], index: 6, kind: input, shape index: {}]   ;;  %s3032_s10 = inlined_call_operand.vmem [shape: f32[1,128], index: 10, kind: output, shape index: {}]  }
   0x1   :  { %v37_v0 = vld [vmem:[%s3022_s0] sm:$0xf]  ;;  %v75_v17 = vld [vmem:[%s3023_s1 + $0x8] sm:$0xff]  ;;  %v76_v18 = vld [vmem:[%s3023_s1 + $0x10] sm:$0xff] }
   0x2   :  { %v74_v1 = vld [vmem:[%s3023_s1] sm:$0xff]  ;;  %v39_v2 = vunpack.c.l.bf16 %v37_v0  ;;  %v77_v19 = vld [vmem:[%s3023_s1 + $0x18] sm:$0xff]  ;;  %v79_v21 = vld [vmem:[%s3023_s1 + $0x28] sm:$0xff] }
   0x3   :  { %1714 = vmatprep.mubr.msk.f32.mxu0 %vm106_vm0, %v74_v1  ;;  %v78_v20 = vld [vmem:[%s3023_s1 + $0x20] sm:$0xff]  ;;  %v80_v22 = vld [vmem:[%s3023_s1 + $0x30] sm:$0xff]  ;;  %v81_v23 = vld [vmem:[%s3023_s1 + $0x38] sm:$0xff] }
   0x4   :  { %v52_v3 = vmax.f32 %v39_v2, -1e+30  ;;  %v82_v24 = vld [vmem:[%s3023_s1 + $0x40] sm:$0xff]  ;;  %v83_v25 = vld [vmem:[%s3023_s1 + $0x48] sm:$0xff]  ;;  %v84_v26 = vld [vmem:[%s3023_s1 + $0x50] sm:$0xff] }
   0x5   :  { %v85_v27 = vld [vmem:[%s3023_s1 + $0x58] sm:$0xff]  ;;  %v86_v28 = vld [vmem:[%s3023_s1 + $0x60] sm:$0xff]  ;;  %v87_v29 = vld [vmem:[%s3023_s1 + $0x68] sm:$0xff] }
   0x6   :  { %v53_v4 = vrot.slane %v52_v3, 4  ;;  %v88_v30 = vld [vmem:[%s3023_s1 + $0x70] sm:$0xff]  ;;  %v89_v31 = vld [vmem:[%s3023_s1 + $0x78] sm:$0xff]  ;;  %v90_v32 = vld [vmem:[%s3023_s1 + $0x80] sm:$0xff] }
   0x7   :  { %v91_v33 = vld [vmem:[%s3023_s1 + $0x88] sm:$0xff]  ;;  %v92_v34 = vld [vmem:[%s3023_s1 + $0x90] sm:$0xff]  ;;  %v93_v35 = vld [vmem:[%s3023_s1 + $0x98] sm:$0xff] }
   0x8   :  { %v54_v5 = vmax.f32 %v52_v3, %v53_v4  ;;  %v94_v36 = vld [vmem:[%s3023_s1 + $0xa0] sm:$0xff]  ;;  %v95_v37 = vld [vmem:[%s3023_s1 + $0xa8] sm:$0xff]  ;;  %v96_v38 = vld [vmem:[%s3023_s1 + $0xb0] sm:$0xff] }
   0x9   :  { %v97_v39 = vld [vmem:[%s3023_s1 + $0xb8] sm:$0xff]  ;;  %v98_v40 = vld [vmem:[%s3023_s1 + $0xc0] sm:$0xff]  ;;  %v99_v41 = vld [vmem:[%s3023_s1 + $0xc8] sm:$0xff] }
   0xa   :  { %v55_v6 = vrot.slane %v54_v5, 2  ;;  %v100_v42 = vld [vmem:[%s3023_s1 + $0xd0] sm:$0xff]  ;;  %v101_v43 = vld [vmem:[%s3023_s1 + $0xd8] sm:$0xff]  ;;  %v102_v44 = vld [vmem:[%s3023_s1 + $0xe0] sm:$0xff] }
   0xb   :  { %v103_v45 = vld [vmem:[%s3023_s1 + $0xe8] sm:$0xff]  ;;  %v104_v46 = vld [vmem:[%s3023_s1 + $0xf0] sm:$0xff]  ;;  %v105_v47 = vld [vmem:[%s3023_s1 + $0xf8] sm:$0xff] }
   0xc   :  { %v56_v7 = vmax.f32 %v54_v5, %v55_v6  ;;  %v619_v48 = vld [vmem:[%s3024_s2 + $0xf8] sm:$0xff]  ;;  %v618_v49 = vld [vmem:[%s3024_s2 + $0xf0] sm:$0xff]  ;;  %v617_v51 = vld [vmem:[%s3024_s2 + $0xe8] sm:$0xff] }
   0xd   :  { %620 = vmatprep.subr.mxu1 %v619_v48  ;;  %v616_v52 = vld [vmem:[%s3024_s2 + $0xe0] sm:$0xff]  ;;  %v615_v53 = vld [vmem:[%s3024_s2 + $0xd8] sm:$0xff]  ;;  %v614_v54 = vld [vmem:[%s3024_s2 + $0xd0] sm:$0xff] }
   0xe   :  { %v57_v8 = vrot.slane %v56_v7, 1  ;;  %621 = vmatpush1.xpose.msra.mxu1 %v618_v49  ;;  %v613_v55 = vld [vmem:[%s3024_s2 + $0xc8] sm:$0xff]  ;;  %v612_v56 = vld [vmem:[%s3024_s2 + $0xc0] sm:$0xff]  ;;  %v611_v57 = vld [vmem:[%s3024_s2 + $0xb8] sm:$0xff] }
   0xf   :  { %622 = vmatprep.subr.mxu1 %v617_v51  ;;  %v610_v58 = vld [vmem:[%s3024_s2 + $0xb0] sm:$0xff]  ;;  %v609_v59 = vld [vmem:[%s3024_s2 + $0xa8] sm:$0xff]  ;;  %v608_v60 = vld [vmem:[%s3024_s2 + $0xa0] sm:$0xff] }
  0x10   :  { %v58_v9 = vmax.f32 %v56_v7, %v57_v8  ;;  %v607_v61 = vld [vmem:[%s3024_s2 + $0x98] sm:$0xff]  ;;  %v606_v62 = vld [vmem:[%s3024_s2 + $0x90] sm:$0xff]  ;;  %v605_v63 = vld [vmem:[%s3024_s2 + $0x88] sm:$0xff] }
  0x11   :  { %v604_v0 = vld [vmem:[%s3024_s2 + $0x80] sm:$0xff]  ;;  %v603_v1 = vld [vmem:[%s3024_s2 + $0x78] sm:$0xff]  ;;  %v601_v3 = vld [vmem:[%s3024_s2 + $0x68] sm:$0xff] }
  0x12   :  { %v60_v10 = vsub.f32 -1e+30, %v58_v9  ;;  %v59_v11 = vsub.f32 %v39_v2, %v58_v9  ;;  %623 = vmatpush1.xpose.msra.mxu1 %v616_v52  ;;  %v602_v2 = vld [vmem:[%s3024_s2 + $0x70] sm:$0xff]  ;;  %v600_v4 = vld [vmem:[%s3024_s2 + $0x60] sm:$0xff]  ;;  %v599_v5 = vld [vmem:[%s3024_s2 + $0x58] sm:$0xff] }
  0x13   :  { %624 = vmatprep.subr.mxu1 %v615_v53  ;;  %v598_v6 = vld [vmem:[%s3024_s2 + $0x50] sm:$0xff]  ;;  %v597_v7 = vld [vmem:[%s3024_s2 + $0x48] sm:$0xff]  ;;  %v596_v8 = vld [vmem:[%s3024_s2 + $0x40] sm:$0xff] }
  0x14   :  { %v63_v12 = vmul.f32 1.442695, %v60_v10  ;;  %v61_v13 = vmul.f32 1.442695, %v59_v11  ;;  %v595_v9 = vld [vmem:[%s3024_s2 + $0x38] sm:$0xff]  ;;  %v594_v10 = vld [vmem:[%s3024_s2 + $0x30] sm:$0xff] }
  0x15   :  { %v593_v11 = vld [vmem:[%s3024_s2 + $0x28] sm:$0xff]  ;;  %v544_v53 = vld [vmem:[%s3025_s4 + $0xa0] sm:$0xff] }
  0x16   :  { %1798 = vpow2.f32 %v63_v12  ;;  %625 = vmatpush1.xpose.msra.mxu1 %v614_v54  ;;  %v592_v12 = vld [vmem:[%s3024_s2 + $0x20] sm:$0xff]  ;;  %v1079_v48 = vld [vmem:[%s3027_s5 + $0x48] sm:$0xff] }
  0x17   :  { %1800 = vpow2.f32 %v61_v13  ;;  %626 = vmatprep.subr.mxu1 %v613_v55  ;;  %v591_v13 = vld [vmem:[%s3024_s2 + $0x18] sm:$0xff]  ;;  %v545_v52 = vld [vmem:[%s3025_s4 + $0xa8] sm:$0xff]  ;;  %v1078_v54 = vld [vmem:[%s3027_s5 + $0x40] sm:$0xff] }
  0x1a   :  { %627 = vmatpush1.xpose.msra.mxu1 %v612_v56 }
  0x1b   :  { %628 = vmatprep.subr.mxu1 %v611_v57 }
  0x1e   :  { %629 = vmatpush1.xpose.msra.mxu1 %v610_v58  ;;  %v547_v58 = vld [vmem:[%s3025_s4 + $0xb8] sm:$0xff] }
  0x1f   :  { %630 = vmatprep.subr.mxu1 %v609_v59  ;;  %v546_v59 = vld [vmem:[%s3025_s4 + $0xb0] sm:$0xff] }
  0x22   :  { %631 = vmatpush1.xpose.msra.mxu1 %v608_v60  ;;  %v1077_v60 = vld [vmem:[%s3027_s5 + $0x38] sm:$0xff] }
  0x23   :  { %v1799_v14 = vpop.eup %1798  ;;  %632 = vmatprep.subr.mxu1 %v607_v61 }
  0x24   :  { %v1801_v15 = vpop.eup %1800  ;;  %1710 = vmatprep.subr.mxu0 %v1799_v14 }
  0x25   :  { %1711 = vmatpush3.msra.mxu0 %v1799_v14  ;;  %v1868_v16 = vadd.f32 %v1801_v15, %v1799_v14  ;;  %v590_v14 = vld [vmem:[%s3024_s2 + $0x10] sm:$0xff] }
  0x26   :  { %1712 = vmatprep.subr.mxu0 %v1801_v15  ;;  %633 = vmatpush1.xpose.msra.mxu1 %v606_v62 }
  0x27   :  { %1713 = vmatpush3.msra.mxu0 %v1801_v15  ;;  %634 = vmatprep.subr.mxu1 %v605_v63  ;;  %v589_v15 = vld [vmem:[%s3024_s2 + $0x8] sm:$0xff] }
  0x28   :  { %1715 = vmatmul.mubr.msk.f32.vlgmr.msra.gmra.mxu0 %vm106_vm0, %v75_v17  ;;  %845 = vmatprep.subr.mxu0 %v1804_v50  ;;  %v588_v17 = vld [vmem:[%s3024_s2] sm:$0xff] }
  0x29   :  { %1717 = vmatprep.mubr.msk.f32.mxu0 %vm106_vm0, %v76_v18  ;;  %v525_v18 = vld [vmem:[%s3025_s4 + $0x8] sm:$0xff] }
  0x2a   :  { %635 = vmatpush1.xpose.msra.mxu1 %v604_v0  ;;  %684 = vmatprep.mubr.f32.mxu1 %v525_v18  ;;  %v549_v0 = vld [vmem:[%s3025_s4 + $0xc8] sm:$0xff]  ;;  %v554_v18 = vld [vmem:[%s3025_s4 + $0xf0] sm:$0xff] }
  0x2b   :  { %636 = vmatprep.subr.mxu1 %v603_v1  ;;  %v548_v1 = vld [vmem:[%s3025_s4 + $0xc0] sm:$0xff] }
  0x2c   :  { %1718 = vmatmul.mubr.msk.f32.gmra.mxu0 %vm106_vm0, %v77_v19  ;;  %v524_v19 = vld [vmem:[%s3025_s4] sm:$0xff] }
  0x2d   :  { %1720 = vmatprep.mubr.msk.f32.mxu0 %vm106_vm0, %v78_v20  ;;  %v461_v20 = vld [vmem:[%s3026_s3 + $0x8] sm:$0xff] }
  0x2e   :  { %637 = vmatpush1.xpose.msra.mxu1 %v602_v2  ;;  %v1076_v2 = vld [vmem:[%s3027_s5 + $0x30] sm:$0xff] }
  0x2f   :  { %638 = vmatprep.subr.mxu1 %v601_v3 }
  0x30   :  { %1721 = vmatmul.mubr.msk.f32.gmra.mxu0 %vm106_vm0, %v79_v21  ;;  %v527_v21 = vld [vmem:[%s3025_s4 + $0x18] sm:$0xff] }
  0x31   :  { %1723 = vmatprep.mubr.msk.f32.mxu0 %vm106_vm0, %v80_v22  ;;  %v526_v22 = vld [vmem:[%s3025_s4 + $0x10] sm:$0xff] }
  0x32   :  { %639 = vmatpush1.xpose.msra.mxu1 %v600_v4 }
  0x33   :  { %640 = vmatprep.subr.mxu1 %v599_v5 }
  0x34   :  { %1724 = vmatmul.mubr.msk.f32.gmra.mxu0 %vm106_vm0, %v81_v23  ;;  %v529_v23 = vld [vmem:[%s3025_s4 + $0x28] sm:$0xff] }
  0x35   :  { %1726 = vmatprep.mubr.msk.f32.mxu0 %vm106_vm0, %v82_v24  ;;  %v528_v24 = vld [vmem:[%s3025_s4 + $0x20] sm:$0xff] }
  0x36   :  { %641 = vmatpush1.xpose.msra.mxu1 %v598_v6  ;;  %v551_v6 = vld [vmem:[%s3025_s4 + $0xd8] sm:$0xff] }
  0x37   :  { %642 = vmatprep.subr.mxu1 %v597_v7  ;;  %v550_v7 = vld [vmem:[%s3025_s4 + $0xd0] sm:$0xff] }
  0x38   :  { %1727 = vmatmul.mubr.msk.f32.gmra.mxu0 %vm106_vm0, %v83_v25  ;;  %v531_v25 = vld [vmem:[%s3025_s4 + $0x38] sm:$0xff] }
  0x39   :  { %1729 = vmatprep.mubr.msk.f32.mxu0 %vm106_vm0, %v84_v26  ;;  %v530_v26 = vld [vmem:[%s3025_s4 + $0x30] sm:$0xff] }
  0x3a   :  { %643 = vmatpush1.xpose.msra.mxu1 %v596_v8  ;;  %v1075_v8 = vld [vmem:[%s3027_s5 + $0x28] sm:$0xff] }
  0x3b   :  { %644 = vmatprep.subr.mxu1 %v595_v9 }
  0x3c   :  { %1730 = vmatmul.mubr.msk.f32.gmra.mxu0 %vm106_vm0, %v85_v27  ;;  %v1805_v27 = vmov 0  }
  0x3d   :  { %1732 = vmatprep.mubr.msk.f32.mxu0 %vm106_vm0, %v86_v28  ;;  %1797 = vset.pattern.permute.xlu1 %v1805_v27  ;;  %v1100_v28 = vld [vmem:[%s3027_s5 + $0xf0] sm:$0xff] }
  0x3e   :  { %645 = vmatpush1.xpose.msra.mxu1 %v594_v10  ;;  %1254 = vperm.xlu1 %1797, %v1100_v28  }
  0x3f   :  { %646 = vmatprep.subr.mxu1 %v593_v11  ;;  %1796 = vset.pattern.permute.xlu0 %v1805_v27  ;;  %v553_v11 = vld [vmem:[%s3025_s4 + $0xe8] sm:$0xff] }
  0x40   :  { %1733 = vmatmul.mubr.msk.f32.gmra.mxu0 %vm106_vm0, %v87_v29  ;;  %v533_v29 = vld [vmem:[%s3025_s4 + $0x48] sm:$0xff] }
  0x41   :  { %1735 = vmatprep.mubr.msk.f32.mxu0 %vm106_vm0, %v88_v30  ;;  %v532_v30 = vld [vmem:[%s3025_s4 + $0x40] sm:$0xff] }
  0x42   :  { %647 = vmatpush1.xpose.msra.mxu1 %v592_v12  ;;  %v552_v12 = vld [vmem:[%s3025_s4 + $0xe0] sm:$0xff] }
  0x43   :  { %648 = vmatprep.subr.mxu1 %v591_v13  ;;  %v1074_v13 = vld [vmem:[%s3027_s5 + $0x20] sm:$0xff] }
  0x44   :  { %1736 = vmatmul.mubr.msk.f32.gmra.mxu0 %vm106_vm0, %v89_v31  ;;  %v1084_v31 = vld [vmem:[%s3027_s5 + $0x70] sm:$0xff] }
  0x45   :  { %1738 = vmatprep.mubr.msk.f32.mxu0 %vm106_vm0, %v90_v32  ;;  %1174 = vperm.xlu1 %1797, %v1084_v31   ;;  %v535_v32 = vld [vmem:[%s3025_s4 + $0x58] sm:$0xff]  ;;  %v1071_v31 = vld [vmem:[%s3027_s5 + $0x8] sm:$0xff] }
  0x46   :  { %649 = vmatpush1.xpose.msra.mxu1 %v590_v14 }
  0x47   :  { %650 = vmatprep.subr.mxu1 %v589_v15 }
  0x48   :  { %1739 = vmatmul.mubr.msk.f32.gmra.mxu0 %vm106_vm0, %v91_v33  ;;  %v534_v33 = vld [vmem:[%s3025_s4 + $0x50] sm:$0xff] }
  0x49   :  { %1741 = vmatprep.mubr.msk.f32.mxu0 %vm106_vm0, %v92_v34  ;;  %v1083_v34 = vld [vmem:[%s3027_s5 + $0x68] sm:$0xff] }
  0x4a   :  { %651 = vmatpush1.xpose.msra.mxu1 %v588_v17  ;;  %1169 = vperm.xlu1 %1797, %v1083_v34   ;;  %v555_v17 = vld [vmem:[%s3025_s4 + $0xf8] sm:$0xff] }
  0x4c   :  { %1742 = vmatmul.mubr.msk.f32.gmra.mxu0 %vm106_vm0, %v93_v35  ;;  %v537_v35 = vld [vmem:[%s3025_s4 + $0x68] sm:$0xff] }
  0x4d   :  { %1744 = vmatprep.mubr.msk.f32.mxu0 %vm106_vm0, %v94_v36  ;;  %685 = vmatmul.mubr.f32.vlgmr.msra.gmra.mxu1 %v524_v19  ;;  %v536_v36 = vld [vmem:[%s3025_s4 + $0x60] sm:$0xff]  ;;  %v1073_v19 = vld [vmem:[%s3027_s5 + $0x18] sm:$0xff] }
  0x4e   :  { %689 = vmatprep.mubr.f32.mxu1 %v527_v21 }
  0x50   :  { %1745 = vmatmul.mubr.msk.f32.gmra.mxu0 %vm106_vm0, %v95_v37  ;;  %v1082_v37 = vld [vmem:[%s3027_s5 + $0x60] sm:$0xff] }
  0x51   :  { %1747 = vmatprep.mubr.msk.f32.mxu0 %vm106_vm0, %v96_v38  ;;  %690 = vmatmul.mubr.f32.gmra.mxu1 %v526_v22  ;;  %v539_v38 = vld [vmem:[%s3025_s4 + $0x78] sm:$0xff]  ;;  %v557_v22 = vld [vmem:[%s3025_s4 + $0x108] sm:$0xff] }
  0x52   :  { %694 = vmatprep.mubr.f32.mxu1 %v529_v23  ;;  %1164 = vperm.xlu1 %1797, %v1082_v37   ;;  %v556_v23 = vld [vmem:[%s3025_s4 + $0x100] sm:$0xff] }
  0x53   :  { %v560_v37 = vld [vmem:[%s3025_s4 + $0x120] sm:$0xff] }
  0x54   :  { %1748 = vmatmul.mubr.msk.f32.gmra.mxu0 %vm106_vm0, %v97_v39  ;;  %v538_v39 = vld [vmem:[%s3025_s4 + $0x70] sm:$0xff] }
  0x55   :  { %1750 = vmatprep.mubr.msk.f32.mxu0 %vm106_vm0, %v98_v40  ;;  %695 = vmatmul.mubr.f32.gmra.mxu1 %v528_v24  ;;  %v1081_v40 = vld [vmem:[%s3027_s5 + $0x58] sm:$0xff]  ;;  %v1072_v24 = vld [vmem:[%s3027_s5 + $0x10] sm:$0xff] }
  0x56   :  { %699 = vmatprep.mubr.f32.mxu1 %v531_v25  ;;  %1159 = vperm.xlu1 %1797, %v1081_v40   ;;  %v1101_v40 = vld [vmem:[%s3027_s5 + $0xf8] sm:$0xff] }
  0x57   :  { %1259 = vperm.xlu0 %1796, %v1101_v40  }
  0x58   :  { %1751 = vmatmul.mubr.msk.f32.gmra.mxu0 %vm106_vm0, %v99_v41  ;;  %v66_v41 = vrot.slane %v1868_v16, 4 }
  0x59   :  { %1753 = vmatprep.mubr.msk.f32.mxu0 %vm106_vm0, %v100_v42  ;;  %700 = vmatmul.mubr.f32.gmra.mxu1 %v530_v26  ;;  %v541_v42 = vld [vmem:[%s3025_s4 + $0x88] sm:$0xff] }
  0x5a   :  { %704 = vmatprep.mubr.f32.mxu1 %v533_v29  ;;  %v559_v29 = vld [vmem:[%s3025_s4 + $0x118] sm:$0xff] }
  0x5c   :  { %1754 = vmatmul.mubr.msk.f32.gmra.mxu0 %vm106_vm0, %v101_v43  ;;  %v540_v43 = vld [vmem:[%s3025_s4 + $0x80] sm:$0xff] }
  0x5d   :  { %1756 = vmatprep.mubr.msk.f32.mxu0 %vm106_vm0, %v102_v44  ;;  %705 = vmatmul.mubr.f32.gmra.mxu1 %v532_v30  ;;  %v1080_v44 = vld [vmem:[%s3027_s5 + $0x50] sm:$0xff] }
  0x5e   :  { %709 = vmatprep.mubr.f32.mxu1 %v535_v32  ;;  %1154 = vperm.xlu1 %1797, %v1080_v44   ;;  %v558_v30 = vld [vmem:[%s3025_s4 + $0x110] sm:$0xff]  ;;  %v563_v44 = vld [vmem:[%s3025_s4 + $0x138] sm:$0xff] }
  0x60   :  { %1757 = vmatmul.mubr.msk.f32.gmra.mxu0 %vm106_vm0, %v103_v45  ;;  %v67_v45 = vadd.f32 %v66_v41, %v1868_v16 }
  0x61   :  { %1759 = vmatprep.mubr.msk.f32.mxu0 %vm106_vm0, %v104_v46  ;;  %710 = vmatmul.mubr.f32.gmra.mxu1 %v534_v33  ;;  %v543_v46 = vld [vmem:[%s3025_s4 + $0x98] sm:$0xff] }
  0x62   :  { %714 = vmatprep.mubr.f32.mxu1 %v537_v35  ;;  %v68_v49 = vrot.slane %v67_v45, 2  ;;  %1149 = vperm.xlu1 %1797, %v1079_v48  }
  0x64   :  { %1760 = vmatmul.mubr.msk.f32.gmra.mxu0 %vm106_vm0, %v105_v47  ;;  %v542_v47 = vld [vmem:[%s3025_s4 + $0x90] sm:$0xff]  ;;  %v69_v55 = vadd.f32 %v68_v49, %v67_v45 }
  0x65   :  { %909 = vmatprep.mubr.f32.mxu0 %v461_v20  ;;  %715 = vmatmul.mubr.f32.gmra.mxu1 %v536_v36  ;;  %v561_v36 = vld [vmem:[%s3025_s4 + $0x128] sm:$0xff]  ;;  %v562_v45 = vld [vmem:[%s3025_s4 + $0x130] sm:$0xff] }
  0x66   :  { %719 = vmatprep.mubr.f32.mxu1 %v539_v38  ;;  %1144 = vperm.xlu1 %1797, %v1078_v54   ;;  %v70_v61 = vrot.slane %v69_v55, 1  ;;  %v1070_v38 = vld [vmem:[%s3027_s5] sm:$0xff] }
  0x67   :  { %v564_v54 = vld [vmem:[%s3025_s4 + $0x140] sm:$0xff] }
  0x68   :  { %v71_v3 = vadd.f32 %v70_v61, %v69_v55 }
  0x69   :  { %720 = vmatmul.mubr.f32.gmra.mxu1 %v538_v39 }
  0x6a   :  { %724 = vmatprep.mubr.f32.mxu1 %v541_v42  ;;  %1139 = vperm.xlu1 %1797, %v1077_v60   ;;  %1802 = vrcp.f32 %v71_v3  ;;  %v1098_v3 = vld [vmem:[%s3027_s5 + $0xe0] sm:$0xff] }
  0x6d   :  { %725 = vmatmul.mubr.f32.gmra.mxu1 %v540_v43 }
  0x6e   :  { %729 = vmatprep.mubr.f32.mxu1 %v543_v46  ;;  %1134 = vperm.xlu1 %1797, %v1076_v2  }
  0x71   :  { %730 = vmatmul.mubr.f32.gmra.mxu1 %v542_v47  ;;  %v1085_v47 = vld [vmem:[%s3027_s5 + $0x78] sm:$0xff] }
  0x72   :  { %734 = vmatprep.mubr.f32.mxu1 %v545_v52  ;;  %1129 = vperm.xlu1 %1797, %v1075_v8   ;;  %v568_v8 = vld [vmem:[%s3025_s4 + $0x160] sm:$0xff] }
  0x73   :  { %1179 = vperm.xlu0 %1796, %v1085_v47  }
  0x75   :  { %735 = vmatmul.mubr.f32.gmra.mxu1 %v544_v53  ;;  %v565_v53 = vld [vmem:[%s3025_s4 + $0x148] sm:$0xff] }
  0x76   :  { %739 = vmatprep.mubr.f32.mxu1 %v547_v58  ;;  %1124 = vperm.xlu1 %1797, %v1074_v13   ;;  %v1099_v58 = vld [vmem:[%s3027_s5 + $0xe8] sm:$0xff]  ;;  %v570_v13 = vld [vmem:[%s3025_s4 + $0x170] sm:$0xff] }
  0x77   :  { %v2260_v25 = vpop.eup %1802  ;;  %1249 = vperm.xlu0 %1796, %v1099_v58  }
  0x79   :  { %740 = vmatmul.mubr.f32.gmra.mxu1 %v546_v59 }
  0x7a   :  { %744 = vmatprep.mubr.f32.mxu1 %v549_v0  ;;  %1119 = vperm.xlu1 %1797, %v1073_v19   ;;  %v567_v0 = vld [vmem:[%s3025_s4 + $0x158] sm:$0xff]  ;;  %v572_v19 = vld [vmem:[%s3025_s4 + $0x180] sm:$0xff] }
  0x7b   :  { %1244 = vperm.xlu0 %1796, %v1098_v3  }
  0x7d   :  { %745 = vmatmul.mubr.f32.gmra.mxu1 %v548_v1  ;;  %v566_v1 = vld [vmem:[%s3025_s4 + $0x150] sm:$0xff] }
  0x7e   :  { %749 = vmatprep.mubr.f32.mxu1 %v551_v6  ;;  %1114 = vperm.xlu1 %1797, %v1072_v24   ;;  %v574_v24 = vld [vmem:[%s3025_s4 + $0x190] sm:$0xff] }
  0x81   :  { %750 = vmatmul.mubr.f32.gmra.mxu1 %v550_v7 }
  0x82   :  { %754 = vmatprep.mubr.f32.mxu1 %v553_v11  ;;  %1109 = vperm.xlu1 %1797, %v1071_v31  }
  0x85   :  { %755 = vmatmul.mubr.f32.gmra.mxu1 %v552_v12 }
  0x86   :  { %759 = vmatprep.mubr.f32.mxu1 %v555_v17  ;;  %1104 = vperm.xlu1 %1797, %v1070_v38  }
  0x89   :  { %760 = vmatmul.mubr.f32.gmra.mxu1 %v554_v18 }
  0x8a   :  { %764 = vmatprep.mubr.f32.mxu1 %v557_v22 }
  0x8d   :  { %765 = vmatmul.mubr.f32.gmra.mxu1 %v556_v23 }
  0x8e   :  { %769 = vmatprep.mubr.f32.mxu1 %v559_v29  ;;  %v577_v29 = vld [vmem:[%s3025_s4 + $0x1a8] sm:$0xff] }
  0x91   :  { %770 = vmatmul.mubr.f32.gmra.mxu1 %v558_v30  ;;  %v576_v30 = vld [vmem:[%s3025_s4 + $0x1a0] sm:$0xff] }
  0x92   :  { %774 = vmatprep.mubr.f32.mxu1 %v561_v36  ;;  %v579_v36 = vld [vmem:[%s3025_s4 + $0x1b8] sm:$0xff] }
  0x95   :  { %775 = vmatmul.mubr.f32.gmra.mxu1 %v560_v37  ;;  %v578_v37 = vld [vmem:[%s3025_s4 + $0x1b0] sm:$0xff] }
  0x96   :  { %779 = vmatprep.mubr.f32.mxu1 %v563_v44  ;;  %v580_v44 = vld [vmem:[%s3025_s4 + $0x1c0] sm:$0xff] }
  0x99   :  { %780 = vmatmul.mubr.f32.gmra.mxu1 %v562_v45 }
  0x9a   :  { %784 = vmatprep.mubr.f32.mxu1 %v565_v53  ;;  %v582_v53 = vld [vmem:[%s3025_s4 + $0x1d0] sm:$0xff] }
  0x9d   :  { %785 = vmatmul.mubr.f32.gmra.mxu1 %v564_v54 }
  0x9e   :  { %789 = vmatprep.mubr.f32.mxu1 %v567_v0 }
  0xa1   :  { %790 = vmatmul.mubr.f32.gmra.mxu1 %v566_v1  ;;  %v587_v1 = vld [vmem:[%s3025_s4 + $0x1f8] sm:$0xff] }
  0xe8   :  { %v2177_v51 = vpop.f32.mrf.mxu0 }
  0xe9   :  { %v429_v17 = vmul.f32 %v2260_v25, %v2177_v51  ;;  %v1095_v51 = vld [vmem:[%s3027_s5 + $0xc8] sm:$0xff] }
  0xea   :  { %v2179_v16 = vpop.f32.mrf.mxu0 }
  0xec   :  { %v2190_v56 = vpop.f32.mrf.mxu0 }
  0xed   :  { %v431_v11 = vmul.f32 %v2260_v25, %v2190_v56  ;;  %v1096_v56 = vld [vmem:[%s3027_s5 + $0xd0] sm:$0xff] }
  0xee   :  { %v2192_v57 = vpop.f32.mrf.mxu0 }
  0xf0   :  { %v2203_v62 = vpop.f32.mrf.mxu0 }
  0xf1   :  { %v433_v6 = vmul.f32 %v2260_v25, %v2203_v62  ;;  %v1097_v62 = vld [vmem:[%s3027_s5 + $0xd8] sm:$0xff] }
  0xf2   :  { %v2205_v63 = vpop.f32.mrf.mxu0  ;;  %1239 = vperm.xlu0 %1796, %v1097_v62   ;;  %v464_v62 = vld [vmem:[%s3026_s3 + $0x20] sm:$0xff] }
  0xf4   :  { %v2216_v4 = vpop.f32.mrf.mxu0 }
  0xf5   :  { %v435_v60 = vmul.f32 %v2260_v25, %v2216_v4 }
  0xf6   :  { %v2218_v5 = vpop.f32.mrf.mxu0  ;;  %1234 = vperm.xlu0 %1796, %v1096_v56   ;;  %v1506_v56 = vld [vmem:[%s3030_s8 + $0x18] sm:$0xff] }
  0xf7   :  { %v434_v2 = vmul.f32 %v2260_v25, %v2218_v5  ;;  %v569_v5 = vld [vmem:[%s3025_s4 + $0x168] sm:$0xff] }
  0xf8   :  { %v2229_v9 = vpop.f32.mrf.mxu0  ;;  %794 = vmatprep.mubr.f32.mxu1 %v569_v5  ;;  %v1086_v5 = vld [vmem:[%s3027_s5 + $0x80] sm:$0xff] }
  0xf9   :  { %v437_v49 = vmul.f32 %v2260_v25, %v2229_v9  ;;  %v432_v9 = vmul.f32 %v2260_v25, %v2205_v63  ;;  %795 = vmatmul.mubr.f32.gmra.mxu1 %v568_v8  ;;  %v571_v63 = vld [vmem:[%s3025_s4 + $0x178] sm:$0xff]  ;;  %v465_v8 = vld [vmem:[%s3026_s3 + $0x28] sm:$0xff] }
  0xfa   :  { %v2231_v10 = vpop.f32.mrf.mxu0  ;;  %799 = vmatprep.mubr.f32.mxu1 %v571_v63  ;;  %1229 = vperm.xlu0 %1796, %v1095_v51   ;;  %v466_v63 = vld [vmem:[%s3026_s3 + $0x30] sm:$0xff]  ;;  %v473_v51 = vld [vmem:[%s3026_s3 + $0x68] sm:$0xff] }
  0xfb   :  { %v436_v55 = vmul.f32 %v2260_v25, %v2231_v10 }
  0xfc   :  { %v1731_v14 = vpop.f32.mrf.mxu0 }
  0xfd   :  { %v439_v42 = vmul.f32 %v2260_v25, %v1731_v14  ;;  %v430_v14 = vmul.f32 %v2260_v25, %v2192_v57  ;;  %800 = vmatmul.mubr.f32.gmra.mxu1 %v570_v13  ;;  %v573_v57 = vld [vmem:[%s3025_s4 + $0x188] sm:$0xff]  ;;  %v1344_v13 = vld [vmem:[%s3029_s7 + $0x10] sm:$0xff] }
  0xfe   :  { %v319_v15 = vpop.f32.mrf.mxu0  ;;  %804 = vmatprep.mubr.f32.mxu1 %v573_v57  ;;  %v1507_v57 = vld [vmem:[%s3030_s8 + $0x20] sm:$0xff] }
  0xff   :  { %v438_v46 = vmul.f32 %v2260_v25, %v319_v15 }
 0x100   :  { %v1734_v20 = vpop.f32.mrf.mxu0 }
 0x101   :  { %v441_v34 = vmul.f32 %v2260_v25, %v1734_v20  ;;  %v428_v20 = vmul.f32 %v2260_v25, %v2179_v16  ;;  %805 = vmatmul.mubr.f32.gmra.mxu1 %v572_v19  ;;  %v575_v16 = vld [vmem:[%s3025_s4 + $0x198] sm:$0xff]  ;;  %v470_v19 = vld [vmem:[%s3026_s3 + $0x50] sm:$0xff] }
 0x102   :  { %v329_v21 = vpop.f32.mrf.mxu0  ;;  %809 = vmatprep.mubr.f32.mxu1 %v575_v16  ;;  %v474_v16 = vld [vmem:[%s3026_s3 + $0x70] sm:$0xff] }
 0x103   :  { %v440_v39 = vmul.f32 %v2260_v25, %v329_v21 }
 0x104   :  { %v1737_v26 = vpop.f32.mrf.mxu0 }
 0x105   :  { %v443_v27 = vmul.f32 %v2260_v25, %v1737_v26  ;;  %810 = vmatmul.mubr.f32.gmra.mxu1 %v574_v24  ;;  %v1348_v24 = vld [vmem:[%s3029_s7 + $0x30] sm:$0xff] }
 0x106   :  { %v339_v28 = vpop.f32.mrf.mxu0  ;;  %814 = vmatprep.mubr.f32.mxu1 %v577_v29  ;;  %v479_v29 = vld [vmem:[%s3026_s3 + $0x98] sm:$0xff] }
 0x107   :  { %v442_v32 = vmul.f32 %v2260_v25, %v339_v28  ;;  %846 = vmatpush1.msra.mxu0 %v443_v27  ;;  %v1094_v27 = vld [vmem:[%s3027_s5 + $0xc0] sm:$0xff] }
 0x108   :  { %v2273_v33 = vpop.f32.mrf.mxu0  ;;  %847 = vmatprep.subr.mxu0 %v1804_v50  ;;  %1224 = vperm.xlu0 %1796, %v1094_v27   ;;  %v476_v27 = vld [vmem:[%s3026_s3 + $0x80] sm:$0xff] }
 0x109   :  { %848 = vmatpush1.msra.mxu0 %v442_v32  ;;  %v1093_v32 = vld [vmem:[%s3027_s5 + $0xb8] sm:$0xff]  ;;  %815 = vmatmul.mubr.f32.gmra.mxu1 %v576_v30  ;;  %v445_v3 = vmul.f32 %v2260_v25, %v2273_v33  ;;  %v15_v33 = vstv %s3028_s9  ;;  %v478_v30 = vld [vmem:[%s3026_s3 + $0x90] sm:$0xff] }
 0x10a   :  { %v2277_v35 = vpop.f32.mrf.mxu0  ;;  %849 = vmatprep.subr.mxu0 %v1804_v50  ;;  %819 = vmatprep.mubr.f32.mxu1 %v579_v36  ;;  %16 = vst [vmem:[#allocation2] sm:$0x1] %v15_v33  ;;  %v480_v36 = vld [vmem:[%s3026_s3 + $0xa0] sm:$0xff] }
 0x10b   :  { %850 = vmatpush1.msra.mxu0 %v441_v34 }
 0x10c   :  { %v2293_v41 = vpop.f32.mrf.mxu0  ;;  %851 = vmatprep.subr.mxu0 %v1804_v50  ;;  %1219 = vperm.xlu0 %1796, %v1093_v32   ;;  %v1508_v32 = vld [vmem:[%s3030_s8 + $0x28] sm:$0xff] }
 0x10d   :  { %852 = vmatpush1.msra.mxu0 %v440_v39  ;;  %v1092_v39 = vld [vmem:[%s3027_s5 + $0xb0] sm:$0xff]  ;;  %820 = vmatmul.mubr.f32.gmra.mxu1 %v578_v37  ;;  %v447_v0 = vmul.f32 %v2260_v25, %v2293_v41 }
 0x10e   :  { %v2297_v43 = vpop.f32.mrf.mxu0  ;;  %853 = vmatprep.subr.mxu0 %v1804_v50  ;;  %v1088_v41 = vld [vmem:[%s3027_s5 + $0x90] sm:$0xff] }
 0x10f   :  { %854 = vmatpush1.msra.mxu0 %v439_v42  ;;  %v581_v42 = vld [vmem:[%s3025_s4 + $0x1c8] sm:$0xff] }
 0x110   :  { %v2310_v48 = vpop.f32.mrf.mxu0  ;;  %855 = vmatprep.subr.mxu0 %v1804_v50  ;;  %1214 = vperm.xlu0 %1796, %v1092_v39   ;;  %v483_v39 = vld [vmem:[%s3026_s3 + $0xb8] sm:$0xff] }
 0x111   :  { %856 = vmatpush1.msra.mxu0 %v438_v46  ;;  %824 = vmatprep.mubr.f32.mxu1 %v581_v42  ;;  %v1091_v46 = vld [vmem:[%s3027_s5 + $0xa8] sm:$0xff]  ;;  %v449_v58 = vmul.f32 %v2260_v25, %v2310_v48  ;;  %v1089_v48 = vld [vmem:[%s3027_s5 + $0x98] sm:$0xff]  ;;  %v1572_v37 = vld [vmem:[#allocation2] sm:$0x1] }
 0x112   :  { %v2315_v52 = vpop.f32.mrf.mxu0  ;;  %857 = vmatprep.subr.mxu0 %v1804_v50  ;;  %825 = vmatmul.mubr.f32.gmra.mxu1 %v580_v44  ;;  %v485_v42 = vld [vmem:[%s3026_s3 + $0xc8] sm:$0xff]  ;;  %v484_v44 = vld [vmem:[%s3026_s3 + $0xc0] sm:$0xff] }
 0x113   :  { %858 = vmatpush1.msra.mxu0 %v437_v49  ;;  %v583_v49 = vld [vmem:[%s3025_s4 + $0x1d8] sm:$0xff] }
 0x114   :  { %v2329_v59 = vpop.f32.mrf.mxu0  ;;  %859 = vmatprep.subr.mxu0 %v1804_v50  ;;  %1209 = vperm.xlu0 %1796, %v1091_v46   ;;  %v486_v46 = vld [vmem:[%s3026_s3 + $0xd0] sm:$0xff] }
 0x115   :  { %860 = vmatpush1.msra.mxu0 %v436_v55  ;;  %v451_v47 = vmul.f32 %v2260_v25, %v2329_v59  ;;  %829 = vmatprep.mubr.f32.mxu1 %v583_v49  ;;  %v1090_v55 = vld [vmem:[%s3027_s5 + $0xa0] sm:$0xff]  ;;  %v585_v59 = vld [vmem:[%s3025_s4 + $0x1e8] sm:$0xff] }
 0x116   :  { %v2334_v61 = vpop.f32.mrf.mxu0  ;;  %861 = vmatprep.subr.mxu0 %v1804_v50  ;;  %830 = vmatmul.mubr.f32.gmra.mxu1 %v582_v53  ;;  %v488_v49 = vld [vmem:[%s3026_s3 + $0xe0] sm:$0xff]  ;;  %v491_v53 = vld [vmem:[%s3026_s3 + $0xf8] sm:$0xff] }
 0x117   :  { %862 = vmatpush1.msra.mxu0 %v435_v60  ;;  %v450_v54 = vmul.f32 %v2260_v25, %v2334_v61  ;;  %v584_v60 = vld [vmem:[%s3025_s4 + $0x1e0] sm:$0xff]  ;;  %v448_v61 = vmul.f32 %v2260_v25, %v2315_v52  ;;  %834 = vmatprep.mubr.f32.mxu1 %v585_v59  ;;  %v586_v52 = vld [vmem:[%s3025_s4 + $0x1f0] sm:$0xff]  ;;  %v495_v59 = vld [vmem:[%s3026_s3 + $0x118] sm:$0xff] }
 0x118   :  { %v2348_v4 = vpop.f32.mrf.mxu0  ;;  %863 = vmatprep.subr.mxu0 %v1804_v50  ;;  %1204 = vperm.xlu0 %1796, %v1090_v55   ;;  %v493_v55 = vld [vmem:[%s3026_s3 + $0x108] sm:$0xff] }
 0x119   :  { %864 = vmatpush1.msra.mxu0 %v434_v2  ;;  %v453_v40 = vmul.f32 %v2260_v25, %v2348_v4  ;;  %v446_v2 = vmul.f32 %v2260_v25, %v2297_v43  ;;  %v444_v4 = vmul.f32 %v2260_v25, %v2277_v35  ;;  %v460_v43 = vld [vmem:[%s3026_s3] sm:$0xff]  ;;  %v1345_v35 = vld [vmem:[%s3029_s7 + $0x18] sm:$0xff] }
 0x11a   :  { %v2353_v7 = vpop.f32.mrf.mxu0  ;;  %865 = vmatprep.subr.mxu0 %v1804_v50  ;;  %835 = vmatmul.mubr.f32.gmra.mxu1 %v584_v60  ;;  %v2662_v60 = vpop.f32.mrf.mxu1 }
 0x11b   :  { %866 = vmatpush1.msra.mxu0 %v433_v6  ;;  %v452_v45 = vmul.f32 %v2260_v25, %v2353_v7  ;;  %839 = vmatprep.mubr.f32.mxu1 %v587_v1  ;;  %v1087_v6 = vld [vmem:[%s3027_s5 + $0x88] sm:$0xff]  ;;  %v463_v7 = vld [vmem:[%s3026_s3 + $0x18] sm:$0xff]  ;;  %3033 = vst [vmem:[#allocation3_spill] sm:$0xff] %v2662_v60 }
 0x11c   :  { %v1755_v10 = vpop.f32.mrf.mxu0  ;;  %867 = vmatprep.subr.mxu0 %v1804_v50  ;;  %1199 = vperm.xlu0 %1796, %v1089_v48   ;;  %v494_v48 = vld [vmem:[%s3026_s3 + $0x110] sm:$0xff] }
 0x11d   :  { %868 = vmatpush1.msra.mxu0 %v432_v9  ;;  %v455_v34 = vmul.f32 %v2260_v25, %v1755_v10  ;;  %v1504_v9 = vld [vmem:[%s3030_s8 + $0x8] sm:$0xff]  ;;  %v1342_v10 = vld [vmem:[%s3029_s7] sm:$0xff] }
 0x11e   :  { %v399_v12 = vpop.f32.mrf.mxu0  ;;  %869 = vmatprep.subr.mxu0 %v1804_v50  ;;  %840 = vmatmul.mubr.f32.gmra.mxu1 %v586_v52 }
 0x11f   :  { %870 = vmatpush1.msra.mxu0 %v431_v11  ;;  %v454_v38 = vmul.f32 %v2260_v25, %v399_v12  ;;  %v467_v11 = vld [vmem:[%s3026_s3 + $0x38] sm:$0xff]  ;;  %v1505_v12 = vld [vmem:[%s3030_s8 + $0x10] sm:$0xff] }
 0x120   :  { %v1758_v15 = vpop.f32.mrf.mxu0  ;;  %871 = vmatprep.subr.mxu0 %v1804_v50  ;;  %1194 = vperm.xlu0 %1796, %v1088_v41   ;;  %v499_v41 = vld [vmem:[%s3026_s3 + $0x138] sm:$0xff] }
 0x121   :  { %872 = vmatpush1.msra.mxu0 %v430_v14  ;;  %v457_v28 = vmul.f32 %v2260_v25, %v1758_v15  ;;  %v469_v14 = vld [vmem:[%s3026_s3 + $0x48] sm:$0xff]  ;;  %v468_v15 = vld [vmem:[%s3026_s3 + $0x40] sm:$0xff] }
 0x122   :  { %v409_v18 = vpop.f32.mrf.mxu0  ;;  %873 = vmatprep.subr.mxu0 %v1804_v50 }
 0x123   :  { %874 = vmatpush1.msra.mxu0 %v429_v17  ;;  %v456_v31 = vmul.f32 %v2260_v25, %v409_v18  ;;  %v1503_v17 = vld [vmem:[%s3030_s8] sm:$0xff]  ;;  %v471_v18 = vld [vmem:[%s3026_s3 + $0x58] sm:$0xff] }
 0x124   :  { %v1761_v21 = vpop.f32.mrf.mxu0  ;;  %875 = vmatprep.subr.mxu0 %v1804_v50  ;;  %1189 = vperm.xlu0 %1796, %v1087_v6   ;;  %v501_v6 = vld [vmem:[%s3026_s3 + $0x148] sm:$0xff] }
 0x125   :  { %v459_v22 = vmul.f32 %v2260_v25, %v1761_v21  ;;  %876 = vmatpush1.msra.mxu0 %v428_v20  ;;  %v1346_v20 = vld [vmem:[%s3029_s7 + $0x20] sm:$0xff] }
 0x126   :  { %v419_v23 = vpop.f32.mrf.mxu0  ;;  %877 = vmatprep.subr.mxu0 %v1804_v50  ;;  %v472_v21 = vld [vmem:[%s3026_s3 + $0x60] sm:$0xff] }
 0x127   :  { %v458_v26 = vmul.f32 %v2260_v25, %v419_v23  ;;  %878 = vmatpush2.msra.mxu0 %v459_v22  ;;  %v1343_v25 = vld [vmem:[%s3029_s7 + $0x8] sm:$0xff]  ;;  %v475_v23 = vld [vmem:[%s3026_s3 + $0x78] sm:$0xff] }
 0x128   :  { %879 = vmatprep.subr.mxu0 %v1804_v50  ;;  %1357 = vperm.xlu1 %1797, %v1343_v25   ;;  %v1347_v22 = vld [vmem:[%s3029_s7 + $0x28] sm:$0xff]  ;;  %v500_v25 = vld [vmem:[%s3026_s3 + $0x140] sm:$0xff] }
 0x129   :  { %880 = vmatpush2.msra.mxu0 %v458_v26  ;;  %1184 = vperm.xlu0 %1796, %v1086_v5   ;;  %v477_v26 = vld [vmem:[%s3026_s3 + $0x88] sm:$0xff] }
 0x12a   :  { %881 = vmatprep.subr.mxu0 %v1804_v50 }
 0x12b   :  { %882 = vmatpush2.msra.mxu0 %v457_v28  ;;  %v1349_v28 = vld [vmem:[%s3029_s7 + $0x38] sm:$0xff] }
 0x12c   :  { %883 = vmatprep.subr.mxu0 %v1804_v50  ;;  %1367 = vperm.xlu1 %1797, %v1345_v35   ;;  %v503_v35 = vld [vmem:[%s3026_s3 + $0x158] sm:$0xff] }
 0x12d   :  { %884 = vmatpush2.msra.mxu0 %v456_v31  ;;  %1352 = vperm.xlu0 %1796, %v1342_v10   ;;  %v1509_v31 = vld [vmem:[%s3030_s8 + $0x30] sm:$0xff] }
 0x12e   :  { %885 = vmatprep.subr.mxu0 %v1804_v50 }
 0x12f   :  { %886 = vmatpush2.msra.mxu0 %v455_v34  ;;  %v481_v34 = vld [vmem:[%s3026_s3 + $0xa8] sm:$0xff] }
 0x130   :  { %887 = vmatprep.subr.mxu0 %v1804_v50  ;;  %1518 = vperm.xlu1 %1797, %v1504_v9   ;;  %v505_v9 = vld [vmem:[%s3026_s3 + $0x168] sm:$0xff] }
 0x131   :  { %888 = vmatpush2.msra.mxu0 %v454_v38  ;;  %1362 = vperm.xlu0 %1796, %v1344_v13   ;;  %v1510_v38 = vld [vmem:[%s3030_s8 + $0x38] sm:$0xff] }
 0x132   :  { %889 = vmatprep.subr.mxu0 %v1804_v50 }
 0x133   :  { %890 = vmatpush2.msra.mxu0 %v453_v40  ;;  %v482_v40 = vld [vmem:[%s3026_s3 + $0xb0] sm:$0xff] }
 0x134   :  { %891 = vmatprep.subr.mxu0 %v1804_v50  ;;  %1523 = vperm.xlu1 %1797, %v1505_v12   ;;  %v507_v12 = vld [vmem:[%s3026_s3 + $0x178] sm:$0xff] }
 0x135   :  { %892 = vmatpush2.msra.mxu0 %v452_v45  ;;  %1513 = vperm.xlu0 %1796, %v1503_v17   ;;  %v487_v45 = vld [vmem:[%s3026_s3 + $0xd8] sm:$0xff] }
 0x136   :  { %893 = vmatprep.subr.mxu0 %v1804_v50 }
 0x137   :  { %894 = vmatpush2.msra.mxu0 %v451_v47  ;;  %v489_v47 = vld [vmem:[%s3026_s3 + $0xe8] sm:$0xff] }
 0x138   :  { %895 = vmatprep.subr.mxu0 %v1804_v50  ;;  %1528 = vperm.xlu1 %1797, %v1506_v56   ;;  %v509_v56 = vld [vmem:[%s3026_s3 + $0x188] sm:$0xff] }
 0x139   :  { %896 = vmatpush2.msra.mxu0 %v450_v54  ;;  %1372 = vperm.xlu0 %1796, %v1346_v20   ;;  %v490_v54 = vld [vmem:[%s3026_s3 + $0xf0] sm:$0xff] }
 0x13a   :  { %897 = vmatprep.subr.mxu0 %v1804_v50 }
 0x13b   :  { %898 = vmatpush2.msra.mxu0 %v449_v58  ;;  %v492_v58 = vld [vmem:[%s3026_s3 + $0x100] sm:$0xff] }
 0x13c   :  { %899 = vmatprep.subr.mxu0 %v1804_v50  ;;  %1533 = vperm.xlu1 %1797, %v1507_v57   ;;  %v511_v57 = vld [vmem:[%s3026_s3 + $0x198] sm:$0xff] }
 0x13d   :  { %900 = vmatpush2.msra.mxu0 %v448_v61  ;;  %1377 = vperm.xlu0 %1796, %v1347_v22   ;;  %v688_v61 = vpop.f32.mrf.mxu1 }
 0x13e   :  { %901 = vmatprep.subr.mxu0 %v1804_v50 }
 0x13f   :  { %902 = vmatpush2.msra.mxu0 %v447_v0  ;;  %v497_v0 = vld [vmem:[%s3026_s3 + $0x128] sm:$0xff]  ;;  %v2670_v1 = vpop.f32.mrf.mxu1 }
 0x140   :  { %903 = vmatprep.subr.mxu0 %v1804_v50  ;;  %1538 = vperm.xlu1 %1797, %v1508_v32   ;;  %3034 = vst [vmem:[#allocation4_spill] sm:$0xff] %v2670_v1  ;;  %v516_v32 = vld [vmem:[%s3026_s3 + $0x1c0] sm:$0xff] }
 0x141   :  { %904 = vmatpush2.msra.mxu0 %v446_v2  ;;  %1382 = vperm.xlu0 %1796, %v1348_v24   ;;  %v693_v52 = vpop.f32.mrf.mxu1  ;;  %v496_v2 = vld [vmem:[%s3026_s3 + $0x120] sm:$0xff]  ;;  %v515_v24 = vld [vmem:[%s3026_s3 + $0x1b8] sm:$0xff] }
 0x142   :  { %905 = vmatprep.subr.mxu0 %v1804_v50 }
 0x143   :  { %906 = vmatpush2.msra.mxu0 %v445_v3  ;;  %v2678_v3 = vpop.f32.mrf.mxu1 }
 0x144   :  { %907 = vmatprep.subr.mxu0 %v1804_v50  ;;  %v462_v50 = vld [vmem:[%s3026_s3 + $0x10] sm:$0xff]  ;;  %1548 = vperm.xlu1 %1797, %v1510_v38   ;;  %3035 = vst [vmem:[#allocation5_spill] sm:$0xff] %v2678_v3 }
 0x145   :  { %908 = vmatpush2.msra.mxu0 %v444_v4  ;;  %1387 = vperm.xlu0 %1796, %v1349_v28   ;;  %v698_v4 = vpop.f32.mrf.mxu1  ;;  %v514_v28 = vld [vmem:[%s3026_s3 + $0x1b0] sm:$0xff] }
 0x146   :  { %910 = vmatmul.mubr.f32.vlgmr.msra.gmra.mxu0 %v460_v43  ;;  %v498_v43 = vld [vmem:[%s3026_s3 + $0x130] sm:$0xff] }
 0x147   :  { %914 = vmatprep.mubr.f32.mxu0 %v463_v7  ;;  %v2686_v33 = vpop.f32.mrf.mxu1  ;;  %v518_v38 = vld [vmem:[%s3026_s3 + $0x1d0] sm:$0xff] }
 0x148   :  { %3036 = vst [vmem:[#allocation6_spill] sm:$0xff] %v2686_v33 }
 0x149   :  { %1543 = vperm.xlu0 %1796, %v1509_v31   ;;  %v703_v7 = vpop.f32.mrf.mxu1 }
 0x14a   :  { %915 = vmatmul.mubr.f32.gmra.mxu0 %v462_v50 }
 0x14b   :  { %919 = vmatprep.mubr.f32.mxu0 %v465_v8  ;;  %v2694_v50 = vpop.f32.mrf.mxu1  ;;  %v502_v8 = vld [vmem:[%s3026_s3 + $0x150] sm:$0xff] }
 0x14c   :  { %3037 = vst [vmem:[#allocation7_spill] sm:$0xff] %v2694_v50 }
 0x14d   :  { %1575 = vperm.xlu0 %1796, %v1572_v37   ;;  %v708_v5 = vpop.f32.mrf.mxu1 }
 0x14e   :  { %920 = vmatmul.mubr.f32.gmra.mxu0 %v464_v62 }
 0x14f   :  { %924 = vmatprep.mubr.f32.mxu0 %v467_v11  ;;  %v2702_v62 = vpop.f32.mrf.mxu1  ;;  %v504_v11 = vld [vmem:[%s3026_s3 + $0x160] sm:$0xff] }
 0x150   :  { %3038 = vst [vmem:[#allocation8_spill] sm:$0xff] %v2702_v62 }
 0x151   :  { %v713_v10 = vpop.f32.mrf.mxu1 }
 0x152   :  { %925 = vmatmul.mubr.f32.gmra.mxu0 %v466_v63 }
 0x153   :  { %929 = vmatprep.mubr.f32.mxu0 %v469_v14  ;;  %v2710_v63 = vpop.f32.mrf.mxu1  ;;  %v506_v14 = vld [vmem:[%s3026_s3 + $0x170] sm:$0xff] }
 0x154   :  { %3039 = vst [vmem:[#allocation9_spill] sm:$0xff] %v2710_v63 }
 0x155   :  { %v718_v13 = vpop.f32.mrf.mxu1 }
 0x156   :  { %930 = vmatmul.mubr.f32.gmra.mxu0 %v468_v15 }
 0x157   :  { %934 = vmatprep.mubr.f32.mxu0 %v471_v18  ;;  %v2718_v15 = vpop.f32.mrf.mxu1  ;;  %v508_v18 = vld [vmem:[%s3026_s3 + $0x180] sm:$0xff] }
 0x159   :  { %v723_v17 = vpop.f32.mrf.mxu1 }
 0x15a   :  { %935 = vmatmul.mubr.f32.gmra.mxu0 %v470_v19 }
 0x15b   :  { %939 = vmatprep.mubr.f32.mxu0 %v473_v51  ;;  %v2726_v19 = vpop.f32.mrf.mxu1  ;;  %v510_v51 = vld [vmem:[%s3026_s3 + $0x190] sm:$0xff] }
 0x15d   :  { %v728_v20 = vpop.f32.mrf.mxu1 }
 0x15e   :  { %940 = vmatmul.mubr.f32.gmra.mxu0 %v472_v21  ;;  %v513_v21 = vld [vmem:[%s3026_s3 + $0x1a8] sm:$0xff] }
 0x15f   :  { %944 = vmatprep.mubr.f32.mxu0 %v475_v23  ;;  %v2734_v22 = vpop.f32.mrf.mxu1 }
 0x161   :  { %v733_v23 = vpop.f32.mrf.mxu1 }
 0x162   :  { %945 = vmatmul.mubr.f32.gmra.mxu0 %v474_v16  ;;  %v512_v16 = vld [vmem:[%s3026_s3 + $0x1a0] sm:$0xff] }
 0x163   :  { %949 = vmatprep.mubr.f32.mxu0 %v477_v26  ;;  %v2742_v26 = vpop.f32.mrf.mxu1 }
 0x166   :  { %950 = vmatmul.mubr.f32.gmra.mxu0 %v476_v27  ;;  %v738_v27 = vpop.f32.mrf.mxu1 }
 0x167   :  { %954 = vmatprep.mubr.f32.mxu0 %v479_v29  ;;  %v517_v29 = vld [vmem:[%s3026_s3 + $0x1c8] sm:$0xff] }
 0x16a   :  { %955 = vmatmul.mubr.f32.gmra.mxu0 %v478_v30  ;;  %v2750_v30 = vpop.f32.mrf.mxu1 }
 0x16b   :  { %959 = vmatprep.mubr.f32.mxu0 %v481_v34  ;;  %v519_v34 = vld [vmem:[%s3026_s3 + $0x1d8] sm:$0xff] }
 0x16c   :  { %v743_v31 = vpop.f32.mrf.mxu1 }
 0x16e   :  { %960 = vmatmul.mubr.f32.gmra.mxu0 %v480_v36  ;;  %v2758_v36 = vpop.f32.mrf.mxu1 }
 0x16f   :  { %964 = vmatprep.mubr.f32.mxu0 %v483_v39  ;;  %v521_v39 = vld [vmem:[%s3026_s3 + $0x1e8] sm:$0xff] }
 0x170   :  { %v748_v37 = vpop.f32.mrf.mxu1 }
 0x172   :  { %965 = vmatmul.mubr.f32.gmra.mxu0 %v482_v40  ;;  %v2766_v40 = vpop.f32.mrf.mxu1 }
 0x173   :  { %969 = vmatprep.mubr.f32.mxu0 %v485_v42 }
 0x174   :  { %v753_v42 = vpop.f32.mrf.mxu1 }
 0x176   :  { %970 = vmatmul.mubr.f32.gmra.mxu0 %v484_v44  ;;  %v520_v44 = vld [vmem:[%s3026_s3 + $0x1e0] sm:$0xff] }
 0x177   :  { %974 = vmatprep.mubr.f32.mxu0 %v487_v45  ;;  %v523_v45 = vld [vmem:[%s3026_s3 + $0x1f8] sm:$0xff] }
 0x17a   :  { %975 = vmatmul.mubr.f32.gmra.mxu0 %v486_v46  ;;  %v2774_v46 = vpop.f32.mrf.mxu1 }
 0x17b   :  { %979 = vmatprep.mubr.f32.mxu0 %v489_v47 }
 0x17c   :  { %v758_v47 = vpop.f32.mrf.mxu1 }
 0x17e   :  { %980 = vmatmul.mubr.f32.gmra.mxu0 %v488_v49  ;;  %v522_v49 = vld [vmem:[%s3026_s3 + $0x1f0] sm:$0xff] }
 0x17f   :  { %984 = vmatprep.mubr.f32.mxu0 %v491_v53  ;;  %v2779_v53 = vpop.f32.mrf.mxu1 }
 0x182   :  { %985 = vmatmul.mubr.f32.gmra.mxu0 %v490_v54  ;;  %v763_v54 = vpop.f32.mrf.mxu1 }
 0x183   :  { %989 = vmatprep.mubr.f32.mxu0 %v493_v55 }
 0x184   :  { %v2781_v55 = vpop.f32.mrf.mxu1 }
 0x185   :  { %3040 = vst [vmem:[#allocation10_spill] sm:$0xff] %v2781_v55 }
 0x186   :  { %990 = vmatmul.mubr.f32.gmra.mxu0 %v492_v58  ;;  %v768_v58 = vpop.f32.mrf.mxu1 }
 0x187   :  { %994 = vmatprep.mubr.f32.mxu0 %v495_v59 }
 0x188   :  { %v2783_v59 = vpop.f32.mrf.mxu1 }
 0x189   :  { %3041 = vst [vmem:[#allocation11_spill] sm:$0xff] %v2783_v59 }
 0x18a   :  { %995 = vmatmul.mubr.f32.gmra.mxu0 %v494_v48  ;;  %v773_v61 = vpop.f32.mrf.mxu1 }
 0x18b   :  { %999 = vmatprep.mubr.f32.mxu0 %v497_v0  ;;  %v1327_v61 = vld [vmem:[%s3031_s6 + $0x8] sm:$0xff] }
 0x18c   :  { %v2785_v48 = vpop.f32.mrf.mxu1 }
 0x18d   :  { %3042 = vst [vmem:[#allocation12_spill] sm:$0xff] %v2785_v48 }
 0x18e   :  { %1000 = vmatmul.mubr.f32.gmra.mxu0 %v496_v2  ;;  %v778_v0 = vpop.f32.mrf.mxu1 }
 0x18f   :  { %1004 = vmatprep.mubr.f32.mxu0 %v499_v41  ;;  %v1333_v0 = vld [vmem:[%s3031_s6 + $0x38] sm:$0xff] }
 0x190   :  { %v2787_v52 = vpop.f32.mrf.mxu1  ;;  %1469 = vmatprep.mubr.f32.mxu1 %v1333_v0 }
 0x191   :  { %3043 = vst [vmem:[#allocation13_spill] sm:$0xff] %v2787_v52 }
 0x192   :  { %1005 = vmatmul.mubr.f32.gmra.mxu0 %v498_v43  ;;  %v783_v2 = vpop.f32.mrf.mxu1 }
 0x193   :  { %1009 = vmatprep.mubr.f32.mxu0 %v501_v6 }
 0x194   :  { %v2789_v41 = vpop.f32.mrf.mxu1 }
 0x195   :  { %3044 = vst [vmem:[#allocation14_spill] sm:$0xff] %v2789_v41 }
 0x196   :  { %1010 = vmatmul.mubr.f32.gmra.mxu0 %v500_v25  ;;  %v788_v4 = vpop.f32.mrf.mxu1 }
 0x197   :  { %1014 = vmatprep.mubr.f32.mxu0 %v503_v35 }
 0x198   :  { %v2791_v43 = vpop.f32.mrf.mxu1 }
 0x199   :  { %3045 = vst [vmem:[#allocation15_spill] sm:$0xff] %v2791_v43 }
 0x19a   :  { %1015 = vmatmul.mubr.f32.gmra.mxu0 %v502_v8  ;;  %v793_v6 = vpop.f32.mrf.mxu1 }
 0x19b   :  { %1019 = vmatprep.mubr.f32.mxu0 %v505_v9 }
 0x19e   :  { %1020 = vmatmul.mubr.f32.gmra.mxu0 %v504_v11 }
 0x19f   :  { %1024 = vmatprep.mubr.f32.mxu0 %v507_v12 }
 0x1a2   :  { %1025 = vmatmul.mubr.f32.gmra.mxu0 %v506_v14 }
 0x1a3   :  { %1029 = vmatprep.mubr.f32.mxu0 %v509_v56 }
 0x1a6   :  { %1030 = vmatmul.mubr.f32.gmra.mxu0 %v508_v18 }
 0x1a7   :  { %1034 = vmatprep.mubr.f32.mxu0 %v511_v57 }
 0x1aa   :  { %1035 = vmatmul.mubr.f32.gmra.mxu0 %v510_v51 }
 0x1ab   :  { %1039 = vmatprep.mubr.f32.mxu0 %v513_v21 }
 0x1ae   :  { %1040 = vmatmul.mubr.f32.gmra.mxu0 %v512_v16 }
 0x1af   :  { %1044 = vmatprep.mubr.f32.mxu0 %v515_v24 }
 0x1b2   :  { %1045 = vmatmul.mubr.f32.gmra.mxu0 %v514_v28 }
 0x1b3   :  { %1049 = vmatprep.mubr.f32.mxu0 %v517_v29 }
 0x1b6   :  { %1050 = vmatmul.mubr.f32.gmra.mxu0 %v516_v32 }
 0x1b7   :  { %1054 = vmatprep.mubr.f32.mxu0 %v519_v34 }
 0x1b9   :  { %v2793_v7 = vpop.f32.mrf.mxu1 }
 0x1ba   :  { %1055 = vmatmul.mubr.f32.gmra.mxu0 %v518_v38 }
 0x1bb   :  { %1059 = vmatprep.mubr.f32.mxu0 %v521_v39  ;;  %v798_v25 = vpop.f32.mrf.mxu1 }
 0x1bd   :  { %v2795_v35 = vpop.f32.mrf.mxu1 }
 0x1be   :  { %1060 = vmatmul.mubr.f32.gmra.mxu0 %v520_v44 }
 0x1bf   :  { %1064 = vmatprep.mubr.f32.mxu0 %v523_v45  ;;  %v803_v5 = vpop.f32.mrf.mxu1 }
 0x1c1   :  { %v2797_v8 = vpop.f32.mrf.mxu1 }
 0x1c2   :  { %1065 = vmatmul.mubr.f32.gmra.mxu0 %v522_v49 }
 0x1c3   :  { %v808_v9 = vpop.f32.mrf.mxu1  ;;  %1454 = vmatprep.mubr.f32.mxu0 %v1327_v61 }
 0x1c5   :  { %v2799_v10 = vpop.f32.mrf.mxu1 }
 0x1c7   :  { %v813_v11 = vpop.f32.mrf.mxu1 }
 0x1c9   :  { %v2801_v12 = vpop.f32.mrf.mxu1 }
 0x1cb   :  { %v818_v13 = vpop.f32.mrf.mxu1 }
 0x1cd   :  { %v2803_v14 = vpop.f32.mrf.mxu1 }
 0x1cf   :  { %v823_v56 = vpop.f32.mrf.mxu1 }
 0x1d2   :  { %v2805_v17 = vpop.f32.mrf.mxu1 }
 0x1d4   :  { %v828_v18 = vpop.f32.mrf.mxu1 }
 0x1d6   :  { %v2807_v57 = vpop.f32.mrf.mxu1 }
 0x1d8   :  { %v833_v20 = vpop.f32.mrf.mxu1 }
 0x1da   :  { %v2809_v51 = vpop.f32.mrf.mxu1 }
 0x1dc   :  { %v838_v21 = vpop.f32.mrf.mxu1 }
 0x1de   :  { %v2811_v23 = vpop.f32.mrf.mxu1 }
 0x1e0   :  { %v843_v16 = vpop.f32.mrf.mxu1 }
 0x206   :  { %v2813_v24 = vpop.f32.mrf.mxu0 }
 0x207   :  { %3046 = vst [vmem:[#allocation16_spill] sm:$0xff] %v2813_v24 }
 0x208   :  { %v913_v27 = vpop.f32.mrf.mxu0 }
 0x20a   :  { %v2815_v28 = vpop.f32.mrf.mxu0 }
 0x20b   :  { %3047 = vst [vmem:[#allocation17_spill] sm:$0xff] %v2815_v28 }
 0x20c   :  { %v918_v29 = vpop.f32.mrf.mxu0 }
 0x20e   :  { %v2817_v31 = vpop.f32.mrf.mxu0 }
 0x20f   :  { %3048 = vst [vmem:[#allocation18_spill] sm:$0xff] %v2817_v31 }
 0x210   :  { %v923_v32 = vpop.f32.mrf.mxu0 }
 0x211   :  { %v1255_v32 = vpop.permute.xlu1 %1254 }
 0x212   :  { %v2819_v34 = vpop.f32.mrf.mxu0 }
 0x213   :  { %3049 = vst [vmem:[#allocation19_spill] sm:$0xff] %v2819_v34 }
 0x214   :  { %v928_v37 = vpop.f32.mrf.mxu0 }
 0x215   :  { %v1260_v37 = vpop.permute.xlu0 %1259 }
 0x216   :  { %v2821_v38 = vpop.f32.mrf.mxu0 }
 0x217   :  { %3050 = vst [vmem:[#allocation20_spill] sm:$0xff] %v2821_v38 }
 0x218   :  { %v933_v39 = vpop.f32.mrf.mxu0 }
 0x219   :  { %v1180_v61 = vpop.permute.xlu0 %1179 }
 0x21a   :  { %v2823_v42 = vpop.f32.mrf.mxu0 }
 0x21b   :  { %3051 = vst [vmem:[#allocation21_spill] sm:$0xff] %v2823_v42 }
 0x21c   :  { %v938_v44 = vpop.f32.mrf.mxu0 }
 0x21e   :  { %v2825_v45 = vpop.f32.mrf.mxu0 }
 0x21f   :  { %3052 = vst [vmem:[#allocation22_spill] sm:$0xff] %v2825_v45 }
 0x220   :  { %v943_v47 = vpop.f32.mrf.mxu0 }
 0x222   :  { %v2827_v49 = vpop.f32.mrf.mxu0 }
 0x224   :  { %v948_v54 = vpop.f32.mrf.mxu0 }
 0x225   :  { %v1175_v54 = vpop.permute.xlu1 %1174 }
 0x226   :  { %v2829_v58 = vpop.f32.mrf.mxu0 }
 0x228   :  { %v953_v2 = vpop.f32.mrf.mxu0 }
 0x22a   :  { %v2837_v4 = vpop.f32.mrf.mxu0 }
 0x22c   :  { %v958_v6 = vpop.f32.mrf.mxu0 }
 0x22e   :  { %v2839_v25 = vpop.f32.mrf.mxu0 }
 0x230   :  { %v963_v5 = vpop.f32.mrf.mxu0 }
 0x231   :  { %v1170_v5 = vpop.permute.xlu1 %1169 }
 0x232   :  { %v2841_v9 = vpop.f32.mrf.mxu0 }
 0x234   :  { %v968_v11 = vpop.f32.mrf.mxu0 }
 0x235   :  { %v1250_v11 = vpop.permute.xlu0 %1249 }
 0x236   :  { %v2843_v13 = vpop.f32.mrf.mxu0 }
 0x238   :  { %v973_v56 = vpop.f32.mrf.mxu0 }
 0x239   :  { %v1245_v24 = vpop.permute.xlu0 %1244 }
 0x23a   :  { %v2845_v18 = vpop.f32.mrf.mxu0 }
 0x23c   :  { %v978_v20 = vpop.f32.mrf.mxu0 }
 0x23e   :  { %v981_v21 = vpop.f32.mrf.mxu0 }
 0x240   :  { %v983_v16 = vpop.f32.mrf.mxu0 }
 0x242   :  { %v986_v27 = vpop.f32.mrf.mxu0 }
 0x243   :  { %v987_v43 = vadd.f32 %v986_v27, %v2779_v53 }
 0x244   :  { %v988_v29 = vpop.f32.mrf.mxu0 }
 0x245   :  { %v2857_v29 = vpop.permute.xlu1 %1164 }
 0x246   :  { %v2847_v39 = vpop.f32.mrf.mxu0 }
 0x247   :  { %3053 = vst [vmem:[#allocation23_spill] sm:$0xff] %v2847_v39 }
 0x248   :  { %v993_v44 = vpop.f32.mrf.mxu0 }
 0x249   :  { %v2861_v55 = vpop.permute.xlu1 %1159 }
 0x24a   :  { %v2849_v47 = vpop.f32.mrf.mxu0 }
 0x24b   :  { %3054 = vst [vmem:[#allocation24_spill] sm:$0xff] %v2849_v47 }
 0x24c   :  { %v998_v0 = vpop.f32.mrf.mxu0 }
 0x24d   :  { %v2863_v0 = vpop.permute.xlu0 %1239  ;;  %v2869_v47 = vpop.permute.xlu1 %1154 }
 0x24e   :  { %v2851_v2 = vpop.f32.mrf.mxu0 }
 0x24f   :  { %3055 = vst [vmem:[#allocation25_spill] sm:$0xff] %v2851_v2 }
 0x250   :  { %v1003_v6 = vpop.f32.mrf.mxu0 }
 0x251   :  { %v2875_v3 = vpop.permute.xlu1 %1149 }
 0x252   :  { %v2853_v56 = vpop.f32.mrf.mxu0 }
 0x253   :  { %3056 = vst [vmem:[#allocation26_spill] sm:$0xff] %v2853_v56 }
 0x254   :  { %v1008_v20 = vpop.f32.mrf.mxu0 }
 0x255   :  { %v2871_v20 = vpop.permute.xlu0 %1234  ;;  %v2879_v33 = vpop.permute.xlu1 %1144 }
 0x256   :  { %v2855_v16 = vpop.f32.mrf.mxu0  ;;  %3059 = vst [vmem:[#allocation29_spill] sm:$0xff] %v2879_v33 }
 0x257   :  { %3057 = vst [vmem:[#allocation27_spill] sm:$0xff] %v2855_v16 }
 0x258   :  { %v1013_v60 = vpop.f32.mrf.mxu0 }
 0x259   :  { %v2883_v50 = vpop.permute.xlu1 %1139 }
 0x25a   :  { %v2859_v44 = vpop.f32.mrf.mxu0  ;;  %3060 = vst [vmem:[#allocation30_spill] sm:$0xff] %v2883_v50  ;;  %v982_v50 = vadd.f32 %v981_v21, %v2774_v46 }
 0x25b   :  { %3058 = vst [vmem:[#allocation28_spill] sm:$0xff] %v2859_v44 }
 0x25c   :  { %v1018_v39 = vpop.f32.mrf.mxu0 }
 0x25d   :  { %v2877_v39 = vpop.permute.xlu0 %1229  ;;  %v2887_v42 = vpop.permute.xlu1 %1134 }
 0x25e   :  { %v2865_v28 = vpop.f32.mrf.mxu0  ;;  %3062 = vst [vmem:[#allocation32_spill] sm:$0xff] %v2887_v42 }
 0x260   :  { %v1023_v6 = vpop.f32.mrf.mxu0 }
 0x261   :  { %v2881_v6 = vpop.permute.xlu0 %1224  ;;  %v2892_v45 = vpop.permute.xlu1 %1129 }
 0x262   :  { %v2867_v1 = vpop.f32.mrf.mxu0  ;;  %3064 = vst [vmem:[#allocation34_spill] sm:$0xff] %v2892_v45 }
 0x263   :  { %v1027_v21 = vadd.f32 %v2867_v1, %v2795_v35  ;;  %v3065_v1 = vld [vmem:[#allocation9_spill] sm:$0xff]  ;;  %v3066_v35 = vld [vmem:[#allocation22_spill] sm:$0xff] }
 0x264   :  { %v1028_v59 = vpop.f32.mrf.mxu0 }
 0x265   :  { %v2885_v59 = vpop.permute.xlu0 %1219  ;;  %v2905_v45 = vpop.permute.xlu1 %1124 }
 0x266   :  { %v2873_v31 = vpop.f32.mrf.mxu0  ;;  %3061 = vst [vmem:[#allocation31_spill] sm:$0xff] %v2885_v59 }
 0x268   :  { %v1033_v60 = vpop.f32.mrf.mxu0 }
 0x269   :  { %v2889_v62 = vpop.permute.xlu0 %1214 }
 0x26a   :  { %v1036_v2 = vpop.f32.mrf.mxu0  ;;  %3063 = vst [vmem:[#allocation33_spill] sm:$0xff] %v2889_v62  ;;  %v1277_v62 = vadd.f32 %v1180_v61, %v987_v43  ;;  %v942_v61 = vadd.f32 %v3066_v35, %v3065_v1  ;;  %v3092_v1 = vld [vmem:[#allocation17_spill] sm:$0xff] }
 0x26c   :  { %v1038_v48 = vpop.f32.mrf.mxu0  ;;  %v1309_v43 = vmax.f32 %v1277_v62, 0.0  ;;  %v957_v62 = vadd.f32 %v2837_v4, %v2734_v22 }
 0x26e   :  { %v1041_v34 = vpop.f32.mrf.mxu0 }
 0x270   :  { %v1043_v56 = vpop.f32.mrf.mxu0 }
 0x271   :  { %v2895_v56 = vpop.permute.xlu0 %1209 }
 0x272   :  { %v1046_v52 = vpop.f32.mrf.mxu0 }
 0x273   :  { %v1047_v46 = vadd.f32 %v1046_v52, %v2803_v14 }
 0x274   :  { %v1048_v38 = vpop.f32.mrf.mxu0 }
 0x275   :  { %v1289_v14 = vadd.f32 %v2863_v0, %v1047_v46  ;;  %v3077_v46 = vld [vmem:[#allocation7_spill] sm:$0xff] }
 0x276   :  { %v1051_v16 = vpop.f32.mrf.mxu0 }
 0x278   :  { %v1053_v60 = vpop.f32.mrf.mxu0 }
 0x27a   :  { %v1056_v41 = vpop.f32.mrf.mxu0 }
 0x27b   :  { %v1057_v60 = vadd.f32 %v1056_v41, %v2807_v57 }
 0x27c   :  { %v1058_v48 = vpop.f32.mrf.mxu0 }
 0x27d   :  { %v977_v48 = vadd.f32 %v2845_v18, %v2766_v40  ;;  %v1291_v41 = vadd.f32 %v1250_v11, %v1057_v60  ;;  %v2910_v40 = vpop.permute.xlu0 %1204 }
 0x27e   :  { %v1061_v44 = vpop.f32.mrf.mxu0 }
 0x27f   :  { %v1062_v38 = vadd.f32 %v1061_v44, %v2809_v51  ;;  %v972_v51 = vadd.f32 %v2843_v13, %v2758_v36  ;;  %v1276_v44 = vadd.f32 %v1175_v54, %v982_v50  ;;  %v962_v50 = vadd.f32 %v2839_v25, %v2742_v26  ;;  %v2921_v26 = vpop.permute.xlu1 %1119 }
 0x280   :  { %v1063_v33 = vpop.f32.mrf.mxu0  ;;  %v952_v13 = vadd.f32 %v2829_v58, %v2726_v19  ;;  %v1271_v19 = vadd.f32 %v2875_v3, %v957_v62 }
 0x281   :  { %v1052_v33 = vadd.f32 %v1051_v16, %v2805_v17  ;;  %v1292_v53 = vadd.f32 %v1255_v32, %v1062_v38  ;;  %v1042_v17 = vadd.f32 %v1041_v34, %v2801_v12  ;;  %v1274_v36 = vadd.f32 %v2857_v29, %v972_v51  ;;  %v3070_v29 = vld [vmem:[#allocation31_spill] sm:$0xff] }
 0x282   :  { %v1066_v59 = vpop.f32.mrf.mxu0  ;;  %v1308_v52 = vmax.f32 %v1276_v44, 0.0  ;;  %v1032_v34 = vadd.f32 %v2873_v31, %v2797_v8  ;;  %v1272_v22 = vadd.f32 %v2869_v47, %v962_v50  ;;  %v1321_v31 = vmax.f32 %v1289_v14, 0.0 }
 0x283   :  { %v1067_v42 = vadd.f32 %v1066_v59, %v2811_v23  ;;  %v967_v23 = vadd.f32 %v2841_v9, %v2750_v30  ;;  %v1324_v18 = vmax.f32 %v1292_v53, 0.0  ;;  %v1037_v30 = vadd.f32 %v1036_v2, %v2799_v10  ;;  %v3067_v2 = vld [vmem:[#allocation29_spill] sm:$0xff]  ;;  %v1115_v3 = vpop.permute.xlu1 %1114 }
 0x284   :  { %v1068_v63 = vpop.f32.mrf.mxu0  ;;  %v1323_v9 = vmax.f32 %v1291_v41, 0.0  ;;  %v1288_v10 = vadd.f32 %v2871_v20, %v1042_v17  ;;  %v1306_v4 = vmax.f32 %v1274_v36, 0.0  ;;  %v947_v32 = vadd.f32 %v2827_v49, %v2718_v15  ;;  %v3068_v15 = vld [vmem:[#allocation15_spill] sm:$0xff]  ;;  %v3069_v49 = vld [vmem:[#allocation28_spill] sm:$0xff]  ;;  %v3072_v20 = vld [vmem:[#allocation21_spill] sm:$0xff] }
 0x285   :  { %v1293_v27 = vadd.f32 %v1260_v37, %v1067_v42  ;;  %v1275_v63 = vadd.f32 %v1170_v5, %v977_v48  ;;  %v1290_v42 = vadd.f32 %v1245_v24, %v1052_v33  ;;  %v1273_v12 = vadd.f32 %v2861_v55, %v967_v23  ;;  %v2929_v55 = vpop.permute.xlu0 %1199  ;;  %v3074_v48 = vld [vmem:[#allocation14_spill] sm:$0xff]  ;;  %v3075_v33 = vld [vmem:[#allocation27_spill] sm:$0xff]  ;;  %v3078_v41 = vld [vmem:[#allocation20_spill] sm:$0xff] }
 0x286   :  { %v1287_v8 = vadd.f32 %v2877_v39, %v1037_v30  ;;  %v1022_v37 = vadd.f32 %v2865_v28, %v2793_v7  ;;  %v1286_v47 = vadd.f32 %v2881_v6, %v1032_v34  ;;  %v1320_v54 = vmax.f32 %v1288_v10, 0.0  ;;  %v3071_v28 = vld [vmem:[#allocation8_spill] sm:$0xff]  ;;  %v3073_v6 = vld [vmem:[#allocation30_spill] sm:$0xff]  ;;  %v3080_v17 = vld [vmem:[#allocation13_spill] sm:$0xff] }
 0x287   :  { %v1325_v57 = vmax.f32 %v1293_v27, 0.0  ;;  %v1307_v24 = vmax.f32 %v1275_v63, 0.0  ;;  %v1322_v25 = vmax.f32 %v1290_v42, 0.0  ;;  %v1305_v58 = vmax.f32 %v1273_v12, 0.0  ;;  %v3076_v27 = vld [vmem:[#allocation33_spill] sm:$0xff]  ;;  %v3079_v23 = vld [vmem:[#allocation32_spill] sm:$0xff] }
 0x288   :  { %v1270_v5 = vadd.f32 %v3067_v2, %v952_v13  ;;  %v1304_v11 = vmax.f32 %v1272_v22, 0.0  ;;  %v1017_v16 = vadd.f32 %v3069_v49, %v3068_v15  ;;  %v1285_v0 = vadd.f32 %v3070_v29, %v1027_v21  ;;  %v3081_v42 = vld [vmem:[#allocation26_spill] sm:$0xff]  ;;  %v3083_v30 = vld [vmem:[#allocation19_spill] sm:$0xff]  ;;  %v3085_v34 = vld [vmem:[#allocation12_spill] sm:$0xff] }
 0x289   :  { %1654 = vmatprep.subr.mxu0 %v1325_v57  ;;  %1762 = vmatprep.subr.mxu1 %v1325_v57  ;;  %v1319_v7 = vmax.f32 %v1287_v8, 0.0  ;;  %v937_v39 = vadd.f32 %v3072_v20, %v3071_v28  ;;  %v1269_v59 = vadd.f32 %v3073_v6, %v947_v32  ;;  %v1303_v38 = vmax.f32 %v1271_v19, 0.0  ;;  %v1195_v60 = vpop.permute.xlu0 %1194  ;;  %v3086_v10 = vld [vmem:[#allocation25_spill] sm:$0xff]  ;;  %v3089_v19 = vld [vmem:[#allocation11_spill] sm:$0xff] }
 0x28a   :  { %1655 = vmatpush3.msra.mxu0 %v1309_v43  ;;  %1778 = vmatpush3.msra.mxu1 %v1309_v43  ;;  %v1012_v53 = vadd.f32 %v3075_v33, %v3074_v48  ;;  %v1284_v51 = vadd.f32 %v3076_v27, %v1022_v37  ;;  %v1318_v44 = vmax.f32 %v1286_v47, 0.0  ;;  %v932_v57 = vadd.f32 %v3078_v41, %v3077_v46  ;;  %v1332_v46 = vld [vmem:[%s3031_s6 + $0x30] sm:$0xff]  ;;  %v1329_v41 = vld [vmem:[%s3031_s6 + $0x18] sm:$0xff] }
 0x28b   :  { %1656 = vmatprep.subr.mxu0 %v1324_v18  ;;  %1763 = vmatprep.subr.mxu1 %v1324_v18  ;;  %v1268_v63 = vadd.f32 %v3079_v23, %v942_v61  ;;  %v1302_v43 = vmax.f32 %v1270_v5, 0.0  ;;  %v1007_v18 = vadd.f32 %v3081_v42, %v3080_v17  ;;  %v1283_v50 = vadd.f32 %v2895_v56, %v1017_v16  ;;  %v3087_v56 = vld [vmem:[#allocation5_spill] sm:$0xff]  ;;  %v3094_v5 = vld [vmem:[#allocation23_spill] sm:$0xff] }
 0x28c   :  { %1657 = vmatpush3.msra.mxu0 %v1308_v52  ;;  %1779 = vmatpush3.msra.mxu1 %v1308_v52  ;;  %v1317_v36 = vmax.f32 %v1285_v0, 0.0  ;;  %v3082_v52 = vld [vmem:[#allocation6_spill] sm:$0xff]  ;;  %v1301_v12 = vmax.f32 %v1269_v59, 0.0  ;;  %v1282_v13 = vadd.f32 %v2910_v40, %v1012_v53  ;;  %v1316_v22 = vmax.f32 %v1284_v51, 0.0  ;;  %v3091_v40 = vld [vmem:[#allocation4_spill] sm:$0xff]  ;;  %v3095_v16 = vld [vmem:[#allocation3_spill] sm:$0xff] }
 0x28d   :  { %1658 = vmatprep.subr.mxu0 %v1323_v9  ;;  %1764 = vmatprep.subr.mxu1 %v1323_v9  ;;  %v927_v14 = vadd.f32 %v3083_v30, %v3082_v52  ;;  %v3084_v9 = vld [vmem:[#allocation34_spill] sm:$0xff]  ;;  %v1266_v8 = vadd.f32 %v2905_v45, %v932_v57  ;;  %v1190_v32 = vpop.permute.xlu0 %1189  ;;  %v1281_v47 = vadd.f32 %v2929_v55, %v1007_v18  ;;  %v3096_v55 = vld [vmem:[#allocation16_spill] sm:$0xff] }
 0x28e   :  { %1659 = vmatpush3.msra.mxu0 %v1307_v24  ;;  %1780 = vmatpush3.msra.mxu1 %v1307_v24  ;;  %v1267_v62 = vadd.f32 %v3084_v9, %v937_v39  ;;  %v1110_v24 = vpop.permute.xlu1 %1109  ;;  %v917_v35 = vadd.f32 %v3092_v1, %v3091_v40  ;;  %v3093_v45 = vld [vmem:[#allocation10_spill] sm:$0xff]  ;;  %v1314_v49 = vmax.f32 %v1282_v13, 0.0  ;;  %v912_v29 = vadd.f32 %v3096_v55, %v3095_v16  ;;  %v1335_v57 = vld [vmem:[%s3031_s6 + $0x48] sm:$0xff]  ;;  %v1328_v23 = vld [vmem:[%s3031_s6 + $0x10] sm:$0xff] }
 0x28f   :  { %1660 = vmatprep.subr.mxu0 %v1322_v25  ;;  %1765 = vmatprep.subr.mxu1 %v1322_v25  ;;  %v1002_v25 = vadd.f32 %v3086_v10, %v3085_v34  ;;  %v1265_v61 = vadd.f32 %v2921_v26, %v927_v14  ;;  %v1313_v26 = vmax.f32 %v1281_v47, 0.0  ;;  %v1337_v17 = vld [vmem:[%s3031_s6 + $0x58] sm:$0xff]  ;;  %v1330_v42 = vld [vmem:[%s3031_s6 + $0x20] sm:$0xff]  ;;  %v1336_v18 = vld [vmem:[%s3031_s6 + $0x50] sm:$0xff] }
 0x290   :  { %1661 = vmatpush3.msra.mxu0 %v1306_v4  ;;  %1781 = vmatpush3.msra.mxu1 %v1306_v4  ;;  %v3088_v4 = vld [vmem:[#allocation18_spill] sm:$0xff]  ;;  %v1299_v2 = vmax.f32 %v1267_v62, 0.0  ;;  %v1263_v39 = vadd.f32 %v1110_v24, %v917_v35  ;;  %v1340_v30 = vld [vmem:[%s3031_s6 + $0x70] sm:$0xff] }
 0x291   :  { %1662 = vmatprep.subr.mxu0 %v1321_v31  ;;  %1766 = vmatprep.subr.mxu1 %v1321_v31  ;;  %v922_v21 = vadd.f32 %v3088_v4, %v3087_v56  ;;  %v1300_v31 = vmax.f32 %v1268_v63, 0.0  ;;  %v1280_v15 = vadd.f32 %v1195_v60, %v1002_v25  ;;  %v1297_v6 = vmax.f32 %v1265_v61, 0.0  ;;  %v1185_v59 = vpop.permute.xlu0 %1184  ;;  %v1334_v63 = vld [vmem:[%s3031_s6 + $0x40] sm:$0xff]  ;;  %v1341_v52 = vld [vmem:[%s3031_s6 + $0x78] sm:$0xff] }
 0x292   :  { %1663 = vmatpush3.msra.mxu0 %v1305_v58  ;;  %1782 = vmatpush3.msra.mxu1 %v1305_v58  ;;  %v3090_v58 = vld [vmem:[#allocation24_spill] sm:$0xff]  ;;  %v1105_v28 = vpop.permute.xlu1 %1104  ;;  %v1295_v53 = vmax.f32 %v1263_v39, 0.0 }
 0x293   :  { %1664 = vmatprep.subr.mxu0 %v1320_v54  ;;  %1767 = vmatprep.subr.mxu1 %v1320_v54  ;;  %v997_v37 = vadd.f32 %v3090_v58, %v3089_v19  ;;  %v1315_v54 = vmax.f32 %v1283_v50, 0.0  ;;  %v1264_v0 = vadd.f32 %v1115_v3, %v922_v21  ;;  %v1312_v60 = vmax.f32 %v1280_v15, 0.0  ;;  %v1339_v50 = vld [vmem:[%s3031_s6 + $0x68] sm:$0xff] }
 0x294   :  { %1665 = vmatpush3.msra.mxu0 %v1304_v11  ;;  %1783 = vmatpush3.msra.mxu1 %v1304_v11  ;;  %v992_v11 = vadd.f32 %v3094_v5, %v3093_v45  ;;  %v1262_v48 = vadd.f32 %v1105_v28, %v912_v29 }
 0x295   :  { %1666 = vmatprep.subr.mxu0 %v1319_v7  ;;  %1768 = vmatprep.subr.mxu1 %v1319_v7  ;;  %v1298_v7 = vmax.f32 %v1266_v8, 0.0  ;;  %v1279_v20 = vadd.f32 %v1190_v32, %v997_v37  ;;  %v1296_v33 = vmax.f32 %v1264_v0, 0.0  ;;  %v1353_v14 = vpop.permute.xlu0 %1352 }
 0x296   :  { %1667 = vmatpush3.msra.mxu0 %v1303_v38  ;;  %1784 = vmatpush3.msra.mxu1 %v1303_v38  ;;  %v1278_v38 = vadd.f32 %v1185_v59, %v992_v11  ;;  %v1294_v51 = vmax.f32 %v1262_v48, 0.0  ;;  %v1358_v9 = vpop.permute.xlu1 %1357 }
 0x297   :  { %1668 = vmatprep.subr.mxu0 %v1318_v44  ;;  %1769 = vmatprep.subr.mxu1 %v1318_v44  ;;  %v1311_v3 = vmax.f32 %v1279_v20, 0.0  ;;  %v1326_v44 = vld [vmem:[%s3031_s6] sm:$0xff] }
 0x298   :  { %1669 = vmatpush3.msra.mxu0 %v1302_v43  ;;  %1785 = vmatpush3.msra.mxu1 %v1302_v43  ;;  %v1310_v27 = vmax.f32 %v1278_v38, 0.0  ;;  %v1331_v43 = vld [vmem:[%s3031_s6 + $0x28] sm:$0xff] }
 0x299   :  { %1670 = vmatprep.subr.mxu0 %v1317_v36  ;;  %1770 = vmatprep.subr.mxu1 %v1317_v36  ;;  %v1338_v36 = vld [vmem:[%s3031_s6 + $0x60] sm:$0xff]  ;;  %v1363_v62 = vpop.permute.xlu0 %1362 }
 0x29a   :  { %1671 = vmatpush3.msra.mxu0 %v1301_v12  ;;  %1786 = vmatpush3.msra.mxu1 %v1301_v12  ;;  %v1368_v12 = vpop.permute.xlu1 %1367 }
 0x29b   :  { %1672 = vmatprep.subr.mxu0 %v1316_v22  ;;  %1771 = vmatprep.subr.mxu1 %v1316_v22 }
 0x29c   :  { %1673 = vmatpush3.msra.mxu0 %v1300_v31  ;;  %1787 = vmatpush3.msra.mxu1 %v1300_v31 }
 0x29d   :  { %1674 = vmatprep.subr.mxu0 %v1315_v54  ;;  %1772 = vmatprep.subr.mxu1 %v1315_v54  ;;  %v1514_v24 = vpop.permute.xlu0 %1513 }
 0x29e   :  { %1675 = vmatpush3.msra.mxu0 %v1299_v2  ;;  %1788 = vmatpush3.msra.mxu1 %v1299_v2  ;;  %v1519_v34 = vpop.permute.xlu1 %1518 }
 0x29f   :  { %1676 = vmatprep.subr.mxu0 %v1314_v49  ;;  %1773 = vmatprep.subr.mxu1 %v1314_v49 }
 0x2a0   :  { %1677 = vmatpush3.msra.mxu0 %v1298_v7  ;;  %1789 = vmatpush3.msra.mxu1 %v1298_v7 }
 0x2a1   :  { %1678 = vmatprep.subr.mxu0 %v1313_v26  ;;  %1774 = vmatprep.subr.mxu1 %v1313_v26  ;;  %v1373_v10 = vpop.permute.xlu0 %1372 }
 0x2a2   :  { %1679 = vmatpush3.msra.mxu0 %v1297_v6  ;;  %1790 = vmatpush3.msra.mxu1 %v1297_v6  ;;  %v1524_v22 = vpop.permute.xlu1 %1523 }
 0x2a3   :  { %1680 = vmatprep.subr.mxu0 %v1312_v60  ;;  %1775 = vmatprep.subr.mxu1 %v1312_v60 }
 0x2a4   :  { %1681 = vmatpush3.msra.mxu0 %v1296_v33  ;;  %1791 = vmatpush3.msra.mxu1 %v1296_v33 }
 0x2a5   :  { %1682 = vmatprep.subr.mxu0 %v1311_v3  ;;  %1776 = vmatprep.subr.mxu1 %v1311_v3  ;;  %v1378_v32 = vpop.permute.xlu0 %1377 }
 0x2a6   :  { %1683 = vmatpush3.msra.mxu0 %v1295_v53  ;;  %1792 = vmatpush3.msra.mxu1 %v1295_v53  ;;  %v1529_v47 = vpop.permute.xlu1 %1528 }
 0x2a7   :  { %1684 = vmatprep.subr.mxu0 %v1310_v27  ;;  %1777 = vmatprep.subr.mxu1 %v1310_v27 }
 0x2a8   :  { %1685 = vmatpush3.msra.mxu0 %v1294_v51  ;;  %1793 = vmatpush3.msra.mxu1 %v1294_v51 }
 0x2a9   :  { %1455 = vmatmul.mubr.f32.vlgmr.msra.gmra.mxu0 %v1326_v44  ;;  %1470 = vmatmul.mubr.f32.vlgmr.msra.gmra.mxu1 %v1332_v46  ;;  %v1383_v29 = vpop.permute.xlu0 %1382 }
 0x2aa   :  { %1459 = vmatprep.mubr.f32.mxu0 %v1329_v41  ;;  %1474 = vmatprep.mubr.f32.mxu1 %v1335_v57  ;;  %v1534_v26 = vpop.permute.xlu1 %1533 }
 0x2ad   :  { %1460 = vmatmul.mubr.f32.gmra.mxu0 %v1328_v23  ;;  %1475 = vmatmul.mubr.f32.gmra.mxu1 %v1334_v63  ;;  %v1388_v44 = vpop.permute.xlu0 %1387 }
 0x2ae   :  { %1464 = vmatprep.mubr.f32.mxu0 %v1331_v43  ;;  %1479 = vmatprep.mubr.f32.mxu1 %v1337_v17  ;;  %v1539_v43 = vpop.permute.xlu1 %1538 }
 0x2b1   :  { %1465 = vmatmul.mubr.f32.gmra.mxu0 %v1330_v42  ;;  %1480 = vmatmul.mubr.f32.gmra.mxu1 %v1336_v18 }
 0x2b2   :  { %1484 = vmatprep.mubr.f32.mxu1 %v1339_v50 }
 0x2b5   :  { %1485 = vmatmul.mubr.f32.gmra.mxu1 %v1338_v36 }
 0x2b6   :  { %1489 = vmatprep.mubr.f32.mxu1 %v1341_v52 }
 0x2b9   :  { %1490 = vmatmul.mubr.f32.gmra.mxu1 %v1340_v30 }
 0x369   :  { %v1686_v25 = vpop.f32.mrf.mxu0  ;;  %v1695_v13 = vpop.f32.mrf.mxu1 }
 0x36b   :  { %v1687_v56 = vpop.f32.mrf.mxu0  ;;  %v1696_v4 = vpop.f32.mrf.mxu1 }
 0x36c   :  { %v1688_v21 = vadd.f32 %v1687_v56, %v1686_v25  ;;  %v1697_v19 = vadd.f32 %v1696_v4, %v1695_v13 }
 0x36d   :  { %v1689_v8 = vpop.f32.mrf.mxu0  ;;  %v1698_v31 = vpop.f32.mrf.mxu1 }
 0x36e   :  { %v1457_v54 = vadd.f32 %v1688_v21, %v1353_v14  ;;  %v1472_v45 = vadd.f32 %v1697_v19, %v1368_v12  ;;  %v1544_v14 = vpop.permute.xlu0 %1543  ;;  %v1549_v12 = vpop.permute.xlu1 %1548 }
 0x36f   :  { %v1690_v58 = vpop.f32.mrf.mxu0  ;;  %v1699_v37 = vpop.f32.mrf.mxu1 }
 0x370   :  { %v1691_v40 = vadd.f32 %v1690_v58, %v1689_v8  ;;  %v1700_v2 = vadd.f32 %v1699_v37, %v1698_v31  ;;  %v1495_v15 = vmax.f32 %v1457_v54, 0.0  ;;  %v1498_v39 = vmax.f32 %v1472_v45, 0.0 }
 0x371   :  { %v1692_v1 = vpop.f32.mrf.mxu0  ;;  %v1701_v35 = vpop.f32.mrf.mxu1 }
 0x372   :  { %v1462_v61 = vadd.f32 %v1691_v40, %v1358_v9  ;;  %v1477_v28 = vadd.f32 %v1700_v2, %v1373_v10  ;;  %v1551_v59 = vmul.f32 %v1514_v24, %v1495_v15  ;;  %v1554_v41 = vmul.f32 %v1529_v47, %v1498_v39  ;;  %v1576_v31 = vpop.permute.xlu0 %1575 }
 0x373   :  { %v1693_v5 = vpop.f32.mrf.mxu0  ;;  %v1702_v11 = vpop.f32.mrf.mxu1  ;;  %v1578_v10 = vlaneseq }
 0x374   :  { %v1496_v49 = vmax.f32 %v1462_v61, 0.0  ;;  %v1694_v16 = vadd.f32 %v1693_v5, %v1692_v1  ;;  %v1703_v55 = vadd.f32 %v1702_v11, %v1701_v35  ;;  %v1499_v53 = vmax.f32 %v1477_v28, 0.0 }
 0x375   :  { %v1704_v0 = vpop.f32.mrf.mxu1 }
 0x376   :  { %v1552_v7 = vmul.f32 %v1519_v34, %v1496_v49  ;;  %v1467_v20 = vadd.f32 %v1694_v16, %v1363_v62  ;;  %v1482_v60 = vadd.f32 %v1703_v55, %v1378_v32  ;;  %v1555_v17 = vmul.f32 %v1534_v26, %v1499_v53 }
 0x377   :  { %v1705_v6 = vpop.f32.mrf.mxu1 }
 0x378   :  { %v1497_v38 = vmax.f32 %v1467_v20, 0.0  ;;  %v1706_v48 = vadd.f32 %v1705_v6, %v1704_v0  ;;  %v1559_v3 = vadd.f32 %v1552_v7, %v1551_v59  ;;  %v1500_v23 = vmax.f32 %v1482_v60, 0.0 }
 0x379   :  { %v1707_v33 = vpop.f32.mrf.mxu1 }
 0x37a   :  { %v1553_v27 = vmul.f32 %v1524_v22, %v1497_v38  ;;  %v1487_v51 = vadd.f32 %v1706_v48, %v1383_v29  ;;  %v1556_v36 = vmul.f32 %v1539_v43, %v1500_v23  ;;  %v1579_v22 = vshrl.u32 %v1578_v10, 7 }
 0x37b   :  { %v1708_v46 = vpop.f32.mrf.mxu1 }
 0x37c   :  { %v1560_v57 = vadd.f32 %v1559_v3, %v1553_v27  ;;  %v1709_v63 = vadd.f32 %v1708_v46, %v1707_v33  ;;  %v1501_v18 = vmax.f32 %v1487_v51, 0.0  ;;  %v1580_v21 = vsub.s32 0, %v1579_v22 }
 0x37e   :  { %v1561_v42 = vadd.f32 %v1560_v57, %v1554_v41  ;;  %v1492_v50 = vadd.f32 %v1709_v63, %v1388_v44  ;;  %v1557_v62 = vmul.f32 %v1544_v14, %v1501_v18  ;;  %v1581_v19 = vrot.slane %v1576_v31, %v1580_v21 }
 0x380   :  { %v1562_v52 = vadd.f32 %v1561_v42, %v1555_v17  ;;  %v1502_v30 = vmax.f32 %v1492_v50, 0.0 }
 0x382   :  { %v1563_v9 = vadd.f32 %v1562_v52, %v1556_v36  ;;  %v1558_v34 = vmul.f32 %v1549_v12, %v1502_v30 }
 0x384   :  { %v1564_v24 = vadd.f32 %v1563_v9, %v1557_v62 }
 0x386   :  { %v1565_v25 = vadd.f32 %v1564_v24, %v1558_v34 }
 0x388   :  { %v1566_v13 = vrot.slane %v1565_v25, 4 }
 0x38a   :  { %v1567_v56 = vadd.f32 %v1566_v13, %v1565_v25 }
 0x38c   :  { %v1568_v4 = vrot.slane %v1567_v56, 2 }
 0x38e   :  { %v1569_v8 = vadd.f32 %v1568_v4, %v1567_v56 }
 0x390   :  { %v1570_v32 = vrot.slane %v1569_v8, 1 }
 0x392   :  { %v1571_v58 = vadd.f32 %v1570_v32, %v1569_v8 }
 0x394   :  { %v1582_v37 = vadd.f32 %v1581_v19, %v1571_v58 }
 0x396   :  { %1583 = vst [vmem:[%s3032_s10] sm:$0x1] %v1582_v37 }

// kernel: forward_pair.11
= control target key start
LH: loop header
LB: loop body
LE: loop exit
PB: predicated region body
PF: predicated region fallthrough
CT: control target
= control target key end

     0   :  { %s369_s13 = smov 16   ;;  %v130_v37 = vlaneseq  ;;  %v370_v41 = vmov -1e+30   ;;  %vm161_vm1 = vcmask 122880   ;;  %vm163_vm3 = vcmask 131200   ;;  %s544_s22 = smov 0   ;;  %s567_s1 = inlined_call_operand.vmem [shape: f32[128,256], index: 1, kind: input, shape index: {}]   ;;  %s568_s0 = inlined_call_operand.vmem [shape: f32[16,256], index: 0, kind: input, shape index: {}]   ;;  %s569_s2 = inlined_call_operand.vmem [shape: f32[16,1], index: 2, kind: input, shape index: {}]   ;;  %s570_s3 = inlined_call_operand.vmem [shape: f32[1,128], index: 3, kind: input, shape index: {}]   ;;  %s571_s4 = inlined_call_operand.vmem [shape: f32[16,128], index: 4, kind: output, shape index: {}]  }
   0x1   :  { %v52_v0 = vld [vmem:[%s567_s1 + $0xf8] sm:$0xff]  ;;  %v51_v1 = vld [vmem:[%s567_s1 + $0xf0] sm:$0xff]  ;;  %v50_v2 = vld [vmem:[%s567_s1 + $0xe8] sm:$0xff]  ;;  %152 = vst [vmem:[%s571_s4 + $0x8] sm:$0xff] %v370_v41  ;;  %v371_v44 = vmov 1.0   ;;  %vm158_vm5 = vcmask 138368  }
   0x2   :  { %53 = vmatprep.subr.mxu0 %v52_v0  ;;  %280 = vmatprep.subr.mxu1 %v52_v0  ;;  %v49_v3 = vld [vmem:[%s567_s1 + $0xe0] sm:$0xff]  ;;  %v48_v4 = vld [vmem:[%s567_s1 + $0xd8] sm:$0xff]  ;;  %v47_v5 = vld [vmem:[%s567_s1 + $0xd0] sm:$0xff]  ;;  %v134_v38 = vand.u32 127, %v130_v37  ;;  %v131_v39 = vshrl.u32 %v130_v37, 7  ;;  %v542_v56 = vmov 0.0  }
   0x3   :  { %54 = vmatpush1.xpose.msra.mxu0 %v51_v1  ;;  %296 = vmatpush1.xpose.msra.mxu1 %v51_v1  ;;  %v46_v6 = vld [vmem:[%s567_s1 + $0xc8] sm:$0xff]  ;;  %v45_v8 = vld [vmem:[%s567_s1 + $0xc0] sm:$0xff]  ;;  %v20_v9 = vld [vmem:[%s568_s0 + $0x18] sm:$0xff] }
   0x4   :  { %55 = vmatprep.subr.mxu0 %v50_v2  ;;  %281 = vmatprep.subr.mxu1 %v50_v2  ;;  %v18_v7 = vld [vmem:[%s568_s0 + $0x8] sm:$0xff]  ;;  %v44_v10 = vld [vmem:[%s567_s1 + $0xb8] sm:$0xff]  ;;  %v153_v11 = vld [vmem:[%s569_s2] sm:$0xff]  ;;  %vm140_vm0 = vcmp.eq.s32.totalorder %v134_v38, 16  ;;  %v132_v40 = vadd.s32 8, %v131_v39  ;;  %vm139_vm2 = vcmp.lt.s32.totalorder %v134_v38, 16 }
   0x5   :  { %117 = vmatprep.mubr.f32.mxu0 %v18_v7  ;;  %122 = vmatprep.mubr.f32.mxu1 %v20_v9  ;;  %v43_v12 = vld [vmem:[%s567_s1 + $0xb0] sm:$0xff]  ;;  %v42_v13 = vld [vmem:[%s567_s1 + $0xa8] sm:$0xff]  ;;  %v41_v14 = vld [vmem:[%s567_s1 + $0xa0] sm:$0xff]  ;;  %v171_v43 = vsel %vm140_vm0, -1.0986123, %v370_v41 }
   0x6   :  { %155 = vrot.lane.b32.xlu0 %v153_v11, %s369_s13  ;;  %v40_v15 = vld [vmem:[%s567_s1 + $0x98] sm:$0xff]  ;;  %v39_v16 = vld [vmem:[%s567_s1 + $0x90] sm:$0xff]  ;;  %v38_v17 = vld [vmem:[%s567_s1 + $0x88] sm:$0xff]  ;;  %vm138_vm4 = vcmp.eq.s32.totalorder %v132_v40, 8  ;;  %v521_v45 = vsel %vm139_vm2, -3.1780539, %v171_v43 }
   0x7   :  { %56 = vmatpush1.xpose.msra.mxu0 %v49_v3  ;;  %297 = vmatpush1.xpose.msra.mxu1 %v49_v3  ;;  %v37_v18 = vld [vmem:[%s567_s1 + $0x80] sm:$0xff]  ;;  %v36_v19 = vld [vmem:[%s567_s1 + $0x78] sm:$0xff]  ;;  %v35_v20 = vld [vmem:[%s567_s1 + $0x70] sm:$0xff]  ;;  %v523_v46 = vsel %vm138_vm4, -0.4054651, %v370_v41 }
   0x8   :  { %57 = vmatprep.subr.mxu0 %v48_v4  ;;  %282 = vmatprep.subr.mxu1 %v48_v4  ;;  %v34_v21 = vld [vmem:[%s567_s1 + $0x68] sm:$0xff]  ;;  %v33_v22 = vld [vmem:[%s567_s1 + $0x60] sm:$0xff]  ;;  %v32_v23 = vld [vmem:[%s567_s1 + $0x58] sm:$0xff] }
   0x9   :  { %v31_v24 = vld [vmem:[%s567_s1 + $0x50] sm:$0xff]  ;;  %v30_v25 = vld [vmem:[%s567_s1 + $0x48] sm:$0xff]  ;;  %v29_v26 = vld [vmem:[%s567_s1 + $0x40] sm:$0xff] }
   0xa   :  { %v28_v27 = vld [vmem:[%s567_s1 + $0x38] sm:$0xff]  ;;  %v27_v28 = vld [vmem:[%s567_s1 + $0x30] sm:$0xff]  ;;  %v26_v29 = vld [vmem:[%s567_s1 + $0x28] sm:$0xff] }
   0xb   :  { %58 = vmatpush1.xpose.msra.mxu0 %v47_v5  ;;  %298 = vmatpush1.xpose.msra.mxu1 %v47_v5  ;;  %v25_v30 = vld [vmem:[%s567_s1 + $0x20] sm:$0xff]  ;;  %v24_v31 = vld [vmem:[%s567_s1 + $0x18] sm:$0xff]  ;;  %v23_v32 = vld [vmem:[%s567_s1 + $0x10] sm:$0xff] }
   0xc   :  { %59 = vmatprep.subr.mxu0 %v46_v6  ;;  %283 = vmatprep.subr.mxu1 %v46_v6  ;;  %v22_v33 = vld [vmem:[%s567_s1 + $0x8] sm:$0xff]  ;;  %v21_v34 = vld [vmem:[%s567_s1] sm:$0xff]  ;;  %v19_v36 = vld [vmem:[%s568_s0 + $0x10] sm:$0xff] }
   0xd   :  { %v17_v35 = vld [vmem:[%s568_s0] sm:$0xff] }
   0xe   :  { %v160_v42 = vld [vmem:[%s570_s3] sm:$0x1] }
   0xf   :  { %60 = vmatpush1.xpose.msra.mxu0 %v45_v8  ;;  %299 = vmatpush1.xpose.msra.mxu1 %v45_v8  ;;  %162 = vst.msk [vmem:[%s571_s4 + $0x8] sm:$0x1] %vm161_vm1, %v160_v42 }
  0x10   :  { %61 = vmatprep.subr.mxu0 %v44_v10  ;;  %284 = vmatprep.subr.mxu1 %v44_v10  ;;  %164 = vst.msk [vmem:[%s571_s4 + $0x8] sm:$0x1] %vm163_vm3, %v371_v44 }
  0x13   :  { %62 = vmatpush1.xpose.msra.mxu0 %v43_v12  ;;  %300 = vmatpush1.xpose.msra.mxu1 %v43_v12 }
  0x14   :  { %63 = vmatprep.subr.mxu0 %v42_v13  ;;  %285 = vmatprep.subr.mxu1 %v42_v13 }
  0x17   :  { %64 = vmatpush1.xpose.msra.mxu0 %v41_v14  ;;  %301 = vmatpush1.xpose.msra.mxu1 %v41_v14  ;;  %v528_v47 = vld [vmem:[%s571_s4 + $0x8] sm:$0xff] }
  0x18   :  { %65 = vmatprep.subr.mxu0 %v40_v15  ;;  %286 = vmatprep.subr.mxu1 %v40_v15 }
  0x1b   :  { %66 = vmatpush1.xpose.msra.mxu0 %v39_v16  ;;  %302 = vmatpush1.xpose.msra.mxu1 %v39_v16 }
  0x1c   :  { %67 = vmatprep.subr.mxu0 %v38_v17  ;;  %287 = vmatprep.subr.mxu1 %v38_v17 }
  0x1f   :  { %68 = vmatpush1.xpose.msra.mxu0 %v37_v18  ;;  %303 = vmatpush1.xpose.msra.mxu1 %v37_v18 }
  0x20   :  { %69 = vmatprep.subr.mxu0 %v36_v19  ;;  %288 = vmatprep.subr.mxu1 %v36_v19 }
  0x23   :  { %70 = vmatpush1.xpose.msra.mxu0 %v35_v20  ;;  %304 = vmatpush1.xpose.msra.mxu1 %v35_v20 }
  0x24   :  { %71 = vmatprep.subr.mxu0 %v34_v21  ;;  %289 = vmatprep.subr.mxu1 %v34_v21 }
  0x27   :  { %72 = vmatpush1.xpose.msra.mxu0 %v33_v22  ;;  %305 = vmatpush1.xpose.msra.mxu1 %v33_v22 }
  0x28   :  { %73 = vmatprep.subr.mxu0 %v32_v23  ;;  %290 = vmatprep.subr.mxu1 %v32_v23 }
  0x2b   :  { %74 = vmatpush1.xpose.msra.mxu0 %v31_v24  ;;  %306 = vmatpush1.xpose.msra.mxu1 %v31_v24 }
  0x2c   :  { %75 = vmatprep.subr.mxu0 %v30_v25  ;;  %291 = vmatprep.subr.mxu1 %v30_v25 }
  0x2f   :  { %76 = vmatpush1.xpose.msra.mxu0 %v29_v26  ;;  %307 = vmatpush1.xpose.msra.mxu1 %v29_v26 }
  0x30   :  { %77 = vmatprep.subr.mxu0 %v28_v27  ;;  %292 = vmatprep.subr.mxu1 %v28_v27 }
  0x33   :  { %78 = vmatpush1.xpose.msra.mxu0 %v27_v28  ;;  %308 = vmatpush1.xpose.msra.mxu1 %v27_v28 }
  0x34   :  { %79 = vmatprep.subr.mxu0 %v26_v29  ;;  %293 = vmatprep.subr.mxu1 %v26_v29 }
  0x37   :  { %80 = vmatpush1.xpose.msra.mxu0 %v25_v30  ;;  %309 = vmatpush1.xpose.msra.mxu1 %v25_v30 }
  0x38   :  { %81 = vmatprep.subr.mxu0 %v24_v31  ;;  %294 = vmatprep.subr.mxu1 %v24_v31 }
  0x3b   :  { %82 = vmatpush1.xpose.msra.mxu0 %v23_v32  ;;  %310 = vmatpush1.xpose.msra.mxu1 %v23_v32 }
  0x3c   :  { %83 = vmatprep.subr.mxu0 %v22_v33  ;;  %295 = vmatprep.subr.mxu1 %v22_v33 }
  0x3f   :  { %84 = vmatpush1.xpose.msra.mxu0 %v21_v34  ;;  %311 = vmatpush1.xpose.msra.mxu1 %v21_v34 }
  0x42   :  { %118 = vmatmul.mubr.f32.vlgmr.msra.gmra.mxu0 %v17_v35  ;;  %123 = vmatmul.mubr.f32.vlgmr.msra.gmra.mxu1 %v19_v36 }
  0x78   :  { %v156_v51 = vpop.permute.xlu0 %155 }
 0x102   :  { %v119_v48 = vpop.f32.mrf.mxu0  ;;  %v124_v49 = vpop.f32.mrf.mxu1 }
 0x103   :  { %v128_v50 = vmul.f32 0.0625, %v119_v48 }
 0x104   :  { %v121_v52 = vpop.f32.mrf.mxu0  ;;  %v126_v53 = vpop.f32.mrf.mxu1 }
 0x105   :  { %v149_v54 = vsel %vm139_vm2, %v128_v50, -1e+30 }
 0x106   :  { %151 = vst [vmem:[%s571_s4] sm:$0xff] %v149_v54 }
 0x107   :  { %159 = vst.msk [vmem:[%s571_s4] sm:$0xff] %vm158_vm5, %v156_v51 }
 0x10e   :  { %v540_v55 = vld [vmem:[%s571_s4] sm:$0xff] }
 0x10f LB: > { %v182_v57 = vadd.f32 %v363_v56, %v540_v55  ;;  %v183_v58 = vadd.f32 %v363_v56, %v528_v47  ;;  %s178_s22 = sadd.s32 1, %s367_s22   ;;  %s367_s22 = sphi %s544_s22, %s178_s22   ;;  %v363_v56 = vphi %v542_v56, %v572_v56  }
 0x110   : > { %p175_p0 = scmp.ge.s32.totalorder %s178_s22, 10  }
 0x111   : > { %184 = vmax.xlane.f32.xlu0 %v182_v57 }
 0x115   : > { %186 = vmax.xlane.f32.xlu0 %v183_v58 }
 0x19a   : > { %v185_v59 = vpop.xlane.xlu0 %184 }
 0x19b   : > { %v188_v60 = vsub.f32 %v182_v57, %v185_v59 }
 0x19d   : > { %v190_v61 = vmul.f32 1.442695, %v188_v60 }
 0x19e   : > { %v187_v62 = vpop.xlane.xlu0 %186 }
 0x19f   : > { %331 = vpow2.f32 %v190_v61  ;;  %v189_v63 = vsub.f32 %v183_v58, %v187_v62 }
 0x1a1   : > { %v192_v0 = vmul.f32 1.442695, %v189_v63 }
 0x1a3   : > { %333 = vpow2.f32 %v192_v0 }
 0x1ac   : > { %v332_v1 = vpop.eup %331 }
 0x1ad   : > { %194 = vadd.xlane.f32.xlu1 %v332_v1 }
 0x1b0   : > { %v334_v2 = vpop.eup %333 }
 0x1b1   : > { %196 = vadd.xlane.f32.xlu1 %v334_v2 }
 0x236   : > { %v195_v3 = vpop.xlane.xlu1 %194 }
 0x237   : > { %335 = vlog2.f32 %v195_v3 }
 0x23a   : > { %v197_v4 = vpop.xlane.xlu1 %196 }
 0x23b   : > { %337 = vlog2.f32 %v197_v4 }
 0x244   : > { %v336_v5 = vpop.eup %335 }
 0x245   : > { %v199_v6 = vmul.f32 0.6931472, %v336_v5 }
 0x247   : > { %v202_v7 = vadd.f32 %v199_v6, %v185_v59 }
 0x248   : > { %v338_v8 = vpop.eup %337 }
 0x249   : > { %v201_v9 = vmul.f32 0.6931472, %v338_v8  ;;  %v204_v10 = vsub.f32 -3.1780539, %v202_v7 }
 0x24b   : > { %v203_v11 = vadd.f32 %v201_v9, %v187_v62  ;;  %v206_v13 = vadd.f32 %v204_v10, %v540_v55 }
 0x24d   : > { %v205_v12 = vsub.f32 %v523_v46, %v203_v11 }
 0x24f   : > { %v207_v14 = vadd.f32 %v205_v12, %v528_v47 }
 0x251   : > { %v208_v15 = vmax.f32 %v206_v13, %v207_v14 }
 0x253   : > { %v209_v16 = vrot.slane %v208_v15, 4 }
 0x255   : > { %v210_v17 = vmax.f32 %v208_v15, %v209_v16 }
 0x257   : > { %v211_v18 = vrot.slane %v210_v17, 2 }
 0x259   : > { %v212_v19 = vmax.f32 %v210_v17, %v211_v18 }
 0x25b   : > { %v213_v20 = vrot.slane %v212_v19, 1 }
 0x25d   : > { %v214_v21 = vmax.f32 %v212_v19, %v213_v20 }
 0x25f   : > { %v215_v22 = vsub.f32 %v206_v13, %v214_v21  ;;  %v216_v23 = vsub.f32 %v207_v14, %v214_v21 }
 0x261   : > { %v217_v24 = vmul.f32 1.442695, %v215_v22  ;;  %v219_v25 = vmul.f32 1.442695, %v216_v23 }
 0x263   : > { %339 = vpow2.f32 %v217_v24 }
 0x264   : > { %341 = vpow2.f32 %v219_v25 }
 0x270   : > { %v340_v26 = vpop.eup %339 }
 0x271   : > { %v342_v27 = vpop.eup %341 }
 0x272   : > { %v221_v28 = vadd.f32 %v342_v27, %v340_v26 }
 0x274   : > { %v222_v29 = vrot.slane %v221_v28, 4 }
 0x276   : > { %v223_v30 = vadd.f32 %v222_v29, %v221_v28 }
 0x278   : > { %v224_v31 = vrot.slane %v223_v30, 2 }
 0x27a   : > { %v225_v32 = vadd.f32 %v224_v31, %v223_v30 }
 0x27c   : > { %v226_v33 = vrot.slane %v225_v32, 1 }
 0x27e   : > { %v227_v34 = vadd.f32 %v226_v33, %v225_v32 }
 0x280   : > { %343 = vlog2.f32 %v227_v34 }
 0x28d   : > { %v344_v35 = vpop.eup %343 }
 0x28e   : > { %v229_v36 = vmul.f32 0.6931472, %v344_v35 }
 0x290   : > { %v230_v37 = vadd.f32 %v229_v36, %v214_v21  ;;  %177 = sbr.rel (!%p175_p0) target bundleno = 271 (0x10f), region = 43 }
 0x292   : > { %v231_v38 = vsub.f32 %v521_v45, %v230_v37  }
 0x294   : > { %v572_v56 = vmov %v231_v38  ;;  %v234_v39 = vadd.f32 (%p175_p0), %v231_v38, %v206_v13  ;;  %v235_v40 = vadd.f32 (%p175_p0), %v231_v38, %v207_v14 }
 0x296   :  { %v278_v41 = vadd.f32 3.1780539, %v234_v39  ;;  %v279_v42 = vadd.f32 3.1780539, %v235_v40 }
 0x298   :  { %238 = vmax.xlane.f32.xlu0 %v278_v41 }
 0x29c   :  { %240 = vmax.xlane.f32.xlu0 %v279_v42 }
 0x321   :  { %v239_v43 = vpop.xlane.xlu0 %238 }
 0x322   :  { %v242_v44 = vsub.f32 %v278_v41, %v239_v43 }
 0x324   :  { %v244_v48 = vmul.f32 1.442695, %v242_v44 }
 0x325   :  { %v241_v49 = vpop.xlane.xlu0 %240 }
 0x326   :  { %345 = vpow2.f32 %v244_v48  ;;  %v243_v50 = vsub.f32 %v279_v42, %v241_v49 }
 0x328   :  { %v246_v51 = vmul.f32 1.442695, %v243_v50 }
 0x32a   :  { %347 = vpow2.f32 %v246_v51 }
 0x333   :  { %v346_v52 = vpop.eup %345 }
 0x334   :  { %248 = vadd.xlane.f32.xlu1 %v346_v52 }
 0x337   :  { %v348_v53 = vpop.eup %347 }
 0x338   :  { %250 = vadd.xlane.f32.xlu1 %v348_v53 }
 0x3bd   :  { %v249_v54 = vpop.xlane.xlu1 %248 }
 0x3be   :  { %349 = vrcp.f32 %v249_v54 }
 0x3c1   :  { %v251_v45 = vpop.xlane.xlu1 %250 }
 0x3c2   :  { %351 = vrcp.f32 %v251_v45 }
 0x3cb   :  { %v350_v46 = vpop.eup %349 }
 0x3cc   :  { %v256_v47 = vmul.f32 %v350_v46, %v346_v52 }
 0x3ce   :  { %258 = vst [vmem:[%s571_s4] sm:$0xff] %v256_v47 }
 0x3cf   :  { %v352_v55 = vpop.eup %351 }
 0x3d0   :  { %v257_v56 = vmul.f32 %v352_v55, %v348_v53 }
 0x3d2   :  { %259 = vst [vmem:[%s571_s4 + $0x8] sm:$0xff] %v257_v56 }

// kernel: forward_pair.8
= control target key start
LH: loop header
LB: loop body
LE: loop exit
PB: predicated region body
PF: predicated region fallthrough
CT: control target
= control target key end

     0   :  { %s4565_s27 = smov 0   ;;  %s6575_s0 = inlined_call_operand.vmem [shape: f32[16,256], index: 0, kind: input, shape index: {}]   ;;  %s6576_s1 = inlined_call_operand.vmem [shape: f32[128,256], index: 1, kind: input, shape index: {}]   ;;  %s6577_s5 = inlined_call_operand.<no memory space> [shape: f32[1,1], index: 5, kind: input, shape index: {}]   ;;  %s6578_s6 = inlined_call_operand.vmem [shape: bf16[16,128], index: 6, kind: output, shape index: {}]   ;;  %s6579_s2 = inlined_call_operand.vmem [shape: f32[256,64], index: 2, kind: input, shape index: {}]   ;;  %s6580_s3 = inlined_call_operand.vmem [shape: f32[1,64], index: 3, kind: input, shape index: {}]   ;;  %s6581_s4 = inlined_call_operand.vmem [shape: f32[1,64], index: 4, kind: input, shape index: {}]  }
   0x1   :  { %v11_v0 = vstv %s6577_s5  ;;  %v4236_v1 = vld [vmem:[%s6576_s1] sm:$0xff]  ;;  %v4241_v2 = vld [vmem:[%s6576_s1 + $0x8] sm:$0xff]  ;;  %v4246_v3 = vld [vmem:[%s6576_s1 + $0x10] sm:$0xff] }
   0x2   :  { %6660 = vst [vmem:[#allocation3_spill] sm:$0xff] %v4236_v1  ;;  %6661 = vst [vmem:[#allocation4_spill] sm:$0xff] %v4241_v2  ;;  %v4251_v4 = vld [vmem:[%s6576_s1 + $0x18] sm:$0xff]  ;;  %v4256_v5 = vld [vmem:[%s6576_s1 + $0x20] sm:$0xff] }
   0x3   :  { %6662 = vst [vmem:[#allocation5_spill] sm:$0xff] %v4246_v3  ;;  %12 = vst [vmem:[#allocation2] sm:$0x1] %v11_v0  ;;  %v4261_v6 = vld [vmem:[%s6576_s1 + $0x28] sm:$0xff]  ;;  %v4266_v7 = vld [vmem:[%s6576_s1 + $0x30] sm:$0xff] }
   0x4   :  { %6663 = vst [vmem:[#allocation6_spill] sm:$0xff] %v4251_v4  ;;  %6664 = vst [vmem:[#allocation7_spill] sm:$0xff] %v4256_v5  ;;  %v4271_v8 = vld [vmem:[%s6576_s1 + $0x38] sm:$0xff]  ;;  %v4276_v9 = vld [vmem:[%s6576_s1 + $0x40] sm:$0xff] }
   0x5   :  { %6665 = vst [vmem:[#allocation8_spill] sm:$0xff] %v4261_v6  ;;  %6666 = vst [vmem:[#allocation9_spill] sm:$0xff] %v4266_v7  ;;  %v4281_v10 = vld [vmem:[%s6576_s1 + $0x48] sm:$0xff]  ;;  %v4286_v11 = vld [vmem:[%s6576_s1 + $0x50] sm:$0xff] }
   0x6   :  { %6667 = vst [vmem:[#allocation10_spill] sm:$0xff] %v4271_v8  ;;  %6668 = vst [vmem:[#allocation11_spill] sm:$0xff] %v4276_v9  ;;  %v4291_v12 = vld [vmem:[%s6576_s1 + $0x58] sm:$0xff]  ;;  %v4296_v13 = vld [vmem:[%s6576_s1 + $0x60] sm:$0xff] }
   0x7   :  { %6669 = vst [vmem:[#allocation12_spill] sm:$0xff] %v4281_v10  ;;  %6670 = vst [vmem:[#allocation13_spill] sm:$0xff] %v4286_v11  ;;  %v4301_v14 = vld [vmem:[%s6576_s1 + $0x68] sm:$0xff]  ;;  %v4306_v15 = vld [vmem:[%s6576_s1 + $0x70] sm:$0xff] }
   0x8   :  { %6671 = vst [vmem:[#allocation14_spill] sm:$0xff] %v4291_v12  ;;  %6672 = vst [vmem:[#allocation15_spill] sm:$0xff] %v4296_v13  ;;  %v4311_v16 = vld [vmem:[%s6576_s1 + $0x78] sm:$0xff]  ;;  %v4316_v17 = vld [vmem:[%s6576_s1 + $0x80] sm:$0xff] }
   0x9   :  { %6673 = vst [vmem:[#allocation16_spill] sm:$0xff] %v4301_v14  ;;  %6674 = vst [vmem:[#allocation17_spill] sm:$0xff] %v4306_v15  ;;  %v4321_v18 = vld [vmem:[%s6576_s1 + $0x88] sm:$0xff]  ;;  %v4326_v19 = vld [vmem:[%s6576_s1 + $0x90] sm:$0xff] }
   0xa   :  { %6675 = vst [vmem:[#allocation18_spill] sm:$0xff] %v4311_v16  ;;  %6676 = vst [vmem:[#allocation19_spill] sm:$0xff] %v4316_v17  ;;  %v4331_v20 = vld [vmem:[%s6576_s1 + $0x98] sm:$0xff]  ;;  %v4336_v21 = vld [vmem:[%s6576_s1 + $0xa0] sm:$0xff] }
   0xb   :  { %6677 = vst [vmem:[#allocation20_spill] sm:$0xff] %v4321_v18  ;;  %6678 = vst [vmem:[#allocation21_spill] sm:$0xff] %v4326_v19  ;;  %v4341_v22 = vld [vmem:[%s6576_s1 + $0xa8] sm:$0xff]  ;;  %v4346_v23 = vld [vmem:[%s6576_s1 + $0xb0] sm:$0xff] }
   0xc   :  { %6679 = vst [vmem:[#allocation22_spill] sm:$0xff] %v4331_v20  ;;  %6680 = vst [vmem:[#allocation23_spill] sm:$0xff] %v4336_v21  ;;  %v4351_v24 = vld [vmem:[%s6576_s1 + $0xb8] sm:$0xff]  ;;  %v4356_v25 = vld [vmem:[%s6576_s1 + $0xc0] sm:$0xff] }
   0xd   :  { %6681 = vst [vmem:[#allocation24_spill] sm:$0xff] %v4341_v22  ;;  %6682 = vst [vmem:[#allocation25_spill] sm:$0xff] %v4346_v23  ;;  %v4361_v26 = vld [vmem:[%s6576_s1 + $0xc8] sm:$0xff]  ;;  %v4366_v27 = vld [vmem:[%s6576_s1 + $0xd0] sm:$0xff] }
   0xe   :  { %6683 = vst [vmem:[#allocation26_spill] sm:$0xff] %v4351_v24  ;;  %6684 = vst [vmem:[#allocation27_spill] sm:$0xff] %v4356_v25  ;;  %v4371_v28 = vld [vmem:[%s6576_s1 + $0xd8] sm:$0xff]  ;;  %v4376_v29 = vld [vmem:[%s6576_s1 + $0xe0] sm:$0xff] }
   0xf   :  { %6685 = vst [vmem:[#allocation28_spill] sm:$0xff] %v4361_v26  ;;  %6686 = vst [vmem:[#allocation29_spill] sm:$0xff] %v4366_v27  ;;  %v4381_v30 = vld [vmem:[%s6576_s1 + $0xe8] sm:$0xff]  ;;  %v4386_v31 = vld [vmem:[%s6576_s1 + $0xf0] sm:$0xff] }
  0x10   :  { %6687 = vst [vmem:[#allocation30_spill] sm:$0xff] %v4371_v28  ;;  %6688 = vst [vmem:[#allocation31_spill] sm:$0xff] %v4376_v29  ;;  %v4391_v32 = vld [vmem:[%s6576_s1 + $0xf8] sm:$0xff]  ;;  %v4396_v33 = vld [vmem:[%s6579_s2] sm:$0xff] }
  0x11   :  { %6689 = vst [vmem:[#allocation32_spill] sm:$0xff] %v4381_v30  ;;  %6690 = vst [vmem:[#allocation33_spill] sm:$0xff] %v4386_v31  ;;  %v4401_v34 = vld [vmem:[%s6579_s2 + $0x8] sm:$0xff]  ;;  %v4406_v35 = vld [vmem:[%s6579_s2 + $0x10] sm:$0xff] }
  0x12   :  { %6691 = vst [vmem:[#allocation34_spill] sm:$0xff] %v4391_v32  ;;  %6692 = vst [vmem:[#allocation35_spill] sm:$0xff] %v4396_v33  ;;  %v4411_v36 = vld [vmem:[%s6579_s2 + $0x18] sm:$0xff]  ;;  %v4416_v37 = vld [vmem:[%s6579_s2 + $0x20] sm:$0xff] }
  0x13   :  { %6693 = vst [vmem:[#allocation36_spill] sm:$0xff] %v4401_v34  ;;  %6694 = vst [vmem:[#allocation37_spill] sm:$0xff] %v4406_v35  ;;  %v4421_v38 = vld [vmem:[%s6579_s2 + $0x28] sm:$0xff]  ;;  %v4426_v39 = vld [vmem:[%s6579_s2 + $0x30] sm:$0xff] }
  0x14   :  { %6695 = vst [vmem:[#allocation38_spill] sm:$0xff] %v4411_v36  ;;  %6696 = vst [vmem:[#allocation39_spill] sm:$0xff] %v4416_v37  ;;  %v4431_v40 = vld [vmem:[%s6579_s2 + $0x38] sm:$0xff]  ;;  %v4436_v41 = vld [vmem:[%s6579_s2 + $0x40] sm:$0xff] }
  0x15   :  { %6697 = vst [vmem:[#allocation40_spill] sm:$0xff] %v4421_v38  ;;  %6698 = vst [vmem:[#allocation41_spill] sm:$0xff] %v4426_v39  ;;  %v4441_v42 = vld [vmem:[%s6579_s2 + $0x48] sm:$0xff]  ;;  %v4446_v43 = vld [vmem:[%s6579_s2 + $0x50] sm:$0xff] }
  0x16   :  { %6699 = vst [vmem:[#allocation42_spill] sm:$0xff] %v4431_v40  ;;  %6700 = vst [vmem:[#allocation43_spill] sm:$0xff] %v4436_v41  ;;  %v4451_v44 = vld [vmem:[%s6579_s2 + $0x58] sm:$0xff]  ;;  %v4456_v45 = vld [vmem:[%s6579_s2 + $0x60] sm:$0xff] }
  0x17   :  { %6701 = vst [vmem:[#allocation44_spill] sm:$0xff] %v4441_v42  ;;  %6702 = vst [vmem:[#allocation45_spill] sm:$0xff] %v4446_v43  ;;  %v4461_v46 = vld [vmem:[%s6579_s2 + $0x68] sm:$0xff]  ;;  %v4466_v47 = vld [vmem:[%s6579_s2 + $0x70] sm:$0xff] }
  0x18   :  { %6703 = vst [vmem:[#allocation46_spill] sm:$0xff] %v4451_v44  ;;  %6704 = vst [vmem:[#allocation47_spill] sm:$0xff] %v4456_v45  ;;  %v4471_v48 = vld [vmem:[%s6579_s2 + $0x78] sm:$0xff]  ;;  %v4476_v49 = vld [vmem:[%s6579_s2 + $0x80] sm:$0xff] }
  0x19   :  { %6705 = vst [vmem:[#allocation48_spill] sm:$0xff] %v4461_v46  ;;  %6706 = vst [vmem:[#allocation49_spill] sm:$0xff] %v4466_v47  ;;  %v4481_v50 = vld [vmem:[%s6579_s2 + $0x88] sm:$0xff]  ;;  %v4486_v51 = vld [vmem:[%s6579_s2 + $0x90] sm:$0xff] }
  0x1a   :  { %6707 = vst [vmem:[#allocation50_spill] sm:$0xff] %v4471_v48  ;;  %6708 = vst [vmem:[#allocation51_spill] sm:$0xff] %v4476_v49  ;;  %v4491_v52 = vld [vmem:[%s6579_s2 + $0x98] sm:$0xff]  ;;  %v4496_v53 = vld [vmem:[%s6579_s2 + $0xa0] sm:$0xff] }
  0x1b   :  { %6709 = vst [vmem:[#allocation52_spill] sm:$0xff] %v4481_v50  ;;  %6710 = vst [vmem:[#allocation53_spill] sm:$0xff] %v4486_v51  ;;  %v4501_v54 = vld [vmem:[%s6579_s2 + $0xa8] sm:$0xff]  ;;  %v4506_v55 = vld [vmem:[%s6579_s2 + $0xb0] sm:$0xff] }
  0x1c   :  { %6711 = vst [vmem:[#allocation54_spill] sm:$0xff] %v4491_v52  ;;  %6712 = vst [vmem:[#allocation55_spill] sm:$0xff] %v4496_v53  ;;  %v4511_v56 = vld [vmem:[%s6579_s2 + $0xb8] sm:$0xff]  ;;  %v4516_v57 = vld [vmem:[%s6579_s2 + $0xc0] sm:$0xff] }
  0x1d   :  { %6713 = vst [vmem:[#allocation56_spill] sm:$0xff] %v4501_v54  ;;  %6714 = vst [vmem:[#allocation57_spill] sm:$0xff] %v4506_v55  ;;  %v4521_v58 = vld [vmem:[%s6579_s2 + $0xc8] sm:$0xff]  ;;  %v4526_v59 = vld [vmem:[%s6579_s2 + $0xd0] sm:$0xff] }
  0x1e   :  { %6715 = vst [vmem:[#allocation58_spill] sm:$0xff] %v4511_v56  ;;  %6716 = vst [vmem:[#allocation59_spill] sm:$0xff] %v4516_v57  ;;  %v4531_v60 = vld [vmem:[%s6579_s2 + $0xd8] sm:$0xff]  ;;  %v4536_v61 = vld [vmem:[%s6579_s2 + $0xe0] sm:$0xff] }
  0x1f   :  { %6717 = vst [vmem:[#allocation60_spill] sm:$0xff] %v4521_v58  ;;  %6718 = vst [vmem:[#allocation61_spill] sm:$0xff] %v4526_v59  ;;  %v4541_v62 = vld [vmem:[%s6579_s2 + $0xe8] sm:$0xff]  ;;  %v4546_v63 = vld [vmem:[%s6579_s2 + $0xf0] sm:$0xff] }
  0x20   :  { %6719 = vst [vmem:[#allocation62_spill] sm:$0xff] %v4531_v60  ;;  %6720 = vst [vmem:[#allocation63_spill] sm:$0xff] %v4536_v61  ;;  %v4551_v0 = vld [vmem:[%s6579_s2 + $0xf8] sm:$0xff]  ;;  %v4556_v31 = vld [vmem:[%s6580_s3] ss:$0 sm:$0xff] }
  0x21   :  { %6721 = vst [vmem:[#allocation64_spill] sm:$0xff] %v4541_v62  ;;  %6722 = vst [vmem:[#allocation65_spill] sm:$0xff] %v4546_v63  ;;  %v4561_v32 = vld [vmem:[%s6581_s4] ss:$0 sm:$0xff] }
  0x22   :  { %6723 = vst [vmem:[#allocation66_spill] sm:$0xff] %v4551_v0  ;;  %v4563_v29 = vld [vmem:[#allocation2] ss:$0 sm:$0xff] }
  0x23   :  { %6724 = vst [vmem:[#allocation67_spill] sm:$0xff] %v4563_v29 }
  0x24 LB: > { %v6727_v28 = vld [vmem:[#allocation30_spill] sm:$0xff]  ;;  %v6728_v27 = vld [vmem:[#allocation29_spill] sm:$0xff]  ;;  %v6729_v26 = vld [vmem:[#allocation28_spill] sm:$0xff]  ;;  %v4190_v30 = vmov 0.0   ;;  %s4093_s2 = sshll.u32 %s4188_s27, 3  ;;  %vm1723_vm0 = vcmask 523264   ;;  %s4188_s27 = sphi %s4565_s27, %s97_s27  }
  0x25   : > { %v6730_v25 = vld [vmem:[#allocation27_spill] sm:$0xff]  ;;  %v6731_v24 = vld [vmem:[#allocation26_spill] sm:$0xff]  ;;  %v6732_v23 = vld [vmem:[#allocation25_spill] sm:$0xff]  ;;  %756 = vmatprep.subr.mxu0 %v4190_v30  ;;  %4101 = vmatprep.subr.mxu1 %v4190_v30  ;;  %s4577_s3 = sshra.s32 %s4093_s2, 3  ;;  %vm3408_vm1 = vcmask 130112   ;;  %vm3415_vm2 = vcmask 195712  }
  0x26   : > { %v6733_v22 = vld [vmem:[#allocation24_spill] sm:$0xff]  ;;  %v6734_v21 = vld [vmem:[#allocation23_spill] sm:$0xff]  ;;  %v6735_v20 = vld [vmem:[#allocation22_spill] sm:$0xff]  ;;  %s4100_s4 = sshll.u32 %s4577_s3, 4  ;;  %vm3422_vm3 = vcmask 261312   ;;  %vm3429_vm4 = vcmask 326912  }
  0x27   : > { %v6736_v19 = vld [vmem:[#allocation21_spill] sm:$0xff]  ;;  %v6737_v18 = vld [vmem:[#allocation20_spill] sm:$0xff]  ;;  %v6738_v17 = vld [vmem:[#allocation19_spill] sm:$0xff]  ;;  %s4587_s30 = scalar_lea.vmem %s6575_s0, %s4100_s4  ;;  %vm3436_vm5 = vcmask 392512   ;;  %vm3443_vm6 = vcmask 458112   ;;  %vm3450_vm7 = vcmask 523712  }
  0x28   : > { %v6725_v63 = vld [vmem:[#allocation65_spill] sm:$0xff]  ;;  %v6726_v62 = vld [vmem:[#allocation64_spill] sm:$0xff]  ;;  %v6739_v16 = vld [vmem:[#allocation18_spill] sm:$0xff]  ;;  %vm3457_vm8 = vcmask 589312   ;;  %vm3464_vm9 = vcmask 654912   ;;  %vm3471_vm10 = vcmask 720512  }
  0x29   : > { %v6740_v15 = vld [vmem:[#allocation17_spill] sm:$0xff]  ;;  %v6741_v14 = vld [vmem:[#allocation16_spill] sm:$0xff]  ;;  %v6742_v13 = vld [vmem:[#allocation15_spill] sm:$0xff]  ;;  %vm6659_vm11 = vcmask 786112   ;;  %vm3485_vm12 = vcmask 851712   ;;  %vm3492_vm13 = vcmask 917312  }
  0x2a   : > { %v6743_v12 = vld [vmem:[#allocation14_spill] sm:$0xff]  ;;  %v6744_v11 = vld [vmem:[#allocation13_spill] sm:$0xff]  ;;  %v6745_v10 = vld [vmem:[#allocation12_spill] sm:$0xff]  ;;  %vm3499_vm14 = vcmask 982912   ;;  %vm3506_vm15 = vcmask 1048512   ;;  %s4099_s5 = sshll.u32 %s4577_s3, 2 }
  0x2b   : > { %v6746_v9 = vld [vmem:[#allocation11_spill] sm:$0xff]  ;;  %v6747_v8 = vld [vmem:[#allocation10_spill] sm:$0xff]  ;;  %v6748_v7 = vld [vmem:[#allocation9_spill] sm:$0xff]  ;;  %s4078_s9 = scalar_lea.vmem %s6578_s6, %s4099_s5  ;;  %s97_s27 = sadd.s32 1, %s4188_s27  }
  0x2c   : > { %v6749_v6 = vld [vmem:[#allocation8_spill] sm:$0xff]  ;;  %v6750_v5 = vld [vmem:[#allocation7_spill] sm:$0xff]  ;;  %v6751_v4 = vld [vmem:[#allocation6_spill] sm:$0xff]  ;;  %p94_p0 = scmp.ge.s32.totalorder %s97_s27, 2  }
  0x2d   : > { %v6752_v3 = vld [vmem:[#allocation5_spill] sm:$0xff]  ;;  %v6753_v2 = vld [vmem:[#allocation4_spill] sm:$0xff]  ;;  %v6754_v1 = vld [vmem:[#allocation3_spill] sm:$0xff] }
  0x2e   : > { %v6755_v61 = vld [vmem:[#allocation63_spill] sm:$0xff]  ;;  %v6757_v60 = vld [vmem:[#allocation62_spill] sm:$0xff]  ;;  %v6758_v50 = vld [vmem:[#allocation52_spill] sm:$0xff] }
  0x2f   : > { %v6756_v49 = vld [vmem:[#allocation51_spill] sm:$0xff]  ;;  %v6759_v59 = vld [vmem:[#allocation61_spill] sm:$0xff]  ;;  %v6761_v58 = vld [vmem:[#allocation60_spill] sm:$0xff] }
  0x30   : > { %v6760_v51 = vld [vmem:[#allocation53_spill] sm:$0xff]  ;;  %v6762_v57 = vld [vmem:[#allocation59_spill] sm:$0xff]  ;;  %v6763_v56 = vld [vmem:[#allocation58_spill] sm:$0xff] }
  0x31   : > { %v6764_v55 = vld [vmem:[#allocation57_spill] sm:$0xff]  ;;  %v6765_v54 = vld [vmem:[#allocation56_spill] sm:$0xff]  ;;  %v6766_v52 = vld [vmem:[#allocation54_spill] sm:$0xff] }
  0x32   : > { %v6767_v53 = vld [vmem:[#allocation55_spill] sm:$0xff]  ;;  %v6768_v48 = vld [vmem:[#allocation50_spill] sm:$0xff]  ;;  %v6769_v47 = vld [vmem:[#allocation49_spill] sm:$0xff] }
  0x33   : > { %v6770_v46 = vld [vmem:[#allocation48_spill] sm:$0xff]  ;;  %v6771_v45 = vld [vmem:[#allocation47_spill] sm:$0xff]  ;;  %v6772_v44 = vld [vmem:[#allocation46_spill] sm:$0xff]  ;;  %757 = vmatpush1.msra.mxu0 %v6768_v48  ;;  %4133 = vmatpush1.msra.mxu1 %v6768_v48 }
  0x34   : > { %v6773_v43 = vld [vmem:[#allocation45_spill] sm:$0xff]  ;;  %v6774_v42 = vld [vmem:[#allocation44_spill] sm:$0xff]  ;;  %v6775_v41 = vld [vmem:[#allocation43_spill] sm:$0xff]  ;;  %758 = vmatprep.subr.mxu0 %v4190_v30  ;;  %4102 = vmatprep.subr.mxu1 %v4190_v30 }
  0x35   : > { %v6776_v40 = vld [vmem:[#allocation42_spill] sm:$0xff]  ;;  %v6777_v39 = vld [vmem:[#allocation41_spill] sm:$0xff]  ;;  %v6778_v38 = vld [vmem:[#allocation40_spill] sm:$0xff]  ;;  %759 = vmatpush1.msra.mxu0 %v6769_v47  ;;  %4134 = vmatpush1.msra.mxu1 %v6769_v47 }
  0x36   : > { %v6779_v34 = vld [vmem:[#allocation36_spill] sm:$0xff]  ;;  %v6780_v0 = vld [vmem:[#allocation66_spill] sm:$0xff]  ;;  %v6781_v33 = vld [vmem:[#allocation35_spill] sm:$0xff]  ;;  %760 = vmatprep.subr.mxu0 %v4190_v30  ;;  %4103 = vmatprep.subr.mxu1 %v4190_v30 }
  0x37   : > { %v6782_v37 = vld [vmem:[#allocation39_spill] sm:$0xff]  ;;  %v6783_v36 = vld [vmem:[#allocation38_spill] sm:$0xff]  ;;  %v6784_v35 = vld [vmem:[#allocation37_spill] sm:$0xff]  ;;  %761 = vmatpush1.msra.mxu0 %v6770_v46  ;;  %4135 = vmatpush1.msra.mxu1 %v6770_v46 }
  0x38   : > { %762 = vmatprep.subr.mxu0 %v4190_v30  ;;  %4104 = vmatprep.subr.mxu1 %v4190_v30  ;;  %v6785_v29 = vld [vmem:[#allocation67_spill] sm:$0xff] }
  0x39   : > { %763 = vmatpush1.msra.mxu0 %v6771_v45  ;;  %4136 = vmatpush1.msra.mxu1 %v6771_v45 }
  0x3a   : > { %764 = vmatprep.subr.mxu0 %v4190_v30  ;;  %4105 = vmatprep.subr.mxu1 %v4190_v30 }
  0x3b   : > { %765 = vmatpush1.msra.mxu0 %v6772_v44  ;;  %4137 = vmatpush1.msra.mxu1 %v6772_v44 }
  0x3c   : > { %766 = vmatprep.subr.mxu0 %v4190_v30  ;;  %4106 = vmatprep.subr.mxu1 %v4190_v30 }
  0x3d   : > { %767 = vmatpush1.msra.mxu0 %v6773_v43  ;;  %4138 = vmatpush1.msra.mxu1 %v6773_v43 }
  0x3e   : > { %768 = vmatprep.subr.mxu0 %v4190_v30  ;;  %4107 = vmatprep.subr.mxu1 %v4190_v30 }
  0x3f   : > { %769 = vmatpush1.msra.mxu0 %v6774_v42  ;;  %4139 = vmatpush1.msra.mxu1 %v6774_v42 }
  0x40   : > { %770 = vmatprep.subr.mxu0 %v4190_v30  ;;  %4108 = vmatprep.subr.mxu1 %v4190_v30 }
  0x41   : > { %771 = vmatpush1.msra.mxu0 %v6775_v41  ;;  %4140 = vmatpush1.msra.mxu1 %v6775_v41 }
  0x42   : > { %772 = vmatprep.subr.mxu0 %v4190_v30  ;;  %4109 = vmatprep.subr.mxu1 %v4190_v30 }
  0x43   : > { %773 = vmatpush1.msra.mxu0 %v6776_v40  ;;  %4141 = vmatpush1.msra.mxu1 %v6776_v40 }
  0x44   : > { %774 = vmatprep.subr.mxu0 %v4190_v30  ;;  %4110 = vmatprep.subr.mxu1 %v4190_v30 }
  0x45   : > { %775 = vmatpush1.msra.mxu0 %v6777_v39  ;;  %4142 = vmatpush1.msra.mxu1 %v6777_v39 }
  0x46   : > { %776 = vmatprep.subr.mxu0 %v4190_v30  ;;  %4111 = vmatprep.subr.mxu1 %v4190_v30 }
  0x47   : > { %777 = vmatpush1.msra.mxu0 %v6778_v38  ;;  %4143 = vmatpush1.msra.mxu1 %v6778_v38 }
  0x48   : > { %778 = vmatprep.subr.mxu0 %v4190_v30  ;;  %4112 = vmatprep.subr.mxu1 %v4190_v30 }
  0x49   : > { %779 = vmatpush1.msra.mxu0 %v6782_v37  ;;  %4144 = vmatpush1.msra.mxu1 %v6782_v37  ;;  %v6590_v37 = vlaneseq }
  0x4a   : > { %780 = vmatprep.subr.mxu0 %v4190_v30  ;;  %4113 = vmatprep.subr.mxu1 %v4190_v30 }
  0x4b   : > { %781 = vmatpush1.msra.mxu0 %v6783_v36  ;;  %4145 = vmatpush1.msra.mxu1 %v6783_v36 }
  0x4c   : > { %782 = vmatprep.subr.mxu0 %v4190_v30  ;;  %4114 = vmatprep.subr.mxu1 %v4190_v30 }
  0x4d   : > { %783 = vmatpush1.msra.mxu0 %v6784_v35  ;;  %4146 = vmatpush1.msra.mxu1 %v6784_v35  ;;  %v4191_v35 = vmov 1966171168  }
  0x4e   : > { %784 = vmatprep.subr.mxu0 %v4190_v30  ;;  %4115 = vmatprep.subr.mxu1 %v4190_v30  ;;  %v111_v36 = vunpack.c.l.s4 %v4191_v35 }
  0x4f   : > { %785 = vmatpush1.msra.mxu0 %v6779_v34  ;;  %4147 = vmatpush1.msra.mxu1 %v6779_v34 }
  0x50   : > { %786 = vmatprep.subr.mxu0 %v4190_v30  ;;  %4116 = vmatprep.subr.mxu1 %v4190_v30  ;;  %v112_v35 = vunpack.c.0.s8 %v111_v36  ;;  %v4179_v36 = vld [vmem:[%s4587_s30] ss:$8 sps:$4 sm:$0xff]  }
  0x51   : > { %787 = vmatpush1.msra.mxu0 %v6781_v33  ;;  %4148 = vmatpush1.msra.mxu1 %v6781_v33  ;;  %v4654_v33 = vshrl.u32 %v6590_v37, 7 }
  0x52   : > { %788 = vmatprep.subr.mxu0 %v4190_v30  ;;  %4117 = vmatprep.subr.mxu1 %v4190_v30 }
  0x53   : > { %789 = vmatpush2.msra.mxu0 %v6780_v0  ;;  %4149 = vmatpush2.msra.mxu1 %v6780_v0  ;;  %v4666_v37 = vsub.s32 %v112_v35, %v4654_v33  ;;  %v4181_v0 = vld [vmem:[%s4587_s30 + $0x4] ss:$8 sps:$4 sm:$0xff]   ;;  %v4705_v39 = vsub.s32 0, %v4654_v33 }
  0x54   : > { %790 = vmatprep.subr.mxu0 %v4190_v30  ;;  %4118 = vmatprep.subr.mxu1 %v4190_v30 }
  0x55   : > { %791 = vmatpush2.msra.mxu0 %v6725_v63  ;;  %4150 = vmatpush2.msra.mxu1 %v6725_v63  ;;  %v4678_v35 = vrot.slane %v4179_v36, %v4666_v37  ;;  %v4681_v34 = vrot.slane %v4181_v0, %v4666_v37  ;;  %v4696_v36 = vsub.s32 1, %v4654_v33 }
  0x56   : > { %792 = vmatprep.subr.mxu0 %v4190_v30  ;;  %4119 = vmatprep.subr.mxu1 %v4190_v30 }
  0x57   : > { %793 = vmatpush2.msra.mxu0 %v6726_v62  ;;  %4151 = vmatpush2.msra.mxu1 %v6726_v62  ;;  %v4693_v0 = vrot.slane %v4678_v35, %v4666_v37  ;;  %v4700_v38 = vrot.slane %v4681_v34, %v4666_v37 }
  0x58   : > { %794 = vmatprep.subr.mxu0 %v4190_v30  ;;  %4120 = vmatprep.subr.mxu1 %v4190_v30 }
  0x59   : > { %795 = vmatpush2.msra.mxu0 %v6755_v61  ;;  %4152 = vmatpush2.msra.mxu1 %v6755_v61  ;;  %v4715_v40 = vrot.slane %v4693_v0, %v4696_v36  ;;  %v4719_v41 = vrot.slane %v4700_v38, %v4696_v36  ;;  %v4725_v42 = vrot.slane %v4693_v0, %v4705_v39 }
  0x5a   : > { %796 = vmatprep.subr.mxu0 %v4190_v30  ;;  %4121 = vmatprep.subr.mxu1 %v4190_v30  ;;  %v4729_v43 = vrot.slane %v4700_v38, %v4705_v39 }
  0x5b   : > { %797 = vmatpush2.msra.mxu0 %v6757_v60  ;;  %4153 = vmatpush2.msra.mxu1 %v6757_v60  ;;  %v239_v44 = vadd.f32 %v4715_v40, %v6753_v2  ;;  %v367_v45 = vadd.f32 %v4719_v41, %v6753_v2  ;;  %v238_v46 = vadd.f32 %v4725_v42, %v6754_v1 }
  0x5c   : > { %798 = vmatprep.subr.mxu0 %v4190_v30  ;;  %4122 = vmatprep.subr.mxu1 %v4190_v30  ;;  %v366_v47 = vadd.f32 %v4729_v43, %v6754_v1  ;;  %v241_v48 = vadd.f32 %v4715_v40, %v6751_v4  ;;  %v245_v60 = vadd.f32 %v4715_v40, %v6747_v8 }
  0x5d   : > { %799 = vmatpush2.msra.mxu0 %v6759_v59  ;;  %4154 = vmatpush2.msra.mxu1 %v6759_v59 }
  0x5e   : > { %800 = vmatprep.subr.mxu0 %v4190_v30  ;;  %4123 = vmatprep.subr.mxu1 %v4190_v30 }
  0x5f   : > { %801 = vmatpush2.msra.mxu0 %v6761_v58  ;;  %4155 = vmatpush2.msra.mxu1 %v6761_v58  ;;  %v368_v58 = vadd.f32 %v4729_v43, %v6752_v3 }
  0x60   : > { %802 = vmatprep.subr.mxu0 %v4190_v30  ;;  %4124 = vmatprep.subr.mxu1 %v4190_v30 }
  0x61   : > { %803 = vmatpush2.msra.mxu0 %v6762_v57  ;;  %4156 = vmatpush2.msra.mxu1 %v6762_v57  ;;  %v240_v57 = vadd.f32 %v4725_v42, %v6752_v3 }
  0x62   : > { %804 = vmatprep.subr.mxu0 %v4190_v30  ;;  %4125 = vmatprep.subr.mxu1 %v4190_v30 }
  0x63   : > { %805 = vmatpush2.msra.mxu0 %v6763_v56  ;;  %4157 = vmatpush2.msra.mxu1 %v6763_v56  ;;  %v622_v56 = vmax.f32 %v366_v47, 0.0  ;;  %v624_v47 = vmax.f32 %v368_v58, 0.0 }
  0x64   : > { %806 = vmatprep.subr.mxu0 %v4190_v30  ;;  %4126 = vmatprep.subr.mxu1 %v4190_v30 }
  0x65   : > { %807 = vmatpush2.msra.mxu0 %v6764_v55  ;;  %4158 = vmatpush2.msra.mxu1 %v6764_v55  ;;  %v494_v55 = vmax.f32 %v238_v46, 0.0  ;;  %v496_v46 = vmax.f32 %v240_v57, 0.0  ;;  %v372_v57 = vadd.f32 %v4729_v43, %v6748_v7 }
  0x66   : > { %808 = vmatprep.subr.mxu0 %v4190_v30  ;;  %4127 = vmatprep.subr.mxu1 %v4190_v30 }
  0x67   : > { %809 = vmatpush2.msra.mxu0 %v6765_v54  ;;  %4159 = vmatpush2.msra.mxu1 %v6765_v54  ;;  %v623_v54 = vmax.f32 %v367_v45, 0.0  ;;  %v371_v45 = vadd.f32 %v4719_v41, %v6749_v6 }
  0x68   : > { %810 = vmatprep.subr.mxu0 %v4190_v30  ;;  %4128 = vmatprep.subr.mxu1 %v4190_v30 }
  0x69   : > { %811 = vmatpush2.msra.mxu0 %v6767_v53  ;;  %4160 = vmatpush2.msra.mxu1 %v6767_v53  ;;  %v369_v53 = vadd.f32 %v4719_v41, %v6751_v4 }
  0x6a   : > { %812 = vmatprep.subr.mxu0 %v4190_v30  ;;  %4129 = vmatprep.subr.mxu1 %v4190_v30 }
  0x6b   : > { %813 = vmatpush2.msra.mxu0 %v6766_v52  ;;  %4161 = vmatpush2.msra.mxu1 %v6766_v52  ;;  %v495_v52 = vmax.f32 %v239_v44, 0.0  ;;  %v625_v59 = vmax.f32 %v369_v53, 0.0  ;;  %v243_v44 = vadd.f32 %v4715_v40, %v6749_v6 }
  0x6c   : > { %814 = vmatprep.subr.mxu0 %v4190_v30  ;;  %4130 = vmatprep.subr.mxu1 %v4190_v30 }
  0x6d   : > { %815 = vmatpush2.msra.mxu0 %v6760_v51  ;;  %4162 = vmatpush2.msra.mxu1 %v6760_v51  ;;  %v497_v51 = vmax.f32 %v241_v48, 0.0  ;;  %v370_v48 = vadd.f32 %v4729_v43, %v6750_v5  ;;  %v499_v53 = vmax.f32 %v243_v44, 0.0  ;;  %v375_v44 = vadd.f32 %v4719_v41, %v6745_v10 }
  0x6e   : > { %816 = vmatprep.subr.mxu0 %v4190_v30  ;;  %4131 = vmatprep.subr.mxu1 %v4190_v30 }
  0x6f   : > { %817 = vmatpush2.msra.mxu0 %v6758_v50  ;;  %4163 = vmatpush2.msra.mxu1 %v6758_v50  ;;  %v627_v50 = vmax.f32 %v371_v45, 0.0 }
  0x70   : > { %818 = vmatprep.subr.mxu0 %v4190_v30  ;;  %4132 = vmatprep.subr.mxu1 %v4190_v30  ;;  %v242_v30 = vadd.f32 %v4725_v42, %v6750_v5 }
  0x71   : > { %819 = vmatpush2.msra.mxu0 %v6756_v49  ;;  %4164 = vmatpush2.msra.mxu1 %v6756_v49 }
  0x72   : > { %820 = vmatprep.mubr.f32.mxu0 %v495_v52  ;;  %1140 = vmatprep.mubr.f32.mxu1 %v623_v54  ;;  %v373_v52 = vadd.f32 %v4719_v41, %v6747_v8  ;;  %v498_v54 = vmax.f32 %v242_v30, 0.0  ;;  %v374_v30 = vadd.f32 %v4729_v43, %v6746_v9 }
  0x73   : > { %821 = vmatmul.mubr.f32.vlgmr.msra.gmra.mxu0 %v494_v55  ;;  %1141 = vmatmul.mubr.f32.vlgmr.msra.gmra.mxu1 %v622_v56  ;;  %v626_v55 = vmax.f32 %v370_v48, 0.0  ;;  %v244_v56 = vadd.f32 %v4725_v42, %v6748_v7  ;;  %v249_v48 = vadd.f32 %v4715_v40, %v6743_v12 }
  0x74   : > { %825 = vmatprep.mubr.f32.mxu0 %v497_v51  ;;  %1145 = vmatprep.mubr.f32.mxu1 %v625_v59  ;;  %v501_v51 = vmax.f32 %v245_v60, 0.0  ;;  %v629_v58 = vmax.f32 %v373_v52, 0.0  ;;  %v247_v59 = vadd.f32 %v4715_v40, %v6745_v10  ;;  %v631_v60 = vmax.f32 %v375_v44, 0.0 }
  0x75   : > { %v500_v45 = vmax.f32 %v244_v56, 0.0  ;;  %v376_v56 = vadd.f32 %v4729_v43, %v6744_v11 }
  0x77   : > { %826 = vmatmul.mubr.f32.gmra.mxu0 %v496_v46  ;;  %1146 = vmatmul.mubr.f32.gmra.mxu1 %v624_v47  ;;  %v628_v46 = vmax.f32 %v372_v57, 0.0  ;;  %v246_v47 = vadd.f32 %v4725_v42, %v6746_v9  ;;  %v505_v57 = vmax.f32 %v249_v48, 0.0  ;;  %v381_v48 = vadd.f32 %v4719_v41, %v6739_v16 }
  0x78   : > { %830 = vmatprep.mubr.f32.mxu0 %v499_v53  ;;  %1150 = vmatprep.mubr.f32.mxu1 %v627_v50  ;;  %v503_v50 = vmax.f32 %v247_v59, 0.0  ;;  %v377_v53 = vadd.f32 %v4719_v41, %v6743_v12  ;;  %v379_v59 = vadd.f32 %v4719_v41, %v6741_v14 }
  0x79   : > { %v502_v52 = vmax.f32 %v246_v47, 0.0  ;;  %v378_v47 = vadd.f32 %v4729_v43, %v6742_v13 }
  0x7b   : > { %831 = vmatmul.mubr.f32.gmra.mxu0 %v498_v54  ;;  %1151 = vmatmul.mubr.f32.gmra.mxu1 %v626_v55  ;;  %v630_v54 = vmax.f32 %v374_v30, 0.0  ;;  %v248_v55 = vadd.f32 %v4725_v42, %v6744_v11 }
  0x7c   : > { %835 = vmatprep.mubr.f32.mxu0 %v501_v51  ;;  %1155 = vmatprep.mubr.f32.mxu1 %v629_v58  ;;  %v633_v51 = vmax.f32 %v377_v53, 0.0  ;;  %v251_v58 = vadd.f32 %v4715_v40, %v6741_v14 }
  0x7d   : > { %v504_v44 = vmax.f32 %v248_v55, 0.0  ;;  %v380_v55 = vadd.f32 %v4729_v43, %v6740_v15 }
  0x7e   : > { %v507_v30 = vmax.f32 %v251_v58, 0.0  ;;  %v383_v58 = vadd.f32 %v4719_v41, %v6737_v18 }
  0x7f   : > { %836 = vmatmul.mubr.f32.gmra.mxu0 %v500_v45  ;;  %1156 = vmatmul.mubr.f32.gmra.mxu1 %v628_v46  ;;  %v632_v45 = vmax.f32 %v376_v56, 0.0  ;;  %v250_v46 = vadd.f32 %v4725_v42, %v6742_v13 }
  0x80   : > { %840 = vmatprep.mubr.f32.mxu0 %v503_v50  ;;  %1160 = vmatprep.mubr.f32.mxu1 %v631_v60  ;;  %v635_v50 = vmax.f32 %v379_v59, 0.0  ;;  %v253_v60 = vadd.f32 %v4715_v40, %v6739_v16 }
  0x81   : > { %v506_v53 = vmax.f32 %v250_v46, 0.0  ;;  %v382_v46 = vadd.f32 %v4729_v43, %v6738_v17 }
  0x82   : > { %v509_v56 = vmax.f32 %v253_v60, 0.0  ;;  %v385_v60 = vadd.f32 %v4719_v41, %v6735_v20 }
  0x83   : > { %841 = vmatmul.mubr.f32.gmra.mxu0 %v502_v52  ;;  %1161 = vmatmul.mubr.f32.gmra.mxu1 %v630_v54  ;;  %v634_v52 = vmax.f32 %v378_v47, 0.0  ;;  %v252_v54 = vadd.f32 %v4725_v42, %v6740_v15 }
  0x84   : > { %845 = vmatprep.mubr.f32.mxu0 %v505_v57  ;;  %1165 = vmatprep.mubr.f32.mxu1 %v633_v51  ;;  %v637_v57 = vmax.f32 %v381_v48, 0.0  ;;  %v255_v51 = vadd.f32 %v4715_v40, %v6737_v18 }
  0x85   : > { %v508_v59 = vmax.f32 %v252_v54, 0.0  ;;  %v384_v54 = vadd.f32 %v4729_v43, %v6736_v19 }
  0x86   : > { %v511_v47 = vmax.f32 %v255_v51, 0.0  ;;  %v387_v51 = vadd.f32 %v4719_v41, %v6733_v22 }
  0x87   : > { %846 = vmatmul.mubr.f32.gmra.mxu0 %v504_v44  ;;  %1166 = vmatmul.mubr.f32.gmra.mxu1 %v632_v45  ;;  %v636_v44 = vmax.f32 %v380_v55, 0.0  ;;  %v254_v45 = vadd.f32 %v4725_v42, %v6738_v17 }
  0x88   : > { %850 = vmatprep.mubr.f32.mxu0 %v507_v30  ;;  %1170 = vmatprep.mubr.f32.mxu1 %v635_v50  ;;  %v639_v30 = vmax.f32 %v383_v58, 0.0  ;;  %v257_v50 = vadd.f32 %v4715_v40, %v6735_v20  ;;  %v258_v58 = vadd.f32 %v4725_v42, %v6734_v21 }
  0x89   : > { %v510_v48 = vmax.f32 %v254_v45, 0.0  ;;  %v386_v45 = vadd.f32 %v4729_v43, %v6734_v21 }
  0x8a   : > { %v513_v55 = vmax.f32 %v257_v50, 0.0  ;;  %v389_v50 = vadd.f32 %v4719_v41, %v6731_v24 }
  0x8b   : > { %851 = vmatmul.mubr.f32.gmra.mxu0 %v506_v53  ;;  %1171 = vmatmul.mubr.f32.gmra.mxu1 %v634_v52  ;;  %v638_v53 = vmax.f32 %v382_v46, 0.0  ;;  %v256_v52 = vadd.f32 %v4725_v42, %v6736_v19  ;;  %v261_v46 = vadd.f32 %v4715_v40, %v6731_v24 }
  0x8c   : > { %855 = vmatprep.mubr.f32.mxu0 %v509_v56  ;;  %1175 = vmatprep.mubr.f32.mxu1 %v637_v57  ;;  %v641_v56 = vmax.f32 %v385_v60, 0.0  ;;  %v259_v57 = vadd.f32 %v4715_v40, %v6733_v22  ;;  %v514_v60 = vmax.f32 %v258_v58, 0.0  ;;  %v124_v58 = vcombine.high %v4678_v35, %v4678_v35 }
  0x8d   : > { %v265_v35 = vadd.f32 %v4715_v40, %v6727_v28 }
  0x8f   : > { %856 = vmatmul.mubr.f32.gmra.mxu0 %v508_v59  ;;  %1176 = vmatmul.mubr.f32.gmra.mxu1 %v636_v44  ;;  %v512_v59 = vmax.f32 %v256_v52, 0.0  ;;  %v640_v44 = vmax.f32 %v384_v54, 0.0  ;;  %v260_v52 = vadd.f32 %v4725_v42, %v6732_v23  ;;  %v388_v54 = vadd.f32 %v4729_v43, %v6732_v23 }
  0x90   : > { %860 = vmatprep.mubr.f32.mxu0 %v511_v47  ;;  %1180 = vmatprep.mubr.f32.mxu1 %v639_v30  ;;  %v515_v47 = vmax.f32 %v259_v57, 0.0  ;;  %v643_v30 = vmax.f32 %v387_v51, 0.0  ;;  %v391_v57 = vadd.f32 %v4719_v41, %v6729_v26  ;;  %v4192_v51 = vmov 0  }
  0x91   : > { %4178 = vset.pattern.permute.xlu0 %v4192_v51  ;;  %v6786_v51 = vld [vmem:[#allocation32_spill] sm:$0xff] }
  0x92   : > { %2114 = vperm.xlu0 %4178, %v6785_v29   ;;  %v267_v29 = vadd.f32 %v4715_v40, %v6786_v51 }
  0x93   : > { %861 = vmatmul.mubr.f32.gmra.mxu0 %v510_v48  ;;  %1181 = vmatmul.mubr.f32.gmra.mxu1 %v638_v53  ;;  %v642_v48 = vmax.f32 %v386_v45, 0.0  ;;  %v517_v53 = vmax.f32 %v261_v46, 0.0  ;;  %v644_v45 = vmax.f32 %v388_v54, 0.0  ;;  %v262_v46 = vadd.f32 %v4725_v42, %v6730_v25 }
  0x94   : > { %865 = vmatprep.mubr.f32.mxu0 %v513_v55  ;;  %1185 = vmatprep.mubr.f32.mxu1 %v641_v56  ;;  %v645_v55 = vmax.f32 %v389_v50, 0.0  ;;  %v263_v56 = vadd.f32 %v4715_v40, %v6729_v26  ;;  %v647_v50 = vmax.f32 %v391_v57, 0.0 }
  0x97   : > { %866 = vmatmul.mubr.f32.gmra.mxu0 %v512_v59  ;;  %1186 = vmatmul.mubr.f32.gmra.mxu1 %v640_v44  ;;  %v125_v59 = vcombine.high %v4681_v34, %v4681_v34  ;;  %v516_v44 = vmax.f32 %v260_v52, 0.0  ;;  %v393_v34 = vadd.f32 %v4719_v41, %v6727_v28  ;;  %v518_v52 = vmax.f32 %v262_v46, 0.0 }
  0x98   : > { %870 = vmatprep.mubr.f32.mxu0 %v515_v47  ;;  %1190 = vmatprep.mubr.f32.mxu1 %v643_v30  ;;  %v390_v47 = vadd.f32 %v4729_v43, %v6730_v25  ;;  %v519_v30 = vmax.f32 %v263_v56, 0.0  ;;  %v521_v56 = vmax.f32 %v265_v35, 0.0  ;;  %v523_v35 = vmax.f32 %v267_v29, 0.0 }
  0x99   : > { %v649_v57 = vmax.f32 %v393_v34, 0.0 }
  0x9a   : > { %v646_v54 = vmax.f32 %v390_v47, 0.0 }
  0x9b   : > { %871 = vmatmul.mubr.f32.gmra.mxu0 %v514_v60  ;;  %1191 = vmatmul.mubr.f32.gmra.mxu1 %v642_v48  ;;  %v264_v60 = vadd.f32 %v4725_v42, %v6728_v27  ;;  %v4867_v48 = vrot.slane %v124_v58, %v4666_v37  ;;  %v395_v58 = vadd.f32 %v4719_v41, %v6786_v51 }
  0x9c   : > { %875 = vmatprep.mubr.f32.mxu0 %v517_v53  ;;  %1195 = vmatprep.mubr.f32.mxu1 %v645_v55  ;;  %v392_v53 = vadd.f32 %v4729_v43, %v6728_v27  ;;  %v4872_v55 = vrot.slane %v125_v59, %v4666_v37  ;;  %v6788_v59 = vld [vmem:[#allocation34_spill] sm:$0xff] }
  0x9d   : > { %v651_v34 = vmax.f32 %v395_v58, 0.0  ;;  %v4900_v29 = vrot.slane %v4867_v48, %v4705_v39 }
  0x9e   : > { %v648_v47 = vmax.f32 %v392_v53, 0.0  ;;  %v6789_v53 = vld [vmem:[#allocation33_spill] sm:$0xff] }
  0x9f   : > { %876 = vmatmul.mubr.f32.gmra.mxu0 %v516_v44  ;;  %1196 = vmatmul.mubr.f32.gmra.mxu1 %v644_v45  ;;  %v520_v44 = vmax.f32 %v264_v60, 0.0  ;;  %v6787_v45 = vld [vmem:[#allocation31_spill] sm:$0xff]  ;;  %v4888_v60 = vrot.slane %v4867_v48, %v4696_v36  ;;  %v268_v49 = vadd.f32 %v4725_v42, %v6789_v53 }
  0xa0   : > { %880 = vmatprep.mubr.f32.mxu0 %v519_v30  ;;  %1200 = vmatprep.mubr.f32.mxu1 %v647_v50  ;;  %v266_v46 = vadd.f32 %v4725_v42, %v6787_v45  ;;  %v394_v37 = vadd.f32 %v4729_v43, %v6787_v45  ;;  %v269_v30 = vadd.f32 %v4715_v40, %v6788_v59 }
  0xa1   : > { %v397_v50 = vadd.f32 %v4719_v41, %v6788_v59  ;;  %v396_v41 = vadd.f32 %v4729_v43, %v6789_v53  ;;  %v271_v42 = vadd.f32 %v4888_v60, %v6753_v2  ;;  %v524_v43 = vmax.f32 %v268_v49, 0.0 }
  0xa2   : > { %v650_v40 = vmax.f32 %v394_v37, 0.0 }
  0xa3   : > { %881 = vmatmul.mubr.f32.gmra.mxu0 %v518_v52  ;;  %1201 = vmatmul.mubr.f32.gmra.mxu1 %v646_v54  ;;  %v4892_v52 = vrot.slane %v4872_v55, %v4696_v36  ;;  %v522_v54 = vmax.f32 %v266_v46, 0.0  ;;  %v653_v58 = vmax.f32 %v397_v50, 0.0  ;;  %v652_v46 = vmax.f32 %v396_v41, 0.0 }
  0xa4   : > { %885 = vmatprep.mubr.f32.mxu0 %v521_v56  ;;  %1205 = vmatprep.mubr.f32.mxu1 %v649_v57  ;;  %v4904_v56 = vrot.slane %v4872_v55, %v4705_v39  ;;  %v525_v57 = vmax.f32 %v269_v30, 0.0  ;;  %v527_v30 = vmax.f32 %v271_v42, 0.0  ;;  %v275_v42 = vadd.f32 %v4888_v60, %v6749_v6 }
  0xa6   : > { %v398_v37 = vadd.f32 %v4904_v56, %v6754_v1  ;;  %v400_v41 = vadd.f32 %v4904_v56, %v6752_v3 }
  0xa7   : > { %886 = vmatmul.mubr.f32.gmra.mxu0 %v520_v44  ;;  %1206 = vmatmul.mubr.f32.gmra.mxu1 %v648_v47  ;;  %v399_v44 = vadd.f32 %v4892_v52, %v6753_v2  ;;  %v270_v47 = vadd.f32 %v4900_v29, %v6754_v1 }
  0xa8   : > { %890 = vmatprep.mubr.f32.mxu0 %v523_v35  ;;  %1210 = vmatprep.mubr.f32.mxu1 %v651_v34  ;;  %v273_v35 = vadd.f32 %v4888_v60, %v6751_v4  ;;  %v401_v34 = vadd.f32 %v4892_v52, %v6751_v4 }
  0xa9   : > { %v655_v50 = vmax.f32 %v399_v44, 0.0  ;;  %v526_v49 = vmax.f32 %v270_v47, 0.0  ;;  %v403_v44 = vadd.f32 %v4892_v52, %v6749_v6  ;;  %v274_v47 = vadd.f32 %v4900_v29, %v6750_v5 }
  0xab   : > { %891 = vmatmul.mubr.f32.gmra.mxu0 %v522_v54  ;;  %1211 = vmatmul.mubr.f32.gmra.mxu1 %v650_v40  ;;  %v654_v54 = vmax.f32 %v398_v37, 0.0  ;;  %v272_v40 = vadd.f32 %v4900_v29, %v6752_v3  ;;  %v402_v37 = vadd.f32 %v4904_v56, %v6750_v5 }
  0xac   : > { %895 = vmatprep.mubr.f32.mxu0 %v525_v57  ;;  %1215 = vmatprep.mubr.f32.mxu1 %v653_v58  ;;  %v529_v57 = vmax.f32 %v273_v35, 0.0  ;;  %v657_v58 = vmax.f32 %v401_v34, 0.0  ;;  %v277_v35 = vadd.f32 %v4888_v60, %v6747_v8  ;;  %v405_v34 = vadd.f32 %v4892_v52, %v6747_v8 }
  0xaf   : > { %896 = vmatmul.mubr.f32.gmra.mxu0 %v524_v43  ;;  %1216 = vmatmul.mubr.f32.gmra.mxu1 %v652_v46  ;;  %v528_v43 = vmax.f32 %v272_v40, 0.0  ;;  %v656_v46 = vmax.f32 %v400_v41, 0.0  ;;  %v276_v40 = vadd.f32 %v4900_v29, %v6748_v7  ;;  %v404_v41 = vadd.f32 %v4904_v56, %v6748_v7 }
  0xb0   : > { %900 = vmatprep.mubr.f32.mxu0 %v527_v30  ;;  %1220 = vmatprep.mubr.f32.mxu1 %v655_v50  ;;  %v531_v30 = vmax.f32 %v275_v42, 0.0  ;;  %v659_v50 = vmax.f32 %v403_v44, 0.0  ;;  %v279_v42 = vadd.f32 %v4888_v60, %v6745_v10  ;;  %v407_v44 = vadd.f32 %v4892_v52, %v6745_v10 }
  0xb3   : > { %901 = vmatmul.mubr.f32.gmra.mxu0 %v526_v49  ;;  %1221 = vmatmul.mubr.f32.gmra.mxu1 %v654_v54  ;;  %v530_v49 = vmax.f32 %v274_v47, 0.0  ;;  %v658_v54 = vmax.f32 %v402_v37, 0.0  ;;  %v278_v47 = vadd.f32 %v4900_v29, %v6746_v9  ;;  %v406_v37 = vadd.f32 %v4904_v56, %v6746_v9 }
  0xb4   : > { %905 = vmatprep.mubr.f32.mxu0 %v529_v57  ;;  %1225 = vmatprep.mubr.f32.mxu1 %v657_v58  ;;  %v533_v57 = vmax.f32 %v277_v35, 0.0  ;;  %v661_v58 = vmax.f32 %v405_v34, 0.0  ;;  %v281_v35 = vadd.f32 %v4888_v60, %v6743_v12  ;;  %v409_v34 = vadd.f32 %v4892_v52, %v6743_v12 }
  0xb7   : > { %906 = vmatmul.mubr.f32.gmra.mxu0 %v528_v43  ;;  %1226 = vmatmul.mubr.f32.gmra.mxu1 %v656_v46  ;;  %v532_v43 = vmax.f32 %v276_v40, 0.0  ;;  %v660_v46 = vmax.f32 %v404_v41, 0.0  ;;  %v280_v40 = vadd.f32 %v4900_v29, %v6744_v11  ;;  %v408_v41 = vadd.f32 %v4904_v56, %v6744_v11 }
  0xb8   : > { %910 = vmatprep.mubr.f32.mxu0 %v531_v30  ;;  %1230 = vmatprep.mubr.f32.mxu1 %v659_v50  ;;  %v535_v30 = vmax.f32 %v279_v42, 0.0  ;;  %v663_v50 = vmax.f32 %v407_v44, 0.0  ;;  %v283_v42 = vadd.f32 %v4888_v60, %v6741_v14  ;;  %v411_v44 = vadd.f32 %v4892_v52, %v6741_v14 }
  0xbb   : > { %911 = vmatmul.mubr.f32.gmra.mxu0 %v530_v49  ;;  %1231 = vmatmul.mubr.f32.gmra.mxu1 %v658_v54  ;;  %v534_v49 = vmax.f32 %v278_v47, 0.0  ;;  %v662_v54 = vmax.f32 %v406_v37, 0.0  ;;  %v282_v47 = vadd.f32 %v4900_v29, %v6742_v13  ;;  %v410_v37 = vadd.f32 %v4904_v56, %v6742_v13 }
  0xbc   : > { %915 = vmatprep.mubr.f32.mxu0 %v533_v57  ;;  %1235 = vmatprep.mubr.f32.mxu1 %v661_v58  ;;  %v537_v57 = vmax.f32 %v281_v35, 0.0  ;;  %v665_v58 = vmax.f32 %v409_v34, 0.0  ;;  %v285_v35 = vadd.f32 %v4888_v60, %v6739_v16  ;;  %v413_v34 = vadd.f32 %v4892_v52, %v6739_v16 }
  0xbf   : > { %916 = vmatmul.mubr.f32.gmra.mxu0 %v532_v43  ;;  %1236 = vmatmul.mubr.f32.gmra.mxu1 %v660_v46  ;;  %v536_v43 = vmax.f32 %v280_v40, 0.0  ;;  %v664_v46 = vmax.f32 %v408_v41, 0.0  ;;  %v284_v40 = vadd.f32 %v4900_v29, %v6740_v15  ;;  %v412_v41 = vadd.f32 %v4904_v56, %v6740_v15 }
  0xc0   : > { %920 = vmatprep.mubr.f32.mxu0 %v535_v30  ;;  %1240 = vmatprep.mubr.f32.mxu1 %v663_v50  ;;  %v539_v30 = vmax.f32 %v283_v42, 0.0  ;;  %v667_v50 = vmax.f32 %v411_v44, 0.0  ;;  %v287_v42 = vadd.f32 %v4888_v60, %v6737_v18  ;;  %v415_v44 = vadd.f32 %v4892_v52, %v6737_v18 }
  0xc3   : > { %921 = vmatmul.mubr.f32.gmra.mxu0 %v534_v49  ;;  %1241 = vmatmul.mubr.f32.gmra.mxu1 %v662_v54  ;;  %v538_v49 = vmax.f32 %v282_v47, 0.0  ;;  %v666_v54 = vmax.f32 %v410_v37, 0.0  ;;  %v286_v47 = vadd.f32 %v4900_v29, %v6738_v17  ;;  %v414_v37 = vadd.f32 %v4904_v56, %v6738_v17 }
  0xc4   : > { %925 = vmatprep.mubr.f32.mxu0 %v537_v57  ;;  %1245 = vmatprep.mubr.f32.mxu1 %v665_v58  ;;  %v541_v57 = vmax.f32 %v285_v35, 0.0  ;;  %v669_v58 = vmax.f32 %v413_v34, 0.0  ;;  %v289_v35 = vadd.f32 %v4888_v60, %v6735_v20  ;;  %v417_v34 = vadd.f32 %v4892_v52, %v6735_v20 }
  0xc7   : > { %926 = vmatmul.mubr.f32.gmra.mxu0 %v536_v43  ;;  %1246 = vmatmul.mubr.f32.gmra.mxu1 %v664_v46  ;;  %v540_v43 = vmax.f32 %v284_v40, 0.0  ;;  %v668_v46 = vmax.f32 %v412_v41, 0.0  ;;  %v288_v40 = vadd.f32 %v4900_v29, %v6736_v19  ;;  %v416_v41 = vadd.f32 %v4904_v56, %v6736_v19 }
  0xc8   : > { %930 = vmatprep.mubr.f32.mxu0 %v539_v30  ;;  %1250 = vmatprep.mubr.f32.mxu1 %v667_v50  ;;  %v543_v30 = vmax.f32 %v287_v42, 0.0  ;;  %v671_v50 = vmax.f32 %v415_v44, 0.0  ;;  %v291_v42 = vadd.f32 %v4888_v60, %v6733_v22  ;;  %v419_v44 = vadd.f32 %v4892_v52, %v6733_v22 }
  0xcb   : > { %931 = vmatmul.mubr.f32.gmra.mxu0 %v538_v49  ;;  %1251 = vmatmul.mubr.f32.gmra.mxu1 %v666_v54  ;;  %v542_v49 = vmax.f32 %v286_v47, 0.0  ;;  %v670_v54 = vmax.f32 %v414_v37, 0.0  ;;  %v290_v47 = vadd.f32 %v4900_v29, %v6734_v21  ;;  %v418_v37 = vadd.f32 %v4904_v56, %v6734_v21 }
  0xcc   : > { %935 = vmatprep.mubr.f32.mxu0 %v541_v57  ;;  %1255 = vmatprep.mubr.f32.mxu1 %v669_v58  ;;  %v545_v57 = vmax.f32 %v289_v35, 0.0  ;;  %v673_v58 = vmax.f32 %v417_v34, 0.0  ;;  %v293_v35 = vadd.f32 %v4888_v60, %v6731_v24  ;;  %v421_v34 = vadd.f32 %v4892_v52, %v6731_v24 }
  0xcf   : > { %936 = vmatmul.mubr.f32.gmra.mxu0 %v540_v43  ;;  %1256 = vmatmul.mubr.f32.gmra.mxu1 %v668_v46  ;;  %v544_v43 = vmax.f32 %v288_v40, 0.0  ;;  %v672_v46 = vmax.f32 %v416_v41, 0.0  ;;  %v292_v40 = vadd.f32 %v4900_v29, %v6732_v23  ;;  %v420_v41 = vadd.f32 %v4904_v56, %v6732_v23 }
  0xd0   : > { %940 = vmatprep.mubr.f32.mxu0 %v543_v30  ;;  %1260 = vmatprep.mubr.f32.mxu1 %v671_v50  ;;  %v547_v30 = vmax.f32 %v291_v42, 0.0  ;;  %v675_v50 = vmax.f32 %v419_v44, 0.0  ;;  %v295_v42 = vadd.f32 %v4888_v60, %v6729_v26  ;;  %v423_v44 = vadd.f32 %v4892_v52, %v6729_v26 }
  0xd3   : > { %941 = vmatmul.mubr.f32.gmra.mxu0 %v542_v49  ;;  %1261 = vmatmul.mubr.f32.gmra.mxu1 %v670_v54  ;;  %v546_v49 = vmax.f32 %v290_v47, 0.0  ;;  %v674_v54 = vmax.f32 %v418_v37, 0.0  ;;  %v676_v47 = vmax.f32 %v420_v41, 0.0  ;;  %v422_v37 = vadd.f32 %v4904_v56, %v6730_v25 }
  0xd4   : > { %945 = vmatprep.mubr.f32.mxu0 %v545_v57  ;;  %1265 = vmatprep.mubr.f32.mxu1 %v673_v58  ;;  %v549_v57 = vmax.f32 %v293_v35, 0.0  ;;  %v677_v58 = vmax.f32 %v421_v34, 0.0  ;;  %v679_v35 = vmax.f32 %v423_v44, 0.0  ;;  %v425_v34 = vadd.f32 %v4892_v52, %v6727_v28 }
  0xd5   : > { %v299_v41 = vadd.f32 %v4888_v60, %v6786_v51  ;;  %v154_v44 = vcombine.high %v4693_v0, %v4693_v0 }
  0xd7   : > { %946 = vmatmul.mubr.f32.gmra.mxu0 %v544_v43  ;;  %1266 = vmatmul.mubr.f32.gmra.mxu1 %v672_v46  ;;  %v294_v43 = vadd.f32 %v4900_v29, %v6730_v25  ;;  %v548_v46 = vmax.f32 %v292_v40, 0.0 }
  0xd8   : > { %950 = vmatprep.mubr.f32.mxu0 %v547_v30  ;;  %1270 = vmatprep.mubr.f32.mxu1 %v675_v50  ;;  %v297_v30 = vadd.f32 %v4888_v60, %v6727_v28  ;;  %v551_v50 = vmax.f32 %v295_v42, 0.0  ;;  %v427_v42 = vadd.f32 %v4892_v52, %v6786_v51 }
  0xd9   : > { %v550_v61 = vmax.f32 %v294_v43, 0.0  ;;  %v155_v43 = vcombine.high %v4700_v38, %v4700_v38  ;;  %v429_v38 = vadd.f32 %v4892_v52, %v6788_v59 }
  0xda   : > { %v553_v40 = vmax.f32 %v297_v30, 0.0  ;;  %v683_v0 = vmax.f32 %v427_v42, 0.0 }
  0xdb   : > { %951 = vmatmul.mubr.f32.gmra.mxu0 %v546_v49  ;;  %1271 = vmatmul.mubr.f32.gmra.mxu1 %v674_v54  ;;  %v296_v49 = vadd.f32 %v4900_v29, %v6728_v27  ;;  %v678_v54 = vmax.f32 %v422_v37, 0.0  ;;  %v555_v37 = vmax.f32 %v299_v41, 0.0  ;;  %v428_v41 = vadd.f32 %v4904_v56, %v6789_v53 }
  0xdc   : > { %955 = vmatprep.mubr.f32.mxu0 %v549_v57  ;;  %1275 = vmatprep.mubr.f32.mxu1 %v677_v58  ;;  %v424_v57 = vadd.f32 %v4904_v56, %v6728_v27  ;;  %v681_v58 = vmax.f32 %v425_v34, 0.0  ;;  %v5033_v34 = vrot.slane %v154_v44, %v4696_v36  ;;  %v685_v42 = vmax.f32 %v429_v38, 0.0 }
  0xde   : > { %v680_v30 = vmax.f32 %v424_v57, 0.0  ;;  %v5048_v57 = vrot.slane %v155_v43, %v4705_v39 }
  0xdf   : > { %956 = vmatmul.mubr.f32.gmra.mxu0 %v548_v46  ;;  %1276 = vmatmul.mubr.f32.gmra.mxu1 %v676_v47  ;;  %v552_v46 = vmax.f32 %v296_v49, 0.0  ;;  %v298_v47 = vadd.f32 %v4900_v29, %v6787_v45 }
  0xe0   : > { %960 = vmatprep.mubr.f32.mxu0 %v551_v50  ;;  %1280 = vmatprep.mubr.f32.mxu1 %v679_v35  ;;  %v301_v50 = vadd.f32 %v4888_v60, %v6788_v59  ;;  %v426_v35 = vadd.f32 %v4904_v56, %v6787_v45  ;;  %v684_v56 = vmax.f32 %v428_v41, 0.0 }
  0xe1   : > { %v554_v49 = vmax.f32 %v298_v47, 0.0 }
  0xe2   : > { %v682_v60 = vmax.f32 %v426_v35, 0.0  ;;  %v557_v52 = vmax.f32 %v301_v50, 0.0 }
  0xe3   : > { %961 = vmatmul.mubr.f32.gmra.mxu0 %v550_v61  ;;  %1281 = vmatmul.mubr.f32.gmra.mxu1 %v678_v54  ;;  %v5038_v61 = vrot.slane %v155_v43, %v4696_v36  ;;  %v300_v54 = vadd.f32 %v4900_v29, %v6789_v53  ;;  %v430_v43 = vadd.f32 %v5048_v57, %v6754_v1 }
  0xe4   : > { %965 = vmatprep.mubr.f32.mxu0 %v553_v40  ;;  %1285 = vmatprep.mubr.f32.mxu1 %v681_v58  ;;  %v5043_v40 = vrot.slane %v154_v44, %v4705_v39  ;;  %v303_v58 = vadd.f32 %v5033_v34, %v6753_v2 }
  0xe5   : > { %v431_v29 = vadd.f32 %v5038_v61, %v6753_v2  ;;  %v433_v50 = vadd.f32 %v5038_v61, %v6751_v4  ;;  %v686_v38 = vmax.f32 %v430_v43, 0.0 }
  0xe6   : > { %v302_v44 = vadd.f32 %v5043_v40, %v6754_v1  ;;  %v559_v47 = vmax.f32 %v303_v58, 0.0 }
  0xe7   : > { %966 = vmatmul.mubr.f32.gmra.mxu0 %v552_v46  ;;  %1286 = vmatmul.mubr.f32.gmra.mxu1 %v680_v30  ;;  %v556_v46 = vmax.f32 %v300_v54, 0.0  ;;  %v687_v30 = vmax.f32 %v431_v29, 0.0  ;;  %v689_v41 = vmax.f32 %v433_v50, 0.0 }
  0xe8   : > { %970 = vmatprep.mubr.f32.mxu0 %v555_v37  ;;  %1290 = vmatprep.mubr.f32.mxu1 %v683_v0  ;;  %v305_v37 = vadd.f32 %v5033_v34, %v6751_v4  ;;  %v558_v35 = vmax.f32 %v302_v44, 0.0  ;;  %v304_v0 = vadd.f32 %v5043_v40, %v6752_v3 }
  0xea   : > { %v561_v54 = vmax.f32 %v305_v37, 0.0  ;;  %v560_v58 = vmax.f32 %v304_v0, 0.0 }
  0xeb   : > { %971 = vmatmul.mubr.f32.gmra.mxu0 %v554_v49  ;;  %1291 = vmatmul.mubr.f32.gmra.mxu1 %v682_v60  ;;  %v432_v49 = vadd.f32 %v5048_v57, %v6752_v3  ;;  %v307_v60 = vadd.f32 %v5033_v34, %v6749_v6 }
  0xec   : > { %975 = vmatprep.mubr.f32.mxu0 %v557_v52  ;;  %1295 = vmatprep.mubr.f32.mxu1 %v685_v42  ;;  %v435_v52 = vadd.f32 %v5038_v61, %v6749_v6  ;;  %v306_v42 = vadd.f32 %v5043_v40, %v6750_v5 }
  0xed   : > { %v688_v29 = vmax.f32 %v432_v49, 0.0  ;;  %v563_v44 = vmax.f32 %v307_v60, 0.0 }
  0xee   : > { %v691_v43 = vmax.f32 %v435_v52, 0.0  ;;  %v562_v37 = vmax.f32 %v306_v42, 0.0 }
  0xef   : > { %976 = vmatmul.mubr.f32.gmra.mxu0 %v556_v46  ;;  %1296 = vmatmul.mubr.f32.gmra.mxu1 %v684_v56  ;;  %v434_v46 = vadd.f32 %v5048_v57, %v6750_v5  ;;  %v309_v56 = vadd.f32 %v5033_v34, %v6747_v8 }
  0xf0   : > { %980 = vmatprep.mubr.f32.mxu0 %v559_v47  ;;  %1300 = vmatprep.mubr.f32.mxu1 %v687_v30  ;;  %v437_v47 = vadd.f32 %v5038_v61, %v6747_v8  ;;  %v308_v30 = vadd.f32 %v5043_v40, %v6748_v7 }
  0xf1   : > { %v690_v50 = vmax.f32 %v434_v46, 0.0  ;;  %v565_v0 = vmax.f32 %v309_v56, 0.0 }
  0xf2   : > { %v693_v49 = vmax.f32 %v437_v47, 0.0  ;;  %v564_v60 = vmax.f32 %v308_v30, 0.0 }
  0xf3   : > { %981 = vmatmul.mubr.f32.gmra.mxu0 %v558_v35  ;;  %1301 = vmatmul.mubr.f32.gmra.mxu1 %v686_v38  ;;  %v436_v35 = vadd.f32 %v5048_v57, %v6748_v7  ;;  %v311_v38 = vadd.f32 %v5033_v34, %v6745_v10 }
  0xf4   : > { %985 = vmatprep.mubr.f32.mxu0 %v561_v54  ;;  %1305 = vmatprep.mubr.f32.mxu1 %v689_v41  ;;  %v439_v54 = vadd.f32 %v5038_v61, %v6745_v10  ;;  %v310_v41 = vadd.f32 %v5043_v40, %v6746_v9 }
  0xf5   : > { %v692_v52 = vmax.f32 %v436_v35, 0.0  ;;  %v567_v42 = vmax.f32 %v311_v38, 0.0 }
  0xf6   : > { %v695_v46 = vmax.f32 %v439_v54, 0.0  ;;  %v566_v56 = vmax.f32 %v310_v41, 0.0 }
  0xf7   : > { %986 = vmatmul.mubr.f32.gmra.mxu0 %v560_v58  ;;  %1306 = vmatmul.mubr.f32.gmra.mxu1 %v688_v29  ;;  %v438_v58 = vadd.f32 %v5048_v57, %v6746_v9  ;;  %v313_v29 = vadd.f32 %v5033_v34, %v6743_v12 }
  0xf8   : > { %990 = vmatprep.mubr.f32.mxu0 %v563_v44  ;;  %1310 = vmatprep.mubr.f32.mxu1 %v691_v43  ;;  %v441_v44 = vadd.f32 %v5038_v61, %v6743_v12  ;;  %v312_v43 = vadd.f32 %v5043_v40, %v6744_v11 }
  0xf9   : > { %v694_v47 = vmax.f32 %v438_v58, 0.0  ;;  %v569_v30 = vmax.f32 %v313_v29, 0.0 }
  0xfa   : > { %v697_v35 = vmax.f32 %v441_v44, 0.0  ;;  %v568_v38 = vmax.f32 %v312_v43, 0.0 }
  0xfb   : > { %991 = vmatmul.mubr.f32.gmra.mxu0 %v562_v37  ;;  %1311 = vmatmul.mubr.f32.gmra.mxu1 %v690_v50  ;;  %v440_v37 = vadd.f32 %v5048_v57, %v6744_v11  ;;  %v315_v50 = vadd.f32 %v5033_v34, %v6741_v14 }
  0xfc   : > { %995 = vmatprep.mubr.f32.mxu0 %v565_v0  ;;  %1315 = vmatprep.mubr.f32.mxu1 %v693_v49  ;;  %v443_v0 = vadd.f32 %v5038_v61, %v6741_v14  ;;  %v314_v49 = vadd.f32 %v5043_v40, %v6742_v13 }
  0xfd   : > { %v696_v54 = vmax.f32 %v440_v37, 0.0  ;;  %v571_v41 = vmax.f32 %v315_v50, 0.0 }
  0xfe   : > { %v699_v58 = vmax.f32 %v443_v0, 0.0  ;;  %v570_v29 = vmax.f32 %v314_v49, 0.0 }
  0xff   : > { %996 = vmatmul.mubr.f32.gmra.mxu0 %v564_v60  ;;  %1316 = vmatmul.mubr.f32.gmra.mxu1 %v692_v52  ;;  %v442_v60 = vadd.f32 %v5048_v57, %v6742_v13  ;;  %v317_v52 = vadd.f32 %v5033_v34, %v6739_v16 }
 0x100   : > { %1000 = vmatprep.mubr.f32.mxu0 %v567_v42  ;;  %1320 = vmatprep.mubr.f32.mxu1 %v695_v46  ;;  %v445_v42 = vadd.f32 %v5038_v61, %v6739_v16  ;;  %v316_v46 = vadd.f32 %v5043_v40, %v6740_v15 }
 0x101   : > { %v698_v44 = vmax.f32 %v442_v60, 0.0  ;;  %v573_v43 = vmax.f32 %v317_v52, 0.0 }
 0x102   : > { %v701_v37 = vmax.f32 %v445_v42, 0.0  ;;  %v572_v50 = vmax.f32 %v316_v46, 0.0 }
 0x103   : > { %1001 = vmatmul.mubr.f32.gmra.mxu0 %v566_v56  ;;  %1321 = vmatmul.mubr.f32.gmra.mxu1 %v694_v47  ;;  %v444_v56 = vadd.f32 %v5048_v57, %v6740_v15  ;;  %v319_v47 = vadd.f32 %v5033_v34, %v6737_v18 }
 0x104   : > { %1005 = vmatprep.mubr.f32.mxu0 %v569_v30  ;;  %1325 = vmatprep.mubr.f32.mxu1 %v697_v35  ;;  %v447_v30 = vadd.f32 %v5038_v61, %v6737_v18  ;;  %v318_v35 = vadd.f32 %v5043_v40, %v6738_v17 }
 0x105   : > { %v700_v0 = vmax.f32 %v444_v56, 0.0  ;;  %v575_v49 = vmax.f32 %v319_v47, 0.0 }
 0x106   : > { %v703_v60 = vmax.f32 %v447_v30, 0.0  ;;  %v574_v52 = vmax.f32 %v318_v35, 0.0 }
 0x107   : > { %1006 = vmatmul.mubr.f32.gmra.mxu0 %v568_v38  ;;  %1326 = vmatmul.mubr.f32.gmra.mxu1 %v696_v54  ;;  %v446_v38 = vadd.f32 %v5048_v57, %v6738_v17  ;;  %v321_v54 = vadd.f32 %v5033_v34, %v6735_v20 }
 0x108   : > { %1010 = vmatprep.mubr.f32.mxu0 %v571_v41  ;;  %1330 = vmatprep.mubr.f32.mxu1 %v699_v58  ;;  %v449_v41 = vadd.f32 %v5038_v61, %v6735_v20  ;;  %v320_v58 = vadd.f32 %v5043_v40, %v6736_v19 }
 0x109   : > { %v702_v42 = vmax.f32 %v446_v38, 0.0  ;;  %v577_v46 = vmax.f32 %v321_v54, 0.0 }
 0x10a   : > { %v705_v56 = vmax.f32 %v449_v41, 0.0  ;;  %v576_v47 = vmax.f32 %v320_v58, 0.0 }
 0x10b   : > { %1011 = vmatmul.mubr.f32.gmra.mxu0 %v570_v29  ;;  %1331 = vmatmul.mubr.f32.gmra.mxu1 %v698_v44  ;;  %v448_v29 = vadd.f32 %v5048_v57, %v6736_v19  ;;  %v323_v44 = vadd.f32 %v5033_v34, %v6733_v22 }
 0x10c   : > { %1015 = vmatprep.mubr.f32.mxu0 %v573_v43  ;;  %1335 = vmatprep.mubr.f32.mxu1 %v701_v37  ;;  %v451_v43 = vadd.f32 %v5038_v61, %v6733_v22  ;;  %v322_v37 = vadd.f32 %v5043_v40, %v6734_v21 }
 0x10d   : > { %v704_v30 = vmax.f32 %v448_v29, 0.0  ;;  %v579_v35 = vmax.f32 %v323_v44, 0.0  ;;  %v326_v44 = vadd.f32 %v5043_v40, %v6730_v25 }
 0x10e   : > { %v707_v38 = vmax.f32 %v451_v43, 0.0  ;;  %v578_v54 = vmax.f32 %v322_v37, 0.0  ;;  %v454_v37 = vadd.f32 %v5048_v57, %v6730_v25 }
 0x10f   : > { %1016 = vmatmul.mubr.f32.gmra.mxu0 %v572_v50  ;;  %1336 = vmatmul.mubr.f32.gmra.mxu1 %v700_v0  ;;  %v450_v50 = vadd.f32 %v5048_v57, %v6734_v21  ;;  %v325_v0 = vadd.f32 %v5033_v34, %v6731_v24 }
 0x110   : > { %1020 = vmatprep.mubr.f32.mxu0 %v575_v49  ;;  %1340 = vmatprep.mubr.f32.mxu1 %v703_v60  ;;  %v453_v49 = vadd.f32 %v5038_v61, %v6731_v24  ;;  %v324_v60 = vadd.f32 %v5043_v40, %v6732_v23 }
 0x111   : > { %v706_v41 = vmax.f32 %v450_v50, 0.0  ;;  %v581_v58 = vmax.f32 %v325_v0, 0.0  ;;  %v582_v0 = vmax.f32 %v326_v44, 0.0  ;;  %v330_v44 = vadd.f32 %v5043_v40, %v6787_v45 }
 0x112   : > { %v709_v29 = vmax.f32 %v453_v49, 0.0 }
 0x113   : > { %1021 = vmatmul.mubr.f32.gmra.mxu0 %v574_v52  ;;  %1341 = vmatmul.mubr.f32.gmra.mxu1 %v702_v42  ;;  %v452_v52 = vadd.f32 %v5048_v57, %v6732_v23  ;;  %v327_v42 = vadd.f32 %v5033_v34, %v6729_v26 }
 0x114   : > { %1025 = vmatprep.mubr.f32.mxu0 %v577_v46  ;;  %1345 = vmatprep.mubr.f32.mxu1 %v705_v56  ;;  %v455_v46 = vadd.f32 %v5038_v61, %v6729_v26  ;;  %v580_v56 = vmax.f32 %v324_v60, 0.0  ;;  %v331_v60 = vadd.f32 %v5033_v34, %v6786_v51 }
 0x115   : > { %v708_v43 = vmax.f32 %v452_v52, 0.0 }
 0x116   : > { %v711_v50 = vmax.f32 %v455_v46, 0.0 }
 0x117   : > { %1026 = vmatmul.mubr.f32.gmra.mxu0 %v576_v47  ;;  %1346 = vmatmul.mubr.f32.gmra.mxu1 %v704_v30  ;;  %v329_v47 = vadd.f32 %v5033_v34, %v6727_v28  ;;  %v583_v30 = vmax.f32 %v327_v42, 0.0  ;;  %v156_v42 = vcombine.high %v4867_v48, %v4867_v48 }
 0x118   : > { %1030 = vmatprep.mubr.f32.mxu0 %v579_v35  ;;  %1350 = vmatprep.mubr.f32.mxu1 %v707_v38  ;;  %v457_v35 = vadd.f32 %v5038_v61, %v6727_v28  ;;  %v328_v38 = vadd.f32 %v5043_v40, %v6728_v27 }
 0x119   : > { %v585_v49 = vmax.f32 %v329_v47, 0.0  ;;  %v333_v47 = vadd.f32 %v5033_v34, %v6788_v59 }
 0x11a   : > { %v713_v52 = vmax.f32 %v457_v35, 0.0  ;;  %v584_v46 = vmax.f32 %v328_v38, 0.0  ;;  %v586_v35 = vmax.f32 %v330_v44, 0.0  ;;  %v5187_v38 = vrot.slane %v156_v42, %v4705_v39 }
 0x11b   : > { %1031 = vmatmul.mubr.f32.gmra.mxu0 %v578_v54  ;;  %1351 = vmatmul.mubr.f32.gmra.mxu1 %v706_v41  ;;  %v710_v54 = vmax.f32 %v454_v37, 0.0  ;;  %v456_v41 = vadd.f32 %v5048_v57, %v6728_v27  ;;  %v458_v37 = vadd.f32 %v5048_v57, %v6787_v45 }
 0x11c   : > { %1035 = vmatprep.mubr.f32.mxu0 %v581_v58  ;;  %1355 = vmatprep.mubr.f32.mxu1 %v709_v29  ;;  %v459_v58 = vadd.f32 %v5038_v61, %v6786_v51  ;;  %v157_v29 = vcombine.high %v4872_v55, %v4872_v55  ;;  %v461_v55 = vadd.f32 %v5038_v61, %v6788_v59  ;;  %v589_v61 = vmax.f32 %v333_v47, 0.0 }
 0x11d   : > { %v714_v34 = vmax.f32 %v458_v37, 0.0 }
 0x11e   : > { %v715_v48 = vmax.f32 %v459_v58, 0.0 }
 0x11f   : > { %1036 = vmatmul.mubr.f32.gmra.mxu0 %v580_v56  ;;  %1356 = vmatmul.mubr.f32.gmra.mxu1 %v708_v43  ;;  %v587_v56 = vmax.f32 %v331_v60, 0.0  ;;  %v712_v43 = vmax.f32 %v456_v41, 0.0  ;;  %v717_v60 = vmax.f32 %v461_v55, 0.0 }
 0x120   : > { %1040 = vmatprep.mubr.f32.mxu0 %v583_v30  ;;  %1360 = vmatprep.mubr.f32.mxu1 %v711_v50  ;;  %v5177_v30 = vrot.slane %v156_v42, %v4696_v36  ;;  %v5182_v50 = vrot.slane %v157_v29, %v4696_v36 }
 0x122   : > { %v335_v36 = vadd.f32 %v5177_v30, %v6753_v2  ;;  %v337_v42 = vadd.f32 %v5177_v30, %v6751_v4 }
 0x123   : > { %1041 = vmatmul.mubr.f32.gmra.mxu0 %v582_v0  ;;  %1361 = vmatmul.mubr.f32.gmra.mxu1 %v710_v54  ;;  %v332_v0 = vadd.f32 %v5043_v40, %v6789_v53  ;;  %v5192_v54 = vrot.slane %v157_v29, %v4705_v39  ;;  %v463_v40 = vadd.f32 %v5182_v50, %v6753_v2 }
 0x124   : > { %1045 = vmatprep.mubr.f32.mxu0 %v585_v49  ;;  %1365 = vmatprep.mubr.f32.mxu1 %v713_v52  ;;  %v460_v49 = vadd.f32 %v5048_v57, %v6789_v53  ;;  %v334_v52 = vadd.f32 %v5187_v38, %v6754_v1  ;;  %v591_v58 = vmax.f32 %v335_v36, 0.0  ;;  %v593_v37 = vmax.f32 %v337_v42, 0.0 }
 0x125   : > { %v588_v41 = vmax.f32 %v332_v0, 0.0  ;;  %v462_v39 = vadd.f32 %v5192_v54, %v6754_v1  ;;  %v719_v29 = vmax.f32 %v463_v40, 0.0  ;;  %v464_v47 = vadd.f32 %v5192_v54, %v6752_v3 }
 0x126   : > { %v716_v57 = vmax.f32 %v460_v49, 0.0  ;;  %v590_v44 = vmax.f32 %v334_v52, 0.0  ;;  %v338_v36 = vadd.f32 %v5187_v38, %v6750_v5  ;;  %v466_v42 = vadd.f32 %v5192_v54, %v6750_v5 }
 0x127   : > { %1046 = vmatmul.mubr.f32.gmra.mxu0 %v584_v46  ;;  %1366 = vmatmul.mubr.f32.gmra.mxu1 %v712_v43  ;;  %v465_v46 = vadd.f32 %v5182_v50, %v6751_v4  ;;  %v718_v43 = vmax.f32 %v462_v39, 0.0 }
 0x128   : > { %1050 = vmatprep.mubr.f32.mxu0 %v587_v56  ;;  %1370 = vmatprep.mubr.f32.mxu1 %v715_v48  ;;  %v336_v56 = vadd.f32 %v5187_v38, %v6752_v3  ;;  %v339_v48 = vadd.f32 %v5177_v30, %v6749_v6 }
 0x129   : > { %v721_v55 = vmax.f32 %v465_v46, 0.0 }
 0x12a   : > { %v592_v49 = vmax.f32 %v336_v56, 0.0  ;;  %v595_v52 = vmax.f32 %v339_v48, 0.0  ;;  %v340_v48 = vadd.f32 %v5187_v38, %v6748_v7 }
 0x12b   : > { %1051 = vmatmul.mubr.f32.gmra.mxu0 %v586_v35  ;;  %1371 = vmatmul.mubr.f32.gmra.mxu1 %v714_v34  ;;  %v467_v35 = vadd.f32 %v5182_v50, %v6749_v6 }
 0x12c   : > { %1055 = vmatprep.mubr.f32.mxu0 %v589_v61  ;;  %1375 = vmatprep.mubr.f32.mxu1 %v717_v60  ;;  %v720_v61 = vmax.f32 %v464_v47, 0.0  ;;  %v341_v60 = vadd.f32 %v5177_v30, %v6747_v8  ;;  %v594_v47 = vmax.f32 %v338_v36, 0.0 }
 0x12f   : > { %1056 = vmatmul.mubr.f32.gmra.mxu0 %v588_v41  ;;  %1376 = vmatmul.mubr.f32.gmra.mxu1 %v716_v57 }
 0x130   : > { %1060 = vmatprep.mubr.f32.mxu0 %v591_v58  ;;  %1380 = vmatprep.mubr.f32.mxu1 %v719_v29  ;;  %v723_v58 = vmax.f32 %v467_v35, 0.0 }
 0x133   : > { %v822_v0 = vpop.f32.mrf.mxu0  ;;  %1061 = vmatmul.mubr.f32.gmra.mxu0 %v590_v44  ;;  %v1142_v34 = vpop.f32.mrf.mxu1  ;;  %1381 = vmatmul.mubr.f32.gmra.mxu1 %v718_v43  ;;  %v469_v44 = vadd.f32 %v5182_v50, %v6747_v8 }
 0x134   : > { %v823_v40 = vadd.f32 %v4556_v31, %v822_v0  ;;  %v1143_v41 = vadd.f32 %v4556_v31, %v1142_v34  ;;  %1065 = vmatprep.mubr.f32.mxu0 %v593_v37  ;;  %1385 = vmatprep.mubr.f32.mxu1 %v721_v55  ;;  %v597_v37 = vmax.f32 %v341_v60, 0.0  ;;  %v343_v55 = vadd.f32 %v5177_v30, %v6745_v10 }
 0x135   : > { %v824_v57 = vpop.f32.mrf.mxu0  ;;  %v1144_v39 = vpop.f32.mrf.mxu1 }
 0x136   : > { %v1461_v29 = vmax.f32 %v823_v40, 0.0  ;;  %v1525_v46 = vmax.f32 %v1143_v41, 0.0  ;;  %v722_v40 = vmax.f32 %v466_v42, 0.0  ;;  %v471_v41 = vadd.f32 %v5182_v50, %v6745_v10 }
 0x137   : > { %v827_v56 = vpop.f32.mrf.mxu0  ;;  %1066 = vmatmul.mubr.f32.gmra.mxu0 %v592_v49  ;;  %v1147_v43 = vpop.f32.mrf.mxu1  ;;  %1386 = vmatmul.mubr.f32.gmra.mxu1 %v720_v61  ;;  %v468_v49 = vadd.f32 %v5192_v54, %v6748_v7  ;;  %v599_v2 = vmax.f32 %v343_v55, 0.0  ;;  %v470_v55 = vadd.f32 %v5192_v54, %v6746_v9 }
 0x138   : > { %v1595_v35 = vmul.f32 %v4561_v32, %v1461_v29  ;;  %v828_v0 = vadd.f32 %v4556_v31, %v827_v56  ;;  %v1148_v34 = vadd.f32 %v4556_v31, %v1147_v43  ;;  %1070 = vmatprep.mubr.f32.mxu0 %v595_v52  ;;  %v1659_v61 = vmul.f32 %v4561_v32, %v1525_v46 }
 0x139   : > { %v829_v36 = vpop.f32.mrf.mxu0  ;;  %v1149_v60 = vpop.f32.mrf.mxu1  ;;  %1390 = vmatprep.mubr.f32.mxu1 %v723_v58  ;;  %v725_v56 = vmax.f32 %v469_v44, 0.0  ;;  %v596_v52 = vmax.f32 %v340_v48, 0.0  ;;  %v342_v46 = vadd.f32 %v5187_v38, %v6746_v9  ;;  %v345_v58 = vadd.f32 %v5177_v30, %v6743_v12 }
 0x13a   : > { %v1462_v57 = vmax.f32 %v828_v0, 0.0  ;;  %v1526_v39 = vmax.f32 %v1148_v34, 0.0  ;;  %v1724_v29 = vsel %vm1723_vm0, %v1595_v35, 0.0  ;;  %v724_v44 = vmax.f32 %v468_v49, 0.0 }
 0x13b   : > { %v832_v1 = vpop.f32.mrf.mxu0  ;;  %v1152_v43 = vpop.f32.mrf.mxu1  ;;  %1725 = vadd.xlane.f32.xlu0 %v1724_v29  ;;  %1071 = vmatmul.mubr.f32.gmra.mxu0 %v594_v47  ;;  %v1916_v47 = vsel %vm1723_vm0, %v1659_v61, 0.0  ;;  %v727_v48 = vmax.f32 %v471_v41, 0.0  ;;  %v473_v60 = vadd.f32 %v5182_v50, %v6743_v12  ;;  %v601_v61 = vmax.f32 %v345_v58, 0.0 }
 0x13c   : > { %v1660_v42 = vmul.f32 %v4561_v32, %v1526_v39  ;;  %v833_v0 = vadd.f32 %v4556_v31, %v832_v1  ;;  %v1153_v34 = vadd.f32 %v4556_v31, %v1152_v43  ;;  %1075 = vmatprep.mubr.f32.mxu0 %v597_v37  ;;  %1391 = vmatmul.mubr.f32.gmra.mxu1 %v722_v40  ;;  %v598_v40 = vmax.f32 %v342_v46, 0.0 }
 0x13d   : > { %v834_v35 = vpop.f32.mrf.mxu0  ;;  %v1154_v36 = vpop.f32.mrf.mxu1  ;;  %v1596_v39 = vmul.f32 %v4561_v32, %v1462_v57  ;;  %1395 = vmatprep.mubr.f32.mxu1 %v725_v56  ;;  %v344_v41 = vadd.f32 %v5187_v38, %v6744_v11  ;;  %v726_v46 = vmax.f32 %v470_v55, 0.0  ;;  %v729_v58 = vmax.f32 %v473_v60, 0.0 }
 0x13e   : > { %v1463_v29 = vmax.f32 %v833_v0, 0.0  ;;  %v1527_v1 = vmax.f32 %v1153_v34, 0.0  ;;  %v1919_v43 = vsel %vm1723_vm0, %v1660_v42, 0.0  ;;  %v347_v35 = vadd.f32 %v5177_v30, %v6741_v14 }
 0x13f   : > { %v1157_v37 = vpop.f32.mrf.mxu1  ;;  %1920 = vadd.xlane.f32.xlu1 %v1919_v43  ;;  %v837_v49 = vpop.f32.mrf.mxu0  ;;  %1917 = vadd.xlane.f32.xlu0 %v1916_v47  ;;  %v472_v47 = vadd.f32 %v5192_v54, %v6744_v11  ;;  %v475_v43 = vadd.f32 %v5182_v50, %v6741_v14  ;;  %v346_v60 = vadd.f32 %v5187_v38, %v6742_v13 }
 0x140   : > { %v1597_v36 = vmul.f32 %v4561_v32, %v1463_v29  ;;  %v1661_v57 = vmul.f32 %v4561_v32, %v1527_v1  ;;  %v1158_v0 = vadd.f32 %v4556_v31, %v1157_v37  ;;  %v838_v56 = vadd.f32 %v4556_v31, %v837_v49  ;;  %1076 = vmatmul.mubr.f32.gmra.mxu0 %v596_v52 }
 0x141   : > { %v839_v42 = vpop.f32.mrf.mxu0  ;;  %v1159_v34 = vpop.f32.mrf.mxu1  ;;  %1080 = vmatprep.mubr.f32.mxu0 %v599_v2  ;;  %1396 = vmatmul.mubr.f32.gmra.mxu1 %v724_v44  ;;  %v1727_v37 = vsel %vm1723_vm0, %v1596_v39, 0.0  ;;  %v600_v44 = vmax.f32 %v344_v41, 0.0  ;;  %v603_v55 = vmax.f32 %v347_v35, 0.0  ;;  %v349_v41 = vadd.f32 %v5177_v30, %v6739_v16 }
 0x142   : > { %v1528_v29 = vmax.f32 %v1158_v0, 0.0  ;;  %v1464_v3 = vmax.f32 %v838_v56, 0.0  ;;  %v1730_v1 = vsel %vm1723_vm0, %v1597_v36, 0.0  ;;  %1400 = vmatprep.mubr.f32.mxu1 %v727_v48  ;;  %v1922_v2 = vsel %vm1723_vm0, %v1661_v57, 0.0 }
 0x143   : > { %v842_v52 = vpop.f32.mrf.mxu0  ;;  %v1162_v49 = vpop.f32.mrf.mxu1  ;;  %1731 = vadd.xlane.f32.xlu1 %v1730_v1  ;;  %1728 = vadd.xlane.f32.xlu0 %v1727_v37  ;;  %v728_v34 = vmax.f32 %v472_v47, 0.0  ;;  %v731_v35 = vmax.f32 %v475_v43, 0.0  ;;  %v474_v57 = vadd.f32 %v5192_v54, %v6742_v13  ;;  %v348_v47 = vadd.f32 %v5187_v38, %v6740_v15 }
 0x144   : > { %v1662_v42 = vmul.f32 %v4561_v32, %v1528_v29  ;;  %v1598_v0 = vmul.f32 %v4561_v32, %v1464_v3  ;;  %v843_v36 = vadd.f32 %v4556_v31, %v842_v52  ;;  %v1163_v39 = vadd.f32 %v4556_v31, %v1162_v49  ;;  %1081 = vmatmul.mubr.f32.gmra.mxu0 %v598_v40 }
 0x145   : > { %v844_v48 = vpop.f32.mrf.mxu0  ;;  %v1164_v56 = vpop.f32.mrf.mxu1  ;;  %1085 = vmatprep.mubr.f32.mxu0 %v601_v61  ;;  %1401 = vmatmul.mubr.f32.gmra.mxu1 %v726_v46  ;;  %v477_v40 = vadd.f32 %v5182_v50, %v6739_v16  ;;  %v602_v46 = vmax.f32 %v346_v60, 0.0  ;;  %v351_v43 = vadd.f32 %v5177_v30, %v6737_v18  ;;  %v605_v60 = vmax.f32 %v349_v41, 0.0 }
 0x146   : > { %v1465_v29 = vmax.f32 %v843_v36, 0.0  ;;  %v1529_v1 = vmax.f32 %v1163_v39, 0.0  ;;  %v1733_v3 = vsel %vm1723_vm0, %v1598_v0, 0.0  ;;  %1405 = vmatprep.mubr.f32.mxu1 %v729_v58  ;;  %v1925_v61 = vsel %vm1723_vm0, %v1662_v42, 0.0 }
 0x147   : > { %v847_v37 = vpop.f32.mrf.mxu0  ;;  %v1167_v52 = vpop.f32.mrf.mxu1  ;;  %1734 = vadd.xlane.f32.xlu1 %v1733_v3  ;;  %1923 = vadd.xlane.f32.xlu0 %v1922_v2  ;;  %v730_v42 = vmax.f32 %v474_v57, 0.0  ;;  %v476_v48 = vadd.f32 %v5192_v54, %v6740_v15  ;;  %v479_v56 = vadd.f32 %v5182_v50, %v6737_v18  ;;  %v607_v41 = vmax.f32 %v351_v43, 0.0 }
 0x148   : > { %v1599_v49 = vmul.f32 %v4561_v32, %v1465_v29  ;;  %v1663_v58 = vmul.f32 %v4561_v32, %v1529_v1  ;;  %v848_v0 = vadd.f32 %v4556_v31, %v847_v37  ;;  %v1168_v36 = vadd.f32 %v4556_v31, %v1167_v52  ;;  %1086 = vmatmul.mubr.f32.gmra.mxu0 %v600_v44 }
 0x149   : > { %v849_v39 = vpop.f32.mrf.mxu0  ;;  %v1169_v2 = vpop.f32.mrf.mxu1  ;;  %1090 = vmatprep.mubr.f32.mxu0 %v603_v55  ;;  %1406 = vmatmul.mubr.f32.gmra.mxu1 %v728_v34  ;;  %v733_v37 = vmax.f32 %v477_v40, 0.0  ;;  %v604_v34 = vmax.f32 %v348_v47, 0.0  ;;  %v350_v57 = vadd.f32 %v5187_v38, %v6738_v17  ;;  %v353_v47 = vadd.f32 %v5177_v30, %v6735_v20 }
 0x14a   : > { %v1466_v29 = vmax.f32 %v848_v0, 0.0  ;;  %v1530_v3 = vmax.f32 %v1168_v36, 0.0  ;;  %v1736_v1 = vsel %vm1723_vm0, %v1599_v49, 0.0  ;;  %1410 = vmatprep.mubr.f32.mxu1 %v731_v35  ;;  %v1928_v55 = vsel %vm1723_vm0, %v1663_v58, 0.0 }
 0x14b   : > { %v852_v52 = vpop.f32.mrf.mxu0  ;;  %v1172_v44 = vpop.f32.mrf.mxu1  ;;  %1926 = vadd.xlane.f32.xlu1 %v1925_v61  ;;  %1737 = vadd.xlane.f32.xlu0 %v1736_v1  ;;  %v732_v61 = vmax.f32 %v476_v48, 0.0  ;;  %v735_v43 = vmax.f32 %v479_v56, 0.0  ;;  %v478_v58 = vadd.f32 %v5192_v54, %v6738_v17  ;;  %v352_v48 = vadd.f32 %v5187_v38, %v6736_v19 }
 0x14c   : > { %v1600_v39 = vmul.f32 %v4561_v32, %v1466_v29  ;;  %v1664_v0 = vmul.f32 %v4561_v32, %v1530_v3  ;;  %v853_v36 = vadd.f32 %v4556_v31, %v852_v52  ;;  %v1173_v35 = vadd.f32 %v4556_v31, %v1172_v44  ;;  %1091 = vmatmul.mubr.f32.gmra.mxu0 %v602_v46 }
 0x14d   : > { %v854_v40 = vpop.f32.mrf.mxu0  ;;  %v1174_v49 = vpop.f32.mrf.mxu1  ;;  %1095 = vmatprep.mubr.f32.mxu0 %v605_v60  ;;  %1411 = vmatmul.mubr.f32.gmra.mxu1 %v730_v42  ;;  %v481_v46 = vadd.f32 %v5182_v50, %v6735_v20  ;;  %v606_v42 = vmax.f32 %v350_v57, 0.0  ;;  %v355_v56 = vadd.f32 %v5177_v30, %v6733_v22  ;;  %v609_v57 = vmax.f32 %v353_v47, 0.0 }
 0x14e   : > { %v1467_v2 = vmax.f32 %v853_v36, 0.0  ;;  %v1531_v29 = vmax.f32 %v1173_v35, 0.0  ;;  %v1739_v3 = vsel %vm1723_vm0, %v1600_v39, 0.0  ;;  %1415 = vmatprep.mubr.f32.mxu1 %v733_v37  ;;  %v1931_v60 = vsel %vm1723_vm0, %v1664_v0, 0.0 }
 0x14f   : > { %v857_v1 = vpop.f32.mrf.mxu0  ;;  %v1177_v52 = vpop.f32.mrf.mxu1  ;;  %1740 = vadd.xlane.f32.xlu1 %v1739_v3  ;;  %1929 = vadd.xlane.f32.xlu0 %v1928_v55  ;;  %v734_v0 = vmax.f32 %v478_v58, 0.0  ;;  %v480_v40 = vadd.f32 %v5192_v54, %v6736_v19  ;;  %v483_v49 = vadd.f32 %v5182_v50, %v6733_v22  ;;  %v611_v47 = vmax.f32 %v355_v56, 0.0 }
 0x150   : > { %v1601_v44 = vmul.f32 %v4561_v32, %v1467_v2  ;;  %v1665_v37 = vmul.f32 %v4561_v32, %v1531_v29  ;;  %v858_v39 = vadd.f32 %v4556_v31, %v857_v1  ;;  %v1178_v36 = vadd.f32 %v4556_v31, %v1177_v52  ;;  %1096 = vmatmul.mubr.f32.gmra.mxu0 %v604_v34 }
 0x151   : > { %v859_v35 = vpop.f32.mrf.mxu0  ;;  %v1179_v55 = vpop.f32.mrf.mxu1  ;;  %1100 = vmatprep.mubr.f32.mxu0 %v607_v41  ;;  %1416 = vmatmul.mubr.f32.gmra.mxu1 %v732_v61  ;;  %v737_v1 = vmax.f32 %v481_v46, 0.0  ;;  %v608_v61 = vmax.f32 %v352_v48, 0.0  ;;  %v354_v58 = vadd.f32 %v5187_v38, %v6734_v21  ;;  %v357_v48 = vadd.f32 %v5177_v30, %v6731_v24 }
 0x152   : > { %v1468_v2 = vmax.f32 %v858_v39, 0.0  ;;  %v1532_v3 = vmax.f32 %v1178_v36, 0.0  ;;  %v1742_v29 = vsel %vm1723_vm0, %v1601_v44, 0.0  ;;  %1420 = vmatprep.mubr.f32.mxu1 %v735_v43  ;;  %v1934_v41 = vsel %vm1723_vm0, %v1665_v37, 0.0 }
 0x153   : > { %v862_v52 = vpop.f32.mrf.mxu0  ;;  %v1182_v34 = vpop.f32.mrf.mxu1  ;;  %1932 = vadd.xlane.f32.xlu1 %v1931_v60  ;;  %1743 = vadd.xlane.f32.xlu0 %v1742_v29  ;;  %v736_v60 = vmax.f32 %v480_v40, 0.0  ;;  %v739_v56 = vmax.f32 %v483_v49, 0.0  ;;  %v482_v37 = vadd.f32 %v5192_v54, %v6734_v21  ;;  %v356_v40 = vadd.f32 %v5187_v38, %v6732_v23 }
 0x154   : > { %v1602_v35 = vmul.f32 %v4561_v32, %v1468_v2  ;;  %v1666_v39 = vmul.f32 %v4561_v32, %v1532_v3  ;;  %v863_v36 = vadd.f32 %v4556_v31, %v862_v52  ;;  %v1183_v43 = vadd.f32 %v4556_v31, %v1182_v34  ;;  %1101 = vmatmul.mubr.f32.gmra.mxu0 %v606_v42 }
 0x155   : > { %v864_v46 = vpop.f32.mrf.mxu0  ;;  %v1184_v44 = vpop.f32.mrf.mxu1  ;;  %1105 = vmatprep.mubr.f32.mxu0 %v609_v57  ;;  %1421 = vmatmul.mubr.f32.gmra.mxu1 %v734_v0  ;;  %v485_v42 = vadd.f32 %v5182_v50, %v6731_v24  ;;  %v610_v0 = vmax.f32 %v354_v58, 0.0  ;;  %v359_v49 = vadd.f32 %v5177_v30, %v6729_v26  ;;  %v613_v58 = vmax.f32 %v357_v48, 0.0 }
 0x156   : > { %v1469_v55 = vmax.f32 %v863_v36, 0.0  ;;  %v1533_v2 = vmax.f32 %v1183_v43, 0.0  ;;  %v1745_v3 = vsel %vm1723_vm0, %v1602_v35, 0.0  ;;  %1425 = vmatprep.mubr.f32.mxu1 %v737_v1  ;;  %v1937_v57 = vsel %vm1723_vm0, %v1666_v39, 0.0 }
 0x157   : > { %v867_v29 = vpop.f32.mrf.mxu0  ;;  %v1187_v52 = vpop.f32.mrf.mxu1  ;;  %1746 = vadd.xlane.f32.xlu1 %v1745_v3  ;;  %1935 = vadd.xlane.f32.xlu0 %v1934_v41  ;;  %v738_v39 = vmax.f32 %v482_v37, 0.0  ;;  %v484_v46 = vadd.f32 %v5192_v54, %v6732_v23  ;;  %v487_v44 = vadd.f32 %v5182_v50, %v6729_v26  ;;  %v615_v48 = vmax.f32 %v359_v49, 0.0 }
 0x158   : > { %v1603_v34 = vmul.f32 %v4561_v32, %v1469_v55  ;;  %v1667_v1 = vmul.f32 %v4561_v32, %v1533_v2  ;;  %v868_v35 = vadd.f32 %v4556_v31, %v867_v29  ;;  %v1188_v36 = vadd.f32 %v4556_v31, %v1187_v52  ;;  %1106 = vmatmul.mubr.f32.gmra.mxu0 %v608_v61 }
 0x159   : > { %v869_v43 = vpop.f32.mrf.mxu0  ;;  %v1189_v41 = vpop.f32.mrf.mxu1  ;;  %1110 = vmatprep.mubr.f32.mxu0 %v611_v47  ;;  %1426 = vmatmul.mubr.f32.gmra.mxu1 %v736_v60  ;;  %v741_v29 = vmax.f32 %v485_v42, 0.0  ;;  %v612_v60 = vmax.f32 %v356_v40, 0.0  ;;  %v358_v37 = vadd.f32 %v5187_v38, %v6730_v25  ;;  %v361_v40 = vadd.f32 %v5177_v30, %v6727_v28 }
 0x15a   : > { %v1470_v55 = vmax.f32 %v868_v35, 0.0  ;;  %v1534_v3 = vmax.f32 %v1188_v36, 0.0  ;;  %v1748_v2 = vsel %vm1723_vm0, %v1603_v34, 0.0  ;;  %1430 = vmatprep.mubr.f32.mxu1 %v739_v56  ;;  %v1940_v47 = vsel %vm1723_vm0, %v1667_v1, 0.0 }
 0x15b   : > { %v872_v52 = vpop.f32.mrf.mxu0  ;;  %v1192_v61 = vpop.f32.mrf.mxu1  ;;  %1938 = vadd.xlane.f32.xlu1 %v1937_v57  ;;  %1749 = vadd.xlane.f32.xlu0 %v1748_v2  ;;  %v740_v57 = vmax.f32 %v484_v46, 0.0  ;;  %v743_v49 = vmax.f32 %v487_v44, 0.0  ;;  %v486_v1 = vadd.f32 %v5192_v54, %v6730_v25  ;;  %v360_v46 = vadd.f32 %v5187_v38, %v6728_v27 }
 0x15c   : > { %v1604_v43 = vmul.f32 %v4561_v32, %v1470_v55  ;;  %v1668_v35 = vmul.f32 %v4561_v32, %v1534_v3  ;;  %v873_v36 = vadd.f32 %v4556_v31, %v872_v52  ;;  %v1193_v56 = vadd.f32 %v4556_v31, %v1192_v61  ;;  %1111 = vmatmul.mubr.f32.gmra.mxu0 %v610_v0 }
 0x15d   : > { %v874_v42 = vpop.f32.mrf.mxu0  ;;  %v1194_v34 = vpop.f32.mrf.mxu1  ;;  %1115 = vmatprep.mubr.f32.mxu0 %v613_v58  ;;  %1431 = vmatmul.mubr.f32.gmra.mxu1 %v738_v39  ;;  %v489_v0 = vadd.f32 %v5182_v50, %v6727_v28  ;;  %v614_v39 = vmax.f32 %v358_v37, 0.0  ;;  %v363_v44 = vadd.f32 %v5177_v30, %v6786_v51  ;;  %v617_v37 = vmax.f32 %v361_v40, 0.0 }
 0x15e   : > { %v1471_v41 = vmax.f32 %v873_v36, 0.0  ;;  %v1535_v55 = vmax.f32 %v1193_v56, 0.0  ;;  %v1751_v3 = vsel %vm1723_vm0, %v1604_v43, 0.0  ;;  %1435 = vmatprep.mubr.f32.mxu1 %v741_v29  ;;  %v1943_v58 = vsel %vm1723_vm0, %v1668_v35, 0.0 }
 0x15f   : > { %v877_v2 = vpop.f32.mrf.mxu0  ;;  %v1197_v52 = vpop.f32.mrf.mxu1  ;;  %1752 = vadd.xlane.f32.xlu1 %v1751_v3  ;;  %1941 = vadd.xlane.f32.xlu0 %v1940_v47  ;;  %v742_v35 = vmax.f32 %v486_v1, 0.0  ;;  %v488_v42 = vadd.f32 %v5192_v54, %v6728_v27  ;;  %v491_v34 = vadd.f32 %v5182_v50, %v6786_v51  ;;  %v619_v40 = vmax.f32 %v363_v44, 0.0 }
 0x160   : > { %v1605_v61 = vmul.f32 %v4561_v32, %v1471_v41  ;;  %v1669_v29 = vmul.f32 %v4561_v32, %v1535_v55  ;;  %v878_v43 = vadd.f32 %v4556_v31, %v877_v2  ;;  %v1198_v36 = vadd.f32 %v4556_v31, %v1197_v52  ;;  %1116 = vmatmul.mubr.f32.gmra.mxu0 %v612_v60 }
 0x161   : > { %v879_v56 = vpop.f32.mrf.mxu0  ;;  %v1199_v47 = vpop.f32.mrf.mxu1  ;;  %1120 = vmatprep.mubr.f32.mxu0 %v615_v48  ;;  %1436 = vmatmul.mubr.f32.gmra.mxu1 %v740_v57  ;;  %v745_v2 = vmax.f32 %v489_v0, 0.0  ;;  %v616_v57 = vmax.f32 %v360_v46, 0.0  ;;  %v362_v1 = vadd.f32 %v5187_v38, %v6787_v45  ;;  %v490_v46 = vadd.f32 %v5192_v54, %v6787_v45 }
 0x162   : > { %v1472_v41 = vmax.f32 %v878_v43, 0.0  ;;  %v1536_v3 = vmax.f32 %v1198_v36, 0.0  ;;  %v1754_v55 = vsel %vm1723_vm0, %v1605_v61, 0.0  ;;  %1440 = vmatprep.mubr.f32.mxu1 %v743_v49  ;;  %v1946_v48 = vsel %vm1723_vm0, %v1669_v29, 0.0 }
 0x163   : > { %v882_v52 = vpop.f32.mrf.mxu0  ;;  %v1202_v60 = vpop.f32.mrf.mxu1  ;;  %1944 = vadd.xlane.f32.xlu1 %v1943_v58  ;;  %1755 = vadd.xlane.f32.xlu0 %v1754_v55  ;;  %v744_v58 = vmax.f32 %v488_v42, 0.0  ;;  %v747_v29 = vmax.f32 %v491_v34, 0.0  ;;  %v365_v44 = vadd.f32 %v5177_v30, %v6788_v59  ;;  %v364_v42 = vadd.f32 %v5187_v38, %v6789_v53 }
 0x164   : > { %v1606_v56 = vmul.f32 %v4561_v32, %v1472_v41  ;;  %v1670_v43 = vmul.f32 %v4561_v32, %v1536_v3  ;;  %v883_v36 = vadd.f32 %v4556_v31, %v882_v52  ;;  %v1203_v49 = vadd.f32 %v4556_v31, %v1202_v60  ;;  %1121 = vmatmul.mubr.f32.gmra.mxu0 %v614_v39 }
 0x165   : > { %v884_v0 = vpop.f32.mrf.mxu0  ;;  %v1204_v61 = vpop.f32.mrf.mxu1  ;;  %1125 = vmatprep.mubr.f32.mxu0 %v617_v37  ;;  %1441 = vmatmul.mubr.f32.gmra.mxu1 %v742_v35  ;;  %v493_v39 = vadd.f32 %v5182_v50, %v6788_v59  ;;  %v618_v35 = vmax.f32 %v362_v1, 0.0  ;;  %v492_v1 = vadd.f32 %v5192_v54, %v6789_v53 }
 0x166   : > { %v1473_v47 = vmax.f32 %v883_v36, 0.0  ;;  %v1537_v41 = vmax.f32 %v1203_v49, 0.0  ;;  %v1757_v3 = vsel %vm1723_vm0, %v1606_v56, 0.0  ;;  %1445 = vmatprep.mubr.f32.mxu1 %v745_v2  ;;  %v1949_v37 = vsel %vm1723_vm0, %v1670_v43, 0.0 }
 0x167   : > { %v887_v55 = vpop.f32.mrf.mxu0  ;;  %v1207_v52 = vpop.f32.mrf.mxu1  ;;  %1758 = vadd.xlane.f32.xlu1 %v1757_v3  ;;  %1947 = vadd.xlane.f32.xlu0 %v1946_v48  ;;  %v746_v48 = vmax.f32 %v490_v46, 0.0  ;;  %v621_v36 = vmax.f32 %v365_v44, 0.0  ;;  %v749_v0 = vmax.f32 %v493_v39, 0.0 }
 0x168   : > { %v1607_v30 = vmul.f32 %v4561_v32, %v1473_v47  ;;  %v1671_v34 = vmul.f32 %v4561_v32, %v1537_v41  ;;  %v888_v60 = vadd.f32 %v4556_v31, %v887_v55  ;;  %v1208_v2 = vadd.f32 %v4556_v31, %v1207_v52  ;;  %1126 = vmatmul.mubr.f32.gmra.mxu0 %v616_v57 }
 0x169   : > { %v889_v50 = vpop.f32.mrf.mxu0  ;;  %v1209_v56 = vpop.f32.mrf.mxu1  ;;  %1130 = vmatprep.mubr.f32.mxu0 %v619_v40  ;;  %1446 = vmatmul.mubr.f32.gmra.mxu1 %v744_v58  ;;  %v620_v41 = vmax.f32 %v364_v42, 0.0 }
 0x16a   : > { %v1474_v43 = vmax.f32 %v888_v60, 0.0  ;;  %v1538_v38 = vmax.f32 %v1208_v2, 0.0  ;;  %v1760_v49 = vsel %vm1723_vm0, %v1607_v30, 0.0  ;;  %1450 = vmatprep.mubr.f32.mxu1 %v747_v29  ;;  %v1952_v57 = vsel %vm1723_vm0, %v1671_v34, 0.0 }
 0x16b   : > { %v892_v61 = vpop.f32.mrf.mxu0  ;;  %v1212_v47 = vpop.f32.mrf.mxu1  ;;  %1950 = vadd.xlane.f32.xlu1 %v1949_v37  ;;  %1761 = vadd.xlane.f32.xlu0 %v1760_v49  ;;  %v748_v29 = vmax.f32 %v492_v1, 0.0 }
 0x16c   : > { %v1608_v40 = vmul.f32 %v4561_v32, %v1474_v43  ;;  %v1672_v58 = vmul.f32 %v4561_v32, %v1538_v38  ;;  %v893_v46 = vadd.f32 %v4556_v31, %v892_v61  ;;  %v1213_v54 = vadd.f32 %v4556_v31, %v1212_v47  ;;  %1131 = vmatmul.mubr.f32.gmra.mxu0 %v618_v35 }
 0x16d   : > { %v894_v44 = vpop.f32.mrf.mxu0  ;;  %v1214_v3 = vpop.f32.mrf.mxu1  ;;  %1451 = vmatmul.mubr.f32.gmra.mxu1 %v746_v48  ;;  %1135 = vmatprep.mubr.f32.mxu0 %v621_v36 }
 0x16e   : > { %v1475_v39 = vmax.f32 %v893_v46, 0.0  ;;  %v1539_v55 = vmax.f32 %v1213_v54, 0.0  ;;  %v1763_v52 = vsel %vm1723_vm0, %v1608_v40, 0.0  ;;  %1455 = vmatprep.mubr.f32.mxu1 %v749_v0  ;;  %v1955_v30 = vsel %vm1723_vm0, %v1672_v58, 0.0 }
 0x16f   : > { %v897_v37 = vpop.f32.mrf.mxu0  ;;  %v1217_v42 = vpop.f32.mrf.mxu1  ;;  %1764 = vadd.xlane.f32.xlu1 %v1763_v52  ;;  %1953 = vadd.xlane.f32.xlu0 %v1952_v57 }
 0x170   : > { %v1609_v34 = vmul.f32 %v4561_v32, %v1475_v39  ;;  %v1673_v35 = vmul.f32 %v4561_v32, %v1539_v55  ;;  %v898_v60 = vadd.f32 %v4556_v31, %v897_v37  ;;  %v1218_v2 = vadd.f32 %v4556_v31, %v1217_v42  ;;  %1136 = vmatmul.mubr.f32.gmra.mxu0 %v620_v41 }
 0x171   : > { %v899_v50 = vpop.f32.mrf.mxu0  ;;  %v1219_v56 = vpop.f32.mrf.mxu1  ;;  %1456 = vmatmul.mubr.f32.gmra.mxu1 %v748_v29 }
 0x172   : > { %v1476_v48 = vmax.f32 %v898_v60, 0.0  ;;  %v1540_v36 = vmax.f32 %v1218_v2, 0.0  ;;  %v1766_v1 = vsel %vm1723_vm0, %v1609_v34, 0.0  ;;  %v1958_v49 = vsel %vm1723_vm0, %v1673_v35, 0.0 }
 0x173   : > { %v1222_v43 = vpop.f32.mrf.mxu1  ;;  %1956 = vadd.xlane.f32.xlu1 %v1955_v30  ;;  %1767 = vadd.xlane.f32.xlu0 %v1766_v1  ;;  %v902_v38 = vpop.f32.mrf.mxu0 }
 0x174   : > { %v1610_v0 = vmul.f32 %v4561_v32, %v1476_v48  ;;  %v1674_v61 = vmul.f32 %v4561_v32, %v1540_v36  ;;  %v1223_v47 = vadd.f32 %v4556_v31, %v1222_v43  ;;  %v903_v57 = vadd.f32 %v4556_v31, %v902_v38 }
 0x175   : > { %v904_v41 = vpop.f32.mrf.mxu0  ;;  %v1224_v40 = vpop.f32.mrf.mxu1 }
 0x176   : > { %v1541_v58 = vmax.f32 %v1223_v47, 0.0  ;;  %v1477_v46 = vmax.f32 %v903_v57, 0.0  ;;  %v1769_v54 = vsel %vm1723_vm0, %v1610_v0, 0.0  ;;  %v1961_v29 = vsel %vm1723_vm0, %v1674_v61, 0.0 }
 0x177   : > { %v1227_v44 = vpop.f32.mrf.mxu1  ;;  %1770 = vadd.xlane.f32.xlu1 %v1769_v54  ;;  %1959 = vadd.xlane.f32.xlu0 %v1958_v49  ;;  %v907_v3 = vpop.f32.mrf.mxu0 }
 0x178   : > { %v1675_v39 = vmul.f32 %v4561_v32, %v1541_v58  ;;  %v1611_v55 = vmul.f32 %v4561_v32, %v1477_v46  ;;  %v1228_v52 = vadd.f32 %v4556_v31, %v1227_v44  ;;  %v908_v37 = vadd.f32 %v4556_v31, %v907_v3 }
 0x179   : > { %v909_v42 = vpop.f32.mrf.mxu0  ;;  %v1229_v30 = vpop.f32.mrf.mxu1 }
 0x17a   : > { %v1542_v34 = vmax.f32 %v1228_v52, 0.0  ;;  %v1478_v35 = vmax.f32 %v908_v37, 0.0  ;;  %v1772_v60 = vsel %vm1723_vm0, %v1611_v55, 0.0  ;;  %v1964_v56 = vsel %vm1723_vm0, %v1675_v39, 0.0 }
 0x17b   : > { %v1232_v2 = vpop.f32.mrf.mxu1  ;;  %1962 = vadd.xlane.f32.xlu1 %v1961_v29  ;;  %v912_v50 = vpop.f32.mrf.mxu0  ;;  %1773 = vadd.xlane.f32.xlu0 %v1772_v60 }
 0x17c   : > { %v1676_v48 = vmul.f32 %v4561_v32, %v1542_v34  ;;  %v1612_v36 = vmul.f32 %v4561_v32, %v1478_v35  ;;  %v1233_v1 = vadd.f32 %v4556_v31, %v1232_v2  ;;  %v913_v43 = vadd.f32 %v4556_v31, %v912_v50 }
 0x17d   : > { %v914_v38 = vpop.f32.mrf.mxu0  ;;  %v1234_v49 = vpop.f32.mrf.mxu1 }
 0x17e   : > { %v1543_v0 = vmax.f32 %v1233_v1, 0.0  ;;  %v1479_v61 = vmax.f32 %v913_v43, 0.0  ;;  %v1775_v47 = vsel %vm1723_vm0, %v1612_v36, 0.0  ;;  %v1967_v40 = vsel %vm1723_vm0, %v1676_v48, 0.0 }
 0x17f   : > { %v917_v57 = vpop.f32.mrf.mxu0  ;;  %v1237_v41 = vpop.f32.mrf.mxu1  ;;  %1776 = vadd.xlane.f32.xlu1 %v1775_v47  ;;  %1965 = vadd.xlane.f32.xlu0 %v1964_v56 }
 0x180   : > { %v1677_v58 = vmul.f32 %v4561_v32, %v1543_v0  ;;  %v1613_v46 = vmul.f32 %v4561_v32, %v1479_v61  ;;  %v918_v54 = vadd.f32 %v4556_v31, %v917_v57  ;;  %v1238_v44 = vadd.f32 %v4556_v31, %v1237_v41 }
 0x181   : > { %v919_v3 = vpop.f32.mrf.mxu0  ;;  %v1239_v29 = vpop.f32.mrf.mxu1 }
 0x182   : > { %v1480_v39 = vmax.f32 %v918_v54, 0.0  ;;  %v1544_v55 = vmax.f32 %v1238_v44, 0.0  ;;  %v1778_v52 = vsel %vm1723_vm0, %v1613_v46, 0.0  ;;  %v1970_v30 = vsel %vm1723_vm0, %v1677_v58, 0.0 }
 0x183   : > { %v922_v37 = vpop.f32.mrf.mxu0  ;;  %v1242_v42 = vpop.f32.mrf.mxu1  ;;  %1968 = vadd.xlane.f32.xlu1 %v1967_v40  ;;  %1779 = vadd.xlane.f32.xlu0 %v1778_v52 }
 0x184   : > { %v1614_v34 = vmul.f32 %v4561_v32, %v1480_v39  ;;  %v1678_v35 = vmul.f32 %v4561_v32, %v1544_v55  ;;  %v923_v60 = vadd.f32 %v4556_v31, %v922_v37  ;;  %v1243_v2 = vadd.f32 %v4556_v31, %v1242_v42 }
 0x185   : > { %v924_v50 = vpop.f32.mrf.mxu0  ;;  %v1244_v56 = vpop.f32.mrf.mxu1 }
 0x186   : > { %v1481_v48 = vmax.f32 %v923_v60, 0.0  ;;  %v1545_v36 = vmax.f32 %v1243_v2, 0.0  ;;  %v1781_v1 = vsel %vm1723_vm0, %v1614_v34, 0.0  ;;  %v1973_v49 = vsel %vm1723_vm0, %v1678_v35, 0.0 }
 0x187   : > { %v927_v43 = vpop.f32.mrf.mxu0  ;;  %v1247_v38 = vpop.f32.mrf.mxu1  ;;  %1782 = vadd.xlane.f32.xlu1 %v1781_v1  ;;  %1971 = vadd.xlane.f32.xlu0 %v1970_v30 }
 0x188   : > { %v1615_v0 = vmul.f32 %v4561_v32, %v1481_v48  ;;  %v1679_v61 = vmul.f32 %v4561_v32, %v1545_v36  ;;  %v928_v47 = vadd.f32 %v4556_v31, %v927_v43  ;;  %v1248_v57 = vadd.f32 %v4556_v31, %v1247_v38 }
 0x189   : > { %v929_v41 = vpop.f32.mrf.mxu0  ;;  %v1249_v40 = vpop.f32.mrf.mxu1 }
 0x18a   : > { %v1482_v58 = vmax.f32 %v928_v47, 0.0  ;;  %v1546_v46 = vmax.f32 %v1248_v57, 0.0  ;;  %v1784_v54 = vsel %vm1723_vm0, %v1615_v0, 0.0  ;;  %v1976_v29 = vsel %vm1723_vm0, %v1679_v61, 0.0 }
 0x18b   : > { %v932_v44 = vpop.f32.mrf.mxu0  ;;  %v1252_v3 = vpop.f32.mrf.mxu1  ;;  %1974 = vadd.xlane.f32.xlu1 %v1973_v49  ;;  %1785 = vadd.xlane.f32.xlu0 %v1784_v54 }
 0x18c   : > { %v1616_v39 = vmul.f32 %v4561_v32, %v1482_v58  ;;  %v1680_v55 = vmul.f32 %v4561_v32, %v1546_v46  ;;  %v933_v52 = vadd.f32 %v4556_v31, %v932_v44  ;;  %v1253_v37 = vadd.f32 %v4556_v31, %v1252_v3 }
 0x18d   : > { %v934_v42 = vpop.f32.mrf.mxu0  ;;  %v1254_v30 = vpop.f32.mrf.mxu1 }
 0x18e   : > { %v1483_v34 = vmax.f32 %v933_v52, 0.0  ;;  %v1547_v35 = vmax.f32 %v1253_v37, 0.0  ;;  %v1787_v60 = vsel %vm1723_vm0, %v1616_v39, 0.0  ;;  %v1979_v56 = vsel %vm1723_vm0, %v1680_v55, 0.0 }
 0x18f   : > { %v937_v2 = vpop.f32.mrf.mxu0  ;;  %v1257_v50 = vpop.f32.mrf.mxu1  ;;  %1788 = vadd.xlane.f32.xlu1 %v1787_v60  ;;  %1977 = vadd.xlane.f32.xlu0 %v1976_v29 }
 0x190   : > { %v1617_v48 = vmul.f32 %v4561_v32, %v1483_v34  ;;  %v1681_v36 = vmul.f32 %v4561_v32, %v1547_v35  ;;  %v938_v1 = vadd.f32 %v4556_v31, %v937_v2  ;;  %v1258_v43 = vadd.f32 %v4556_v31, %v1257_v50 }
 0x191   : > { %v939_v38 = vpop.f32.mrf.mxu0  ;;  %v1259_v49 = vpop.f32.mrf.mxu1 }
 0x192   : > { %v1484_v0 = vmax.f32 %v938_v1, 0.0  ;;  %v1548_v61 = vmax.f32 %v1258_v43, 0.0  ;;  %v1790_v47 = vsel %vm1723_vm0, %v1617_v48, 0.0  ;;  %v1982_v40 = vsel %vm1723_vm0, %v1681_v36, 0.0 }
 0x193   : > { %v942_v57 = vpop.f32.mrf.mxu0  ;;  %v1262_v41 = vpop.f32.mrf.mxu1  ;;  %1980 = vadd.xlane.f32.xlu1 %v1979_v56  ;;  %1791 = vadd.xlane.f32.xlu0 %v1790_v47 }
 0x194   : > { %v1618_v58 = vmul.f32 %v4561_v32, %v1484_v0  ;;  %v1682_v46 = vmul.f32 %v4561_v32, %v1548_v61  ;;  %v943_v54 = vadd.f32 %v4556_v31, %v942_v57  ;;  %v1263_v44 = vadd.f32 %v4556_v31, %v1262_v41 }
 0x195   : > { %v944_v3 = vpop.f32.mrf.mxu0  ;;  %v1264_v29 = vpop.f32.mrf.mxu1 }
 0x196   : > { %v1485_v39 = vmax.f32 %v943_v54, 0.0  ;;  %v1549_v55 = vmax.f32 %v1263_v44, 0.0  ;;  %v1793_v52 = vsel %vm1723_vm0, %v1618_v58, 0.0  ;;  %v1985_v30 = vsel %vm1723_vm0, %v1682_v46, 0.0 }
 0x197   : > { %v947_v37 = vpop.f32.mrf.mxu0  ;;  %v1267_v42 = vpop.f32.mrf.mxu1  ;;  %1794 = vadd.xlane.f32.xlu1 %v1793_v52  ;;  %1983 = vadd.xlane.f32.xlu0 %v1982_v40 }
 0x198   : > { %v1619_v34 = vmul.f32 %v4561_v32, %v1485_v39  ;;  %v1683_v35 = vmul.f32 %v4561_v32, %v1549_v55  ;;  %v948_v60 = vadd.f32 %v4556_v31, %v947_v37  ;;  %v1268_v2 = vadd.f32 %v4556_v31, %v1267_v42 }
 0x199   : > { %v949_v50 = vpop.f32.mrf.mxu0  ;;  %v1269_v56 = vpop.f32.mrf.mxu1 }
 0x19a   : > { %v1486_v48 = vmax.f32 %v948_v60, 0.0  ;;  %v1550_v36 = vmax.f32 %v1268_v2, 0.0  ;;  %v1796_v1 = vsel %vm1723_vm0, %v1619_v34, 0.0  ;;  %v1988_v49 = vsel %vm1723_vm0, %v1683_v35, 0.0 }
 0x19b   : > { %v952_v43 = vpop.f32.mrf.mxu0  ;;  %v1272_v38 = vpop.f32.mrf.mxu1  ;;  %1986 = vadd.xlane.f32.xlu1 %v1985_v30  ;;  %1797 = vadd.xlane.f32.xlu0 %v1796_v1 }
 0x19c   : > { %v1620_v0 = vmul.f32 %v4561_v32, %v1486_v48  ;;  %v1684_v61 = vmul.f32 %v4561_v32, %v1550_v36  ;;  %v953_v47 = vadd.f32 %v4556_v31, %v952_v43  ;;  %v1273_v57 = vadd.f32 %v4556_v31, %v1272_v38 }
 0x19d   : > { %v954_v41 = vpop.f32.mrf.mxu0  ;;  %v1274_v40 = vpop.f32.mrf.mxu1 }
 0x19e   : > { %v1487_v58 = vmax.f32 %v953_v47, 0.0  ;;  %v1551_v46 = vmax.f32 %v1273_v57, 0.0  ;;  %v1799_v54 = vsel %vm1723_vm0, %v1620_v0, 0.0  ;;  %v1991_v29 = vsel %vm1723_vm0, %v1684_v61, 0.0 }
 0x19f   : > { %v957_v44 = vpop.f32.mrf.mxu0  ;;  %v1277_v3 = vpop.f32.mrf.mxu1  ;;  %1800 = vadd.xlane.f32.xlu1 %v1799_v54  ;;  %1989 = vadd.xlane.f32.xlu0 %v1988_v49 }
 0x1a0   : > { %v1621_v39 = vmul.f32 %v4561_v32, %v1487_v58  ;;  %v1685_v55 = vmul.f32 %v4561_v32, %v1551_v46  ;;  %v958_v52 = vadd.f32 %v4556_v31, %v957_v44  ;;  %v1278_v37 = vadd.f32 %v4556_v31, %v1277_v3 }
 0x1a1   : > { %v959_v42 = vpop.f32.mrf.mxu0  ;;  %v1279_v30 = vpop.f32.mrf.mxu1 }
 0x1a2   : > { %v1488_v34 = vmax.f32 %v958_v52, 0.0  ;;  %v1552_v35 = vmax.f32 %v1278_v37, 0.0  ;;  %v1802_v60 = vsel %vm1723_vm0, %v1621_v39, 0.0  ;;  %v1994_v56 = vsel %vm1723_vm0, %v1685_v55, 0.0 }
 0x1a3   : > { %v962_v2 = vpop.f32.mrf.mxu0  ;;  %1992 = vadd.xlane.f32.xlu1 %v1991_v29  ;;  %1803 = vadd.xlane.f32.xlu0 %v1802_v60  ;;  %v1282_v50 = vpop.f32.mrf.mxu1 }
 0x1a4   : > { %v1622_v48 = vmul.f32 %v4561_v32, %v1488_v34  ;;  %v1686_v36 = vmul.f32 %v4561_v32, %v1552_v35  ;;  %v963_v1 = vadd.f32 %v4556_v31, %v962_v2  ;;  %v1283_v43 = vadd.f32 %v4556_v31, %v1282_v50 }
 0x1a5   : > { %v964_v38 = vpop.f32.mrf.mxu0  ;;  %v1284_v49 = vpop.f32.mrf.mxu1 }
 0x1a6   : > { %v1489_v0 = vmax.f32 %v963_v1, 0.0  ;;  %v1553_v61 = vmax.f32 %v1283_v43, 0.0  ;;  %v1997_v47 = vsel %vm1723_vm0, %v1686_v36, 0.0  ;;  %v1805_v40 = vsel %vm1723_vm0, %v1622_v48, 0.0 }
 0x1a7   : > { %v967_v57 = vpop.f32.mrf.mxu0  ;;  %1995 = vadd.xlane.f32.xlu1 %v1994_v56  ;;  %1998 = vadd.xlane.f32.xlu0 %v1997_v47  ;;  %v1287_v41 = vpop.f32.mrf.mxu1 }
 0x1a8   : > { %v1623_v58 = vmul.f32 %v4561_v32, %v1489_v0  ;;  %v1687_v46 = vmul.f32 %v4561_v32, %v1553_v61  ;;  %v968_v54 = vadd.f32 %v4556_v31, %v967_v57  ;;  %v1288_v44 = vadd.f32 %v4556_v31, %v1287_v41 }
 0x1a9   : > { %v969_v3 = vpop.f32.mrf.mxu0  ;;  %v1289_v29 = vpop.f32.mrf.mxu1 }
 0x1aa   : > { %v1490_v39 = vmax.f32 %v968_v54, 0.0  ;;  %v1808_v55 = vsel %vm1723_vm0, %v1623_v58, 0.0  ;;  %v1554_v37 = vmax.f32 %v1288_v44, 0.0  ;;  %v2000_v60 = vsel %vm1723_vm0, %v1687_v46, 0.0 }
 0x1ab   : > { %v972_v52 = vpop.f32.mrf.mxu0  ;;  %1806 = vadd.xlane.f32.xlu1 %v1805_v40  ;;  %1809 = vadd.xlane.f32.xlu0 %v1808_v55  ;;  %v1292_v42 = vpop.f32.mrf.mxu1 }
 0x1ac   : > { %v1624_v30 = vmul.f32 %v4561_v32, %v1490_v39  ;;  %v973_v34 = vadd.f32 %v4556_v31, %v972_v52  ;;  %v1293_v35 = vadd.f32 %v4556_v31, %v1292_v42  ;;  %v1688_v36 = vmul.f32 %v4561_v32, %v1554_v37 }
 0x1ad   : > { %v974_v2 = vpop.f32.mrf.mxu0  ;;  %v1294_v50 = vpop.f32.mrf.mxu1 }
 0x1ae   : > { %v1491_v56 = vmax.f32 %v973_v34, 0.0  ;;  %v1555_v48 = vmax.f32 %v1293_v35, 0.0  ;;  %v1811_v38 = vsel %vm1723_vm0, %v1624_v30, 0.0  ;;  %v2003_v3 = vsel %vm1723_vm0, %v1688_v36, 0.0 }
 0x1af   : > { %v977_v1 = vpop.f32.mrf.mxu0  ;;  %2001 = vadd.xlane.f32.xlu1 %v2000_v60  ;;  %v1297_v43 = vpop.f32.mrf.mxu1  ;;  %v4193_v35 = vmov 839922192   ;;  %v4194_v36 = vmov 1985246804  }
 0x1b0   : > { %v1625_v49 = vmul.f32 %v4561_v32, %v1491_v56  ;;  %v978_v0 = vadd.f32 %v4556_v31, %v977_v1  ;;  %v1689_v61 = vmul.f32 %v4561_v32, %v1555_v48  ;;  %v1298_v47 = vadd.f32 %v4556_v31, %v1297_v43 }
 0x1b1   : > { %v979_v57 = vpop.f32.mrf.mxu0  ;;  %v1299_v41 = vpop.f32.mrf.mxu1  ;;  %v2374_v60 = vunpack.c.l.s4 %v4193_v35  ;;  %v2381_v1 = vunpack.c.l.s4 %v4194_v36 }
 0x1b2   : > { %v1492_v40 = vmax.f32 %v978_v0, 0.0  ;;  %v1814_v58 = vsel %vm1723_vm0, %v1625_v49, 0.0  ;;  %v1556_v54 = vmax.f32 %v1298_v47, 0.0  ;;  %v2006_v52 = vsel %vm1723_vm0, %v1689_v61, 0.0 }
 0x1b3   : > { %v982_v46 = vpop.f32.mrf.mxu0  ;;  %1812 = vadd.xlane.f32.xlu1 %v1811_v38  ;;  %1815 = vadd.xlane.f32.xlu0 %v1814_v58  ;;  %v1302_v44 = vpop.f32.mrf.mxu1  ;;  %v6790_v57 = vlaneseq }
 0x1b4   : > { %v1626_v29 = vmul.f32 %v4561_v32, %v1492_v40  ;;  %v983_v39 = vadd.f32 %v4556_v31, %v982_v46  ;;  %v1303_v55 = vadd.f32 %v4556_v31, %v1302_v44  ;;  %v1690_v2 = vmul.f32 %v4561_v32, %v1556_v54 }
 0x1b5   : > { %v984_v37 = vpop.f32.mrf.mxu0  ;;  %v1304_v42 = vpop.f32.mrf.mxu1  ;;  %v5520_v41 = vand.u32 127, %v6790_v57  ;;  %v2375_v46 = vunpack.c.0.s8 %v2374_v60 }
 0x1b6   : > { %v1493_v30 = vmax.f32 %v983_v39, 0.0  ;;  %v1557_v34 = vmax.f32 %v1303_v55, 0.0  ;;  %v1817_v48 = vsel %vm1723_vm0, %v1626_v29, 0.0  ;;  %v2009_v29 = vsel %vm1723_vm0, %v1690_v2, 0.0 }
 0x1b7   : > { %v987_v50 = vpop.f32.mrf.mxu0  ;;  %2004 = vadd.xlane.f32.xlu1 %v2003_v3  ;;  %2007 = vadd.xlane.f32.xlu0 %v2006_v52  ;;  %v1307_v56 = vpop.f32.mrf.mxu1  ;;  %v2382_v39 = vunpack.c.0.s8 %v2381_v1  ;;  %v3403_v35 = vadd.s32 4294967288, %v5520_v41  ;;  %v3410_v60 = vadd.s32 4294967280, %v5520_v41  ;;  %v5533_v2 = vsub.s32 %v2375_v46, %v4654_v33 }
 0x1b8   : > { %v1627_v43 = vmul.f32 %v4561_v32, %v1493_v30  ;;  %v988_v38 = vadd.f32 %v4556_v31, %v987_v50  ;;  %v1691_v49 = vmul.f32 %v4561_v32, %v1557_v34  ;;  %v1308_v0 = vadd.f32 %v4556_v31, %v1307_v56 }
 0x1b9   : > { %v989_v61 = vpop.f32.mrf.mxu0  ;;  %v1309_v47 = vpop.f32.mrf.mxu1 }
 0x1ba   : > { %v1494_v40 = vmax.f32 %v988_v38, 0.0  ;;  %v1820_v58 = vsel %vm1723_vm0, %v1627_v43, 0.0  ;;  %v1558_v44 = vmax.f32 %v1308_v0, 0.0  ;;  %v2012_v42 = vsel %vm1723_vm0, %v1691_v49, 0.0 }
 0x1bb   : > { %v992_v54 = vpop.f32.mrf.mxu0  ;;  %1818 = vadd.xlane.f32.xlu1 %v1817_v48  ;;  %1821 = vadd.xlane.f32.xlu0 %v1820_v58  ;;  %v1312_v3 = vpop.f32.mrf.mxu1  ;;  %v5538_v49 = vsub.s32 %v2382_v39, %v4654_v33  ;;  %v5542_v0 = vsub.s32 %v5520_v41, %v4654_v33 }
 0x1bc   : > { %v1628_v55 = vmul.f32 %v4561_v32, %v1494_v40  ;;  %v993_v52 = vadd.f32 %v4556_v31, %v992_v54  ;;  %v1313_v37 = vadd.f32 %v4556_v31, %v1312_v3  ;;  %v5530_v48 = vpop.permute.xlu0 %2114  ;;  %v1692_v36 = vmul.f32 %v4561_v32, %v1558_v44 }
 0x1bd   : > { %v994_v30 = vpop.f32.mrf.mxu0  ;;  %v1314_v34 = vpop.f32.mrf.mxu1  ;;  %v5549_v54 = vsub.s32 %v3403_v35, %v4654_v33  ;;  %v5552_v44 = vsub.s32 %v3410_v60, %v4654_v33  ;;  %v3417_v3 = vadd.s32 4294967272, %v5520_v41  ;;  %v3445_v60 = vadd.s32 4294967240, %v5520_v41 }
 0x1be   : > { %v1495_v50 = vmax.f32 %v993_v52, 0.0  ;;  %v1559_v56 = vmax.f32 %v1313_v37, 0.0  ;;  %v1823_v38 = vsel %vm1723_vm0, %v1628_v55, 0.0  ;;  %v3431_v52 = vadd.s32 4294967256, %v5520_v41 }
 0x1bf   : > { %v997_v1 = vpop.f32.mrf.mxu0  ;;  %2010 = vadd.xlane.f32.xlu1 %v2009_v29  ;;  %2013 = vadd.xlane.f32.xlu0 %v2012_v42  ;;  %v1317_v43 = vpop.f32.mrf.mxu1  ;;  %6791 = vst [vmem:[#allocation68_spill] sm:$0xff] %v5549_v54  ;;  %6792 = vst [vmem:[#allocation69_spill] sm:$0xff] %v5552_v44  ;;  %v3424_v29 = vadd.s32 4294967264, %v5520_v41  ;;  %v3438_v37 = vadd.s32 4294967248, %v5520_v41  ;;  %v2015_v35 = vsel %vm1723_vm0, %v1692_v36, 0.0  ;;  %v5583_v4 = vsub.s32 %v3445_v60, %v4654_v33 }
 0x1c0   : > { %v1629_v61 = vmul.f32 %v4561_v32, %v1495_v50  ;;  %v998_v47 = vadd.f32 %v4556_v31, %v997_v1  ;;  %v1693_v57 = vmul.f32 %v4561_v32, %v1559_v56  ;;  %v1318_v40 = vadd.f32 %v4556_v31, %v1317_v43 }
 0x1c1   : > { %v999_v58 = vpop.f32.mrf.mxu0  ;;  %v1319_v46 = vpop.f32.mrf.mxu1  ;;  %v3452_v50 = vadd.s32 4294967232, %v5520_v41  ;;  %v5570_v36 = vsub.s32 %v3424_v29, %v4654_v33 }
 0x1c2   : > { %v1496_v39 = vmax.f32 %v998_v47, 0.0  ;;  %v1826_v55 = vsel %vm1723_vm0, %v1629_v61, 0.0  ;;  %v1560_v30 = vmax.f32 %v1318_v40, 0.0  ;;  %v2018_v47 = vsel %vm1723_vm0, %v1693_v57, 0.0 }
 0x1c3   : > { %v1002_v42 = vpop.f32.mrf.mxu0  ;;  %1824 = vadd.xlane.f32.xlu1 %v1823_v38  ;;  %1827 = vadd.xlane.f32.xlu0 %v1826_v55  ;;  %v1322_v34 = vpop.f32.mrf.mxu1  ;;  %v5567_v38 = vsub.s32 %v3417_v3, %v4654_v33  ;;  %v3459_v46 = vadd.s32 4294967224, %v5520_v41  ;;  %v3466_v55 = vadd.s32 4294967216, %v5520_v41  ;;  %v3473_v57 = vadd.s32 4294967208, %v5520_v41 }
 0x1c4   : > { %v1630_v56 = vmul.f32 %v4561_v32, %v1496_v39  ;;  %v1003_v1 = vadd.f32 %v4556_v31, %v1002_v42  ;;  %v1726_v43 = vpop.xlane.xlu0 %1725  ;;  %v1323_v61 = vadd.f32 %v4556_v31, %v1322_v34  ;;  %v5575_v42 = vsub.s32 %v3431_v52, %v4654_v33 }
 0x1c5   : > { %v1004_v58 = vpop.f32.mrf.mxu0  ;;  %v1324_v40 = vpop.f32.mrf.mxu1  ;;  %6793 = vst [vmem:[#allocation70_spill] sm:$0xff] %v5567_v38  ;;  %v5578_v34 = vsub.s32 %v3438_v37, %v4654_v33  ;;  %v5595_v8 = vsub.s32 %v3459_v46, %v4654_v33  ;;  %v3494_v46 = vadd.s32 4294967184, %v5520_v41 }
 0x1c6   : > { %v1497_v39 = vmax.f32 %v1003_v1, 0.0  ;;  %6794 = vst [vmem:[#allocation71_spill] sm:$0xff] %v5575_v42  ;;  %v1694_v58 = vmul.f32 %v4561_v32, %v1560_v30  ;;  %v1561_v40 = vmax.f32 %v1323_v61, 0.0  ;;  %v5586_v1 = vsub.s32 %v3452_v50, %v4654_v33 }
 0x1c7   : > { %v1007_v3 = vpop.f32.mrf.mxu0  ;;  %2016 = vadd.xlane.f32.xlu1 %v2015_v35  ;;  %2019 = vadd.xlane.f32.xlu0 %v2018_v47  ;;  %v1327_v29 = vpop.f32.mrf.mxu1  ;;  %v1829_v30 = vsel %vm1723_vm0, %v1630_v56, 0.0  ;;  %v5598_v50 = vsub.s32 %v3466_v55, %v4654_v33  ;;  %v3487_v56 = vadd.s32 4294967192, %v5520_v41  ;;  %v3501_v55 = vadd.s32 4294967176, %v5520_v41 }
 0x1c8   : > { %v1631_v52 = vmul.f32 %v4561_v32, %v1497_v39  ;;  %v1008_v37 = vadd.f32 %v4556_v31, %v1007_v3  ;;  %v1921_v5 = vpop.xlane.xlu1 %1920  ;;  %v1918_v6 = vpop.xlane.xlu0 %1917  ;;  %v1328_v7 = vadd.f32 %v4556_v31, %v1327_v29  ;;  %v5602_v3 = vsub.s32 %v3473_v57, %v4654_v33 }
 0x1c9   : > { %v2182_v35 = vadd.f32 %v5530_v48, %v1921_v5  ;;  %v2181_v61 = vadd.f32 %v5530_v48, %v1918_v6  ;;  %v1009_v47 = vpop.f32.mrf.mxu0  ;;  %v1329_v60 = vpop.f32.mrf.mxu1  ;;  %v3480_v29 = vadd.s32 4294967200, %v5520_v41  ;;  %v2021_v12 = vsel %vm1723_vm0, %v1694_v58, 0.0 }
 0x1ca   : > { %v1832_v39 = vsel %vm1723_vm0, %v1631_v52, 0.0  ;;  %v1498_v5 = vmax.f32 %v1008_v37, 0.0  ;;  %v1695_v60 = vmul.f32 %v4561_v32, %v1561_v40  ;;  %v1562_v57 = vmax.f32 %v1328_v7, 0.0 }
 0x1cb   : > { %v2277_v9 = vpack.c.bf16 %v2182_v35, %v2181_v61  ;;  %v1012_v6 = vpop.f32.mrf.mxu0  ;;  %1830 = vadd.xlane.f32.xlu1 %v1829_v30  ;;  %1833 = vadd.xlane.f32.xlu0 %v1832_v39  ;;  %v1332_v47 = vpop.f32.mrf.mxu1  ;;  %v2117_v37 = vadd.f32 %v5530_v48, %v1726_v43  ;;  %v5620_v7 = vsub.s32 %v3487_v56, %v4654_v33 }
 0x1cc   : > { %v1013_v52 = vadd.f32 %v4556_v31, %v1012_v6  ;;  %v1732_v10 = vpop.xlane.xlu1 %1731  ;;  %v1729_v11 = vpop.xlane.xlu0 %1728  ;;  %v1333_v40 = vadd.f32 %v4556_v31, %v1332_v47  ;;  %v5617_v6 = vsub.s32 %v3480_v29, %v4654_v33  ;;  %v1632_v58 = vmul.f32 %v4561_v32, %v1498_v5 }
 0x1cd   : > { %v2827_v35 = vrot.slane %v2277_v9, %v5533_v2  ;;  %v2834_v30 = vrot.slane %v2277_v9, %v5538_v49  ;;  %v2118_v61 = vadd.f32 %v5530_v48, %v1729_v11  ;;  %v1014_v39 = vpop.f32.mrf.mxu0  ;;  %v1334_v13 = vpop.f32.mrf.mxu1  ;;  %v5624_v11 = vsub.s32 %v3494_v46, %v4654_v33 }
 0x1ce   : > { %v1499_v41 = vmax.f32 %v1013_v52, 0.0  ;;  %v5627_v13 = vsub.s32 %v3501_v55, %v4654_v33  ;;  %v1696_v29 = vmul.f32 %v4561_v32, %v1562_v57  ;;  %v2024_v5 = vsel %vm1723_vm0, %v1695_v60, 0.0 }
 0x1cf   : > { %v2245_v43 = vpack.c.bf16 %v2118_v61, %v2117_v37  ;;  %v1017_v14 = vpop.f32.mrf.mxu0  ;;  %2022 = vadd.xlane.f32.xlu1 %v2021_v12  ;;  %v1337_v9 = vpop.f32.mrf.mxu1  ;;  %v3333_v37 = vunpack.c.l.b16 %v2827_v35  ;;  %v3334_v61 = vunpack.c.l.b16 %v2834_v30  ;;  %v2119_v33 = vadd.f32 %v5530_v48, %v1732_v10 }
 0x1d0   : > { %v1633_v47 = vmul.f32 %v4561_v32, %v1499_v41  ;;  %v1018_v56 = vadd.f32 %v4556_v31, %v1017_v14  ;;  %v1735_v52 = vpop.xlane.xlu1 %1734  ;;  %v1924_v39 = vpop.xlane.xlu0 %1923  ;;  %v1563_v55 = vmax.f32 %v1333_v40, 0.0  ;;  %v1338_v57 = vadd.f32 %v4556_v31, %v1337_v9 }
 0x1d1   : > { %v2379_v12 = vrot.slane %v2245_v43, %v5533_v2  ;;  %v2386_v46 = vrot.slane %v2245_v43, %v5538_v49  ;;  %v1019_v15 = vpop.f32.mrf.mxu0  ;;  %v1339_v16 = vpop.f32.mrf.mxu1  ;;  %v2120_v41 = vadd.f32 %v5530_v48, %v1735_v52  ;;  %v1835_v30 = vsel %vm1723_vm0, %v1632_v58, 0.0 }
 0x1d2   : > { %v1838_v60 = vsel %vm1723_vm0, %v1633_v47, 0.0  ;;  %v1500_v19 = vmax.f32 %v1018_v56, 0.0  ;;  %v2027_v40 = vsel %vm1723_vm0, %v1696_v29, 0.0  ;;  %v3748_v9 = vrot.slane %v3333_v37, %v5542_v0 }
 0x1d3   : > { %v3269_v14 = vunpack.c.l.b16 %v2379_v12  ;;  %v3270_v17 = vunpack.c.l.b16 %v2386_v46  ;;  %v1022_v18 = vpop.f32.mrf.mxu0  ;;  %2025 = vadd.xlane.f32.xlu1 %v2024_v5  ;;  %v1342_v35 = vpop.f32.mrf.mxu1  ;;  %v2246_v43 = vpack.c.bf16 %v2120_v41, %v2119_v33  ;;  %1839 = vadd.xlane.f32.xlu0 %v1838_v60  ;;  %v3752_v52 = vrot.slane %v3334_v61, %v5549_v54 }
 0x1d4   : > { %v1023_v15 = vadd.f32 %v4556_v31, %v1022_v18  ;;  %v1927_v10 = vpop.xlane.xlu1 %1926  ;;  %v1738_v16 = vpop.xlane.xlu0 %1737  ;;  %v2183_v5 = vadd.f32 %v5530_v48, %v1924_v39  ;;  %v1564_v33 = vmax.f32 %v1338_v57, 0.0  ;;  %v1697_v37 = vmul.f32 %v4561_v32, %v1563_v55 }
 0x1d5   : > { %v2184_v47 = vadd.f32 %v5530_v48, %v1927_v10  ;;  %v1024_v12 = vpop.f32.mrf.mxu0  ;;  %v1344_v58 = vpop.f32.mrf.mxu1  ;;  %v2393_v56 = vrot.slane %v2246_v43, %v5533_v2  ;;  %v2400_v18 = vrot.slane %v2246_v43, %v5538_v49  ;;  %v3402_v41 = vrot.slane %v3269_v14, %v5542_v0 }
 0x1d6   : > { %v1501_v46 = vmax.f32 %v1023_v15, 0.0  ;;  %v3407_v29 = vrot.slane %v3270_v17, %v5549_v54  ;;  %v1634_v10 = vmul.f32 %v4561_v32, %v1500_v19  ;;  %v1343_v43 = vadd.f32 %v4556_v31, %v1342_v35 }
 0x1d7   : > { %v2278_v61 = vpack.c.bf16 %v2184_v47, %v2183_v5  ;;  %v1027_v60 = vpop.f32.mrf.mxu0  ;;  %1836 = vadd.xlane.f32.xlu1 %v1835_v30  ;;  %v1347_v39 = vpop.f32.mrf.mxu1  ;;  %v3271_v12 = vunpack.c.l.b16 %v2393_v56  ;;  %v2121_v55 = vadd.f32 %v5530_v48, %v1738_v16  ;;  %v3753_v19 = vsel %vm3408_vm1, %v3752_v52, %v3748_v9 }
 0x1d8   : > { %v1028_v58 = vadd.f32 %v4556_v31, %v1027_v60  ;;  %v1741_v15 = vpop.xlane.xlu1 %1740  ;;  %v1930_v57 = vpop.xlane.xlu0 %1929  ;;  %v3272_v20 = vunpack.c.l.b16 %v2400_v18  ;;  %v1635_v56 = vmul.f32 %v4561_v32, %v1501_v46  ;;  %v5661_v60 = vmul.f32 %v4561_v32, %v1564_v33 }
 0x1d9   : > { %v2841_v14 = vrot.slane %v2278_v61, %v5533_v2  ;;  %v2848_v17 = vrot.slane %v2278_v61, %v5538_v49  ;;  %v2122_v5 = vadd.f32 %v5530_v48, %v1741_v15  ;;  %v1029_v30 = vpop.f32.mrf.mxu0  ;;  %v1349_v47 = vpop.f32.mrf.mxu1  ;;  %v3409_v35 = vsel %vm3408_vm1, %v3407_v29, %v3402_v41 }
 0x1da   : > { %v2030_v15 = vsel %vm1723_vm0, %v1697_v37, 0.0  ;;  %v3414_v30 = vrot.slane %v3271_v12, %v5552_v44  ;;  %v1502_v47 = vmax.f32 %v1028_v58, 0.0  ;;  %v1565_v9 = vmax.f32 %v1343_v43, 0.0 }
 0x1db   : > { %v3335_v21 = vunpack.c.l.b16 %v2841_v14  ;;  %v2247_v22 = vpack.c.bf16 %v2122_v5, %v2121_v55  ;;  %v1032_v61 = vpop.f32.mrf.mxu0  ;;  %2028 = vadd.xlane.f32.xlu1 %v2027_v40  ;;  %v1352_v16 = vpop.f32.mrf.mxu1  ;;  %v3336_v33 = vunpack.c.l.b16 %v2848_v17  ;;  %v1841_v40 = vsel %vm1723_vm0, %v1634_v10, 0.0 }
 0x1dc   : > { %v1033_v52 = vadd.f32 %v4556_v31, %v1032_v61  ;;  %v1933_v18 = vpop.xlane.xlu1 %1932  ;;  %v1744_v46 = vpop.xlane.xlu0 %1743  ;;  %v3421_v37 = vrot.slane %v3272_v20, %v5567_v38  ;;  %v2185_v58 = vadd.f32 %v5530_v48, %v1930_v57  ;;  %v1844_v43 = vsel %vm1723_vm0, %v1635_v56, 0.0 }
 0x1dd   : > { %v3757_v23 = vrot.slane %v3335_v21, %v5552_v44  ;;  %v2407_v41 = vrot.slane %v2247_v22, %v5533_v2  ;;  %v1034_v29 = vpop.f32.mrf.mxu0  ;;  %v1354_v14 = vpop.f32.mrf.mxu1  ;;  %v2414_v12 = vrot.slane %v2247_v22, %v5538_v49  ;;  %v1348_v17 = vadd.f32 %v4556_v31, %v1347_v39  ;;  %1845 = vadd.xlane.f32.xlu0 %v1844_v43 }
 0x1de   : > { %v1503_v5 = vmax.f32 %v1033_v52, 0.0  ;;  %v2186_v21 = vadd.f32 %v5530_v48, %v1933_v18  ;;  %v3416_v10 = vsel %vm3415_vm2, %v3414_v30, %v3409_v35  ;;  %v5678_v20 = vmul.f32 %v4561_v32, %v1502_v47 }
 0x1df   : > { %v3273_v55 = vunpack.c.l.b16 %v2407_v41  ;;  %v1037_v61 = vpop.f32.mrf.mxu0  ;;  %2031 = vadd.xlane.f32.xlu1 %v2030_v15  ;;  %v1357_v29 = vpop.f32.mrf.mxu1  ;;  %v5681_v22 = vmul.f32 %v4561_v32, %v1565_v9  ;;  %v3274_v57 = vunpack.c.l.b16 %v2414_v12  ;;  %v3758_v52 = vsel %vm3415_vm2, %v3757_v23, %v3753_v19 }
 0x1e0   : > { %v1747_v56 = vpop.xlane.xlu1 %1746  ;;  %v1936_v41 = vpop.xlane.xlu0 %1935  ;;  %v3762_v39 = vrot.slane %v3336_v33, %v5567_v38  ;;  %v2279_v14 = vpack.c.bf16 %v2186_v21, %v2185_v58  ;;  %v2123_v35 = vadd.f32 %v5530_v48, %v1744_v46  ;;  %v1038_v30 = vadd.f32 %v4556_v31, %v1037_v61 }
 0x1e1   : > { %v3428_v18 = vrot.slane %v3273_v55, %v5570_v36  ;;  %v1039_v15 = vpop.f32.mrf.mxu0  ;;  %v1359_v43 = vpop.f32.mrf.mxu1  ;;  %v1353_v47 = vadd.f32 %v4556_v31, %v1352_v16  ;;  %v2124_v9 = vadd.f32 %v5530_v48, %v1747_v56  ;;  %v3423_v12 = vsel %vm3422_vm3, %v3421_v37, %v3416_v10 }
 0x1e2   : > { %v1637_v24 = vmul.f32 %v4561_v32, %v1503_v5  ;;  %v1566_v23 = vmax.f32 %v1348_v17, 0.0  ;;  %v2855_v19 = vrot.slane %v2279_v14, %v5533_v2  ;;  %v3435_v55 = vrot.slane %v3274_v57, %v5575_v42 }
 0x1e3   : > { %v1042_v33 = vpop.f32.mrf.mxu0  ;;  %1842 = vadd.xlane.f32.xlu1 %v1841_v40  ;;  %v1362_v58 = vpop.f32.mrf.mxu1  ;;  %v2862_v46 = vrot.slane %v2279_v14, %v5538_v49  ;;  %v2248_v21 = vpack.c.bf16 %v2124_v9, %v2123_v35  ;;  %v3763_v37 = vsel %vm3422_vm3, %v3762_v39, %v3758_v52  ;;  %v3430_v5 = vsel %vm3429_vm4, %v3428_v18, %v3423_v12 }
 0x1e4   : > { %v1043_v16 = vadd.f32 %v4556_v31, %v1042_v33  ;;  %v1939_v61 = vpop.xlane.xlu1 %1938  ;;  %v1750_v56 = vpop.xlane.xlu0 %1749  ;;  %v3337_v17 = vunpack.c.l.b16 %v2855_v19  ;;  %v1358_v10 = vadd.f32 %v4556_v31, %v1357_v29  ;;  %v1504_v40 = vmax.f32 %v1038_v30, 0.0 }
 0x1e5   : > { %v1044_v15 = vpop.f32.mrf.mxu0  ;;  %v1364_v43 = vpop.f32.mrf.mxu1  ;;  %v1567_v25 = vmax.f32 %v1353_v47, 0.0  ;;  %v2421_v57 = vrot.slane %v2248_v21, %v5533_v2  ;;  %v2428_v14 = vrot.slane %v2248_v21, %v5538_v49  ;;  %v5702_v35 = vmul.f32 %v4561_v32, %v1566_v23 }
 0x1e6   : > { %v2187_v9 = vadd.f32 %v5530_v48, %v1936_v41  ;;  %v1505_v52 = vmax.f32 %v1043_v16, 0.0  ;;  %v1850_v39 = vsel %vm1723_vm0, %v1637_v24, 0.0  ;;  %v3437_v29 = vsel %vm3436_vm5, %v3435_v55, %v3430_v5 }
 0x1e7   : > { %v1047_v18 = vpop.f32.mrf.mxu0  ;;  %v5706_v12 = vpop.f32.mrf.mxu1  ;;  %v3338_v30 = vunpack.c.l.b16 %v2862_v46  ;;  %v3275_v47 = vunpack.c.l.b16 %v2421_v57  ;;  %1851 = vadd.xlane.f32.xlu0 %v1850_v39  ;;  %v2188_v19 = vadd.f32 %v5530_v48, %v1939_v61  ;;  %v3767_v23 = vrot.slane %v3337_v17, %v5570_v36 }
 0x1e8   : > { %v1753_v33 = vpop.xlane.xlu1 %1752  ;;  %v1942_v21 = vpop.xlane.xlu0 %1941  ;;  %v3276_v15 = vunpack.c.l.b16 %v2428_v14  ;;  %v1568_v43 = vmax.f32 %v1358_v10, 0.0  ;;  %v1363_v41 = vadd.f32 %v4556_v31, %v1362_v58  ;;  %v5713_v26 = vmul.f32 %v4561_v32, %v1504_v40 }
 0x1e9   : > { %v1049_v16 = vpop.f32.mrf.mxu0  ;;  %v1369_v24 = vpop.f32.mrf.mxu1  ;;  %v5716_v55 = vmul.f32 %v4561_v32, %v1567_v25  ;;  %v3442_v46 = vrot.slane %v3275_v47, %v5578_v34  ;;  %v2280_v5 = vpack.c.bf16 %v2188_v19, %v2187_v9  ;;  %v1639_v61 = vmul.f32 %v4561_v32, %v1505_v52 }
 0x1ea   : > { %v2125_v17 = vadd.f32 %v5530_v48, %v1750_v56  ;;  %v2033_v10 = vsel %vm1723_vm0, %v5661_v60, 0.0  ;;  %v2126_v58 = vadd.f32 %v5530_v48, %v1753_v33  ;;  %v3772_v14 = vrot.slane %v3338_v30, %v5575_v42 }
 0x1eb   : > { %v1052_v57 = vpop.f32.mrf.mxu0  ;;  %v1372_v40 = vpop.f32.mrf.mxu1  ;;  %v2869_v25 = vrot.slane %v2280_v5, %v5533_v2  ;;  %v2876_v39 = vrot.slane %v2280_v5, %v5538_v49  ;;  %v1569_v9 = vmax.f32 %v1363_v41, 0.0  ;;  %2034 = vadd.xlane.f32.xlu1 %v2033_v10  ;;  %v3768_v56 = vsel %vm3429_vm4, %v3767_v23, %v3763_v37 }
 0x1ec   : > { %v1945_v47 = vpop.xlane.xlu1 %1944  ;;  %v1756_v52 = vpop.xlane.xlu0 %1755  ;;  %v3449_v19 = vrot.slane %v3276_v15, %v5583_v4  ;;  %v5730_v60 = vmul.f32 %v4561_v32, %v1568_v43  ;;  %v2249_v33 = vpack.c.bf16 %v2126_v58, %v2125_v17  ;;  %v3444_v30 = vsel %vm3443_vm6, %v3442_v46, %v3437_v29 }
 0x1ed   : > { %v1054_v16 = vpop.f32.mrf.mxu0  ;;  %v1374_v24 = vpop.f32.mrf.mxu1  ;;  %v3339_v27 = vunpack.c.l.b16 %v2869_v25  ;;  %v5733_v28 = vunpack.c.l.b16 %v2876_v39  ;;  %v1053_v41 = vadd.f32 %v4556_v31, %v1052_v57  ;;  %v2036_v37 = vsel %vm1723_vm0, %v5681_v22, 0.0 }
 0x1ee   : > { %v2435_v5 = vrot.slane %v2249_v33, %v5533_v2  ;;  %v2442_v10 = vrot.slane %v2249_v33, %v5538_v49  ;;  %v1856_v23 = vsel %vm1723_vm0, %v1639_v61, 0.0  ;;  %v3773_v17 = vsel %vm3436_vm5, %v3772_v14, %v3768_v56 }
 0x1ef   : > { %v1057_v15 = vpop.f32.mrf.mxu0  ;;  %v5741_v43 = vpop.f32.mrf.mxu1  ;;  %v5745_v29 = vadd.f32 %v4556_v31, %v1047_v18  ;;  %v1703_v46 = vmul.f32 %v4561_v32, %v1569_v9  ;;  %v1507_v58 = vmax.f32 %v1053_v41, 0.0  ;;  %2037 = vadd.xlane.f32.xlu1 %v2036_v37  ;;  %1857 = vadd.xlane.f32.xlu0 %v1856_v23  ;;  %v2189_v22 = vadd.f32 %v5530_v48, %v1942_v21 }
 0x1f0   : > { %v1759_v57 = vpop.xlane.xlu1 %1758  ;;  %v1948_v25 = vpop.xlane.xlu0 %1947  ;;  %v3277_v39 = vunpack.c.l.b16 %v2435_v5  ;;  %v3278_v33 = vunpack.c.l.b16 %v2442_v10  ;;  %v2190_v61 = vadd.f32 %v5530_v48, %v1945_v47  ;;  %v3451_v14 = vsel %vm3450_vm7, %v3449_v19, %v3444_v30 }
 0x1f1   : > { %v1059_v16 = vpop.f32.mrf.mxu0  ;;  %v1379_v24 = vpop.f32.mrf.mxu1  ;;  %v3777_v18 = vrot.slane %v3339_v27, %v5578_v34  ;;  %v3782_v9 = vrot.slane %v5733_v28, %v5583_v4  ;;  %v5756_v56 = vadd.f32 %v4556_v31, %v5706_v12  ;;  %v2127_v47 = vadd.f32 %v5530_v48, %v1756_v52 }
 0x1f2   : > { %v3456_v41 = vrot.slane %v3277_v39, %v5586_v1  ;;  %v3463_v5 = vrot.slane %v3278_v33, %v5595_v8  ;;  %v2281_v21 = vpack.c.bf16 %v2190_v61, %v2189_v22  ;;  %v1641_v19 = vmul.f32 %v4561_v32, %v1507_v58 }
 0x1f3   : > { %v1062_v10 = vpop.f32.mrf.mxu0  ;;  %v1382_v37 = vpop.f32.mrf.mxu1  ;;  %v1373_v27 = vadd.f32 %v4556_v31, %v1372_v40  ;;  %v1847_v28 = vsel %vm1723_vm0, %v5678_v20, 0.0  ;;  %v2048_v30 = vsel %vm1723_vm0, %v1703_v46, 0.0  ;;  %v2128_v20 = vadd.f32 %v5530_v48, %v1759_v57 }
 0x1f4   : > { %v1951_v12 = vpop.xlane.xlu1 %1950  ;;  %v1762_v23 = vpop.xlane.xlu0 %1761  ;;  %v3458_v39 = vsel %vm3457_vm8, %v3456_v41, %v3451_v14  ;;  %v2883_v33 = vrot.slane %v2281_v21, %v5533_v2  ;;  %v2890_v22 = vrot.slane %v2281_v21, %v5538_v49  ;;  %1848 = vadd.xlane.f32.xlu1 %v1847_v28  ;;  %2049 = vadd.xlane.f32.xlu0 %v2048_v30  ;;  %v2039_v46 = vsel %vm1723_vm0, %v5702_v35, 0.0 }
 0x1f5   : > { %v1064_v52 = vpop.f32.mrf.mxu0  ;;  %v1384_v58 = vpop.f32.mrf.mxu1  ;;  %v5770_v40 = vsel %vm3464_vm9, %v3463_v5, %v3458_v39  ;;  %v1571_v61 = vmax.f32 %v1373_v27, 0.0  ;;  %v3778_v16 = vsel %vm3443_vm6, %v3777_v18, %v3773_v17  ;;  %v5777_v41 = vadd.f32 %v4556_v31, %v1057_v15 }
 0x1f6   : > { %v3341_v24 = vunpack.c.l.b16 %v2883_v33  ;;  %v3342_v14 = vunpack.c.l.b16 %v2890_v22  ;;  %v2250_v5 = vpack.c.bf16 %v2128_v20, %v2127_v47  ;;  %v2191_v27 = vadd.f32 %v5530_v48, %v1948_v25 }
 0x1f7   : > { %v5779_v21 = vpop.f32.mrf.mxu0  ;;  %v5781_v28 = vpop.f32.mrf.mxu1  ;;  %v1862_v30 = vsel %vm1723_vm0, %v1641_v19, 0.0  ;;  %v1063_v57 = vadd.f32 %v4556_v31, %v1062_v10  ;;  %v1506_v17 = vmax.f32 %v5745_v29, 0.0  ;;  %v2192_v33 = vadd.f32 %v5530_v48, %v1951_v12 }
 0x1f8   : > { %v1765_v39 = vpop.xlane.xlu1 %1764  ;;  %v5786_v35 = vpop.xlane.xlu0 %1953  ;;  %v3787_v18 = vrot.slane %v3341_v24, %v5586_v1  ;;  %v3792_v15 = vrot.slane %v3342_v14, %v5595_v8  ;;  %2040 = vadd.xlane.f32.xlu1 %v2039_v46  ;;  %1863 = vadd.xlane.f32.xlu0 %v1862_v30  ;;  %v3783_v25 = vsel %vm3450_vm7, %v3782_v9, %v3778_v16 }
 0x1f9   : > { %v1069_v47 = vpop.f32.mrf.mxu0  ;;  %v1389_v22 = vpop.f32.mrf.mxu1  ;;  %v1705_v19 = vmul.f32 %v4561_v32, %v1571_v61  ;;  %v2449_v10 = vrot.slane %v2250_v5, %v5533_v2  ;;  %v2456_v52 = vrot.slane %v2250_v5, %v5538_v49  ;;  %v1509_v58 = vmax.f32 %v1063_v57, 0.0 }
 0x1fa   : > { %v3788_v29 = vsel %vm3457_vm8, %v3787_v18, %v3783_v25  ;;  %v2282_v20 = vpack.c.bf16 %v2192_v33, %v2191_v27  ;;  %v1383_v24 = vadd.f32 %v4556_v31, %v1382_v37  ;;  %v5801_v9 = vadd.f32 %v4556_v31, %v5741_v43 }
 0x1fb   : > { %v1072_v46 = vpop.f32.mrf.mxu0  ;;  %v3793_v14 = vsel %vm3464_vm9, %v3792_v15, %v3788_v29  ;;  %v3279_v12 = vunpack.c.l.b16 %v2449_v10  ;;  %v3280_v30 = vunpack.c.l.b16 %v2456_v52  ;;  %v2129_v27 = vadd.f32 %v5530_v48, %v1762_v23 }
 0x1fc   : > { %v1957_v61 = vpop.xlane.xlu1 %1956  ;;  %v5803_v16 = vpop.xlane.xlu0 %1767  ;;  %v2897_v5 = vrot.slane %v2282_v20, %v5533_v2  ;;  %v2904_v18 = vrot.slane %v2282_v20, %v5538_v49  ;;  %v2042_v37 = vsel %vm1723_vm0, %v5716_v55, 0.0  ;;  %v1573_v43 = vmax.f32 %v1383_v24, 0.0 }
 0x1fd   : > { %v1074_v57 = vpop.f32.mrf.mxu0  ;;  %v1392_v15 = vpop.f32.mrf.mxu1  ;;  %v3470_v33 = vrot.slane %v3279_v12, %v5598_v50  ;;  %v3477_v47 = vrot.slane %v3280_v30, %v5602_v3  ;;  %2043 = vadd.xlane.f32.xlu1 %v2042_v37  ;;  %v2054_v22 = vsel %vm1723_vm0, %v1705_v19, 0.0  ;;  %v1643_v25 = vmul.f32 %v4561_v32, %v1509_v58 }
 0x1fe   : > { %v3343_v10 = vunpack.c.l.b16 %v2897_v5  ;;  %v3344_v52 = vunpack.c.l.b16 %v2904_v18  ;;  %2055 = vadd.xlane.f32.xlu0 %v2054_v22  ;;  %v2130_v23 = vadd.f32 %v5530_v48, %v1765_v39  ;;  %v5816_v29 = vmul.f32 %v4561_v32, %v1506_v17 }
 0x1ff   : > { %v1394_v55 = vpop.f32.mrf.mxu1  ;;  %v1570_v20 = vmax.f32 %v5756_v56, 0.0  ;;  %v1508_v24 = vmax.f32 %v5777_v41, 0.0  ;;  %v3472_v19 = vsel %vm3471_vm10, %v3470_v33, %v5770_v40  ;;  %v1572_v56 = vmax.f32 %v5801_v9, 0.0 }
 0x200   : > { %v5822_v12 = vpop.f32.mrf.mxu0  ;;  %v1771_v58 = vpop.xlane.xlu1 %1770  ;;  %v3479_v30 = vsel %vm6659_vm11, %v3477_v47, %v3472_v19  ;;  %v3797_v5 = vrot.slane %v3343_v10, %v5598_v50  ;;  %v3802_v39 = vrot.slane %v3344_v52, %v5602_v3  ;;  %v2251_v18 = vpack.c.bf16 %v2130_v23, %v2129_v27 }
 0x201   : > { %v1960_v37 = vpop.xlane.xlu0 %1959  ;;  %v5827_v17 = vpop.f32.mrf.mxu1  ;;  %v1707_v41 = vmul.f32 %v4561_v32, %v1573_v43  ;;  %v1853_v40 = vsel %vm1723_vm0, %v5713_v26, 0.0  ;;  %v1073_v57 = vadd.f32 %v4556_v31, %v1072_v46  ;;  %v1868_v27 = vsel %vm1723_vm0, %v1643_v25, 0.0 }
 0x202   : > { %v1079_v33 = vpop.f32.mrf.mxu0  ;;  %v3798_v47 = vsel %vm3471_vm10, %v3797_v5, %v3793_v14  ;;  %v2463_v22 = vrot.slane %v2251_v18, %v5533_v2  ;;  %v2470_v10 = vrot.slane %v2251_v18, %v5538_v49  ;;  %1854 = vadd.xlane.f32.xlu1 %v1853_v40  ;;  %v2193_v43 = vadd.f32 %v5530_v48, %v5786_v35 }
 0x203   : > { %v1399_v52 = vpop.f32.mrf.mxu1  ;;  %v5839_v9 = vsel %vm6659_vm11, %v3802_v39, %v3798_v47  ;;  %v1511_v26 = vmax.f32 %v1073_v57, 0.0  ;;  %1869 = vadd.xlane.f32.xlu0 %v1868_v27  ;;  %v2194_v46 = vadd.f32 %v5530_v48, %v1957_v61  ;;  %v1068_v55 = vadd.f32 %v4556_v31, %v5779_v21 }
 0x204   : > { %v1082_v23 = vpop.f32.mrf.mxu0  ;;  %v1963_v14 = vpop.xlane.xlu1 %1962  ;;  %v3281_v19 = vunpack.c.l.b16 %v2463_v22  ;;  %v3282_v5 = vunpack.c.l.b16 %v2470_v10  ;;  %v1393_v25 = vadd.f32 %v4556_v31, %v1392_v15  ;;  %v5852_v40 = vmul.f32 %v4561_v32, %v1570_v20 }
 0x205   : > { %v5847_v18 = vpop.xlane.xlu0 %1773  ;;  %v5849_v39 = vpop.f32.mrf.mxu1  ;;  %v5855_v35 = vmul.f32 %v4561_v32, %v1508_v24  ;;  %v2283_v61 = vpack.c.bf16 %v2194_v46, %v2193_v43  ;;  %v2045_v57 = vsel %vm1723_vm0, %v5730_v60, 0.0  ;;  %v5860_v21 = vmul.f32 %v4561_v32, %v1572_v56 }
 0x206   : > { %v1084_v33 = vpop.f32.mrf.mxu0  ;;  %v3484_v15 = vrot.slane %v3281_v19, %v5617_v6  ;;  %v3491_v47 = vrot.slane %v3282_v5, %v5620_v7  ;;  %2046 = vadd.xlane.f32.xlu1 %v2045_v57  ;;  %v2060_v22 = vsel %vm1723_vm0, %v1707_v41, 0.0  ;;  %v1645_v10 = vmul.f32 %v4561_v32, %v1511_v26 }
 0x207   : > { %v1404_v20 = vpop.f32.mrf.mxu1  ;;  %v2911_v24 = vrot.slane %v2283_v61, %v5533_v2  ;;  %v2918_v27 = vrot.slane %v2283_v61, %v5538_v49  ;;  %2061 = vadd.xlane.f32.xlu0 %v2060_v22  ;;  %v2132_v60 = vadd.f32 %v5530_v48, %v1771_v58  ;;  %v1510_v43 = vmax.f32 %v1068_v55, 0.0 }
 0x208   : > { %v5869_v56 = vpop.f32.mrf.mxu0  ;;  %v1777_v52 = vpop.xlane.xlu1 %1776  ;;  %v3486_v46 = vsel %vm3485_vm12, %v3484_v15, %v3479_v30  ;;  %v2131_v41 = vadd.f32 %v5530_v48, %v5803_v16  ;;  %v1575_v19 = vmax.f32 %v1393_v25, 0.0  ;;  %v5881_v58 = vadd.f32 %v4556_v31, %v5781_v28 }
 0x209   : > { %v5874_v26 = vpop.xlane.xlu0 %1965  ;;  %v5876_v5 = vpop.f32.mrf.mxu1  ;;  %v3493_v61 = vsel %vm3492_vm13, %v3491_v47, %v3486_v46  ;;  %v3345_v57 = vunpack.c.l.b16 %v2911_v24  ;;  %v3346_v33 = vunpack.c.l.b16 %v2918_v27  ;;  %v2195_v30 = vadd.f32 %v5530_v48, %v1960_v37 }
 0x20a   : > { %v1089_v55 = vpop.f32.mrf.mxu0  ;;  %v2252_v22 = vpack.c.bf16 %v2132_v60, %v2131_v41  ;;  %v1859_v16 = vsel %vm1723_vm0, %v5816_v29, 0.0  ;;  %v1083_v25 = vadd.f32 %v4556_v31, %v1082_v23  ;;  %v1874_v28 = vsel %vm1723_vm0, %v1645_v10, 0.0 }
 0x20b   : > { %v1409_v15 = vpop.f32.mrf.mxu1  ;;  %v3807_v20 = vrot.slane %v3345_v57, %v5617_v6  ;;  %v3812_v47 = vrot.slane %v3346_v33, %v5620_v7  ;;  %1860 = vadd.xlane.f32.xlu1 %v1859_v16  ;;  %v2196_v24 = vadd.f32 %v5530_v48, %v1963_v14  ;;  %v5894_v37 = vmul.f32 %v4561_v32, %v1510_v43 }
 0x20c   : > { %v1092_v27 = vpop.f32.mrf.mxu0  ;;  %v5891_v46 = vpop.xlane.xlu1 %1968  ;;  %v1709_v29 = vmul.f32 %v4561_v32, %v1575_v19  ;;  %v2477_v23 = vrot.slane %v2252_v22, %v5533_v2  ;;  %v2484_v60 = vrot.slane %v2252_v22, %v5538_v49  ;;  %1875 = vadd.xlane.f32.xlu0 %v1874_v28  ;;  %v1574_v10 = vmax.f32 %v5881_v58, 0.0 }
 0x20d   : > { %v5899_v41 = vpop.xlane.xlu0 %1779  ;;  %v5901_v57 = vpop.f32.mrf.mxu1  ;;  %v3808_v14 = vsel %vm3485_vm12, %v3807_v20, %v5839_v9  ;;  %v1513_v33 = vmax.f32 %v1083_v25, 0.0  ;;  %v2284_v55 = vpack.c.bf16 %v2196_v24, %v2195_v30  ;;  %v5909_v19 = vadd.f32 %v4556_v31, %v5822_v12 }
 0x20e   : > { %v1094_v43 = vpop.f32.mrf.mxu0  ;;  %v3813_v16 = vsel %vm3492_vm13, %v3812_v47, %v3808_v14  ;;  %v3283_v22 = vunpack.c.l.b16 %v2477_v23  ;;  %v3284_v15 = vunpack.c.l.b16 %v2484_v60  ;;  %v1398_v45 = vadd.f32 %v4556_v31, %v5827_v17 }
 0x20f   : > { %v1414_v28 = vpop.f32.mrf.mxu1  ;;  %v2925_v58 = vrot.slane %v2284_v55, %v5533_v2  ;;  %v2932_v51 = vrot.slane %v2284_v55, %v5538_v49  ;;  %v2051_v9 = vsel %vm1723_vm0, %v5852_v40, 0.0  ;;  %v2133_v47 = vadd.f32 %v5530_v48, %v5847_v18 }
 0x210   : > { %v5917_v30 = vpop.f32.mrf.mxu0  ;;  %v1783_v25 = vpop.xlane.xlu1 %1782  ;;  %v3498_v20 = vrot.slane %v3283_v22, %v5624_v11  ;;  %v3505_v12 = vrot.slane %v3284_v15, %v5627_v13  ;;  %2052 = vadd.xlane.f32.xlu1 %v2051_v9  ;;  %v2066_v17 = vsel %vm1723_vm0, %v1709_v29, 0.0  ;;  %v1647_v60 = vmul.f32 %v4561_v32, %v1513_v33 }
 0x211   : > { %v5924_v24 = vpop.xlane.xlu0 %1971  ;;  %v5926_v23 = vpop.f32.mrf.mxu1  ;;  %v3347_v40 = vunpack.c.l.b16 %v2925_v58  ;;  %v3348_v14 = vunpack.c.l.b16 %v2932_v51  ;;  %2067 = vadd.xlane.f32.xlu0 %v2066_v17  ;;  %v2134_v55 = vadd.f32 %v5530_v48, %v1777_v52  ;;  %v1512_v22 = vmax.f32 %v5909_v19, 0.0 }
 0x212   : > { %v1099_v43 = vpop.f32.mrf.mxu0  ;;  %v3500_v15 = vsel %vm3499_vm14, %v3498_v20, %v3493_v61  ;;  %v1403_v18 = vadd.f32 %v4556_v31, %v5849_v39  ;;  %v1088_v29 = vadd.f32 %v4556_v31, %v5869_v56  ;;  %v1576_v19 = vmax.f32 %v1398_v45, 0.0 }
 0x213   : > { %v1419_v28 = vpop.f32.mrf.mxu1  ;;  %v5937_v9 = vsel %vm3506_vm15, %v3505_v12, %v3500_v15  ;;  %v3817_v51 = vrot.slane %v3347_v40, %v5624_v11  ;;  %v3822_v33 = vrot.slane %v3348_v14, %v5627_v13  ;;  %v2253_v52 = vpack.c.bf16 %v2134_v55, %v2133_v47 }
 0x214   : > { %v1102_v58 = vpop.f32.mrf.mxu0  ;;  %v5941_v17 = vpop.xlane.xlu1 %1974  ;;  %v2197_v61 = vadd.f32 %v5530_v48, %v5874_v26  ;;  %v1865_v39 = vsel %vm1723_vm0, %v5855_v35, 0.0  ;;  %v1093_v56 = vadd.f32 %v4556_v31, %v1092_v27  ;;  %v1880_v45 = vsel %vm1723_vm0, %v1647_v60, 0.0 }
 0x215   : > { %v5948_v20 = vpop.xlane.xlu0 %1785  ;;  %v5950_v12 = vpop.f32.mrf.mxu1  ;;  %v3818_v40 = vsel %vm3499_vm14, %v3817_v51, %v3813_v16  ;;  %v2491_v47 = vrot.slane %v2253_v52, %v5533_v2  ;;  %v2498_v14 = vrot.slane %v2253_v52, %v5538_v49  ;;  %1866 = vadd.xlane.f32.xlu1 %v1865_v39  ;;  %v1408_v35 = vadd.f32 %v4556_v31, %v5876_v5 }
 0x216   : > { %v1104_v55 = vpop.f32.mrf.mxu0  ;;  %v5957_v26 = vsel %vm3506_vm15, %v3822_v33, %v3818_v40  ;;  %v1515_v27 = vmax.f32 %v1093_v56, 0.0  ;;  %1881 = vadd.xlane.f32.xlu0 %v1880_v45  ;;  %v2198_v43 = vadd.f32 %v5530_v48, %v5891_v46  ;;  %v5964_v15 = vmul.f32 %v4561_v32, %v1574_v10 }
 0x217   : > { %6795 = vst [vmem:[#allocation72_spill] sm:$0xff] %v5957_v26  ;;  %v1424_v16 = vpop.f32.mrf.mxu1  ;;  %v1577_v28 = vmax.f32 %v1403_v18, 0.0  ;;  %v1514_v51 = vmax.f32 %v1088_v29, 0.0  ;;  %v3285_v52 = vunpack.c.l.b16 %v2491_v47  ;;  %v3286_v33 = vunpack.c.l.b16 %v2498_v14 }
 0x218   : > { %v5966_v60 = vpop.f32.mrf.mxu0  ;;  %v1789_v39 = vpop.xlane.xlu1 %1788  ;;  %v2285_v40 = vpack.c.bf16 %v2198_v43, %v2197_v61  ;;  %v1413_v5 = vadd.f32 %v4556_v31, %v5901_v57  ;;  %v2057_v56 = vsel %vm1723_vm0, %v5860_v21, 0.0  ;;  %v5977_v10 = vmul.f32 %v4561_v32, %v1512_v22 }
 0x219   : > { %v5972_v45 = vpop.xlane.xlu0 %1977  ;;  %v5974_v46 = vpop.f32.mrf.mxu1  ;;  %v5980_v18 = vmul.f32 %v4561_v32, %v1576_v19  ;;  %v2135_v29 = vadd.f32 %v5530_v48, %v5899_v41  ;;  %2058 = vadd.xlane.f32.xlu1 %v2057_v56  ;;  %v2136_v61 = vadd.f32 %v5530_v48, %v1783_v25  ;;  %v1578_v47 = vmax.f32 %v1408_v35, 0.0 }
 0x21a   : > { %v1109_v57 = vpop.f32.mrf.mxu0  ;;  %v1649_v21 = vmul.f32 %v4561_v32, %v1515_v27  ;;  %v2939_v14 = vrot.slane %v2285_v40, %v5533_v2  ;;  %v2946_v55 = vrot.slane %v2285_v40, %v5538_v49  ;;  %v5989_v22 = vmul.f32 %v4561_v32, %v1577_v28 }
 0x21b   : > { %v1429_v43 = vpop.f32.mrf.mxu1  ;;  %v5992_v19 = vmul.f32 %v4561_v32, %v1514_v51  ;;  %v2254_v16 = vpack.c.bf16 %v2136_v61, %v2135_v29  ;;  %v1103_v41 = vadd.f32 %v4556_v31, %v1102_v58  ;;  %v3511_v35 = vrot.slane %v3285_v52, %v5542_v0 }
 0x21c   : > { %v1112_v56 = vpop.f32.mrf.mxu0  ;;  %v5995_v25 = vpop.xlane.xlu1 %1980  ;;  %v3515_v27 = vrot.slane %v3286_v33, %v5549_v54  ;;  %v1579_v57 = vmax.f32 %v1413_v5, 0.0  ;;  %v1098_v40 = vadd.f32 %v4556_v31, %v5917_v30  ;;  %v3349_v51 = vunpack.c.l.b16 %v2939_v14 }
 0x21d   : > { %v6001_v43 = vpop.xlane.xlu0 %1791  ;;  %v6003_v28 = vpop.f32.mrf.mxu1  ;;  %v2505_v29 = vrot.slane %v2254_v16, %v5533_v2  ;;  %v2512_v58 = vrot.slane %v2254_v16, %v5538_v49  ;;  %v1871_v61 = vsel %vm1723_vm0, %v5894_v37, 0.0  ;;  %v6010_v52 = vmul.f32 %v4561_v32, %v1578_v47 }
 0x21e   : > { %v1114_v53 = vpop.f32.mrf.mxu0  ;;  %v3350_v33 = vunpack.c.l.b16 %v2946_v55  ;;  %v2199_v30 = vadd.f32 %v5530_v48, %v5924_v24  ;;  %1872 = vadd.xlane.f32.xlu1 %v1871_v61  ;;  %v1886_v5 = vsel %vm1723_vm0, %v1649_v21, 0.0  ;;  %v1517_v63 = vmax.f32 %v1103_v41, 0.0 }
 0x21f   : > { %v1434_v59 = vpop.f32.mrf.mxu1  ;;  %v3287_v14 = vunpack.c.l.b16 %v2505_v29  ;;  %v3288_v62 = vunpack.c.l.b16 %v2512_v58  ;;  %1887 = vadd.xlane.f32.xlu0 %v1886_v5  ;;  %v2200_v16 = vadd.f32 %v5530_v48, %v5941_v17  ;;  %v3516_v47 = vsel %vm3408_vm1, %v3515_v27, %v3511_v35 }
 0x220   : > { %v6017_v37 = vpop.f32.mrf.mxu0  ;;  %v6019_v53 = vpop.xlane.xlu1 %1794  ;;  %v6023_v55 = vmul.f32 %v4561_v32, %v1579_v57  ;;  %v1516_v24 = vmax.f32 %v1098_v40, 0.0  ;;  %v1418_v59 = vadd.f32 %v4556_v31, %v5926_v23  ;;  %v3827_v29 = vrot.slane %v3349_v51, %v5542_v0 }
 0x221   : > { %v6027_v21 = vpop.xlane.xlu0 %1983  ;;  %v6029_v41 = vpop.f32.mrf.mxu1  ;;  %v3520_v17 = vrot.slane %v3287_v14, %v5552_v44  ;;  %v3525_v58 = vrot.slane %v3288_v62, %v5567_v38  ;;  %v2286_v61 = vpack.c.bf16 %v2200_v16, %v2199_v30  ;;  %v3831_v35 = vrot.slane %v3350_v33, %v5549_v54 }
 0x222   : > { %v1119_v5 = vpop.f32.mrf.mxu0  ;;  %v2137_v27 = vadd.f32 %v5530_v48, %v5948_v20  ;;  %v2063_v23 = vsel %vm1723_vm0, %v5964_v15, 0.0  ;;  %v2138_v57 = vadd.f32 %v5530_v48, %v1789_v39  ;;  %v1651_v51 = vmul.f32 %v4561_v32, %v1517_v63 }
 0x223   : > { %v1439_v40 = vpop.f32.mrf.mxu1  ;;  %v3521_v26 = vsel %vm3415_vm2, %v3520_v17, %v3516_v47  ;;  %v2953_v14 = vrot.slane %v2286_v61, %v5533_v2  ;;  %v2960_v62 = vrot.slane %v2286_v61, %v5538_v49  ;;  %2064 = vadd.xlane.f32.xlu1 %v2063_v23  ;;  %v6049_v20 = vmul.f32 %v4561_v32, %v1516_v24 }
 0x224   : > { %v6044_v30 = vpop.f32.mrf.mxu0  ;;  %v6046_v33 = vpop.xlane.xlu1 %1986  ;;  %v3526_v15 = vsel %vm3422_vm3, %v3525_v58, %v3521_v26  ;;  %v1580_v39 = vmax.f32 %v1418_v59, 0.0  ;;  %v2255_v16 = vpack.c.bf16 %v2138_v57, %v2137_v27  ;;  %v1108_v61 = vadd.f32 %v4556_v31, %v5966_v60 }
 0x225   : > { %v6052_v5 = vpop.xlane.xlu0 %1797  ;;  %v6054_v47 = vpop.f32.mrf.mxu1  ;;  %v3351_v63 = vunpack.c.l.b16 %v2953_v14  ;;  %v3352_v17 = vunpack.c.l.b16 %v2960_v62  ;;  %v1113_v23 = vadd.f32 %v4556_v31, %v1112_v56  ;;  %v3832_v54 = vsel %vm3408_vm1, %v3831_v35, %v3827_v29 }
 0x226   : > { %v1124_v40 = vpop.f32.mrf.mxu0  ;;  %v2519_v24 = vrot.slane %v2255_v16, %v5533_v2  ;;  %v2526_v26 = vrot.slane %v2255_v16, %v5538_v49  ;;  %v1877_v59 = vsel %vm1723_vm0, %v5977_v10, 0.0  ;;  %v1423_v60 = vadd.f32 %v4556_v31, %v5950_v12 }
 0x227   : > { %v1444_v58 = vpop.f32.mrf.mxu1  ;;  %v3836_v27 = vrot.slane %v3351_v63, %v5552_v44  ;;  %v3841_v57 = vrot.slane %v3352_v17, %v5567_v38  ;;  %1878 = vadd.xlane.f32.xlu1 %v1877_v59  ;;  %v1892_v56 = vsel %vm1723_vm0, %v1651_v51, 0.0  ;;  %v2201_v10 = vadd.f32 %v5530_v48, %v5972_v45 }
 0x228   : > { %v6069_v14 = vpop.f32.mrf.mxu0  ;;  %v6071_v29 = vpop.xlane.xlu1 %1800  ;;  %v3289_v35 = vunpack.c.l.b16 %v2519_v24  ;;  %v3290_v62 = vunpack.c.l.b16 %v2526_v26  ;;  %1893 = vadd.xlane.f32.xlu0 %v1892_v56  ;;  %v2202_v16 = vadd.f32 %v5530_v48, %v5995_v25  ;;  %v6082_v12 = vmul.f32 %v4561_v32, %v1580_v39 }
 0x229   : > { %v6077_v63 = vpop.xlane.xlu0 %1989  ;;  %v6079_v17 = vpop.f32.mrf.mxu1  ;;  %v3837_v51 = vsel %vm3415_vm2, %v3836_v27, %v3832_v54  ;;  %v1518_v40 = vmax.f32 %v1108_v61, 0.0  ;;  %v1519_v59 = vmax.f32 %v1113_v23, 0.0  ;;  %v1581_v38 = vmax.f32 %v1423_v60, 0.0 }
 0x22a   : > { %v1129_v24 = vpop.f32.mrf.mxu0  ;;  %v3842_v26 = vsel %vm3422_vm3, %v3841_v57, %v3837_v51  ;;  %v3530_v45 = vrot.slane %v3289_v35, %v5570_v36  ;;  %v3535_v58 = vrot.slane %v3290_v62, %v5575_v42  ;;  %v2287_v56 = vpack.c.bf16 %v2202_v16, %v2201_v10 }
 0x22b   : > { %v1449_v25 = vpop.f32.mrf.mxu1  ;;  %v2139_v44 = vadd.f32 %v5530_v48, %v6001_v43  ;;  %v2069_v39 = vsel %vm1723_vm0, %v5980_v18, 0.0  ;;  %v2140_v54 = vadd.f32 %v5530_v48, %v6019_v53  ;;  %v1428_v57 = vadd.f32 %v4556_v31, %v5974_v46 }
 0x22c   : > { %v6094_v61 = vpop.f32.mrf.mxu0  ;;  %v6096_v23 = vpop.xlane.xlu1 %1992  ;;  %v3531_v27 = vsel %vm3429_vm4, %v3530_v45, %v3526_v15  ;;  %v2967_v60 = vrot.slane %v2287_v56, %v5533_v2  ;;  %v2974_v35 = vrot.slane %v2287_v56, %v5538_v49  ;;  %2070 = vadd.xlane.f32.xlu1 %v2069_v39  ;;  %v6108_v53 = vmul.f32 %v4561_v32, %v1518_v40 }
 0x22d   : > { %v6103_v43 = vpop.xlane.xlu0 %1803  ;;  %v6105_v18 = vpop.f32.mrf.mxu1  ;;  %v3536_v62 = vsel %vm3436_vm5, %v3535_v58, %v3531_v27  ;;  %v1653_v10 = vmul.f32 %v4561_v32, %v1519_v59  ;;  %v2256_v15 = vpack.c.bf16 %v2140_v54, %v2139_v44  ;;  %v1118_v24 = vadd.f32 %v4556_v31, %v6017_v37 }
 0x22e   : > { %v1134_v16 = vpop.f32.mrf.mxu0  ;;  %v3353_v51 = vunpack.c.l.b16 %v2967_v60  ;;  %v3354_v46 = vunpack.c.l.b16 %v2974_v35  ;;  %v1123_v45 = vadd.f32 %v4556_v31, %v6044_v30  ;;  %v6117_v25 = vmul.f32 %v4561_v32, %v1581_v38 }
 0x22f   : > { %v1454_v56 = vpop.f32.mrf.mxu1  ;;  %v2533_v40 = vrot.slane %v2256_v15, %v5533_v2  ;;  %v2540_v58 = vrot.slane %v2256_v15, %v5538_v49  ;;  %v2072_v44 = vsel %vm1723_vm0, %v5989_v22, 0.0  ;;  %v1582_v54 = vmax.f32 %v1428_v57, 0.0 }
 0x230   : > { %v6123_v59 = vpop.xlane.xlu1 %1995  ;;  %v6125_v39 = vpop.f32.mrf.mxu0  ;;  %v3846_v37 = vrot.slane %v3353_v51, %v5570_v36  ;;  %v3851_v30 = vrot.slane %v3354_v46, %v5575_v42  ;;  %v2203_v38 = vadd.f32 %v5530_v48, %v6027_v21  ;;  %2073 = vadd.xlane.f32.xlu1 %v2072_v44  ;;  %v1898_v15 = vsel %vm1723_vm0, %v1653_v10, 0.0 }
 0x231   : > { %v6131_v27 = vpop.f32.mrf.mxu1  ;;  %v3291_v60 = vunpack.c.l.b16 %v2533_v40  ;;  %v3292_v35 = vunpack.c.l.b16 %v2540_v58  ;;  %v2204_v22 = vadd.f32 %v5530_v48, %v6046_v33  ;;  %v6136_v16 = vpop.xlane.xlu0 %1998  ;;  %v1520_v56 = vmax.f32 %v1118_v24, 0.0  ;;  %1899 = vadd.xlane.f32.xlu0 %v1898_v15 }
 0x232   : > { %v1139_v57 = vpop.f32.mrf.mxu0  ;;  %v3847_v51 = vsel %vm3429_vm4, %v3846_v37, %v3842_v26  ;;  %v1433_v46 = vadd.f32 %v4556_v31, %v6003_v28  ;;  %v1521_v21 = vmax.f32 %v1123_v45, 0.0  ;;  %v1443_v26 = vadd.f32 %v4556_v31, %v6054_v47 }
 0x233   : > { %v1459_v44 = vpop.f32.mrf.mxu1  ;;  %v3852_v40 = vsel %vm3436_vm5, %v3851_v30, %v3847_v51  ;;  %v3540_v58 = vrot.slane %v3291_v60, %v5578_v34  ;;  %v3545_v10 = vrot.slane %v3292_v35, %v5583_v4  ;;  %v2288_v42 = vpack.c.bf16 %v2204_v22, %v2203_v38 }
 0x234   : > { %v1807_v33 = vpop.xlane.xlu1 %1806  ;;  %v2141_v57 = vadd.f32 %v5530_v48, %v6052_v5  ;;  %v1883_v28 = vsel %vm1723_vm0, %v5992_v19, 0.0  ;;  %v2142_v24 = vadd.f32 %v5530_v48, %v6071_v29  ;;  %v6153_v45 = vmul.f32 %v4561_v32, %v1582_v54 }
 0x235   : > { %v3541_v37 = vsel %vm3443_vm6, %v3540_v58, %v3536_v62  ;;  %v2981_v30 = vrot.slane %v2288_v42, %v5533_v2  ;;  %v2988_v38 = vrot.slane %v2288_v42, %v5538_v49  ;;  %1884 = vadd.xlane.f32.xlu1 %v1883_v28  ;;  %v1655_v47 = vmul.f32 %v4561_v32, %v1521_v21  ;;  %v6165_v62 = vpop.xlane.xlu0 %1809 }
 0x236   : > { %v3546_v5 = vsel %vm3450_vm7, %v3545_v10, %v3541_v37  ;;  %v1585_v60 = vmax.f32 %v1443_v26, 0.0  ;;  %v2257_v35 = vpack.c.bf16 %v2142_v24, %v2141_v57  ;;  %v6161_v19 = vmul.f32 %v4561_v32, %v1520_v56 }
 0x237   : > { %v3355_v29 = vunpack.c.l.b16 %v2981_v30  ;;  %v3356_v15 = vunpack.c.l.b16 %v2988_v38  ;;  %v1133_v54 = vadd.f32 %v4556_v31, %v6094_v61  ;;  %v1583_v42 = vmax.f32 %v1433_v46, 0.0 }
 0x238   : > { %v6167_v22 = vpop.xlane.xlu1 %2001  ;;  %v6171_v51 = vadd.f32 %v4556_v31, %v6029_v41  ;;  %v2547_v21 = vrot.slane %v2257_v35, %v5533_v2  ;;  %v2554_v44 = vrot.slane %v2257_v35, %v5538_v49  ;;  %v1719_v10 = vmul.f32 %v4561_v32, %v1585_v60 }
 0x239   : > { %v3856_v56 = vrot.slane %v3355_v29, %v5578_v34  ;;  %v3861_v58 = vrot.slane %v3356_v15, %v5583_v4  ;;  %v1523_v61 = vmax.f32 %v1133_v54, 0.0  ;;  %v2075_v46 = vsel %vm1723_vm0, %v6010_v52, 0.0 }
 0x23a   : > { %v3293_v57 = vunpack.c.l.b16 %v2547_v21  ;;  %v3294_v26 = vunpack.c.l.b16 %v2554_v44  ;;  %v1904_v28 = vsel %vm1723_vm0, %v1655_v47, 0.0  ;;  %v2205_v24 = vadd.f32 %v5530_v48, %v6077_v63  ;;  %2076 = vadd.xlane.f32.xlu1 %v2075_v46 }
 0x23b   : > { %v3857_v41 = vsel %vm3443_vm6, %v3856_v56, %v3852_v40  ;;  %v1657_v37 = vmul.f32 %v4561_v32, %v1523_v61  ;;  %1905 = vadd.xlane.f32.xlu0 %v1904_v28  ;;  %v2078_v30 = vsel %vm1723_vm0, %v6023_v55, 0.0  ;;  %v2206_v40 = vadd.f32 %v5530_v48, %v6096_v23 }
 0x23c   : > { %v1813_v38 = vpop.xlane.xlu1 %1812  ;;  %v1816_v60 = vpop.xlane.xlu0 %1815  ;;  %v3862_v35 = vsel %vm3450_vm7, %v3861_v58, %v3857_v41  ;;  %v3550_v52 = vrot.slane %v3293_v57, %v5586_v1  ;;  %v3555_v47 = vrot.slane %v3294_v26, %v5595_v8  ;;  %v6193_v63 = vmul.f32 %v4561_v32, %v1583_v42 }
 0x23d   : > { %v1453_v29 = vadd.f32 %v4556_v31, %v6105_v18  ;;  %v2096_v15 = vsel %vm1723_vm0, %v1719_v10, 0.0  ;;  %v2207_v55 = vadd.f32 %v5530_v48, %v6123_v59  ;;  %v2289_v21 = vpack.c.bf16 %v2206_v40, %v2205_v24 }
 0x23e   : > { %v3551_v54 = vsel %vm3457_vm8, %v3550_v52, %v3546_v5  ;;  %v2143_v44 = vadd.f32 %v5530_v48, %v6103_v43  ;;  %v2208_v23 = vadd.f32 %v5530_v48, %v6136_v16  ;;  %2079 = vadd.xlane.f32.xlu1 %v2078_v30  ;;  %v1889_v18 = vsel %vm1723_vm0, %v6049_v20, 0.0 }
 0x23f   : > { %v3556_v42 = vsel %vm3464_vm9, %v3555_v47, %v3551_v54  ;;  %v1587_v56 = vmax.f32 %v1453_v29, 0.0  ;;  %2097 = vadd.xlane.f32.xlu0 %v2096_v15  ;;  %v2144_v58 = vadd.f32 %v5530_v48, %v1807_v33  ;;  %v2995_v5 = vrot.slane %v2289_v21, %v5533_v2 }
 0x240   : > { %v2005_v59 = vpop.xlane.xlu1 %2004  ;;  %v2008_v10 = vpop.xlane.xlu0 %2007  ;;  %v3002_v61 = vrot.slane %v2289_v21, %v5538_v49  ;;  %v2290_v43 = vpack.c.bf16 %v2208_v23, %v2207_v55  ;;  %v1910_v57 = vsel %vm1723_vm0, %v1657_v37, 0.0  ;;  %v1584_v16 = vmax.f32 %v6171_v51, 0.0 }
 0x241   : > { %v6215_v26 = vadd.f32 %v4556_v31, %v6069_v14  ;;  %v1721_v46 = vmul.f32 %v4561_v32, %v1587_v56  ;;  %v2258_v20 = vpack.c.bf16 %v2144_v58, %v2143_v44  ;;  %v3357_v28 = vunpack.c.l.b16 %v2995_v5 }
 0x242   : > { %v3358_v33 = vunpack.c.l.b16 %v3002_v61  ;;  %v3009_v41 = vrot.slane %v2290_v43, %v5533_v2  ;;  %v3016_v24 = vrot.slane %v2290_v43, %v5538_v49  ;;  %1890 = vadd.xlane.f32.xlu1 %v1889_v18  ;;  %v2081_v52 = vsel %vm1723_vm0, %v6082_v12, 0.0 }
 0x243   : > { %1911 = vadd.xlane.f32.xlu0 %v1910_v57  ;;  %v2561_v30 = vrot.slane %v2258_v20, %v5533_v2  ;;  %v2568_v37 = vrot.slane %v2258_v20, %v5538_v49  ;;  %v2102_v14 = vsel %vm1723_vm0, %v1721_v46, 0.0  ;;  %v3866_v40 = vrot.slane %v3357_v28, %v5586_v1 }
 0x244   : > { %v1819_v47 = vpop.xlane.xlu1 %1818  ;;  %v3871_v29 = vrot.slane %v3358_v33, %v5595_v8  ;;  %v3359_v15 = vunpack.c.l.b16 %v3009_v41  ;;  %v3360_v55 = vunpack.c.l.b16 %v3016_v24  ;;  %v2145_v44 = vadd.f32 %v5530_v48, %v6165_v62  ;;  %v1822_v56 = vpop.xlane.xlu0 %1821 }
 0x245   : > { %v3295_v54 = vunpack.c.l.b16 %v2561_v30  ;;  %v3296_v21 = vunpack.c.l.b16 %v2568_v37  ;;  %v2146_v23 = vadd.f32 %v5530_v48, %v1813_v38  ;;  %v3867_v18 = vsel %vm3457_vm8, %v3866_v40, %v3862_v35 }
 0x246   : > { %v3876_v12 = vrot.slane %v3359_v15, %v5598_v50  ;;  %v3881_v58 = vrot.slane %v3360_v55, %v5602_v3  ;;  %v2209_v5 = vadd.f32 %v5530_v48, %v6167_v22  ;;  %v3872_v61 = vsel %vm3464_vm9, %v3871_v29, %v3867_v18  ;;  %2082 = vadd.xlane.f32.xlu1 %v2081_v52 }
 0x247   : > { %v3560_v43 = vrot.slane %v3295_v54, %v5598_v50  ;;  %v3565_v57 = vrot.slane %v3296_v21, %v5602_v3  ;;  %2103 = vadd.xlane.f32.xlu0 %v2102_v14  ;;  %v2084_v62 = vsel %vm1723_vm0, %v6117_v25, 0.0  ;;  %v2259_v46 = vpack.c.bf16 %v2146_v23, %v2145_v44 }
 0x248   : > { %v2011_v38 = vpop.xlane.xlu1 %2010  ;;  %v3877_v35 = vsel %vm3471_vm10, %v3876_v12, %v3872_v61  ;;  %v2147_v20 = vadd.f32 %v5530_v48, %v1816_v60  ;;  %v2210_v28 = vadd.f32 %v5530_v48, %v2005_v59  ;;  %v1895_v41 = vsel %vm1723_vm0, %v6108_v53, 0.0  ;;  %v2014_v40 = vpop.xlane.xlu0 %2013 }
 0x249   : > { %v3882_v22 = vsel %vm6659_vm11, %v3881_v58, %v3877_v35  ;;  %v3561_v33 = vsel %vm3471_vm10, %v3560_v43, %v3556_v42  ;;  %v2148_v24 = vadd.f32 %v5530_v48, %v1819_v47  ;;  %v2575_v25 = vrot.slane %v2259_v46, %v5533_v2 }
 0x24a   : > { %v3566_v30 = vsel %vm6659_vm11, %v3565_v57, %v3561_v33  ;;  %v2582_v37 = vrot.slane %v2259_v46, %v5538_v49  ;;  %v2291_v52 = vpack.c.bf16 %v2210_v28, %v2209_v5  ;;  %2085 = vadd.xlane.f32.xlu1 %v2084_v62  ;;  %v2211_v60 = vadd.f32 %v5530_v48, %v2008_v10 }
 0x24b   : > { %v2087_v59 = vsel %vm1723_vm0, %v6153_v45, 0.0  ;;  %v2260_v14 = vpack.c.bf16 %v2148_v24, %v2147_v20  ;;  %v2212_v42 = vadd.f32 %v5530_v48, %v2011_v38  ;;  %v3297_v29 = vunpack.c.l.b16 %v2575_v25 }
 0x24c   : > { %v1825_v53 = vpop.xlane.xlu1 %1824  ;;  %v3298_v47 = vunpack.c.l.b16 %v2582_v37  ;;  %v3023_v15 = vrot.slane %v2291_v52, %v5533_v2  ;;  %v3030_v55 = vrot.slane %v2291_v52, %v5538_v49  ;;  %vm4061_vm11 = vcmask 1041409  }
 0x24d   : > { %v2589_v54 = vrot.slane %v2260_v14, %v5533_v2  ;;  %v2596_v21 = vrot.slane %v2260_v14, %v5538_v49  ;;  %v2292_v10 = vpack.c.bf16 %v2212_v42, %v2211_v60  ;;  %v3570_v44 = vrot.slane %v3297_v29, %v5617_v6 }
 0x24e   : > { %v3575_v45 = vrot.slane %v3298_v47, %v5620_v7  ;;  %v3361_v23 = vunpack.c.l.b16 %v3023_v15  ;;  %v3362_v18 = vunpack.c.l.b16 %v3030_v55  ;;  %1896 = vadd.xlane.f32.xlu1 %v1895_v41  ;;  %v2149_v35 = vadd.f32 %v5530_v48, %v1822_v56  ;;  %v1828_v41 = vpop.xlane.xlu0 %1827 }
 0x24f   : > { %v3299_v12 = vunpack.c.l.b16 %v2589_v54  ;;  %v3300_v58 = vunpack.c.l.b16 %v2596_v21  ;;  %v3037_v5 = vrot.slane %v2292_v10, %v5533_v2  ;;  %v3044_v61 = vrot.slane %v2292_v10, %v5538_v49 }
 0x250   : > { %v2017_v43 = vpop.xlane.xlu1 %2016  ;;  %v3571_v57 = vsel %vm3485_vm12, %v3570_v44, %v3566_v30  ;;  %v3886_v62 = vrot.slane %v3361_v23, %v5617_v6  ;;  %v3891_v38 = vrot.slane %v3362_v18, %v5620_v7  ;;  %v2090_v25 = vsel %vm1723_vm0, %v6193_v63, 0.0 }
 0x251   : > { %v3576_v46 = vsel %vm3492_vm13, %v3575_v45, %v3571_v57  ;;  %v3580_v20 = vrot.slane %v3299_v12, %v5624_v11  ;;  %v3585_v28 = vrot.slane %v3300_v58, %v5627_v13  ;;  %v3363_v33 = vunpack.c.l.b16 %v3037_v5 }
 0x252   : > { %v3887_v24 = vsel %vm3485_vm12, %v3886_v62, %v3882_v22  ;;  %v3364_v30 = vunpack.c.l.b16 %v3044_v61  ;;  %v2150_v37 = vadd.f32 %v5530_v48, %v1825_v53  ;;  %2088 = vadd.xlane.f32.xlu1 %v2087_v59  ;;  %v2213_v14 = vadd.f32 %v5530_v48, %v2014_v40 }
 0x253   : > { %v3892_v52 = vsel %vm3492_vm13, %v3891_v38, %v3887_v24  ;;  %v3581_v56 = vsel %vm3499_vm14, %v3580_v20, %v3576_v46  ;;  %v3896_v60 = vrot.slane %v3363_v33, %v5624_v11  ;;  %v2214_v63 = vadd.f32 %v5530_v48, %v2017_v43  ;;  %v6796_v33 = vld [vmem:[#allocation68_spill] sm:$0xff] }
 0x254   : > { %v1831_v42 = vpop.xlane.xlu1 %1830  ;;  %v3586_v29 = vsel %vm3506_vm15, %v3585_v28, %v3581_v56  ;;  %v3901_v22 = vrot.slane %v3364_v30, %v5627_v13  ;;  %v2261_v47 = vpack.c.bf16 %v2150_v37, %v2149_v35  ;;  %v1718_v53 = vmul.f32 %v4561_v32, %v1584_v16 }
 0x255   : > { %v1448_v59 = vadd.f32 %v4556_v31, %v6079_v17  ;;  %v6288_v15 = vsel %vm4061_vm11, %v3586_v29, %v5937_v9  ;;  %v3897_v40 = vsel %vm3499_vm14, %v3896_v60, %v3892_v52  ;;  %v2293_v10 = vpack.c.bf16 %v2214_v63, %v2213_v14  ;;  %v2020_v9 = vpop.xlane.xlu0 %2019  ;;  %v6797_v29 = vld [vmem:[#allocation69_spill] sm:$0xff] }
 0x256   : > { %v6292_v55 = vsel %vm3506_vm15, %v3901_v22, %v3897_v40  ;;  %v2603_v54 = vrot.slane %v2261_v47, %v5533_v2  ;;  %v2610_v21 = vrot.slane %v2261_v47, %v5538_v49  ;;  %v1522_v51 = vmax.f32 %v6215_v26, 0.0  ;;  %2091 = vadd.xlane.f32.xlu1 %v2090_v25  ;;  %v6798_v47 = vld [vmem:[#allocation70_spill] sm:$0xff] }
 0x257   : > { %v1901_v17 = vsel %vm1723_vm0, %v6161_v19, 0.0  ;;  %v2151_v16 = vadd.f32 %v5530_v48, %v1828_v41  ;;  %v2152_v44 = vadd.f32 %v5530_v48, %v1831_v42  ;;  %v3051_v12 = vrot.slane %v2293_v10, %v5533_v2 }
 0x258   : > { %v2023_v45 = vpop.xlane.xlu1 %2022  ;;  %v3301_v23 = vunpack.c.l.b16 %v2603_v54  ;;  %v3302_v18 = vunpack.c.l.b16 %v2610_v21  ;;  %v3058_v58 = vrot.slane %v2293_v10, %v5538_v49  ;;  %v1586_v5 = vmax.f32 %v1448_v59, 0.0 }
 0x259   : > { %v2262_v61 = vpack.c.bf16 %v2152_v44, %v2151_v16  ;;  %v3365_v43 = vunpack.c.l.b16 %v3051_v12  ;;  %v1138_v57 = vadd.f32 %v4556_v31, %v6125_v39  ;;  %v2215_v19 = vadd.f32 %v5530_v48, %v2020_v9  ;;  %v1834_v37 = vpop.xlane.xlu0 %1833 }
 0x25a   : > { %v3366_v26 = vunpack.c.l.b16 %v3058_v58  ;;  %1902 = vadd.xlane.f32.xlu1 %v1901_v17  ;;  %v2216_v35 = vadd.f32 %v5530_v48, %v2023_v45  ;;  %v1656_v20 = vmul.f32 %v4561_v32, %v1522_v51  ;;  %v3590_v28 = vrot.slane %v3301_v23, %v5542_v0 }
 0x25b   : > { %v2617_v62 = vrot.slane %v2262_v61, %v5533_v2  ;;  %v2624_v38 = vrot.slane %v2262_v61, %v5538_v49  ;;  %v3594_v41 = vrot.slane %v3302_v18, %v6796_v33  ;;  %v2093_v24 = vsel %vm1723_vm0, %v1718_v53, 0.0 }
 0x25c   : > { %v2026_v46 = vpop.xlane.xlu1 %2025  ;;  %v1720_v39 = vmul.f32 %v4561_v32, %v1586_v5  ;;  %v2294_v52 = vpack.c.bf16 %v2216_v35, %v2215_v19  ;;  %v3906_v56 = vrot.slane %v3365_v43, %v5542_v0  ;;  %v3910_v60 = vrot.slane %v3366_v26, %v6796_v33 }
 0x25d   : > { %v3303_v25 = vunpack.c.l.b16 %v2617_v62  ;;  %v3304_v30 = vunpack.c.l.b16 %v2624_v38  ;;  %v1524_v14 = vmax.f32 %v1138_v57, 0.0  ;;  %v1458_v42 = vadd.f32 %v4556_v31, %v6131_v27 }
 0x25e   : > { %2094 = vadd.xlane.f32.xlu1 %v2093_v24  ;;  %v3065_v53 = vrot.slane %v2294_v52, %v5533_v2  ;;  %v3072_v59 = vrot.slane %v2294_v52, %v5538_v49  ;;  %v3595_v54 = vsel %vm3408_vm1, %v3594_v41, %v3590_v28  ;;  %v1907_v21 = vsel %vm1723_vm0, %v1656_v20, 0.0 }
 0x25f   : > { %v3599_v22 = vrot.slane %v3303_v25, %v6797_v29  ;;  %v3604_v63 = vrot.slane %v3304_v30, %v6798_v47  ;;  %v2153_v10 = vadd.f32 %v5530_v48, %v1834_v37  ;;  %v1658_v9 = vmul.f32 %v4561_v32, %v1524_v14  ;;  %v6799_v30 = vld [vmem:[#allocation71_spill] sm:$0xff] }
 0x260   : > { %v1837_v40 = vpop.xlane.xlu1 %1836  ;;  %v3367_v17 = vunpack.c.l.b16 %v3065_v53  ;;  %v3368_v16 = vunpack.c.l.b16 %v3072_v59  ;;  %v2099_v45 = vsel %vm1723_vm0, %v1720_v39, 0.0  ;;  %v3911_v18 = vsel %vm3408_vm1, %v3910_v60, %v3906_v56 }
 0x261   : > { %v2154_v51 = vadd.f32 %v5530_v48, %v1837_v40  ;;  %v3600_v27 = vsel %vm3415_vm2, %v3599_v22, %v3595_v54  ;;  %v1588_v12 = vmax.f32 %v1458_v42, 0.0  ;;  %v2217_v43 = vadd.f32 %v5530_v48, %v2026_v46  ;;  %v1840_v46 = vpop.xlane.xlu0 %1839 }
 0x262   : > { %v3605_v44 = vsel %vm3422_vm3, %v3604_v63, %v3600_v27  ;;  %1908 = vadd.xlane.f32.xlu1 %v1907_v21  ;;  %v3915_v58 = vrot.slane %v3367_v17, %v6797_v29  ;;  %v3920_v5 = vrot.slane %v3368_v16, %v6798_v47  ;;  %v1913_v24 = vsel %vm1723_vm0, %v1658_v9, 0.0 }
 0x263   : > { %v2263_v23 = vpack.c.bf16 %v2154_v51, %v2153_v10  ;;  %v1722_v41 = vmul.f32 %v4561_v32, %v1588_v12  ;;  %v2155_v22 = vadd.f32 %v5530_v48, %v1840_v46 }
 0x264   : > { %v2029_v61 = vpop.xlane.xlu1 %2028  ;;  %v3916_v62 = vsel %vm3415_vm2, %v3915_v58, %v3911_v18 }
 0x265   : > { %v2631_v26 = vrot.slane %v2263_v23, %v5533_v2  ;;  %v2638_v57 = vrot.slane %v2263_v23, %v5538_v49  ;;  %v2218_v19 = vadd.f32 %v5530_v48, %v2029_v61  ;;  %v3921_v38 = vsel %vm3422_vm3, %v3920_v5, %v3916_v62 }
 0x266   : > { %2100 = vadd.xlane.f32.xlu1 %v2099_v45  ;;  %v2105_v59 = vsel %vm1723_vm0, %v1722_v41, 0.0  ;;  %v1846_v62 = vpop.xlane.xlu0 %1845  ;;  %vm6800_vm0 = vcmask 786112  }
 0x267   : > { %v3305_v35 = vunpack.c.l.b16 %v2631_v26  ;;  %v3306_v20 = vunpack.c.l.b16 %v2638_v57  ;;  %v2295_v28 = vpack.c.bf16 %v2218_v19, %v2217_v43  ;;  %vm6801_vm11 = vmmov %vm6800_vm0 }
 0x268   : > { %v2032_v39 = vpop.xlane.xlu1 %2031 }
 0x269   : > { %v3609_v25 = vrot.slane %v3305_v35, %v5570_v36  ;;  %v3614_v37 = vrot.slane %v3306_v20, %v6799_v30  ;;  %v3079_v52 = vrot.slane %v2295_v28, %v5533_v2  ;;  %v3086_v56 = vrot.slane %v2295_v28, %v5538_v49 }
 0x26a   : > { %1914 = vadd.xlane.f32.xlu1 %v1913_v24  ;;  %v2219_v12 = vadd.f32 %v5530_v48, %v2032_v39  ;;  %v2157_v24 = vadd.f32 %v5530_v48, %v1846_v62 }
 0x26b   : > { %v3610_v60 = vsel %vm3429_vm4, %v3609_v25, %v3605_v44  ;;  %v3369_v14 = vunpack.c.l.b16 %v3079_v52  ;;  %v3370_v42 = vunpack.c.l.b16 %v3086_v56 }
 0x26c   : > { %v3615_v63 = vsel %vm3436_vm5, %v3614_v37, %v3610_v60  ;;  %v1843_v53 = vpop.xlane.xlu1 %1842 }
 0x26d   : > { %v3925_v40 = vrot.slane %v3369_v14, %v5570_v36  ;;  %v3930_v54 = vrot.slane %v3370_v42, %v6799_v30  ;;  %v2156_v21 = vadd.f32 %v5530_v48, %v1843_v53 }
 0x26e   : > { %2106 = vadd.xlane.f32.xlu1 %v2105_v59 }
 0x26f   : > { %v3926_v10 = vsel %vm3429_vm4, %v3925_v40, %v3921_v38  ;;  %v2264_v51 = vpack.c.bf16 %v2156_v21, %v2155_v22 }
 0x270   : > { %v3931_v27 = vsel %vm3436_vm5, %v3930_v54, %v3926_v10 }
 0x271   : > { %v2645_v17 = vrot.slane %v2264_v51, %v5533_v2  ;;  %v2652_v16 = vrot.slane %v2264_v51, %v5538_v49 }
 0x273   : > { %v3307_v9 = vunpack.c.l.b16 %v2645_v17  ;;  %v3308_v44 = vunpack.c.l.b16 %v2652_v16  ;;  %v1852_v16 = vpop.xlane.xlu0 %1851 }
 0x274   : > { %v2035_v18 = vpop.xlane.xlu1 %2034 }
 0x275   : > { %v3619_v45 = vrot.slane %v3307_v9, %v5578_v34  ;;  %v3624_v23 = vrot.slane %v3308_v44, %v5583_v4  ;;  %v2220_v58 = vadd.f32 %v5530_v48, %v2035_v18  ;;  %v2159_v18 = vadd.f32 %v5530_v48, %v1852_v16 }
 0x277   : > { %v3620_v5 = vsel %vm3443_vm6, %v3619_v45, %v3615_v63  ;;  %v2296_v43 = vpack.c.bf16 %v2220_v58, %v2219_v12 }
 0x278   : > { %v3625_v61 = vsel %vm3450_vm7, %v3624_v23, %v3620_v5  ;;  %v2038_v26 = vpop.xlane.xlu1 %2037 }
 0x279   : > { %v3093_v57 = vrot.slane %v2296_v43, %v5533_v2  ;;  %v3100_v19 = vrot.slane %v2296_v43, %v5538_v49  ;;  %v2221_v56 = vadd.f32 %v5530_v48, %v2038_v26  ;;  %v1858_v43 = vpop.xlane.xlu0 %1857 }
 0x27b   : > { %v3371_v38 = vunpack.c.l.b16 %v3093_v57  ;;  %v3372_v35 = vunpack.c.l.b16 %v3100_v19 }
 0x27d   : > { %v3935_v20 = vrot.slane %v3371_v38, %v5578_v34  ;;  %v3940_v28 = vrot.slane %v3372_v35, %v5583_v4  ;;  %v1849_v41 = vpop.xlane.xlu1 %1848 }
 0x27e   : > { %v2158_v39 = vadd.f32 %v5530_v48, %v1849_v41  ;;  %v2050_v41 = vpop.xlane.xlu0 %2049 }
 0x27f   : > { %v3936_v46 = vsel %vm3443_vm6, %v3935_v20, %v3931_v27 }
 0x280   : > { %v3941_v25 = vsel %vm3450_vm7, %v3940_v28, %v3936_v46  ;;  %v2265_v37 = vpack.c.bf16 %v2158_v39, %v2157_v24 }
 0x281   : > { %v2041_v52 = vpop.xlane.xlu1 %2040 }
 0x282   : > { %v2659_v60 = vrot.slane %v2265_v37, %v5533_v2  ;;  %v2666_v14 = vrot.slane %v2265_v37, %v5538_v49  ;;  %v2222_v42 = vadd.f32 %v5530_v48, %v2041_v52  ;;  %v2161_v52 = vadd.f32 %v5530_v48, %v1858_v43 }
 0x284   : > { %v3309_v22 = vunpack.c.l.b16 %v2659_v60  ;;  %v3310_v63 = vunpack.c.l.b16 %v2666_v14  ;;  %v2297_v53 = vpack.c.bf16 %v2222_v42, %v2221_v56 }
 0x286   : > { %v3629_v59 = vrot.slane %v3309_v22, %v5586_v1  ;;  %v3634_v40 = vrot.slane %v3310_v63, %v5595_v8  ;;  %v3107_v54 = vrot.slane %v2297_v53, %v5533_v2  ;;  %v3114_v21 = vrot.slane %v2297_v53, %v5538_v49  ;;  %v2044_v10 = vpop.xlane.xlu1 %2043 }
 0x287   : > { %v2223_v57 = vadd.f32 %v5530_v48, %v2044_v10  ;;  %v2225_v10 = vadd.f32 %v5530_v48, %v2050_v41 }
 0x288   : > { %v3630_v51 = vsel %vm3457_vm8, %v3629_v59, %v3625_v61  ;;  %v3373_v27 = vunpack.c.l.b16 %v3107_v54  ;;  %v3374_v17 = vunpack.c.l.b16 %v3114_v21 }
 0x289   : > { %v3635_v9 = vsel %vm3464_vm9, %v3634_v40, %v3630_v51  ;;  %v1864_v51 = vpop.xlane.xlu0 %1863 }
 0x28a   : > { %v3945_v44 = vrot.slane %v3373_v27, %v5586_v1  ;;  %v3950_v45 = vrot.slane %v3374_v17, %v5595_v8 }
 0x28b   : > { %v1855_v23 = vpop.xlane.xlu1 %1854 }
 0x28c   : > { %v3946_v12 = vsel %vm3457_vm8, %v3945_v44, %v3941_v25  ;;  %v2160_v58 = vadd.f32 %v5530_v48, %v1855_v23 }
 0x28d   : > { %v3951_v5 = vsel %vm3464_vm9, %v3950_v45, %v3946_v12 }
 0x28e   : > { %v2266_v61 = vpack.c.bf16 %v2160_v58, %v2159_v18 }
 0x28f   : > { %v2047_v26 = vpop.xlane.xlu1 %2046 }
 0x290   : > { %v2673_v19 = vrot.slane %v2266_v61, %v5533_v2  ;;  %v2680_v62 = vrot.slane %v2266_v61, %v5538_v49  ;;  %v2224_v38 = vadd.f32 %v5530_v48, %v2047_v26  ;;  %v2163_v61 = vadd.f32 %v5530_v48, %v1864_v51 }
 0x292   : > { %v3311_v35 = vunpack.c.l.b16 %v2673_v19  ;;  %v3312_v20 = vunpack.c.l.b16 %v2680_v62  ;;  %v2298_v28 = vpack.c.bf16 %v2224_v38, %v2223_v57  ;;  %v2056_v57 = vpop.xlane.xlu0 %2055 }
 0x294   : > { %v3639_v24 = vrot.slane %v3311_v35, %v5598_v50  ;;  %v3644_v39 = vrot.slane %v3312_v20, %v5602_v3  ;;  %v3121_v46 = vrot.slane %v2298_v28, %v5533_v2  ;;  %v3128_v25 = vrot.slane %v2298_v28, %v5538_v49  ;;  %v1861_v37 = vpop.xlane.xlu1 %1860 }
 0x295   : > { %v2162_v56 = vadd.f32 %v5530_v48, %v1861_v37 }
 0x296   : > { %v3640_v60 = vsel %vm3471_vm10, %v3639_v24, %v3635_v9  ;;  %v3375_v14 = vunpack.c.l.b16 %v3121_v46  ;;  %v3376_v42 = vunpack.c.l.b16 %v3128_v25  ;;  %v2227_v24 = vadd.f32 %v5530_v48, %v2056_v57 }
 0x297   : > { %v3645_v22 = vsel %vm6800_vm0, %v3644_v39, %v3640_v60  ;;  %v2267_v63 = vpack.c.bf16 %v2162_v56, %v2161_v52  ;;  %vm4063_vm0 = vcmask 1042434  }
 0x298   : > { %v3955_v53 = vrot.slane %v3375_v14, %v5598_v50  ;;  %v3960_v59 = vrot.slane %v3376_v42, %v5602_v3 }
 0x299   : > { %v2687_v40 = vrot.slane %v2267_v63, %v5533_v2  ;;  %v2694_v54 = vrot.slane %v2267_v63, %v5538_v49  ;;  %v2053_v21 = vpop.xlane.xlu1 %2052 }
 0x29a   : > { %v3956_v27 = vsel %vm3471_vm10, %v3955_v53, %v3951_v5  ;;  %v2226_v17 = vadd.f32 %v5530_v48, %v2053_v21 }
 0x29b   : > { %v3961_v16 = vsel %vm6801_vm11, %v3960_v59, %v3956_v27  ;;  %v3313_v9 = vunpack.c.l.b16 %v2687_v40  ;;  %v3314_v44 = vunpack.c.l.b16 %v2694_v54 }
 0x29c   : > { %v2299_v45 = vpack.c.bf16 %v2226_v17, %v2225_v10 }
 0x29d   : > { %v3649_v23 = vrot.slane %v3313_v9, %v5617_v6  ;;  %v3654_v18 = vrot.slane %v3314_v44, %v5620_v7 }
 0x29e   : > { %v3135_v12 = vrot.slane %v2299_v45, %v5533_v2  ;;  %v3142_v58 = vrot.slane %v2299_v45, %v5538_v49  ;;  %v1867_v43 = vpop.xlane.xlu1 %1866 }
 0x29f   : > { %v3650_v5 = vsel %vm3485_vm12, %v3649_v23, %v3645_v22  ;;  %v2164_v26 = vadd.f32 %v5530_v48, %v1867_v43 }
 0x2a0   : > { %v3655_v19 = vsel %vm3492_vm13, %v3654_v18, %v3650_v5  ;;  %v3377_v62 = vunpack.c.l.b16 %v3135_v12  ;;  %v3378_v38 = vunpack.c.l.b16 %v3142_v58  ;;  %v1870_v18 = vpop.xlane.xlu0 %1869 }
 0x2a1   : > { %v2268_v35 = vpack.c.bf16 %v2164_v26, %v2163_v61 }
 0x2a2   : > { %v3965_v20 = vrot.slane %v3377_v62, %v5617_v6  ;;  %v3970_v28 = vrot.slane %v3378_v38, %v5620_v7  ;;  %v2059_v41 = vpop.xlane.xlu1 %2058  ;;  %v2165_v62 = vadd.f32 %v5530_v48, %v1870_v18 }
 0x2a3   : > { %v2701_v39 = vrot.slane %v2268_v35, %v5533_v2  ;;  %v2708_v46 = vrot.slane %v2268_v35, %v5538_v49  ;;  %v2228_v25 = vadd.f32 %v5530_v48, %v2059_v41 }
 0x2a4   : > { %v3966_v37 = vsel %vm3485_vm12, %v3965_v20, %v3961_v16  ;;  %v2062_v43 = vpop.xlane.xlu0 %2061 }
 0x2a5   : > { %v3971_v52 = vsel %vm3492_vm13, %v3970_v28, %v3966_v37  ;;  %v3315_v56 = vunpack.c.l.b16 %v2701_v39  ;;  %v3316_v60 = vunpack.c.l.b16 %v2708_v46  ;;  %v2300_v14 = vpack.c.bf16 %v2228_v25, %v2227_v24 }
 0x2a6   : > { %v2229_v24 = vadd.f32 %v5530_v48, %v2062_v43 }
 0x2a7   : > { %v3659_v42 = vrot.slane %v3315_v56, %v5624_v11  ;;  %v3664_v22 = vrot.slane %v3316_v60, %v5627_v13  ;;  %v3149_v63 = vrot.slane %v2300_v14, %v5533_v2  ;;  %v3156_v53 = vrot.slane %v2300_v14, %v5538_v49  ;;  %v1873_v59 = vpop.xlane.xlu1 %1872 }
 0x2a8   : > { %v1876_v5 = vpop.xlane.xlu0 %1875  ;;  %v2166_v57 = vadd.f32 %v5530_v48, %v1873_v59 }
 0x2a9   : > { %v3660_v40 = vsel %vm3499_vm14, %v3659_v42, %v3655_v19  ;;  %v3379_v54 = vunpack.c.l.b16 %v3149_v63  ;;  %v3380_v21 = vunpack.c.l.b16 %v3156_v53  ;;  %v2167_v35 = vadd.f32 %v5530_v48, %v1876_v5 }
 0x2aa   : > { %v3665_v10 = vsel %vm3506_vm15, %v3664_v22, %v3660_v40  ;;  %v2269_v20 = vpack.c.bf16 %v2166_v57, %v2165_v62 }
 0x2ab   : > { %v6429_v51 = vsel %vm4063_vm0, %v3665_v10, %v6288_v15  ;;  %v3975_v27 = vrot.slane %v3379_v54, %v5624_v11  ;;  %v3980_v17 = vrot.slane %v3380_v21, %v5627_v13 }
 0x2ac   : > { %v2065_v16 = vpop.xlane.xlu1 %2064  ;;  %v2068_v26 = vpop.xlane.xlu0 %2067  ;;  %v2722_v42 = vrot.slane %v2269_v20, %v5538_v49 }
 0x2ad   : > { %v3976_v9 = vsel %vm3499_vm14, %v3975_v27, %v3971_v52  ;;  %v2230_v28 = vadd.f32 %v5530_v48, %v2065_v16  ;;  %v2715_v52 = vrot.slane %v2269_v20, %v5533_v2  ;;  %v2231_v60 = vadd.f32 %v5530_v48, %v2068_v26 }
 0x2ae   : > { %v6435_v44 = vsel %vm3506_vm15, %v3980_v17, %v3976_v9  ;;  %v3318_v17 = vunpack.c.l.b16 %v2722_v42 }
 0x2af   : > { %v2301_v56 = vpack.c.bf16 %v2230_v28, %v2229_v24  ;;  %v3317_v40 = vunpack.c.l.b16 %v2715_v52 }
 0x2b0   : > { %v1879_v45 = vpop.xlane.xlu1 %1878  ;;  %v1882_v39 = vpop.xlane.xlu0 %1881 }
 0x2b1   : > { %v2168_v38 = vadd.f32 %v5530_v48, %v1879_v45  ;;  %v2169_v14 = vadd.f32 %v5530_v48, %v1882_v39  ;;  %v3163_v21 = vrot.slane %v2301_v56, %v5533_v2  ;;  %v3170_v10 = vrot.slane %v2301_v56, %v5538_v49 }
 0x2b2   : > { %v3669_v26 = vrot.slane %v3317_v40, %v5542_v0 }
 0x2b3   : > { %v2270_v46 = vpack.c.bf16 %v2168_v38, %v2167_v35  ;;  %v3381_v57 = vunpack.c.l.b16 %v3163_v21  ;;  %v3382_v62 = vunpack.c.l.b16 %v3170_v10  ;;  %v3673_v38 = vrot.slane %v3318_v17, %v6796_v33 }
 0x2b4   : > { %v1888_v54 = vpop.xlane.xlu0 %1887 }
 0x2b5   : > { %v2071_v23 = vpop.xlane.xlu1 %2070  ;;  %v2729_v63 = vrot.slane %v2270_v46, %v5533_v2  ;;  %v2736_v16 = vrot.slane %v2270_v46, %v5538_v49 }
 0x2b6   : > { %v2232_v25 = vadd.f32 %v5530_v48, %v2071_v23 }
 0x2b7   : > { %v3319_v23 = vunpack.c.l.b16 %v2729_v63  ;;  %v3320_v35 = vunpack.c.l.b16 %v2736_v16  ;;  %v3674_v63 = vsel %vm3408_vm1, %v3673_v38, %v3669_v26 }
 0x2b8   : > { %v2302_v53 = vpack.c.bf16 %v2232_v25, %v2231_v60  ;;  %v1894_v20 = vpop.xlane.xlu0 %1893  ;;  %v3985_v60 = vrot.slane %v3381_v57, %v5542_v0 }
 0x2b9   : > { %v2074_v12 = vpop.xlane.xlu1 %2073  ;;  %v2173_v42 = vadd.f32 %v5530_v48, %v1894_v20 }
 0x2ba   : > { %v2233_v18 = vadd.f32 %v5530_v48, %v2074_v12  ;;  %v3177_v43 = vrot.slane %v2302_v53, %v5533_v2  ;;  %v3678_v12 = vrot.slane %v3319_v23, %v6797_v29  ;;  %v3184_v39 = vrot.slane %v2302_v53, %v5538_v49 }
 0x2bb   : > { %v3683_v53 = vrot.slane %v3320_v35, %v6798_v47 }
 0x2bc   : > { %v3383_v25 = vunpack.c.l.b16 %v3177_v43  ;;  %v1900_v40 = vpop.xlane.xlu0 %1899  ;;  %v3679_v10 = vsel %vm3415_vm2, %v3678_v12, %v3674_v63 }
 0x2bd   : > { %v3684_v43 = vsel %vm3422_vm3, %v3683_v53, %v3679_v10 }
 0x2be   : > { %v1885_v58 = vpop.xlane.xlu1 %1884 }
 0x2bf   : > { %v2170_v37 = vadd.f32 %v5530_v48, %v1885_v58  ;;  %v2171_v58 = vadd.f32 %v5530_v48, %v1888_v54 }
 0x2c1   : > { %v2271_v59 = vpack.c.bf16 %v2170_v37, %v2169_v14  ;;  %v3989_v14 = vrot.slane %v3382_v62, %v6796_v33  ;;  %v3994_v33 = vrot.slane %v3383_v25, %v6797_v29 }
 0x2c3   : > { %v2077_v61 = vpop.xlane.xlu1 %2076  ;;  %v2743_v5 = vrot.slane %v2271_v59, %v5533_v2  ;;  %v2750_v37 = vrot.slane %v2271_v59, %v5538_v49 }
 0x2c4   : > { %v2234_v27 = vadd.f32 %v5530_v48, %v2077_v61  ;;  %v1906_v26 = vpop.xlane.xlu0 %1905 }
 0x2c5   : > { %v3321_v52 = vunpack.c.l.b16 %v2743_v5  ;;  %v3322_v17 = vunpack.c.l.b16 %v2750_v37  ;;  %v2175_v5 = vadd.f32 %v5530_v48, %v1900_v40 }
 0x2c6   : > { %v2303_v61 = vpack.c.bf16 %v2234_v27, %v2233_v18 }
 0x2c7   : > { %v2080_v15 = vpop.xlane.xlu1 %2079  ;;  %v3688_v16 = vrot.slane %v3321_v52, %v5570_v36 }
 0x2c8   : > { %v2235_v56 = vadd.f32 %v5530_v48, %v2080_v15  ;;  %v3384_v15 = vunpack.c.l.b16 %v3184_v39 }
 0x2ca   : > { %v3999_v38 = vrot.slane %v3384_v15, %v6798_v47 }
 0x2cb   : > { %v1891_v19 = vpop.xlane.xlu1 %1890 }
 0x2cc   : > { %v2172_v9 = vadd.f32 %v5530_v48, %v1891_v19 }
 0x2ce   : > { %v2272_v19 = vpack.c.bf16 %v2172_v9, %v2171_v58  ;;  %v3198_v9 = vrot.slane %v2303_v61, %v5538_v49 }
 0x2cf   : > { %v2083_v41 = vpop.xlane.xlu1 %2082 }
 0x2d0   : > { %v2236_v28 = vadd.f32 %v5530_v48, %v2083_v41  ;;  %v3191_v41 = vrot.slane %v2303_v61, %v5533_v2  ;;  %v2757_v54 = vrot.slane %v2272_v19, %v5533_v2  ;;  %v2764_v18 = vrot.slane %v2272_v19, %v5538_v49 }
 0x2d2   : > { %v2304_v21 = vpack.c.bf16 %v2236_v28, %v2235_v56  ;;  %v3385_v23 = vunpack.c.l.b16 %v3191_v41  ;;  %v3323_v57 = vunpack.c.l.b16 %v2757_v54  ;;  %v3693_v28 = vrot.slane %v3322_v17, %v6799_v30 }
 0x2d3   : > { %v2086_v22 = vpop.xlane.xlu1 %2085  ;;  %v3324_v39 = vunpack.c.l.b16 %v2764_v18 }
 0x2d4   : > { %v2237_v58 = vadd.f32 %v5530_v48, %v2086_v22  ;;  %v3205_v29 = vrot.slane %v2304_v21, %v5533_v2  ;;  %v3689_v22 = vsel %vm3429_vm4, %v3688_v16, %v3684_v43  ;;  %v4004_v12 = vrot.slane %v3385_v23, %v5570_v36  ;;  %v2098_v36 = vpop.xlane.xlu0 %2097 }
 0x2d5   : > { %v3698_v47 = vrot.slane %v3323_v57, %v5578_v34  ;;  %v3694_v63 = vsel %vm3436_vm5, %v3693_v28, %v3689_v22  ;;  %v3703_v10 = vrot.slane %v3324_v39, %v5583_v4  ;;  %v2177_v23 = vadd.f32 %v5530_v48, %v1906_v26 }
 0x2d6   : > { %v3387_v37 = vunpack.c.l.b16 %v3205_v29 }
 0x2d7   : > { %v1897_v45 = vpop.xlane.xlu1 %1896 }
 0x2d8   : > { %v2174_v46 = vadd.f32 %v5530_v48, %v1897_v45  ;;  %v3990_v45 = vsel %vm3408_vm1, %v3989_v14, %v3985_v60  ;;  %v1912_v29 = vpop.xlane.xlu0 %1911  ;;  %vm6802_vm1 = vmmov %vm6801_vm11 }
 0x2d9   : > { %v3995_v19 = vsel %vm3415_vm2, %v3994_v33, %v3990_v45  ;;  %vm4065_vm2 = vcmask 1043459  }
 0x2da   : > { %v2273_v27 = vpack.c.bf16 %v2174_v46, %v2173_v42  ;;  %v3212_v46 = vrot.slane %v2304_v21, %v5538_v49  ;;  %v4000_v41 = vsel %vm3422_vm3, %v3999_v38, %v3995_v19  ;;  %vm4067_vm3 = vcmask 1044484  }
 0x2db   : > { %v2089_v24 = vpop.xlane.xlu1 %2088  ;;  %v4005_v54 = vsel %vm3429_vm4, %v4004_v12, %v4000_v41  ;;  %vm6803_vm4 = vmmov %vm6802_vm1 }
 0x2dc   : > { %v2238_v0 = vadd.f32 %v5530_v48, %v2089_v24  ;;  %v2771_v61 = vrot.slane %v2273_v27, %v5533_v2  ;;  %v3386_v24 = vunpack.c.l.b16 %v3198_v9  ;;  %v2778_v52 = vrot.slane %v2273_v27, %v5538_v49 }
 0x2dd   : > { %v3388_v15 = vunpack.c.l.b16 %v3212_v46  ;;  %v3699_v27 = vsel %vm3443_vm6, %v3698_v47, %v3694_v63  ;;  %v2179_v47 = vadd.f32 %v5530_v48, %v1912_v29  ;;  %v2104_v63 = vpop.xlane.xlu0 %2103 }
 0x2de   : > { %v2305_v35 = vpack.c.bf16 %v2238_v0, %v2237_v58  ;;  %v3325_v60 = vunpack.c.l.b16 %v2771_v61  ;;  %v4009_v21 = vrot.slane %v3386_v24, %v6799_v30  ;;  %v4014_v0 = vrot.slane %v3387_v37, %v5578_v34 }
 0x2df   : > { %v2092_v59 = vpop.xlane.xlu1 %2091  ;;  %v3326_v33 = vunpack.c.l.b16 %v2778_v52  ;;  %v3704_v34 = vsel %vm3450_vm7, %v3703_v10, %v3699_v27  ;;  %v4019_v57 = vrot.slane %v3388_v15, %v5583_v4 }
 0x2e0   : > { %v3219_v14 = vrot.slane %v2305_v35, %v5533_v2  ;;  %v2239_v53 = vadd.f32 %v5530_v48, %v2092_v59  ;;  %v3708_v9 = vrot.slane %v3325_v60, %v5586_v1  ;;  %v3226_v59 = vrot.slane %v2305_v35, %v5538_v49 }
 0x2e1   : > { %v4010_v43 = vsel %vm3436_vm5, %v4009_v21, %v4005_v54  ;;  %v3713_v38 = vrot.slane %v3326_v33, %v5595_v8  ;;  %vm4069_vm5 = vcmask 1045509  }
 0x2e2   : > { %v3389_v45 = vunpack.c.l.b16 %v3219_v14  ;;  %v3390_v19 = vunpack.c.l.b16 %v3226_v59 }
 0x2e3   : > { %v1903_v62 = vpop.xlane.xlu1 %1902 }
 0x2e4   : > { %v2176_v20 = vadd.f32 %v5530_v48, %v1903_v62  ;;  %v4015_v62 = vsel %vm3443_vm6, %v4014_v0, %v4010_v43  ;;  %v4024_v22 = vrot.slane %v3389_v45, %v5586_v1  ;;  %v4029_v14 = vrot.slane %v3390_v19, %v5595_v8 }
 0x2e5   : > { %v4020_v37 = vsel %vm3450_vm7, %v4019_v57, %v4015_v62  ;;  %vm4071_vm6 = vcmask 1046534   ;;  %vm4073_vm7 = vcmask 1047559  }
 0x2e6   : > { %v2274_v25 = vpack.c.bf16 %v2176_v20, %v2175_v5  ;;  %v2241_v5 = vadd.f32 %v5530_v48, %v2098_v36  ;;  %v3709_v20 = vsel %vm3457_vm8, %v3708_v9, %v3704_v34  ;;  %v4025_v36 = vsel %vm3457_vm8, %v4024_v22, %v4020_v37 }
 0x2e7   : > { %v2095_v56 = vpop.xlane.xlu1 %2094  ;;  %v3714_v1 = vsel %vm3464_vm9, %v3713_v38, %v3709_v20 }
 0x2e8   : > { %v2240_v42 = vadd.f32 %v5530_v48, %v2095_v56  ;;  %v2785_v40 = vrot.slane %v2274_v25, %v5533_v2  ;;  %v2792_v18 = vrot.slane %v2274_v25, %v5538_v49 }
 0x2ea   : > { %v2306_v17 = vpack.c.bf16 %v2240_v42, %v2239_v53  ;;  %v3327_v30 = vunpack.c.l.b16 %v2785_v40  ;;  %v3328_v24 = vunpack.c.l.b16 %v2792_v18 }
 0x2eb   : > { %v1909_v16 = vpop.xlane.xlu1 %1908 }
 0x2ec   : > { %v2178_v58 = vadd.f32 %v5530_v48, %v1909_v16  ;;  %v3233_v26 = vrot.slane %v2306_v17, %v5533_v2  ;;  %v3718_v12 = vrot.slane %v3327_v30, %v5598_v50  ;;  %v3240_v46 = vrot.slane %v2306_v17, %v5538_v49 }
 0x2ed   : > { %v3723_v40 = vrot.slane %v3328_v24, %v5602_v3  ;;  %v2243_v17 = vadd.f32 %v5530_v48, %v2104_v63  ;;  %v4030_v16 = vsel %vm3464_vm9, %v4029_v14, %v4025_v36 }
 0x2ee   : > { %v2275_v61 = vpack.c.bf16 %v2178_v58, %v2177_v23  ;;  %v3391_v52 = vunpack.c.l.b16 %v3233_v26  ;;  %v3719_v53 = vsel %vm3471_vm10, %v3718_v12, %v3714_v1  ;;  %v3392_v21 = vunpack.c.l.b16 %v3240_v46 }
 0x2ef   : > { %v2101_v35 = vpop.xlane.xlu1 %2100  ;;  %v3724_v59 = vsel %vm6802_vm1, %v3723_v40, %v3719_v53 }
 0x2f0   : > { %v2242_v28 = vadd.f32 %v5530_v48, %v2101_v35  ;;  %v2799_v4 = vrot.slane %v2275_v61, %v5533_v2  ;;  %v2806_v39 = vrot.slane %v2275_v61, %v5538_v49  ;;  %v4034_v8 = vrot.slane %v3391_v52, %v5598_v50 }
 0x2f1   : > { %v4039_v30 = vrot.slane %v3392_v21, %v5602_v3 }
 0x2f2   : > { %v2307_v25 = vpack.c.bf16 %v2242_v28, %v2241_v5  ;;  %v3329_v56 = vunpack.c.l.b16 %v2799_v4  ;;  %v3330_v54 = vunpack.c.l.b16 %v2806_v39  ;;  %v4035_v5 = vsel %vm3471_vm10, %v4034_v8, %v4030_v16 }
 0x2f3   : > { %v1915_v60 = vpop.xlane.xlu1 %1914  ;;  %v4040_v61 = vsel %vm6803_vm4, %v4039_v30, %v4035_v5 }
 0x2f4   : > { %v3247_v42 = vrot.slane %v2307_v25, %v5533_v2  ;;  %v2180_v41 = vadd.f32 %v5530_v48, %v1915_v60  ;;  %v3728_v10 = vrot.slane %v3329_v56, %v5617_v6  ;;  %v3254_v15 = vrot.slane %v2307_v25, %v5538_v49 }
 0x2f5   : > { %v3733_v45 = vrot.slane %v3330_v54, %v5620_v7 }
 0x2f6   : > { %v2276_v27 = vpack.c.bf16 %v2180_v41, %v2179_v47  ;;  %v3393_v0 = vunpack.c.l.b16 %v3247_v42  ;;  %v3729_v50 = vsel %vm3485_vm12, %v3728_v10, %v3724_v59  ;;  %v3394_v58 = vunpack.c.l.b16 %v3254_v15 }
 0x2f7   : > { %v2107_v33 = vpop.xlane.xlu1 %2106  ;;  %v3734_v38 = vsel %vm3492_vm13, %v3733_v45, %v3729_v50 }
 0x2f8   : > { %v2813_v9 = vrot.slane %v2276_v27, %v5533_v2  ;;  %v2820_v23 = vrot.slane %v2276_v27, %v5538_v49  ;;  %v2244_v18 = vadd.f32 %v5530_v48, %v2107_v33  ;;  %v4044_v34 = vrot.slane %v3393_v0, %v5617_v6 }
 0x2f9   : > { %v4049_v35 = vrot.slane %v3394_v58, %v5620_v7 }
 0x2fa   : > { %v3331_v43 = vunpack.c.l.b16 %v2813_v9  ;;  %v3332_v57 = vunpack.c.l.b16 %v2820_v23  ;;  %v2308_v29 = vpack.c.bf16 %v2244_v18, %v2243_v17  ;;  %v4045_v20 = vsel %vm3485_vm12, %v4044_v34, %v4040_v61 }
 0x2fb   : > { %v4050_v7 = vsel %vm3492_vm13, %v4049_v35, %v4045_v20 }
 0x2fc   : > { %v3738_v62 = vrot.slane %v3331_v43, %v5624_v11  ;;  %v3743_v48 = vrot.slane %v3332_v57, %v5627_v13  ;;  %v3261_v3 = vrot.slane %v2308_v29, %v5533_v2  ;;  %v3268_v26 = vrot.slane %v2308_v29, %v5538_v49  ;;  %v6804_v2 = vld [vmem:[#allocation72_spill] sm:$0xff] }
 0x2fe   : > { %v3739_v6 = vsel %vm3499_vm14, %v3738_v62, %v3734_v38  ;;  %v3395_v22 = vunpack.c.l.b16 %v3261_v3  ;;  %v3396_v28 = vunpack.c.l.b16 %v3268_v26 }
 0x2ff   : > { %v3744_v19 = vsel %vm3506_vm15, %v3743_v48, %v3739_v6 }
 0x300   : > { %v4066_v24 = vsel %vm4065_vm2, %v3744_v19, %v6429_v51  ;;  %v4054_v12 = vrot.slane %v3395_v22, %v5624_v11  ;;  %v4059_v4 = vrot.slane %v3396_v28, %v5627_v13 }
 0x301   : > { %v4068_v49 = vsel %vm4067_vm3, %v6804_v2, %v4066_v24 }
 0x302   : > { %v4070_v39 = vsel %vm4069_vm5, %v6292_v55, %v4068_v49  ;;  %v4055_v46 = vsel %vm3499_vm14, %v4054_v12, %v4050_v7 }
 0x303   : > { %v4072_v25 = vsel %vm4071_vm6, %v6435_v44, %v4070_v39  ;;  %v4060_v51 = vsel %vm3506_vm15, %v4059_v4, %v4055_v46  ;;  %96 = sbr.rel (!%p94_p0) target bundleno = 36 (0x24), region = 53 }
 0x304   : > { %v4074_v47 = vsel %vm4073_vm7, %v4060_v51, %v4072_v25 }
 0x305   : > { %v4075_v11 = vpack.c.b16 %v4074_v47, %v4074_v47 }
 0x307   : > { %4079 = vst [vmem:[%s4078_s9] sm:$0xf] %v4075_v11 }

// kernel: forward_pair.9
= control target key start
LH: loop header
LB: loop body
LE: loop exit
PB: predicated region body
PF: predicated region fallthrough
CT: control target
= control target key end

     0   :  { %v41_v0 = vlaneseq  ;;  %v685_v40 = vmov 0.0   ;;  %vm608_vm1 = vcmask 523264   ;;  %vm624_vm2 = vcmask 7168   ;;  %s1362_s0 = inlined_call_operand.vmem [shape: bf16[16,128], index: 0, kind: input, shape index: {}]   ;;  %s1363_s2 = inlined_call_operand.vmem [shape: f32[128,256], index: 2, kind: input, shape index: {}]   ;;  %s1364_s4 = inlined_call_operand.vmem [shape: f32[256,256], index: 4, kind: input, shape index: {}]   ;;  %s1365_s3 = inlined_call_operand.vmem [shape: f32[256,256], index: 3, kind: input, shape index: {}]   ;;  %s1366_s1 = inlined_call_operand.vmem [shape: f32[16,256], index: 1, kind: input, shape index: {}]   ;;  %s1367_s6 = inlined_call_operand.vmem [shape: f32[256,64], index: 6, kind: input, shape index: {}]   ;;  %s1368_s5 = inlined_call_operand.vmem [shape: f32[1,256], index: 5, kind: input, shape index: {}]   ;;  %s1369_s9 = inlined_call_operand.<no memory space> [shape: f32[1,1], index: 9, kind: input, shape index: {}]   ;;  %s1370_s7 = inlined_call_operand.vmem [shape: f32[1,64], index: 7, kind: input, shape index: {}]   ;;  %s1371_s8 = inlined_call_operand.vmem [shape: f32[1,64], index: 8, kind: input, shape index: {}]   ;;  %s1372_s10 = inlined_call_operand.vmem [shape: f32[16,1], index: 10, kind: output, shape index: {}]  }
   0x1   :  { %v635_v1 = vld [vmem:[%s1362_s0] sm:$0xff]   ;;  %v99_v7 = vld [vmem:[%s1363_s2 + $0xf8] sm:$0xff]  ;;  %v98_v8 = vld [vmem:[%s1363_s2 + $0xf0] sm:$0xff]  ;;  %164 = vmatprep.mubr.f32.mxu0 %v685_v40 }
   0x2   :  { %v636_v2 = vunpack.c.l.bf16 %v635_v1  ;;  %v42_v3 = vand.u32 127, %v41_v0  ;;  %v637_v4 = vunpack.c.h.bf16 %v635_v1  ;;  %v97_v9 = vld [vmem:[%s1363_s2 + $0xe8] sm:$0xff]  ;;  %100 = vmatprep.subr.mxu0 %v99_v7  ;;  %v96_v10 = vld [vmem:[%s1363_s2 + $0xe0] sm:$0xff]  ;;  %v95_v11 = vld [vmem:[%s1363_s2 + $0xd8] sm:$0xff] }
   0x3   :  { %101 = vmatpush1.msra.mxu0 %v98_v8  ;;  %v94_v12 = vld [vmem:[%s1363_s2 + $0xd0] sm:$0xff]  ;;  %v93_v13 = vld [vmem:[%s1363_s2 + $0xc8] sm:$0xff]  ;;  %v92_v14 = vld [vmem:[%s1363_s2 + $0xc0] sm:$0xff] }
   0x4   :  { %vm43_vm0 = vcmp.lt.s32.totalorder %v42_v3, 16  ;;  %102 = vmatprep.subr.mxu0 %v97_v9  ;;  %v91_v15 = vld [vmem:[%s1363_s2 + $0xb8] sm:$0xff]  ;;  %v90_v16 = vld [vmem:[%s1363_s2 + $0xb0] sm:$0xff]  ;;  %v89_v17 = vld [vmem:[%s1363_s2 + $0xa8] sm:$0xff] }
   0x5   :  { %v46_v5 = vsel %vm43_vm0, %v636_v2, -1e+30  ;;  %v47_v6 = vsel %vm43_vm0, %v637_v4, -1e+30  ;;  %103 = vmatpush1.msra.mxu0 %v96_v10  ;;  %v88_v18 = vld [vmem:[%s1363_s2 + $0xa0] sm:$0xff]  ;;  %v87_v19 = vld [vmem:[%s1363_s2 + $0x98] sm:$0xff] }
   0x6   :  { %48 = vmax.xlane.f32.xlu0 %v46_v5  ;;  %104 = vmatprep.subr.mxu0 %v95_v11  ;;  %v86_v20 = vld [vmem:[%s1363_s2 + $0x90] sm:$0xff]  ;;  %v85_v21 = vld [vmem:[%s1363_s2 + $0x88] sm:$0xff]  ;;  %v84_v22 = vld [vmem:[%s1363_s2 + $0x80] sm:$0xff] }
   0x7   :  { %105 = vmatpush1.msra.mxu0 %v94_v12  ;;  %v83_v31 = vld [vmem:[%s1363_s2 + $0x78] sm:$0xff]  ;;  %v82_v32 = vld [vmem:[%s1363_s2 + $0x70] sm:$0xff]  ;;  %v81_v33 = vld [vmem:[%s1363_s2 + $0x68] sm:$0xff] }
   0x8   :  { %106 = vmatprep.subr.mxu0 %v93_v13  ;;  %v80_v34 = vld [vmem:[%s1363_s2 + $0x60] sm:$0xff]  ;;  %v79_v35 = vld [vmem:[%s1363_s2 + $0x58] sm:$0xff]  ;;  %v78_v36 = vld [vmem:[%s1363_s2 + $0x50] sm:$0xff] }
   0x9   :  { %107 = vmatpush1.msra.mxu0 %v92_v14  ;;  %v77_v37 = vld [vmem:[%s1363_s2 + $0x48] sm:$0xff]  ;;  %v76_v38 = vld [vmem:[%s1363_s2 + $0x40] sm:$0xff]  ;;  %v75_v39 = vld [vmem:[%s1363_s2 + $0x38] sm:$0xff] }
   0xa   :  { %50 = vmax.xlane.f32.xlu0 %v47_v6  ;;  %108 = vmatprep.subr.mxu0 %v91_v15  ;;  %v74_v41 = vld [vmem:[%s1363_s2 + $0x30] sm:$0xff]  ;;  %v73_v42 = vld [vmem:[%s1363_s2 + $0x28] sm:$0xff]  ;;  %v72_v43 = vld [vmem:[%s1363_s2 + $0x20] sm:$0xff] }
   0xb   :  { %109 = vmatpush1.msra.mxu0 %v90_v16  ;;  %v71_v44 = vld [vmem:[%s1363_s2 + $0x18] sm:$0xff]  ;;  %v70_v45 = vld [vmem:[%s1363_s2 + $0x10] sm:$0xff]  ;;  %v69_v46 = vld [vmem:[%s1363_s2 + $0x8] sm:$0xff] }
   0xc   :  { %110 = vmatprep.subr.mxu0 %v89_v17  ;;  %v68_v47 = vld [vmem:[%s1363_s2] sm:$0xff]  ;;  %v276_v48 = vld [vmem:[%s1364_s4 + $0xf8] sm:$0xff]  ;;  %v275_v49 = vld [vmem:[%s1364_s4 + $0xf0] sm:$0xff] }
   0xd   :  { %111 = vmatpush1.msra.mxu0 %v88_v18  ;;  %v274_v50 = vld [vmem:[%s1364_s4 + $0xe8] sm:$0xff]  ;;  %309 = vmatprep.subr.mxu1 %v276_v48  ;;  %v208_v51 = vld [vmem:[%s1365_s3 + $0xf8] sm:$0xff]  ;;  %v273_v52 = vld [vmem:[%s1364_s4 + $0xe0] sm:$0xff] }
   0xe   :  { %112 = vmatprep.subr.mxu0 %v87_v19  ;;  %310 = vmatpush1.msra.mxu1 %v275_v49  ;;  %v272_v53 = vld [vmem:[%s1364_s4 + $0xd8] sm:$0xff]  ;;  %v271_v54 = vld [vmem:[%s1364_s4 + $0xd0] sm:$0xff]  ;;  %v270_v55 = vld [vmem:[%s1364_s4 + $0xc8] sm:$0xff] }
   0xf   :  { %113 = vmatpush1.msra.mxu0 %v86_v20  ;;  %311 = vmatprep.subr.mxu1 %v274_v50  ;;  %v269_v56 = vld [vmem:[%s1364_s4 + $0xc0] sm:$0xff]  ;;  %v268_v57 = vld [vmem:[%s1364_s4 + $0xb8] sm:$0xff]  ;;  %v267_v58 = vld [vmem:[%s1364_s4 + $0xb0] sm:$0xff] }
  0x10   :  { %114 = vmatprep.subr.mxu0 %v85_v21  ;;  %312 = vmatpush1.msra.mxu1 %v273_v52  ;;  %v266_v59 = vld [vmem:[%s1364_s4 + $0xa8] sm:$0xff]  ;;  %v265_v60 = vld [vmem:[%s1364_s4 + $0xa0] sm:$0xff]  ;;  %v264_v61 = vld [vmem:[%s1364_s4 + $0x98] sm:$0xff] }
  0x11   :  { %115 = vmatpush1.msra.mxu0 %v84_v22  ;;  %313 = vmatprep.subr.mxu1 %v272_v53  ;;  %v263_v62 = vld [vmem:[%s1364_s4 + $0x90] sm:$0xff]  ;;  %v262_v63 = vld [vmem:[%s1364_s4 + $0x88] sm:$0xff]  ;;  %v261_v1 = vld [vmem:[%s1364_s4 + $0x80] sm:$0xff] }
  0x12   :  { %116 = vmatprep.subr.mxu0 %v83_v31  ;;  %314 = vmatpush1.msra.mxu1 %v271_v54  ;;  %v260_v2 = vld [vmem:[%s1364_s4 + $0x78] sm:$0xff]  ;;  %v259_v3 = vld [vmem:[%s1364_s4 + $0x70] sm:$0xff]  ;;  %v258_v4 = vld [vmem:[%s1364_s4 + $0x68] sm:$0xff] }
  0x13   :  { %117 = vmatpush1.msra.mxu0 %v82_v32  ;;  %315 = vmatprep.subr.mxu1 %v270_v55  ;;  %v255_v7 = vld [vmem:[%s1364_s4 + $0x50] sm:$0xff]  ;;  %v254_v8 = vld [vmem:[%s1364_s4 + $0x48] sm:$0xff]  ;;  %v253_v9 = vld [vmem:[%s1364_s4 + $0x40] sm:$0xff] }
  0x14   :  { %118 = vmatprep.subr.mxu0 %v81_v33  ;;  %316 = vmatpush1.msra.mxu1 %v269_v56  ;;  %v252_v10 = vld [vmem:[%s1364_s4 + $0x38] sm:$0xff]  ;;  %v251_v11 = vld [vmem:[%s1364_s4 + $0x30] sm:$0xff]  ;;  %v250_v12 = vld [vmem:[%s1364_s4 + $0x28] sm:$0xff] }
  0x15   :  { %119 = vmatpush1.msra.mxu0 %v80_v34  ;;  %317 = vmatprep.subr.mxu1 %v268_v57  ;;  %v249_v13 = vld [vmem:[%s1364_s4 + $0x20] sm:$0xff]  ;;  %v248_v14 = vld [vmem:[%s1364_s4 + $0x18] sm:$0xff]  ;;  %v247_v15 = vld [vmem:[%s1364_s4 + $0x10] sm:$0xff] }
  0x16   :  { %120 = vmatprep.subr.mxu0 %v79_v35  ;;  %318 = vmatpush1.msra.mxu1 %v267_v58  ;;  %v246_v16 = vld [vmem:[%s1364_s4 + $0x8] sm:$0xff]  ;;  %v245_v17 = vld [vmem:[%s1364_s4] sm:$0xff]  ;;  %v308_v18 = vld [vmem:[%s1364_s4 + $0x1f8] sm:$0xff] }
  0x17   :  { %121 = vmatpush1.msra.mxu0 %v78_v36  ;;  %319 = vmatprep.subr.mxu1 %v266_v59  ;;  %v307_v19 = vld [vmem:[%s1364_s4 + $0x1f0] sm:$0xff]  ;;  %v306_v20 = vld [vmem:[%s1364_s4 + $0x1e8] sm:$0xff]  ;;  %v305_v21 = vld [vmem:[%s1364_s4 + $0x1e0] sm:$0xff] }
  0x18   :  { %122 = vmatprep.subr.mxu0 %v77_v37  ;;  %320 = vmatpush1.msra.mxu1 %v265_v60  ;;  %v304_v22 = vld [vmem:[%s1364_s4 + $0x1d8] sm:$0xff]  ;;  %v297_v31 = vld [vmem:[%s1364_s4 + $0x1a0] sm:$0xff]  ;;  %v295_v33 = vld [vmem:[%s1364_s4 + $0x190] sm:$0xff] }
  0x19   :  { %123 = vmatpush1.msra.mxu0 %v76_v38  ;;  %321 = vmatprep.subr.mxu1 %v264_v61  ;;  %v296_v32 = vld [vmem:[%s1364_s4 + $0x198] sm:$0xff]  ;;  %v294_v34 = vld [vmem:[%s1364_s4 + $0x188] sm:$0xff]  ;;  %v293_v35 = vld [vmem:[%s1364_s4 + $0x180] sm:$0xff] }
  0x1a   :  { %124 = vmatprep.subr.mxu0 %v75_v39  ;;  %322 = vmatpush1.msra.mxu1 %v263_v62  ;;  %v292_v36 = vld [vmem:[%s1364_s4 + $0x178] sm:$0xff]  ;;  %v291_v37 = vld [vmem:[%s1364_s4 + $0x170] sm:$0xff]  ;;  %v290_v38 = vld [vmem:[%s1364_s4 + $0x168] sm:$0xff] }
  0x1b   :  { %125 = vmatpush1.msra.mxu0 %v74_v41  ;;  %323 = vmatprep.subr.mxu1 %v262_v63  ;;  %v289_v39 = vld [vmem:[%s1364_s4 + $0x160] sm:$0xff]  ;;  %v288_v41 = vld [vmem:[%s1364_s4 + $0x158] sm:$0xff]  ;;  %v279_v50 = vld [vmem:[%s1364_s4 + $0x110] sm:$0xff] }
  0x1c   :  { %126 = vmatprep.subr.mxu0 %v73_v42  ;;  %324 = vmatpush1.msra.mxu1 %v261_v1  ;;  %v287_v42 = vld [vmem:[%s1364_s4 + $0x150] sm:$0xff]  ;;  %v281_v48 = vld [vmem:[%s1364_s4 + $0x120] sm:$0xff]  ;;  %v280_v49 = vld [vmem:[%s1364_s4 + $0x118] sm:$0xff] }
  0x1d   :  { %127 = vmatpush1.msra.mxu0 %v72_v43  ;;  %325 = vmatprep.subr.mxu1 %v260_v2  ;;  %v286_v43 = vld [vmem:[%s1364_s4 + $0x148] sm:$0xff]  ;;  %v207_v55 = vld [vmem:[%s1365_s3 + $0xf0] sm:$0xff]  ;;  %v205_v57 = vld [vmem:[%s1365_s3 + $0xe0] sm:$0xff] }
  0x1e   :  { %128 = vmatprep.subr.mxu0 %v71_v44  ;;  %326 = vmatpush1.msra.mxu1 %v259_v3  ;;  %v285_v44 = vld [vmem:[%s1364_s4 + $0x140] sm:$0xff]  ;;  %v206_v56 = vld [vmem:[%s1365_s3 + $0xe8] sm:$0xff]  ;;  %v203_v60 = vld [vmem:[%s1365_s3 + $0xd0] sm:$0xff] }
  0x1f   :  { %129 = vmatpush1.msra.mxu0 %v70_v45  ;;  %327 = vmatprep.subr.mxu1 %v258_v4  ;;  %v284_v45 = vld [vmem:[%s1364_s4 + $0x138] sm:$0xff]  ;;  %v202_v61 = vld [vmem:[%s1365_s3 + $0xc8] sm:$0xff]  ;;  %v199_v62 = vld [vmem:[%s1365_s3 + $0xb0] sm:$0xff] }
  0x20   :  { %130 = vmatprep.subr.mxu0 %v69_v46  ;;  %v283_v46 = vld [vmem:[%s1364_s4 + $0x130] sm:$0xff]  ;;  %v198_v63 = vld [vmem:[%s1365_s3 + $0xa8] sm:$0xff]  ;;  %v197_v1 = vld [vmem:[%s1365_s3 + $0xa0] sm:$0xff] }
  0x21   :  { %131 = vmatpush1.msra.mxu0 %v68_v47  ;;  %v282_v47 = vld [vmem:[%s1364_s4 + $0x128] sm:$0xff]  ;;  %v196_v2 = vld [vmem:[%s1365_s3 + $0x98] sm:$0xff]  ;;  %v195_v3 = vld [vmem:[%s1365_s3 + $0x90] sm:$0xff] }
  0x22   :  { %386 = vmatprep.subr.mxu0 %v208_v51  ;;  %v194_v4 = vld [vmem:[%s1365_s3 + $0x88] sm:$0xff] }
  0x8f   :  { %v49_v23 = vpop.xlane.xlu0 %48 }
  0x90   :  { %v52_v24 = vsub.f32 %v46_v5, %v49_v23  ;;  %v257_v5 = vld [vmem:[%s1364_s4 + $0x60] sm:$0xff]  ;;  %v303_v23 = vld [vmem:[%s1364_s4 + $0x1d0] sm:$0xff] }
  0x91   :  { %328 = vmatpush1.msra.mxu1 %v257_v5  ;;  %v193_v5 = vld [vmem:[%s1365_s3 + $0x80] sm:$0xff] }
  0x92   :  { %v54_v25 = vmul.f32 1.442695, %v52_v24  ;;  %v302_v24 = vld [vmem:[%s1364_s4 + $0x1c8] sm:$0xff] }
  0x93   :  { %v51_v26 = vpop.xlane.xlu0 %50 }
  0x94   :  { %677 = vpow2.f32 %v54_v25  ;;  %v53_v27 = vsub.f32 %v47_v6, %v51_v26  ;;  %v256_v6 = vld [vmem:[%s1364_s4 + $0x58] sm:$0xff]  ;;  %v301_v25 = vld [vmem:[%s1364_s4 + $0x1c0] sm:$0xff] }
  0x95   :  { %329 = vmatprep.subr.mxu1 %v256_v6  ;;  %v300_v26 = vld [vmem:[%s1364_s4 + $0x1b8] sm:$0xff] }
  0x96   :  { %v56_v28 = vmul.f32 1.442695, %v53_v27  ;;  %330 = vmatpush1.msra.mxu1 %v255_v7  ;;  %v299_v27 = vld [vmem:[%s1364_s4 + $0x1b0] sm:$0xff]  ;;  %v192_v6 = vld [vmem:[%s1365_s3 + $0x78] sm:$0xff] }
  0x97   :  { %331 = vmatprep.subr.mxu1 %v254_v8  ;;  %v191_v7 = vld [vmem:[%s1365_s3 + $0x70] sm:$0xff]  ;;  %v190_v8 = vld [vmem:[%s1365_s3 + $0x68] sm:$0xff] }
  0x98   :  { %679 = vpow2.f32 %v56_v28  ;;  %332 = vmatpush1.msra.mxu1 %v253_v9  ;;  %v298_v28 = vld [vmem:[%s1364_s4 + $0x1a8] sm:$0xff]  ;;  %v189_v9 = vld [vmem:[%s1365_s3 + $0x60] sm:$0xff] }
  0x99   :  { %333 = vmatprep.subr.mxu1 %v252_v10  ;;  %v188_v10 = vld [vmem:[%s1365_s3 + $0x58] sm:$0xff] }
  0x9a   :  { %334 = vmatpush1.msra.mxu1 %v251_v11  ;;  %v187_v11 = vld [vmem:[%s1365_s3 + $0x50] sm:$0xff] }
  0x9b   :  { %335 = vmatprep.subr.mxu1 %v250_v12  ;;  %v186_v12 = vld [vmem:[%s1365_s3 + $0x48] sm:$0xff] }
  0x9c   :  { %336 = vmatpush1.msra.mxu1 %v249_v13  ;;  %v185_v13 = vld [vmem:[%s1365_s3 + $0x40] sm:$0xff] }
  0x9d   :  { %337 = vmatprep.subr.mxu1 %v248_v14  ;;  %v184_v14 = vld [vmem:[%s1365_s3 + $0x38] sm:$0xff] }
  0x9e   :  { %338 = vmatpush1.msra.mxu1 %v247_v15  ;;  %v183_v15 = vld [vmem:[%s1365_s3 + $0x30] sm:$0xff] }
  0x9f   :  { %339 = vmatprep.subr.mxu1 %v246_v16  ;;  %v182_v16 = vld [vmem:[%s1365_s3 + $0x28] sm:$0xff] }
  0xa0   :  { %340 = vmatpush1.msra.mxu1 %v245_v17  ;;  %v181_v17 = vld [vmem:[%s1365_s3 + $0x20] sm:$0xff] }
  0xa1   :  { %v793_v29 = vpop.eup %677  ;;  %341 = vmatprep.subr.mxu1 %v308_v18  ;;  %v180_v18 = vld [vmem:[%s1365_s3 + $0x18] sm:$0xff] }
  0xa2   :  { %58 = vadd.xlane.f32.xlu1 %v793_v29  ;;  %342 = vmatpush2.msra.mxu1 %v307_v19  ;;  %v179_v19 = vld [vmem:[%s1365_s3 + $0x10] sm:$0xff] }
  0xa3   :  { %343 = vmatprep.subr.mxu1 %v306_v20  ;;  %v178_v20 = vld [vmem:[%s1365_s3 + $0x8] sm:$0xff] }
  0xa4   :  { %344 = vmatpush2.msra.mxu1 %v305_v21  ;;  %v177_v21 = vld [vmem:[%s1365_s3] sm:$0xff] }
  0xa5   :  { %v796_v30 = vpop.eup %679  ;;  %345 = vmatprep.subr.mxu1 %v304_v22  ;;  %v240_v22 = vld [vmem:[%s1365_s3 + $0x1f8] sm:$0xff] }
  0xa6   :  { %60 = vadd.xlane.f32.xlu1 %v796_v30  ;;  %346 = vmatpush2.msra.mxu1 %v303_v23  ;;  %v239_v23 = vld [vmem:[%s1365_s3 + $0x1f0] sm:$0xff] }
  0xa7   :  { %347 = vmatprep.subr.mxu1 %v302_v24  ;;  %v238_v24 = vld [vmem:[%s1365_s3 + $0x1e8] sm:$0xff] }
  0xa8   :  { %348 = vmatpush2.msra.mxu1 %v301_v25  ;;  %v237_v25 = vld [vmem:[%s1365_s3 + $0x1e0] sm:$0xff] }
  0xa9   :  { %349 = vmatprep.subr.mxu1 %v300_v26  ;;  %v236_v26 = vld [vmem:[%s1365_s3 + $0x1d8] sm:$0xff] }
  0xaa   :  { %350 = vmatpush2.msra.mxu1 %v299_v27  ;;  %v235_v27 = vld [vmem:[%s1365_s3 + $0x1d0] sm:$0xff] }
  0xab   :  { %351 = vmatprep.subr.mxu1 %v298_v28  ;;  %v234_v28 = vld [vmem:[%s1365_s3 + $0x1c8] sm:$0xff] }
  0xac   :  { %352 = vmatpush2.msra.mxu1 %v297_v31  ;;  %v233_v31 = vld [vmem:[%s1365_s3 + $0x1c0] sm:$0xff] }
  0xad   :  { %353 = vmatprep.subr.mxu1 %v296_v32  ;;  %v232_v32 = vld [vmem:[%s1365_s3 + $0x1b8] sm:$0xff] }
  0xae   :  { %354 = vmatpush2.msra.mxu1 %v295_v33  ;;  %v231_v33 = vld [vmem:[%s1365_s3 + $0x1b0] sm:$0xff] }
  0xaf   :  { %355 = vmatprep.subr.mxu1 %v294_v34  ;;  %v230_v34 = vld [vmem:[%s1365_s3 + $0x1a8] sm:$0xff] }
  0xb0   :  { %356 = vmatpush2.msra.mxu1 %v293_v35  ;;  %v229_v35 = vld [vmem:[%s1365_s3 + $0x1a0] sm:$0xff] }
  0xb1   :  { %357 = vmatprep.subr.mxu1 %v292_v36  ;;  %v228_v36 = vld [vmem:[%s1365_s3 + $0x198] sm:$0xff] }
  0xb2   :  { %358 = vmatpush2.msra.mxu1 %v291_v37  ;;  %v227_v37 = vld [vmem:[%s1365_s3 + $0x190] sm:$0xff] }
  0xb3   :  { %359 = vmatprep.subr.mxu1 %v290_v38  ;;  %v226_v38 = vld [vmem:[%s1365_s3 + $0x188] sm:$0xff] }
  0xb4   :  { %360 = vmatpush2.msra.mxu1 %v289_v39  ;;  %v225_v39 = vld [vmem:[%s1365_s3 + $0x180] sm:$0xff] }
  0xb5   :  { %361 = vmatprep.subr.mxu1 %v288_v41  ;;  %v224_v41 = vld [vmem:[%s1365_s3 + $0x178] sm:$0xff] }
  0xb6   :  { %362 = vmatpush2.msra.mxu1 %v287_v42  ;;  %v223_v42 = vld [vmem:[%s1365_s3 + $0x170] sm:$0xff] }
  0xb7   :  { %363 = vmatprep.subr.mxu1 %v286_v43  ;;  %v222_v43 = vld [vmem:[%s1365_s3 + $0x168] sm:$0xff] }
  0xb8   :  { %364 = vmatpush2.msra.mxu1 %v285_v44  ;;  %v221_v44 = vld [vmem:[%s1365_s3 + $0x160] sm:$0xff] }
  0xb9   :  { %365 = vmatprep.subr.mxu1 %v284_v45  ;;  %v220_v45 = vld [vmem:[%s1365_s3 + $0x158] sm:$0xff] }
  0xba   :  { %366 = vmatpush2.msra.mxu1 %v283_v46  ;;  %v219_v46 = vld [vmem:[%s1365_s3 + $0x150] sm:$0xff] }
  0xbb   :  { %367 = vmatprep.subr.mxu1 %v282_v47  ;;  %v218_v47 = vld [vmem:[%s1365_s3 + $0x148] sm:$0xff] }
  0xbc   :  { %368 = vmatpush2.msra.mxu1 %v281_v48  ;;  %v217_v48 = vld [vmem:[%s1365_s3 + $0x140] sm:$0xff] }
  0xbd   :  { %369 = vmatprep.subr.mxu1 %v280_v49  ;;  %v216_v49 = vld [vmem:[%s1365_s3 + $0x138] sm:$0xff] }
  0xbe   :  { %370 = vmatpush2.msra.mxu1 %v279_v50  ;;  %v215_v50 = vld [vmem:[%s1365_s3 + $0x130] sm:$0xff] }
 0x12b   :  { %v59_v51 = vpop.xlane.xlu1 %58 }
 0x12c   :  { %681 = vrcp.f32 %v59_v51  ;;  %v214_v51 = vld [vmem:[%s1365_s3 + $0x128] sm:$0xff] }
 0x12f   :  { %v61_v52 = vpop.xlane.xlu1 %60 }
 0x130   :  { %683 = vrcp.f32 %v61_v52  ;;  %v213_v52 = vld [vmem:[%s1365_s3 + $0x120] sm:$0xff] }
 0x139   :  { %v682_v53 = vpop.eup %681 }
 0x13a   :  { %v66_v54 = vmul.f32 %v682_v53, %v793_v29  ;;  %v204_v29 = vld [vmem:[%s1365_s3 + $0xd8] sm:$0xff]  ;;  %v278_v53 = vld [vmem:[%s1364_s4 + $0x108] sm:$0xff] }
 0x13b   :  { %371 = vmatprep.subr.mxu1 %v278_v53 }
 0x13c   :  { %165 = vmatmul.mubr.f32.vlgmr.msra.gmra.mxu0 %v66_v54  ;;  %v212_v54 = vld [vmem:[%s1365_s3 + $0x118] sm:$0xff] }
 0x13d   :  { %v684_v58 = vpop.eup %683  ;;  %170 = vmatprep.mubr.f32.mxu0 %v685_v40  ;;  %387 = vmatpush1.msra.mxu0 %v207_v55  ;;  %v201_v40 = vld [vmem:[%s1365_s3 + $0xc0] sm:$0xff] }
 0x13e   :  { %v67_v59 = vmul.f32 %v684_v58, %v796_v30  ;;  %388 = vmatprep.subr.mxu0 %v206_v56  ;;  %v200_v30 = vld [vmem:[%s1365_s3 + $0xb8] sm:$0xff]  ;;  %v277_v55 = vld [vmem:[%s1364_s4 + $0x100] sm:$0xff]  ;;  %v242_v56 = vld [vmem:[%s1366_s1 + $0x8] sm:$0xff] }
 0x13f   :  { %389 = vmatpush1.msra.mxu0 %v205_v57  ;;  %v211_v57 = vld [vmem:[%s1365_s3 + $0x110] sm:$0xff]  ;;  %372 = vmatpush2.msra.mxu1 %v277_v55  ;;  %v241_v58 = vld [vmem:[%s1366_s1] sm:$0xff] }
 0x140   :  { %171 = vmatmul.mubr.f32.gmra.mxu0 %v67_v59  ;;  %390 = vmatprep.subr.mxu0 %v204_v29  ;;  %v210_v29 = vld [vmem:[%s1365_s3 + $0x108] sm:$0xff]  ;;  %v209_v59 = vld [vmem:[%s1365_s3 + $0x100] sm:$0xff] }
 0x141   :  { %391 = vmatpush1.msra.mxu0 %v203_v60  ;;  %373 = vmatprep.mubr.f32.mxu1 %v242_v56  ;;  %v244_v60 = vld [vmem:[%s1366_s1 + $0x18] sm:$0xff] }
 0x142   :  { %392 = vmatprep.subr.mxu0 %v202_v61  ;;  %374 = vmatmul.mubr.f32.vlgmr.msra.gmra.mxu1 %v241_v58  ;;  %v243_v61 = vld [vmem:[%s1366_s1 + $0x10] sm:$0xff] }
 0x143   :  { %393 = vmatpush1.msra.mxu0 %v201_v40  ;;  %379 = vmatprep.mubr.f32.mxu1 %v244_v60  ;;  %v514_v40 = vld [vmem:[%s1367_s6 + $0xf8] sm:$0xff]  ;;  %v15_v60 = vstv %s1369_s9 }
 0x144   :  { %394 = vmatprep.subr.mxu0 %v200_v30  ;;  %v498_v30 = vld [vmem:[%s1367_s6 + $0x78] sm:$0xff]  ;;  %638 = vmatprep.subr.mxu1 %v514_v40  ;;  %16 = vst [vmem:[#allocation2] sm:$0x1] %v15_v60  ;;  %v631_v40 = vld [vmem:[%s1370_s7] ss:$0 sm:$0xff] }
 0x145   :  { %395 = vmatpush1.msra.mxu0 %v199_v62  ;;  %v513_v62 = vld [vmem:[%s1367_s6 + $0xf0] sm:$0xff]  ;;  %639 = vmatpush3.msra.mxu1 %v498_v30 }
 0x146   :  { %396 = vmatprep.subr.mxu0 %v198_v63  ;;  %380 = vmatmul.mubr.f32.gmra.mxu1 %v243_v61  ;;  %v497_v63 = vld [vmem:[%s1367_s6 + $0x70] sm:$0xff] }
 0x147   :  { %397 = vmatpush1.msra.mxu0 %v197_v1  ;;  %v512_v1 = vld [vmem:[%s1367_s6 + $0xe8] sm:$0xff]  ;;  %640 = vmatprep.subr.mxu1 %v513_v62 }
 0x148   :  { %398 = vmatprep.subr.mxu0 %v196_v2  ;;  %v496_v2 = vld [vmem:[%s1367_s6 + $0x68] sm:$0xff]  ;;  %641 = vmatpush3.msra.mxu1 %v497_v63 }
 0x149   :  { %399 = vmatpush1.msra.mxu0 %v195_v3  ;;  %v511_v3 = vld [vmem:[%s1367_s6 + $0xe0] sm:$0xff]  ;;  %642 = vmatprep.subr.mxu1 %v512_v1 }
 0x14a   :  { %400 = vmatprep.subr.mxu0 %v194_v4  ;;  %v495_v4 = vld [vmem:[%s1367_s6 + $0x60] sm:$0xff]  ;;  %643 = vmatpush3.msra.mxu1 %v496_v2 }
 0x14b   :  { %401 = vmatpush1.msra.mxu0 %v193_v5  ;;  %v510_v5 = vld [vmem:[%s1367_s6 + $0xd8] sm:$0xff]  ;;  %644 = vmatprep.subr.mxu1 %v511_v3  ;;  %v632_v3 = vld [vmem:[%s1371_s8] ss:$0 sm:$0xff] }
 0x14c   :  { %402 = vmatprep.subr.mxu0 %v192_v6  ;;  %v494_v6 = vld [vmem:[%s1367_s6 + $0x58] sm:$0xff]  ;;  %645 = vmatpush3.msra.mxu1 %v495_v4 }
 0x14d   :  { %403 = vmatpush1.msra.mxu0 %v191_v7  ;;  %v509_v7 = vld [vmem:[%s1367_s6 + $0xd0] sm:$0xff]  ;;  %646 = vmatprep.subr.mxu1 %v510_v5 }
 0x14e   :  { %404 = vmatprep.subr.mxu0 %v190_v8  ;;  %v493_v8 = vld [vmem:[%s1367_s6 + $0x50] sm:$0xff]  ;;  %647 = vmatpush3.msra.mxu1 %v494_v6 }
 0x14f   :  { %405 = vmatpush1.msra.mxu0 %v189_v9  ;;  %v508_v9 = vld [vmem:[%s1367_s6 + $0xc8] sm:$0xff]  ;;  %648 = vmatprep.subr.mxu1 %v509_v7 }
 0x150   :  { %406 = vmatprep.subr.mxu0 %v188_v10  ;;  %v492_v10 = vld [vmem:[%s1367_s6 + $0x48] sm:$0xff]  ;;  %649 = vmatpush3.msra.mxu1 %v493_v8 }
 0x151   :  { %407 = vmatpush1.msra.mxu0 %v187_v11  ;;  %v507_v11 = vld [vmem:[%s1367_s6 + $0xc0] sm:$0xff]  ;;  %650 = vmatprep.subr.mxu1 %v508_v9 }
 0x152   :  { %408 = vmatprep.subr.mxu0 %v186_v12  ;;  %v491_v12 = vld [vmem:[%s1367_s6 + $0x40] sm:$0xff]  ;;  %651 = vmatpush3.msra.mxu1 %v492_v10 }
 0x153   :  { %409 = vmatpush1.msra.mxu0 %v185_v13  ;;  %v506_v13 = vld [vmem:[%s1367_s6 + $0xb8] sm:$0xff]  ;;  %652 = vmatprep.subr.mxu1 %v507_v11 }
 0x154   :  { %410 = vmatprep.subr.mxu0 %v184_v14  ;;  %v490_v14 = vld [vmem:[%s1367_s6 + $0x38] sm:$0xff]  ;;  %653 = vmatpush3.msra.mxu1 %v491_v12  ;;  %v633_v12 = vld [vmem:[#allocation2] ss:$0 sm:$0xff] }
 0x155   :  { %411 = vmatpush1.msra.mxu0 %v183_v15  ;;  %v505_v15 = vld [vmem:[%s1367_s6 + $0xb0] sm:$0xff]  ;;  %654 = vmatprep.subr.mxu1 %v506_v13 }
 0x156   :  { %412 = vmatprep.subr.mxu0 %v182_v16  ;;  %v489_v16 = vld [vmem:[%s1367_s6 + $0x30] sm:$0xff]  ;;  %655 = vmatpush3.msra.mxu1 %v490_v14 }
 0x157   :  { %413 = vmatpush1.msra.mxu0 %v181_v17  ;;  %656 = vmatprep.subr.mxu1 %v505_v15  ;;  %v504_v17 = vld [vmem:[%s1367_s6 + $0xa8] sm:$0xff] }
 0x158   :  { %414 = vmatprep.subr.mxu0 %v180_v18  ;;  %657 = vmatpush3.msra.mxu1 %v489_v16  ;;  %v488_v18 = vld [vmem:[%s1367_s6 + $0x28] sm:$0xff] }
 0x159   :  { %415 = vmatpush1.msra.mxu0 %v179_v19  ;;  %658 = vmatprep.subr.mxu1 %v504_v17 }
 0x15a   :  { %416 = vmatprep.subr.mxu0 %v178_v20  ;;  %659 = vmatpush3.msra.mxu1 %v488_v18 }
 0x15b   :  { %417 = vmatpush1.msra.mxu0 %v177_v21 }
 0x15c   :  { %418 = vmatprep.subr.mxu0 %v240_v22 }
 0x15d   :  { %419 = vmatpush2.msra.mxu0 %v239_v23  ;;  %v503_v23 = vld [vmem:[%s1367_s6 + $0xa0] sm:$0xff] }
 0x15e   :  { %420 = vmatprep.subr.mxu0 %v238_v24  ;;  %660 = vmatprep.subr.mxu1 %v503_v23  ;;  %v487_v24 = vld [vmem:[%s1367_s6 + $0x20] sm:$0xff] }
 0x15f   :  { %421 = vmatpush2.msra.mxu0 %v237_v25  ;;  %661 = vmatpush3.msra.mxu1 %v487_v24  ;;  %v502_v25 = vld [vmem:[%s1367_s6 + $0x98] sm:$0xff] }
 0x160   :  { %422 = vmatprep.subr.mxu0 %v236_v26  ;;  %662 = vmatprep.subr.mxu1 %v502_v25  ;;  %v486_v26 = vld [vmem:[%s1367_s6 + $0x18] sm:$0xff] }
 0x161   :  { %423 = vmatpush2.msra.mxu0 %v235_v27  ;;  %663 = vmatpush3.msra.mxu1 %v486_v26  ;;  %v501_v27 = vld [vmem:[%s1367_s6 + $0x90] sm:$0xff] }
 0x162   :  { %424 = vmatprep.subr.mxu0 %v234_v28  ;;  %664 = vmatprep.subr.mxu1 %v501_v27  ;;  %v485_v28 = vld [vmem:[%s1367_s6 + $0x10] sm:$0xff] }
 0x163   :  { %425 = vmatpush2.msra.mxu0 %v233_v31  ;;  %665 = vmatpush3.msra.mxu1 %v485_v28  ;;  %v500_v31 = vld [vmem:[%s1367_s6 + $0x88] sm:$0xff] }
 0x164   :  { %426 = vmatprep.subr.mxu0 %v232_v32  ;;  %666 = vmatprep.subr.mxu1 %v500_v31  ;;  %v484_v32 = vld [vmem:[%s1367_s6 + $0x8] sm:$0xff] }
 0x165   :  { %427 = vmatpush2.msra.mxu0 %v231_v33  ;;  %667 = vmatpush3.msra.mxu1 %v484_v32  ;;  %v499_v33 = vld [vmem:[%s1367_s6 + $0x80] sm:$0xff] }
 0x166   :  { %428 = vmatprep.subr.mxu0 %v230_v34  ;;  %668 = vmatprep.subr.mxu1 %v499_v33  ;;  %v483_v34 = vld [vmem:[%s1367_s6] sm:$0xff] }
 0x167   :  { %429 = vmatpush2.msra.mxu0 %v229_v35  ;;  %669 = vmatpush3.msra.mxu1 %v483_v34  ;;  %v466_v35 = vshrl.u32 %v41_v0, 7 }
 0x168   :  { %430 = vmatprep.subr.mxu0 %v228_v36 }
 0x169   :  { %431 = vmatpush2.msra.mxu0 %v227_v37  ;;  %v467_v37 = vsub.s32 0, %v466_v35 }
 0x16a   :  { %432 = vmatprep.subr.mxu0 %v226_v38  ;;  %v463_v38 = vld [vmem:[%s1368_s5] sm:$0x3] }
 0x16b   :  { %433 = vmatpush2.msra.mxu0 %v225_v39  ;;  %v471_v39 = vsub.s32 1, %v466_v35 }
 0x16c   :  { %434 = vmatprep.subr.mxu0 %v224_v41 }
 0x16d   :  { %435 = vmatpush2.msra.mxu0 %v223_v42 }
 0x16e   :  { %436 = vmatprep.subr.mxu0 %v222_v43  ;;  %v468_v43 = vrot.slane %v463_v38, %v467_v37 }
 0x16f   :  { %437 = vmatpush2.msra.mxu0 %v221_v44 }
 0x170   :  { %438 = vmatprep.subr.mxu0 %v220_v45  ;;  %v472_v45 = vrot.slane %v463_v38, %v471_v39 }
 0x171   :  { %439 = vmatpush2.msra.mxu0 %v219_v46 }
 0x172   :  { %440 = vmatprep.subr.mxu0 %v218_v47 }
 0x173   :  { %441 = vmatpush2.msra.mxu0 %v217_v48 }
 0x174   :  { %442 = vmatprep.subr.mxu0 %v216_v49 }
 0x175   :  { %443 = vmatpush2.msra.mxu0 %v215_v50 }
 0x176   :  { %444 = vmatprep.subr.mxu0 %v214_v51 }
 0x177   :  { %445 = vmatpush2.msra.mxu0 %v213_v52 }
 0x178   :  { %446 = vmatprep.subr.mxu0 %v212_v54 }
 0x179   :  { %447 = vmatpush2.msra.mxu0 %v211_v57 }
 0x17a   :  { %448 = vmatprep.subr.mxu0 %v210_v29 }
 0x17b   :  { %449 = vmatpush2.msra.mxu0 %v209_v59 }
 0x1fc   :  { %v166_v19 = vpop.f32.mrf.mxu0 }
 0x1fe   :  { %v168_v20 = vpop.f32.mrf.mxu0 }
 0x1ff   :  { %450 = vmatprep.mubr.f32.mxu0 %v168_v20 }
 0x200   :  { %v172_v21 = vpop.f32.mrf.mxu0  ;;  %451 = vmatmul.mubr.f32.vlgmr.msra.gmra.mxu0 %v166_v19 }
 0x202   :  { %v174_v22 = vpop.f32.mrf.mxu0  ;;  %v375_v36 = vpop.f32.mrf.mxu1 }
 0x203   :  { %456 = vmatprep.mubr.f32.mxu0 %v174_v22 }
 0x204   :  { %457 = vmatmul.mubr.f32.gmra.mxu0 %v172_v21  ;;  %v377_v41 = vpop.f32.mrf.mxu1 }
 0x206   :  { %v381_v46 = vpop.f32.mrf.mxu1 }
 0x208   :  { %v383_v0 = vpop.f32.mrf.mxu1 }
 0x2c0   :  { %v452_v42 = vpop.f32.mrf.mxu0 }
 0x2c1   :  { %v453_v44 = vadd.f32 %v452_v42, %v375_v36 }
 0x2c2   :  { %v454_v47 = vpop.f32.mrf.mxu0 }
 0x2c3   :  { %v455_v48 = vadd.f32 %v454_v47, %v377_v41  ;;  %v475_v49 = vadd.f32 %v468_v43, %v453_v44 }
 0x2c4   :  { %v458_v50 = vpop.f32.mrf.mxu0 }
 0x2c5   :  { %v476_v51 = vadd.f32 %v472_v45, %v455_v48  ;;  %v459_v52 = vadd.f32 %v458_v50, %v381_v46  ;;  %v479_v56 = vmax.f32 %v475_v49, 0.0 }
 0x2c6   :  { %v460_v53 = vpop.f32.mrf.mxu0 }
 0x2c7   :  { %v480_v54 = vmax.f32 %v476_v51, 0.0  ;;  %v461_v55 = vadd.f32 %v460_v53, %v383_v0  ;;  %v477_v57 = vadd.f32 %v468_v43, %v459_v52 }
 0x2c9   :  { %v478_v58 = vadd.f32 %v472_v45, %v461_v55  ;;  %586 = vmatprep.mubr.f32.mxu1 %v480_v54  ;;  %v481_v59 = vmax.f32 %v477_v57, 0.0 }
 0x2ca   :  { %587 = vmatmul.mubr.f32.vlgmr.msra.gmra.mxu1 %v479_v56 }
 0x2cb   :  { %v482_v29 = vmax.f32 %v478_v58, 0.0 }
 0x2cd   :  { %591 = vmatprep.mubr.f32.mxu1 %v482_v29 }
 0x2ce   :  { %592 = vmatmul.mubr.f32.gmra.mxu1 %v481_v59 }
 0x38a   :  { %v670_v61 = vpop.f32.mrf.mxu1 }
 0x38c   :  { %v671_v30 = vpop.f32.mrf.mxu1 }
 0x38d   :  { %v672_v62 = vadd.f32 %v671_v30, %v670_v61 }
 0x38e   :  { %v673_v63 = vpop.f32.mrf.mxu1 }
 0x38f   :  { %v589_v1 = vadd.f32 %v672_v62, %v631_v40 }
 0x390   :  { %v674_v2 = vpop.f32.mrf.mxu1 }
 0x391   :  { %v597_v4 = vmax.f32 %v589_v1, 0.0  ;;  %v675_v5 = vadd.f32 %v674_v2, %v673_v63 }
 0x393   :  { %v594_v6 = vadd.f32 %v675_v5, %v631_v40  ;;  %v606_v7 = vmul.f32 %v632_v3, %v597_v4 }
 0x395   :  { %v598_v8 = vmax.f32 %v594_v6, 0.0  ;;  %v609_v9 = vsel %vm608_vm1, %v606_v7, 0.0 }
 0x396   :  { %610 = vadd.xlane.f32.xlu0 %v609_v9 }
 0x397   :  { %v607_v10 = vmul.f32 %v632_v3, %v598_v8 }
 0x399   :  { %v612_v11 = vsel %vm608_vm1, %v607_v10, 0.0 }
 0x39a   :  { %613 = vadd.xlane.f32.xlu1 %v612_v11 }
 0x41f   :  { %v611_v13 = vpop.xlane.xlu0 %610 }
 0x420   :  { %v622_v14 = vadd.f32 %v633_v12, %v611_v13 }
 0x422   :  { %625 = vst.msk [vmem:[%s1372_s10] sm:$0xff] %vm624_vm2, %v622_v14 }
 0x423   :  { %v614_v15 = vpop.xlane.xlu1 %613 }
 0x424   :  { %v623_v16 = vadd.f32 %v633_v12, %v614_v15 }
 0x426   :  { %626 = vst.msk [vmem:[%s1372_s10 + $0x8] sm:$0xff] %vm624_vm2, %v623_v16 }

</bundles_post_ra>
